<compile_context>
chip_gen: v7x
topology: tpu7x:2x2x1
jax: 0.10.0
libtpu: 0.0.40
codegen_flags: <defaults>
</compile_context>

<pallas_src>
import functools

import jax
import jax.numpy as jnp
import numpy as np
from jax.experimental import pallas as pl
from jax.experimental.pallas import tpu as pltpu


_MAX_TM = 512                      # cap on the M tile (rows of the patch matrix)
_MIN_ROWS_FOR_SPLIT = 256          # split M in two when it fits one block (v7x 2 TCs)
_VMEM_TILE_BUDGET = 32 * 1024 * 1024   # tile-plan budget, sized for v7x's 64 MiB VMEM
_VMEM_LIMIT_BYTES = 48 * 1024 * 1024   # scoped limit handed to Mosaic (< v7x physical)


def _round_up(x, m):
    return (x + m - 1) // m * m


def _fused_working_set_bytes(tm, k, n):
    """Double-buffered bf16 x/w/out tiles + f32 bias."""
    return 2 * (tm * k * 2 + k * n * 2 + tm * n * 2) + 2 * n * 4


# ----------------------------- Pallas kernels -----------------------------

def _gemm_fused_kernel(x_ref, w_ref, b_ref, o_ref, *, relu):
    """Single-K-step GEMM: out = relu(x @ w + b). f32 accumulation on the MXU, no
    accumulator scratch, bias/ReLU fused in the same grid step."""
    acc = jnp.dot(x_ref[...], w_ref[...], preferred_element_type=jnp.float32)
    acc = acc + b_ref[...]
    if relu:
        acc = jnp.maximum(acc, 0.0)
    o_ref[...] = acc.astype(o_ref.dtype)


def _gemm_acc_kernel(x_ref, w_ref, b_ref, o_ref, acc_ref, *, relu):
    """K-tiled fallback (grid = (M blocks, K blocks)); not hit by AlexNet shapes."""
    @pl.when(pl.program_id(1) == 0)
    def _():
        acc_ref[...] = jnp.zeros_like(acc_ref)

    acc_ref[...] += jnp.dot(
        x_ref[...], w_ref[...], preferred_element_type=jnp.float32
    )

    @pl.when(pl.program_id(1) == pl.num_programs(1) - 1)
    def _():
        acc = acc_ref[...] + b_ref[...]
        if relu:
            acc = jnp.maximum(acc, 0.0)
        o_ref[...] = acc.astype(o_ref.dtype)


# ----------------------------- kernel wrapper -----------------------------

def _gemm_bias_act(x2d, w2d, b2d, relu):
    """(x2d @ w2d + b) with optional ReLU.

    x2d: (M, K)  bf16 im2col patch matrix (K = kh*kw*Cin, unpadded).
    w2d: (K, N)  bf16 weights (unpadded).
    b2d: (1, N)  f32 bias.
    Returns (M, N) bf16.
    """
    M, K = x2d.shape
    Kw, N = w2d.shape
    assert Kw == K, (Kw, K)

    # --- M tiling: minimize padding; give v7x's two TensorCores >=2 parallel blocks.
    nblk_m = max(1, pl.cdiv(M, _MAX_TM))
    if nblk_m == 1 and M >= _MIN_ROWS_FOR_SPLIT:
        nblk_m = 2
    if nblk_m == 1:
        tm = M                                   # full-dim block: no padding at all
    else:
        tm = _round_up(pl.cdiv(M, nblk_m), 8)    # ragged edge handled by the grid

    flops = 2 * M * K * N
    bytes_accessed = (M * K + K * N + M * N) * 2 + N * 4

    if _fused_working_set_bytes(tm, K, N) <= _VMEM_TILE_BUDGET:
        # ---- main path: single K step, bias+ReLU fused, no accumulator scratch ----
        grid_m = pl.cdiv(M, tm)
        return pl.pallas_call(
            functools.partial(_gemm_fused_kernel, relu=relu),
            out_shape=jax.ShapeDtypeStruct((M, N), jnp.bfloat16),
            grid=(grid_m,),
            in_specs=[
                pl.BlockSpec((tm, K), lambda i: (i, 0)),
                pl.BlockSpec((K, N), lambda i: (0, 0)),   # weights stay VMEM-resident
                pl.BlockSpec((1, N), lambda i: (0, 0)),
            ],
            out_specs=pl.BlockSpec((tm, N), lambda i: (i, 0)),
            compiler_params=pltpu.CompilerParams(
                dimension_semantics=("parallel",),
                vmem_limit_bytes=_VMEM_LIMIT_BYTES,
            ),
            cost_estimate=pl.CostEstimate(
                flops=flops, transcendentals=0, bytes_accessed=bytes_accessed
            ),
        )(x2d, w2d, b2d)

    # ---- fallback: K too large for one step -> K-tiled accumulator GEMM ----
    tk = 2048
    while tk > 128 and (
        _fused_working_set_bytes(tm, tk, N) + tm * N * 4 > _VMEM_TILE_BUDGET
    ):
        tk //= 2
    Kp = _round_up(K, tk)
    xp = jnp.pad(x2d, ((0, 0), (0, Kp - K))) if Kp != K else x2d
    wp = jnp.pad(w2d, ((0, Kp - K), (0, 0))) if Kp != K else w2d
    return pl.pallas_call(
        functools.partial(_gemm_acc_kernel, relu=relu),
        out_shape=jax.ShapeDtypeStruct((M, N), jnp.bfloat16),
        grid=(pl.cdiv(M, tm), Kp // tk),
        in_specs=[
            pl.BlockSpec((tm, tk), lambda i, k: (i, k)),
            pl.BlockSpec((tk, N), lambda i, k: (k, 0)),
            pl.BlockSpec((1, N), lambda i, k: (0, 0)),
        ],
        out_specs=pl.BlockSpec((tm, N), lambda i, k: (i, 0)),
        scratch_shapes=[pltpu.VMEM((tm, N), jnp.float32)],
        compiler_params=pltpu.CompilerParams(
            dimension_semantics=("parallel", "arbitrary"),
            vmem_limit_bytes=_VMEM_LIMIT_BYTES,
        ),
        cost_estimate=pl.CostEstimate(
            flops=flops, transcendentals=0, bytes_accessed=bytes_accessed
        ),
    )(xp, wp, b2d)


# ----------------------------- im2col / conv / pool -----------------------------

def _im2col(x, kh, kw, stride, padding):
    """x: NHWC -> (N*Ho*Wo, kh*kw*C) patch matrix (XLA glue only; no compute).

    TODO(synk): this materializes the activation kh*kw times through HBM; fold the taps
    into the GEMM via manual DMA on a pl.ANY NHWC ref for v5e/v6e bandwidth."""
    x = jnp.pad(x, ((0, 0), (padding, padding), (padding, padding), (0, 0)))
    N, H, W, C = x.shape
    Ho = (H - kh) // stride + 1
    Wo = (W - kw) // stride + 1
    cols = []
    for dh in range(kh):
        for dw in range(kw):
            sl = jax.lax.slice(
                x,
                (0, dh, dw, 0),
                (N, dh + (Ho - 1) * stride + 1, dw + (Wo - 1) * stride + 1, C),
                (1, stride, stride, 1),
            )
            cols.append(sl)  # (N, Ho, Wo, C)
    patches = jnp.stack(cols, axis=3)  # (N, Ho, Wo, kh*kw, C)
    return patches.reshape(N * Ho * Wo, kh * kw * C), (N, Ho, Wo)


def conv2d_pallas(x, w2d, b2d, *, kh, kw, stride, padding, relu):
    """x: NHWC bf16 with its real channel count; w2d/b2d from prepare_params."""
    cin = x.shape[-1]
    assert w2d.shape[0] == kh * kw * cin, (w2d.shape, kh, kw, cin)
    cols, (n, ho, wo) = _im2col(x, kh, kw, stride, padding)
    out2d = _gemm_bias_act(cols, w2d, b2d, relu)
    return out2d.reshape(n, ho, wo, w2d.shape[1])


def maxpool2d(x, *, k, stride):
    """NHWC max-pool as a fused pairwise max over strided slices (trivial VPU work;
    left to XLA fusion per the perf review)."""
    N, H, W, C = x.shape
    Ho = (H - k) // stride + 1
    Wo = (W - k) // stride + 1
    out = None
    for dh in range(k):
        for dw in range(k):
            sl = jax.lax.slice(
                x,
                (0, dh, dw, 0),
                (N, dh + (Ho - 1) * stride + 1, dw + (Wo - 1) * stride + 1, C),
                (1, stride, stride, 1),
            )
            out = sl if out is None else jnp.maximum(out, sl)
    return out


# ----------------------------- weight prep (hoisted out of forward) -----------------------------

def prepare_params(params):
    """One-time transform of PyTorch-layout OIHW weights into bf16 GEMM operands.

    No channel/K padding anywhere: layer i weight becomes (KH*KW*Cin, Cout) exactly,
    matching the unpadded im2col column layout (tap-major, channel-minor)."""
    weights = []
    for idx in range(1, 6):
        w = params[f"w{idx}"]
        b = params[f"b{idx}"]
        cout, cin, kh, kw = w.shape
        w2d = (
            jnp.transpose(w, (2, 3, 1, 0))          # OIHW -> (KH, KW, Cin, Cout)
            .reshape(kh * kw * cin, cout)
            .astype(jnp.bfloat16)
        )
        b2d = b.astype(jnp.float32).reshape(1, cout)
        weights.append((w2d, b2d))
    return weights


# ----------------------------- model -----------------------------

def new_alexnet_forward(x_nchw, weights):
    """Equivalent of new_alexnet(output_layer=None, layer_n=11).forward on NCHW input."""
    (w1, b1), (w2, b2), (w3, b3), (w4, b4), (w5, b5) = weights
    x = jnp.transpose(x_nchw, (0, 2, 3, 1)).astype(jnp.bfloat16)  # NCHW -> NHWC, bf16
    x = conv2d_pallas(x, w1, b1, kh=11, kw=11, stride=4, padding=2, relu=True)
    x = maxpool2d(x, k=3, stride=2)
    x = conv2d_pallas(x, w2, b2, kh=5, kw=5, stride=1, padding=2, relu=True)
    x = maxpool2d(x, k=3, stride=2)
    x = conv2d_pallas(x, w3, b3, kh=3, kw=3, stride=1, padding=1, relu=True)
    x = conv2d_pallas(x, w4, b4, kh=3, kw=3, stride=1, padding=1, relu=True)
    x = conv2d_pallas(x, w5, b5, kh=3, kw=3, stride=1, padding=1, relu=False)
    return jnp.transpose(x, (0, 3, 1, 2)).astype(jnp.float32)  # back to NCHW


def init_params(key):
    # TODO(synk): torchvision pretrained weights are not loadable here; deterministic
    # random init with the exact AlexNet shapes instead.
    cfgs = [(64, 3, 11), (192, 64, 5), (384, 192, 3), (256, 384, 3), (256, 256, 3)]
    params = {}
    for idx, (co, ci, k) in enumerate(cfgs, start=1):
        key, kw_, kb_ = jax.random.split(key, 3)
        fan_in = ci * k * k
        params[f"w{idx}"] = (
            jax.random.normal(kw_, (co, ci, k, k), jnp.float32) / np.sqrt(fan_in)
        )
        params[f"b{idx}"] = jax.random.normal(kb_, (co,), jnp.float32) * 0.01
    return params


# ----------------------------- pure-JAX reference -----------------------------

def reference_forward(x, params):
    def conv(x, w, b, stride, pad):
        y = jax.lax.conv_general_dilated(
            x, w, (stride, stride), ((pad, pad), (pad, pad)),
            dimension_numbers=("NCHW", "OIHW", "NCHW"),
            precision=jax.lax.Precision.HIGHEST,
        )
        return y + b[None, :, None, None]

    def pool(x, k, s):
        return jax.lax.reduce_window(
            x, -jnp.inf, jax.lax.max, (1, 1, k, k), (1, 1, s, s), "VALID"
        )

    x = jax.nn.relu(conv(x, params["w1"], params["b1"], 4, 2))
    x = pool(x, 3, 2)
    x = jax.nn.relu(conv(x, params["w2"], params["b2"], 1, 2))
    x = pool(x, 3, 2)
    x = jax.nn.relu(conv(x, params["w3"], params["b3"], 1, 1))
    x = jax.nn.relu(conv(x, params["w4"], params["b4"], 1, 1))
    x = conv(x, params["w5"], params["b5"], 1, 1)
    return x


if __name__ == "__main__":
    key = jax.random.PRNGKey(0)
    kx, kp = jax.random.split(key)
    # Small NCHW input (PyTorch convention). 64x64 -> final feature map (2, 256, 3, 3).
    x = jax.random.normal(kx, (2, 3, 64, 64), jnp.float32)
    params = init_params(kp)
    weights = prepare_params(params)  # one-time weight transpose/cast, hoisted out of forward

    out = jax.jit(new_alexnet_forward)(x, weights)
    out = jax.block_until_ready(out)
    assert out.shape == (2, 256, 3, 3), out.shape

    ref = jax.block_until_ready(reference_forward(x, params))
    np.testing.assert_allclose(np.asarray(out), np.asarray(ref), rtol=5e-2, atol=5e-2)

    print("KERNEL_OK")
</pallas_src>

<mosaic_0001>
module attributes {stable_mosaic.version = 11 : i64} {
  func.func @_gemm_fused_kernel(%arg0: i32, %arg1: memref<232x363xbf16, #tpu.memory_space<vmem>>, %arg2: memref<363x64xbf16, #tpu.memory_space<vmem>>, %arg3: memref<1x64xf32, #tpu.memory_space<vmem>>, %arg4: memref<232x64xbf16, #tpu.memory_space<vmem>>) attributes {dimension_semantics = [#tpu.dimension_semantics<parallel>], iteration_bounds = array<i64: 2>, scalar_prefetch = 0 : i64, scratch_operands = 0 : i64, tpu.core_type = #tpu.core_type<tc>, window_params = [{transform_indices = @transform_0, window_bounds = array<i64: 232, 363>}, {pipeline_mode = #tpu.pipeline_mode<synchronous>, transform_indices = @transform_1, window_bounds = array<i64: 363, 64>}, {pipeline_mode = #tpu.pipeline_mode<synchronous>, transform_indices = @transform_2, window_bounds = array<i64: 1, 64>}, {transform_indices = @transform_3, window_bounds = array<i64: 232, 64>}]} {
    %c0 = arith.constant 0 : index
    %c0_0 = arith.constant 0 : index
    %0 = vector.load %arg1[%c0, %c0_0] : memref<232x363xbf16, #tpu.memory_space<vmem>>, vector<232x363xbf16>
    %c0_1 = arith.constant 0 : index
    %c0_2 = arith.constant 0 : index
    %1 = vector.load %arg2[%c0_1, %c0_2] : memref<363x64xbf16, #tpu.memory_space<vmem>>, vector<363x64xbf16>
    %cst = arith.constant dense<0.000000e+00> : vector<232x64xf32>
    %2 = tpu.matmul %0, %1, %cst {dimension_numbers = #tpu.dot_dimension_numbers<[1], [0], [0], [1], [0, 0, 1, 1], [], []>} : vector<232x363xbf16>, vector<363x64xbf16>, vector<232x64xf32> -> vector<232x64xf32>
    %c0_3 = arith.constant 0 : index
    %c0_4 = arith.constant 0 : index
    %3 = vector.load %arg3[%c0_3, %c0_4] : memref<1x64xf32, #tpu.memory_space<vmem>>, vector<1x64xf32>
    %4 = vector.broadcast %3 : vector<1x64xf32> to vector<232x64xf32>
    %5 = arith.addf %2, %4 : vector<232x64xf32>
    %cst_5 = arith.constant 0.000000e+00 : f32
    %6 = vector.broadcast %cst_5 : f32 to vector<232x64xf32>
    %7 = arith.maximumf %5, %6 : vector<232x64xf32>
    %8 = arith.truncf %7 : vector<232x64xf32> to vector<232x64xbf16>
    %c0_6 = arith.constant 0 : index
    %c0_7 = arith.constant 0 : index
    %9 = vector.load %arg4[%c0_6, %c0_7] : memref<232x64xbf16, #tpu.memory_space<vmem>>, vector<232x64xbf16>
    tpu.vector_store %arg4[%c0_6, %c0_7], %8 {strides = array<i32>} : memref<232x64xbf16, #tpu.memory_space<vmem>>, vector<232x64xbf16>,
    return
  }
  func.func @transform_0(%arg0: i32) -> (i32, i32) {
    %c0_i32 = arith.constant 0 : i32
    %c0_i32_0 = arith.constant 0 : i32
    return %arg0, %c0_i32 : i32, i32
  }
  func.func @transform_1(%arg0: i32) -> (i32, i32) {
    %c0_i32 = arith.constant 0 : i32
    %c0_i32_0 = arith.constant 0 : i32
    %c0_i32_1 = arith.constant 0 : i32
    return %c0_i32, %c0_i32_0 : i32, i32
  }
  func.func @transform_2(%arg0: i32) -> (i32, i32) {
    %c0_i32 = arith.constant 0 : i32
    %c0_i32_0 = arith.constant 0 : i32
    %c0_i32_1 = arith.constant 0 : i32
    return %c0_i32, %c0_i32_0 : i32, i32
  }
  func.func @transform_3(%arg0: i32) -> (i32, i32) {
    %c0_i32 = arith.constant 0 : i32
    %c0_i32_0 = arith.constant 0 : i32
    return %arg0, %c0_i32 : i32, i32
  }
}

module attributes {stable_mosaic.version = 11 : i64} {
  func.func @_gemm_fused_kernel(%arg0: i32, %arg1: memref<98x1600xbf16, #tpu.memory_space<vmem>>, %arg2: memref<1600x192xbf16, #tpu.memory_space<vmem>>, %arg3: memref<1x192xf32, #tpu.memory_space<vmem>>, %arg4: memref<98x192xbf16, #tpu.memory_space<vmem>>) attributes {dimension_semantics = [#tpu.dimension_semantics<parallel>], iteration_bounds = array<i64: 1>, scalar_prefetch = 0 : i64, scratch_operands = 0 : i64, tpu.core_type = #tpu.core_type<tc>, window_params = [{transform_indices = @transform_0, window_bounds = array<i64: 98, 1600>}, {pipeline_mode = #tpu.pipeline_mode<synchronous>, transform_indices = @transform_1, window_bounds = array<i64: 1600, 192>}, {pipeline_mode = #tpu.pipeline_mode<synchronous>, transform_indices = @transform_2, window_bounds = array<i64: 1, 192>}, {transform_indices = @transform_3, window_bounds = array<i64: 98, 192>}]} {
    %c0 = arith.constant 0 : index
    %c0_0 = arith.constant 0 : index
    %0 = vector.load %arg1[%c0, %c0_0] : memref<98x1600xbf16, #tpu.memory_space<vmem>>, vector<98x1600xbf16>
    %c0_1 = arith.constant 0 : index
    %c0_2 = arith.constant 0 : index
    %1 = vector.load %arg2[%c0_1, %c0_2] : memref<1600x192xbf16, #tpu.memory_space<vmem>>, vector<1600x192xbf16>
    %cst = arith.constant dense<0.000000e+00> : vector<98x192xf32>
    %2 = tpu.matmul %0, %1, %cst {dimension_numbers = #tpu.dot_dimension_numbers<[1], [0], [0], [1], [0, 0, 1, 1], [], []>} : vector<98x1600xbf16>, vector<1600x192xbf16>, vector<98x192xf32> -> vector<98x192xf32>
    %c0_3 = arith.constant 0 : index
    %c0_4 = arith.constant 0 : index
    %3 = vector.load %arg3[%c0_3, %c0_4] : memref<1x192xf32, #tpu.memory_space<vmem>>, vector<1x192xf32>
    %4 = vector.broadcast %3 : vector<1x192xf32> to vector<98x192xf32>
    %5 = arith.addf %2, %4 : vector<98x192xf32>
    %cst_5 = arith.constant 0.000000e+00 : f32
    %6 = vector.broadcast %cst_5 : f32 to vector<98x192xf32>
    %7 = arith.maximumf %5, %6 : vector<98x192xf32>
    %8 = arith.truncf %7 : vector<98x192xf32> to vector<98x192xbf16>
    %c0_6 = arith.constant 0 : index
    %c0_7 = arith.constant 0 : index
    %9 = vector.load %arg4[%c0_6, %c0_7] : memref<98x192xbf16, #tpu.memory_space<vmem>>, vector<98x192xbf16>
    tpu.vector_store %arg4[%c0_6, %c0_7], %8 {strides = array<i32>} : memref<98x192xbf16, #tpu.memory_space<vmem>>, vector<98x192xbf16>,
    return
  }
  func.func @transform_0(%arg0: i32) -> (i32, i32) {
    %c0_i32 = arith.constant 0 : i32
    %c0_i32_0 = arith.constant 0 : i32
    return %arg0, %c0_i32 : i32, i32
  }
  func.func @transform_1(%arg0: i32) -> (i32, i32) {
    %c0_i32 = arith.constant 0 : i32
    %c0_i32_0 = arith.constant 0 : i32
    %c0_i32_1 = arith.constant 0 : i32
    return %c0_i32, %c0_i32_0 : i32, i32
  }
  func.func @transform_2(%arg0: i32) -> (i32, i32) {
    %c0_i32 = arith.constant 0 : i32
    %c0_i32_0 = arith.constant 0 : i32
    %c0_i32_1 = arith.constant 0 : i32
    return %c0_i32, %c0_i32_0 : i32, i32
  }
  func.func @transform_3(%arg0: i32) -> (i32, i32) {
    %c0_i32 = arith.constant 0 : i32
    %c0_i32_0 = arith.constant 0 : i32
    return %arg0, %c0_i32 : i32, i32
  }
}

module attributes {stable_mosaic.version = 11 : i64} {
  func.func @_gemm_fused_kernel(%arg0: i32, %arg1: memref<18x1728xbf16, #tpu.memory_space<vmem>>, %arg2: memref<1728x384xbf16, #tpu.memory_space<vmem>>, %arg3: memref<1x384xf32, #tpu.memory_space<vmem>>, %arg4: memref<18x384xbf16, #tpu.memory_space<vmem>>) attributes {dimension_semantics = [#tpu.dimension_semantics<parallel>], iteration_bounds = array<i64: 1>, scalar_prefetch = 0 : i64, scratch_operands = 0 : i64, tpu.core_type = #tpu.core_type<tc>, window_params = [{transform_indices = @transform_0, window_bounds = array<i64: 18, 1728>}, {pipeline_mode = #tpu.pipeline_mode<synchronous>, transform_indices = @transform_1, window_bounds = array<i64: 1728, 384>}, {pipeline_mode = #tpu.pipeline_mode<synchronous>, transform_indices = @transform_2, window_bounds = array<i64: 1, 384>}, {transform_indices = @transform_3, window_bounds = array<i64: 18, 384>}]} {
    %c0 = arith.constant 0 : index
    %c0_0 = arith.constant 0 : index
    %0 = vector.load %arg1[%c0, %c0_0] : memref<18x1728xbf16, #tpu.memory_space<vmem>>, vector<18x1728xbf16>
    %c0_1 = arith.constant 0 : index
    %c0_2 = arith.constant 0 : index
    %1 = vector.load %arg2[%c0_1, %c0_2] : memref<1728x384xbf16, #tpu.memory_space<vmem>>, vector<1728x384xbf16>
    %cst = arith.constant dense<0.000000e+00> : vector<18x384xf32>
    %2 = tpu.matmul %0, %1, %cst {dimension_numbers = #tpu.dot_dimension_numbers<[1], [0], [0], [1], [0, 0, 1, 1], [], []>} : vector<18x1728xbf16>, vector<1728x384xbf16>, vector<18x384xf32> -> vector<18x384xf32>
    %c0_3 = arith.constant 0 : index
    %c0_4 = arith.constant 0 : index
    %3 = vector.load %arg3[%c0_3, %c0_4] : memref<1x384xf32, #tpu.memory_space<vmem>>, vector<1x384xf32>
    %4 = vector.broadcast %3 : vector<1x384xf32> to vector<18x384xf32>
    %5 = arith.addf %2, %4 : vector<18x384xf32>
    %cst_5 = arith.constant 0.000000e+00 : f32
    %6 = vector.broadcast %cst_5 : f32 to vector<18x384xf32>
    %7 = arith.maximumf %5, %6 : vector<18x384xf32>
    %8 = arith.truncf %7 : vector<18x384xf32> to vector<18x384xbf16>
    %c0_6 = arith.constant 0 : index
    %c0_7 = arith.constant 0 : index
    %9 = vector.load %arg4[%c0_6, %c0_7] : memref<18x384xbf16, #tpu.memory_space<vmem>>, vector<18x384xbf16>
    tpu.vector_store %arg4[%c0_6, %c0_7], %8 {strides = array<i32>} : memref<18x384xbf16, #tpu.memory_space<vmem>>, vector<18x384xbf16>,
    return
  }
  func.func @transform_0(%arg0: i32) -> (i32, i32) {
    %c0_i32 = arith.constant 0 : i32
    %c0_i32_0 = arith.constant 0 : i32
    return %arg0, %c0_i32 : i32, i32
  }
  func.func @transform_1(%arg0: i32) -> (i32, i32) {
    %c0_i32 = arith.constant 0 : i32
    %c0_i32_0 = arith.constant 0 : i32
    %c0_i32_1 = arith.constant 0 : i32
    return %c0_i32, %c0_i32_0 : i32, i32
  }
  func.func @transform_2(%arg0: i32) -> (i32, i32) {
    %c0_i32 = arith.constant 0 : i32
    %c0_i32_0 = arith.constant 0 : i32
    %c0_i32_1 = arith.constant 0 : i32
    return %c0_i32, %c0_i32_0 : i32, i32
  }
  func.func @transform_3(%arg0: i32) -> (i32, i32) {
    %c0_i32 = arith.constant 0 : i32
    %c0_i32_0 = arith.constant 0 : i32
    return %arg0, %c0_i32 : i32, i32
  }
}

module attributes {stable_mosaic.version = 11 : i64} {
  func.func @_gemm_fused_kernel(%arg0: i32, %arg1: memref<18x3456xbf16, #tpu.memory_space<vmem>>, %arg2: memref<3456x256xbf16, #tpu.memory_space<vmem>>, %arg3: memref<1x256xf32, #tpu.memory_space<vmem>>, %arg4: memref<18x256xbf16, #tpu.memory_space<vmem>>) attributes {dimension_semantics = [#tpu.dimension_semantics<parallel>], iteration_bounds = array<i64: 1>, scalar_prefetch = 0 : i64, scratch_operands = 0 : i64, tpu.core_type = #tpu.core_type<tc>, window_params = [{transform_indices = @transform_0, window_bounds = array<i64: 18, 3456>}, {pipeline_mode = #tpu.pipeline_mode<synchronous>, transform_indices = @transform_1, window_bounds = array<i64: 3456, 256>}, {pipeline_mode = #tpu.pipeline_mode<synchronous>, transform_indices = @transform_2, window_bounds = array<i64: 1, 256>}, {transform_indices = @transform_3, window_bounds = array<i64: 18, 256>}]} {
    %c0 = arith.constant 0 : index
    %c0_0 = arith.constant 0 : index
    %0 = vector.load %arg1[%c0, %c0_0] : memref<18x3456xbf16, #tpu.memory_space<vmem>>, vector<18x3456xbf16>
    %c0_1 = arith.constant 0 : index
    %c0_2 = arith.constant 0 : index
    %1 = vector.load %arg2[%c0_1, %c0_2] : memref<3456x256xbf16, #tpu.memory_space<vmem>>, vector<3456x256xbf16>
    %cst = arith.constant dense<0.000000e+00> : vector<18x256xf32>
    %2 = tpu.matmul %0, %1, %cst {dimension_numbers = #tpu.dot_dimension_numbers<[1], [0], [0], [1], [0, 0, 1, 1], [], []>} : vector<18x3456xbf16>, vector<3456x256xbf16>, vector<18x256xf32> -> vector<18x256xf32>
    %c0_3 = arith.constant 0 : index
    %c0_4 = arith.constant 0 : index
    %3 = vector.load %arg3[%c0_3, %c0_4] : memref<1x256xf32, #tpu.memory_space<vmem>>, vector<1x256xf32>
    %4 = vector.broadcast %3 : vector<1x256xf32> to vector<18x256xf32>
    %5 = arith.addf %2, %4 : vector<18x256xf32>
    %cst_5 = arith.constant 0.000000e+00 : f32
    %6 = vector.broadcast %cst_5 : f32 to vector<18x256xf32>
    %7 = arith.maximumf %5, %6 : vector<18x256xf32>
    %8 = arith.truncf %7 : vector<18x256xf32> to vector<18x256xbf16>
    %c0_6 = arith.constant 0 : index
    %c0_7 = arith.constant 0 : index
    %9 = vector.load %arg4[%c0_6, %c0_7] : memref<18x256xbf16, #tpu.memory_space<vmem>>, vector<18x256xbf16>
    tpu.vector_store %arg4[%c0_6, %c0_7], %8 {strides = array<i32>} : memref<18x256xbf16, #tpu.memory_space<vmem>>, vector<18x256xbf16>,
    return
  }
  func.func @transform_0(%arg0: i32) -> (i32, i32) {
    %c0_i32 = arith.constant 0 : i32
    %c0_i32_0 = arith.constant 0 : i32
    return %arg0, %c0_i32 : i32, i32
  }
  func.func @transform_1(%arg0: i32) -> (i32, i32) {
    %c0_i32 = arith.constant 0 : i32
    %c0_i32_0 = arith.constant 0 : i32
    %c0_i32_1 = arith.constant 0 : i32
    return %c0_i32, %c0_i32_0 : i32, i32
  }
  func.func @transform_2(%arg0: i32) -> (i32, i32) {
    %c0_i32 = arith.constant 0 : i32
    %c0_i32_0 = arith.constant 0 : i32
    %c0_i32_1 = arith.constant 0 : i32
    return %c0_i32, %c0_i32_0 : i32, i32
  }
  func.func @transform_3(%arg0: i32) -> (i32, i32) {
    %c0_i32 = arith.constant 0 : i32
    %c0_i32_0 = arith.constant 0 : i32
    return %arg0, %c0_i32 : i32, i32
  }
}

module attributes {stable_mosaic.version = 11 : i64} {
  func.func @_gemm_fused_kernel(%arg0: i32, %arg1: memref<18x2304xbf16, #tpu.memory_space<vmem>>, %arg2: memref<2304x256xbf16, #tpu.memory_space<vmem>>, %arg3: memref<1x256xf32, #tpu.memory_space<vmem>>, %arg4: memref<18x256xbf16, #tpu.memory_space<vmem>>) attributes {dimension_semantics = [#tpu.dimension_semantics<parallel>], iteration_bounds = array<i64: 1>, scalar_prefetch = 0 : i64, scratch_operands = 0 : i64, tpu.core_type = #tpu.core_type<tc>, window_params = [{transform_indices = @transform_0, window_bounds = array<i64: 18, 2304>}, {pipeline_mode = #tpu.pipeline_mode<synchronous>, transform_indices = @transform_1, window_bounds = array<i64: 2304, 256>}, {pipeline_mode = #tpu.pipeline_mode<synchronous>, transform_indices = @transform_2, window_bounds = array<i64: 1, 256>}, {transform_indices = @transform_3, window_bounds = array<i64: 18, 256>}]} {
    %c0 = arith.constant 0 : index
    %c0_0 = arith.constant 0 : index
    %0 = vector.load %arg1[%c0, %c0_0] : memref<18x2304xbf16, #tpu.memory_space<vmem>>, vector<18x2304xbf16>
    %c0_1 = arith.constant 0 : index
    %c0_2 = arith.constant 0 : index
    %1 = vector.load %arg2[%c0_1, %c0_2] : memref<2304x256xbf16, #tpu.memory_space<vmem>>, vector<2304x256xbf16>
    %cst = arith.constant dense<0.000000e+00> : vector<18x256xf32>
    %2 = tpu.matmul %0, %1, %cst {dimension_numbers = #tpu.dot_dimension_numbers<[1], [0], [0], [1], [0, 0, 1, 1], [], []>} : vector<18x2304xbf16>, vector<2304x256xbf16>, vector<18x256xf32> -> vector<18x256xf32>
    %c0_3 = arith.constant 0 : index
    %c0_4 = arith.constant 0 : index
    %3 = vector.load %arg3[%c0_3, %c0_4] : memref<1x256xf32, #tpu.memory_space<vmem>>, vector<1x256xf32>
    %4 = vector.broadcast %3 : vector<1x256xf32> to vector<18x256xf32>
    %5 = arith.addf %2, %4 : vector<18x256xf32>
    %6 = arith.truncf %5 : vector<18x256xf32> to vector<18x256xbf16>
    %c0_5 = arith.constant 0 : index
    %c0_6 = arith.constant 0 : index
    %7 = vector.load %arg4[%c0_5, %c0_6] : memref<18x256xbf16, #tpu.memory_space<vmem>>, vector<18x256xbf16>
    tpu.vector_store %arg4[%c0_5, %c0_6], %6 {strides = array<i32>} : memref<18x256xbf16, #tpu.memory_space<vmem>>, vector<18x256xbf16>,
    return
  }
  func.func @transform_0(%arg0: i32) -> (i32, i32) {
    %c0_i32 = arith.constant 0 : i32
    %c0_i32_0 = arith.constant 0 : i32
    return %arg0, %c0_i32 : i32, i32
  }
  func.func @transform_1(%arg0: i32) -> (i32, i32) {
    %c0_i32 = arith.constant 0 : i32
    %c0_i32_0 = arith.constant 0 : i32
    %c0_i32_1 = arith.constant 0 : i32
    return %c0_i32, %c0_i32_0 : i32, i32
  }
  func.func @transform_2(%arg0: i32) -> (i32, i32) {
    %c0_i32 = arith.constant 0 : i32
    %c0_i32_0 = arith.constant 0 : i32
    %c0_i32_1 = arith.constant 0 : i32
    return %c0_i32, %c0_i32_0 : i32, i32
  }
  func.func @transform_3(%arg0: i32) -> (i32, i32) {
    %c0_i32 = arith.constant 0 : i32
    %c0_i32_0 = arith.constant 0 : i32
    return %arg0, %c0_i32 : i32, i32
  }
}

</mosaic_0001>

<bundles_post_ra>
// kernel: new_alexnet_forward.5
= control target key start
LH: loop header
LB: loop body
LE: loop exit
PB: predicated region body
PF: predicated region fallthrough
CT: control target
= control target key end

     0   :  { %s2183_s12 = smov 0   ;;  %s2185_s13 = smov 0   ;;  %s2606_s0 = inlined_call_operand.vmem [shape: bf16[450,363], index: 0, kind: input, shape index: {}]   ;;  %s2607_s1 = inlined_call_operand.vmem [shape: bf16[363,64], index: 1, kind: input, shape index: {}]   ;;  %s2608_s2 = inlined_call_operand.vmem [shape: f32[1,64], index: 2, kind: input, shape index: {}]   ;;  %s2609_s3 = inlined_call_operand.vmem [shape: bf16[450,64], index: 3, kind: output, shape index: {}]  }
   0x1   :  { %s2187_s14 = smov 0  }
   0x2 LB: > { %s2196_s15 = sadd.s32 4294967295, %s2126_s14   ;;  %s2198_s16 = sadd.s32 1, %s2126_s14   ;;  %s2126_s14 = sphi %s2187_s14, %s2616_s14   ;;  %s2122_s13 = sphi %s2185_s13, %s2615_s13   ;;  %s2118_s12 = sphi %s2183_s12, %s2614_s12  }
   0x3   : > { %s85_s17 = ssub.s32 %s2126_s14, %s2198_s16  ;;  %s88_s18 = sadd.s32 1, %s2122_s13 }
   0x4   : > { %p86_p0 = scmp.eq.s32.totalorder %s85_s17, 0  ;;  %p98_p1 = scmp.ne.s32.totalorder %s2122_s13, %s2118_s12 }
   0x5   : > { %p99_p2 = scmp.eq.s32.totalorder %s2196_s15, 1  ;;  %p1533_p3 = scmp.ge.s32.totalorder %s2126_s14, 1 }
   0x6   : > { %s2206_s19 = scalar_select %p86_p0, %s2122_s13, %s88_s18  }
   0x7   : > { %p2208_p4 = por %p99_p2, %p98_p1  ;;  %p149_p5 = scmp.lt.s32.totalorder %s2126_s14, 3 }
   0x9   : > { %p150_p6 = pnand %p1533_p3, %p149_p5 }
   0xa   : > { %v1986_v0 = vld [vmem:[%s2607_s1 + $0x40] sm:$0xff] (!%p150_p6)   ;;  %v2160_v2 = vmov (!%p150_p6), 0.0   ;;  %v1988_v3 = vld [vmem:[%s2607_s1 + $0x48] sm:$0xff] (!%p150_p6)   ;;  %s2229_s4 = smul.u32 (!%p150_p6), 29, %s2196_s15  ;;  %v1991_v6 = vld [vmem:[%s2607_s1 + $0x50] sm:$0xff] (!%p150_p6)   ;;  %vm2161_vm0 = vmmov (!%p150_p6), 0  }
   0xb   : > { %153 = sbr.rel (%p150_p6) target bundleno = 460 (0x1cc), region = 32  ;;  %v1987_v1 = vld [vmem:[%s2607_s1] sm:$0xff] (!%p150_p6)   ;;  %1818 = vmatprep.subr.bf16.mxu1 (!%p150_p6), %v2160_v2  ;;  %1690 = vmatprep.subr.bf16.mxu0 (!%p150_p6), %v1986_v0  ;;  %v1989_v4 = vld [vmem:[%s2607_s1 + $0x8] sm:$0xff] (!%p150_p6)   ;;  %v1992_v7 = vld [vmem:[%s2607_s1 + $0x10] sm:$0xff] (!%p150_p6)   ;;  %vm715_vm1 = vcmask (!%p150_p6), 1044480   ;;  %vm716_vm2 = vcmask (!%p150_p6), 1045504  }
   0xc   : > { %1691 = vmatpush3.bf16.msra.mxu0 (!%p150_p6), %v1987_v1  ;;  %v1990_v5 = vld [vmem:[%s2607_s1 + $0x80] sm:$0xff] (!%p150_p6)   ;;  %v1993_v8 = vld [vmem:[%s2607_s1 + $0x88] sm:$0xff] (!%p150_p6)   ;;  %v1994_v9 = vld [vmem:[%s2607_s1 + $0x58] sm:$0xff] (!%p150_p6)   ;;  %p184_p7 = scmp.lt.s32.totalorder (!%p150_p6), %s2229_s4, 56  ;;  %1832 = vmatprep.mubr.msk.bf16.mxu1 (!%p150_p6), %vm2161_vm0, %v2160_v2  ;;  %v2162_v18 = vmov (!%p150_p6), 65535   ;;  %vm669_vm3 = vcmask (!%p150_p6), 875520  }
   0xd   : > { %1692 = vmatprep.subr.bf16.mxu0 (!%p150_p6), %v1988_v3  ;;  %1819 = vmatpush3.bf16.msra.mxu1 (!%p150_p6), %v1990_v5  ;;  %v1996_v10 = vld [vmem:[%s2607_s1 + $0x90] sm:$0xff] (!%p150_p6)   ;;  %v1995_v11 = vld [vmem:[%s2607_s1 + $0x18] sm:$0xff] (!%p150_p6)   ;;  %v1997_v12 = vld [vmem:[%s2607_s1 + $0x60] sm:$0xff] (!%p150_p6)   ;;  %v717_v19 = vsel (!%p150_p6), %vm715_vm1, 4294967295, %v2162_v18  ;;  %s175_s8 = sand.u32 (!%p150_p6), 1, %s2118_s12   ;;  %vm1172_vm4 = vcmask (!%p150_p6), 519168  }
   0xe   : > { %1820 = vmatprep.subr.bf16.mxu1 (!%p150_p6), %v2160_v2  ;;  %v1999_v13 = vld [vmem:[%s2607_s1 + $0x98] sm:$0xff] (!%p150_p6)   ;;  %v1998_v14 = vld [vmem:[%s2607_s1 + $0x20] sm:$0xff] (!%p150_p6)   ;;  %v2000_v15 = vld [vmem:[%s2607_s1 + $0x68] sm:$0xff] (!%p150_p6)   ;;  %v718_v24 = vsel (!%p150_p6), %vm716_vm2, %v717_v19, 0  ;;  %s1892_s9 = smul.u32 (!%p150_p6), 116, %s175_s8 }
   0xf   : > { %v2002_v16 = vld [vmem:[%s2607_s1 + $0xa0] sm:$0xff] (!%p150_p6)   ;;  %v2001_v17 = vld [vmem:[%s2607_s1 + $0x28] sm:$0xff] (!%p150_p6)   ;;  %v2003_v20 = vld [vmem:[%s2607_s1 + $0x70] sm:$0xff] (!%p150_p6)  }
  0x10   : > { %1693 = vmatpush3.bf16.msra.mxu0 (!%p150_p6), %v1989_v4  ;;  %v2004_v21 = vld [vmem:[%s2607_s1 + $0x30] sm:$0xff] (!%p150_p6)   ;;  %v2005_v22 = vld [vmem:[%s2607_s1 + $0xa8] sm:$0xff] (!%p150_p6)   ;;  %v2006_v23 = vld [vmem:[%s2607_s1 + $0x78] sm:$0xff] (!%p150_p6)   ;;  %s2395_s12 = scalar_lea.vmem (!%p150_p6), [#allocation2], %s1892_s9  }
  0x11   : > { %1694 = vmatprep.subr.bf16.mxu0 (!%p150_p6), %v1991_v6  ;;  %1821 = vmatpush3.bf16.msra.mxu1 (!%p150_p6), %v1993_v8  ;;  %v2011_v26 = vld [vmem:[%s2607_s1 + $0xb0] sm:$0x3f] (!%p150_p6)   ;;  %v2007_v28 = vld [vmem:[%s2607_s1 + $0x38] sm:$0xff] (!%p150_p6)  }
  0x12   : > { %1822 = vmatprep.subr.bf16.mxu1 %v2160_v2  ;;  %s185_s25 = scalar_select %p184_p7, %s2229_s4, 56  ;;  %v720_v27 = vand.u32 %v2011_v26, %v718_v24 }
  0x13   : > { %s1210_s10 = ssub.s32 (%p2208_p4), 57, %s2229_s4  ;;  %s1689_s11 = smul.u32 (%p2208_p4), 116, %s2196_s15 }
  0x14   : > { %1695 = vmatpush3.bf16.msra.mxu0 %v1992_v7  ;;  %s1893_s6 = smul.u32 12, %s185_s25  ;;  %p1211_p8 = scmp.lt.s32.totalorder (%p2208_p4), %s1210_s10, 29 }
  0x15   : > { %1696 = vmatprep.subr.bf16.mxu0 %v1994_v9  ;;  %1823 = vmatpush3.bf16.msra.mxu1 %v1996_v10  ;;  %s2489_s18 = scalar_lea.vmem (%p2208_p4), %s2609_s3, %s1689_s11  }
  0x16   : > { %1824 = vmatprep.subr.bf16.mxu1 %v2160_v2  ;;  %s2281_s21 = scalar_lea.vmem %s2606_s0, %s1893_s6 }
  0x17   : > { %v2010_v25 = vld [vmem:[%s2281_s21 + $0x4] ss:$12 sps:$4 sm:$0xff]   ;;  %v2012_v29 = vld [vmem:[%s2281_s21 + $0x8] ss:$12 sps:$4 sm:$0xff]   ;;  %v2008_v30 = vld [vmem:[%s2281_s21] ss:$12 sps:$4 sm:$0xff]  }
  0x18   : > { %1697 = vmatpush3.bf16.msra.mxu0 %v1995_v11  ;;  %754 = vmatprep.mubr.bf16.mxu0 %v2010_v25  ;;  %v2013_v31 = vld [vmem:[%s2281_s21 + $0x1c] ss:$12 sps:$4 sm:$0xff]   ;;  %v2016_v32 = vld [vmem:[%s2281_s21 + $0x20] ss:$12 sps:$4 sm:$0xff]   ;;  %v2015_v33 = vld [vmem:[%s2281_s21 + $0x18] ss:$12 sps:$4 sm:$0xff]  }
  0x19   : > { %1698 = vmatprep.subr.bf16.mxu0 %v1997_v12  ;;  %1825 = vmatpush3.bf16.msra.mxu1 %v1999_v13  ;;  %v2017_v34 = vld [vmem:[%s2281_s21 + $0x34] ss:$12 sps:$4 sm:$0xff]   ;;  %v2020_v35 = vld [vmem:[%s2281_s21 + $0x38] ss:$12 sps:$4 sm:$0xff]   ;;  %v2019_v36 = vld [vmem:[%s2281_s21 + $0x30] ss:$12 sps:$4 sm:$0xff]  }
  0x1a   : > { %1826 = vmatprep.subr.bf16.mxu1 %v2160_v2  ;;  %v2021_v37 = vld [vmem:[%s2281_s21 + $0x4c] ss:$12 sps:$4 sm:$0xff]   ;;  %v2024_v38 = vld [vmem:[%s2281_s21 + $0x50] ss:$12 sps:$4 sm:$0xff]   ;;  %v2023_v39 = vld [vmem:[%s2281_s21 + $0x48] ss:$12 sps:$4 sm:$0xff]  }
  0x1b   : > { %v2025_v40 = vld [vmem:[%s2281_s21 + $0x64] ss:$12 sps:$4 sm:$0xff]   ;;  %v2028_v41 = vld [vmem:[%s2281_s21 + $0x68] ss:$12 sps:$4 sm:$0xff]   ;;  %v2027_v42 = vld [vmem:[%s2281_s21 + $0x60] ss:$12 sps:$4 sm:$0xff]  }
  0x1c   : > { %1699 = vmatpush3.bf16.msra.mxu0 %v1998_v14  ;;  %v2029_v43 = vld [vmem:[%s2281_s21 + $0x7c] ss:$12 sps:$4 sm:$0xff]   ;;  %v2032_v44 = vld [vmem:[%s2281_s21 + $0x80] ss:$12 sps:$4 sm:$0xff]   ;;  %v2031_v45 = vld [vmem:[%s2281_s21 + $0x78] ss:$12 sps:$4 sm:$0xff]  }
  0x1d   : > { %1700 = vmatprep.subr.bf16.mxu0 %v2000_v15  ;;  %1827 = vmatpush3.bf16.msra.mxu1 %v2002_v16  ;;  %v2033_v46 = vld [vmem:[%s2281_s21 + $0x94] ss:$12 sps:$4 sm:$0xff]   ;;  %v2036_v47 = vld [vmem:[%s2281_s21 + $0x98] ss:$12 sps:$4 sm:$0xff]   ;;  %v2035_v48 = vld [vmem:[%s2281_s21 + $0x90] ss:$12 sps:$4 sm:$0xff]  }
  0x1e   : > { %1828 = vmatprep.subr.bf16.mxu1 %v2160_v2  ;;  %v2037_v49 = vld [vmem:[%s2281_s21 + $0xac] ss:$12 sps:$4 sm:$0xff]   ;;  %v2040_v50 = vld [vmem:[%s2281_s21 + $0xb0] ss:$12 sps:$4 sm:$0xff]   ;;  %v2039_v51 = vld [vmem:[%s2281_s21 + $0xa8] ss:$12 sps:$4 sm:$0xff]  }
  0x1f   : > { %v2041_v52 = vld [vmem:[%s2281_s21 + $0xc4] ss:$12 sps:$4 sm:$0xff]   ;;  %v2044_v53 = vld [vmem:[%s2281_s21 + $0xc8] ss:$12 sps:$4 sm:$0xff]   ;;  %v2043_v54 = vld [vmem:[%s2281_s21 + $0xc0] ss:$12 sps:$4 sm:$0xff]  }
  0x20   : > { %1701 = vmatpush3.bf16.msra.mxu0 %v2001_v17  ;;  %v2045_v55 = vld [vmem:[%s2281_s21 + $0xdc] ss:$12 sps:$4 sm:$0xff]   ;;  %v2048_v56 = vld [vmem:[%s2281_s21 + $0xe0] ss:$12 sps:$4 sm:$0xff]   ;;  %v2047_v57 = vld [vmem:[%s2281_s21 + $0xd8] ss:$12 sps:$4 sm:$0xff]  }
  0x21   : > { %1702 = vmatprep.subr.bf16.mxu0 %v2003_v20  ;;  %1829 = vmatpush3.bf16.msra.mxu1 %v2005_v22  ;;  %v2049_v58 = vld [vmem:[%s2281_s21 + $0xf4] ss:$12 sps:$4 sm:$0xff]   ;;  %v2052_v59 = vld [vmem:[%s2281_s21 + $0xf8] ss:$12 sps:$4 sm:$0xff]   ;;  %v2051_v60 = vld [vmem:[%s2281_s21 + $0xf0] ss:$12 sps:$4 sm:$0xff]  }
  0x22   : > { %1830 = vmatprep.subr.bf16.mxu1 %v2160_v2  ;;  %v2053_v61 = vld [vmem:[%s2281_s21 + $0x10c] ss:$12 sps:$4 sm:$0xff]   ;;  %v2056_v62 = vld [vmem:[%s2281_s21 + $0x110] ss:$12 sps:$4 sm:$0xff]   ;;  %v2055_v63 = vld [vmem:[%s2281_s21 + $0x108] ss:$12 sps:$4 sm:$0xff]  }
  0x23   : > { %v2057_v0 = vld [vmem:[%s2281_s21 + $0x124] ss:$12 sps:$4 sm:$0xff]   ;;  %v2060_v1 = vld [vmem:[%s2281_s21 + $0x128] ss:$12 sps:$4 sm:$0xff]   ;;  %v2059_v3 = vld [vmem:[%s2281_s21 + $0x120] ss:$12 sps:$4 sm:$0xff]  }
  0x24   : > { %1703 = vmatpush3.bf16.msra.mxu0 %v2004_v21  ;;  %v2061_v4 = vld [vmem:[%s2281_s21 + $0x13c] ss:$12 sps:$4 sm:$0xff]   ;;  %v257_v5 = vld [vmem:[%s2281_s21 + $0x150] sm:$0xff]  ;;  %v2064_v6 = vld [vmem:[%s2281_s21 + $0x140] ss:$12 sps:$4 sm:$0xff]  }
  0x25   : > { %1704 = vmatprep.subr.bf16.mxu0 %v2006_v23  ;;  %1831 = vmatpush3.bf16.msra.mxu1 %v720_v27  ;;  %v2063_v7 = vld [vmem:[%s2281_s21 + $0x138] ss:$12 sps:$4 sm:$0xff]   ;;  %v1579_v8 = vcombine.high %v257_v5, %v257_v5  ;;  %v1578_v10 = vcombine.low %v257_v5, %v257_v5  ;;  %v2390_v15 = vld [vmem:[%s2608_s2] ss:$0 sm:$0xff] }
  0x26   : > { %v2067_v9 = vld [vmem:[%s2281_s21 + $0x158] ss:$0 sps:$4 sm:$0xff]  }
  0x28   : > { %1705 = vmatpush3.bf16.msra.mxu0 %v2007_v28  ;;  %1833 = vmatmul.mubr.msk.bf16.vlgmr.msra.gmra.mrb[0].mxu1 %vm669_vm3, %v2012_v29 }
  0x29   : > { %1836 = vmatprep.mubr.msk.bf16.mxu1 %vm2161_vm0, %v2160_v2 }
  0x2b   : > { %755 = vmatmul.mubr.bf16.vlgmr.msra.gmra.mrb[0].mxu0 %v2008_v30 }
  0x2c   : > { %762 = vmatprep.mubr.bf16.mxu0 %v2013_v31 }
  0x30   : > { %1837 = vmatmul.mubr.msk.bf16.gmra.mrb[4].mxu1 %vm669_vm3, %v2016_v32 }
  0x31   : > { %1840 = vmatprep.mubr.msk.bf16.mxu1 %vm2161_vm0, %v2160_v2 }
  0x33   : > { %763 = vmatmul.mubr.bf16.gmra.mrb[4].mxu0 %v2015_v33 }
  0x34   : > { %770 = vmatprep.mubr.bf16.mxu0 %v2017_v34 }
  0x38   : > { %1841 = vmatmul.mubr.msk.bf16.gmra.mrb[8].mxu1 %vm669_vm3, %v2020_v35 }
  0x39   : > { %1844 = vmatprep.mubr.msk.bf16.mxu1 %vm2161_vm0, %v2160_v2 }
  0x3b   : > { %771 = vmatmul.mubr.bf16.gmra.mrb[8].mxu0 %v2019_v36 }
  0x3c   : > { %778 = vmatprep.mubr.bf16.mxu0 %v2021_v37 }
  0x40   : > { %1845 = vmatmul.mubr.msk.bf16.gmra.mrb[12].mxu1 %vm669_vm3, %v2024_v38 }
  0x41   : > { %1848 = vmatprep.mubr.msk.bf16.mxu1 %vm2161_vm0, %v2160_v2 }
  0x43   : > { %779 = vmatmul.mubr.bf16.gmra.mrb[12].mxu0 %v2023_v39 }
  0x44   : > { %786 = vmatprep.mubr.bf16.mxu0 %v2025_v40 }
  0x48   : > { %1849 = vmatmul.mubr.msk.bf16.gmra.mrb[16].mxu1 %vm669_vm3, %v2028_v41 }
  0x49   : > { %1852 = vmatprep.mubr.msk.bf16.mxu1 %vm2161_vm0, %v2160_v2 }
  0x4b   : > { %787 = vmatmul.mubr.bf16.gmra.mrb[16].mxu0 %v2027_v42 }
  0x4c   : > { %794 = vmatprep.mubr.bf16.mxu0 %v2029_v43 }
  0x50   : > { %1853 = vmatmul.mubr.msk.bf16.gmra.mrb[20].mxu1 %vm669_vm3, %v2032_v44 }
  0x51   : > { %1856 = vmatprep.mubr.msk.bf16.mxu1 %vm2161_vm0, %v2160_v2 }
  0x53   : > { %795 = vmatmul.mubr.bf16.gmra.mrb[20].mxu0 %v2031_v45 }
  0x54   : > { %802 = vmatprep.mubr.bf16.mxu0 %v2033_v46 }
  0x58   : > { %1857 = vmatmul.mubr.msk.bf16.gmra.mrb[24].mxu1 %vm669_vm3, %v2036_v47 }
  0x59   : > { %1860 = vmatprep.mubr.msk.bf16.mxu1 %vm2161_vm0, %v2160_v2 }
  0x5b   : > { %803 = vmatmul.mubr.bf16.gmra.mrb[24].mxu0 %v2035_v48 }
  0x5c   : > { %810 = vmatprep.mubr.bf16.mxu0 %v2037_v49 }
  0x60   : > { %1861 = vmatmul.mubr.msk.bf16.gmra.mrb[28].mxu1 %vm669_vm3, %v2040_v50 }
  0x61   : > { %1864 = vmatprep.mubr.msk.bf16.mxu1 %vm2161_vm0, %v2160_v2 }
  0x63   : > { %811 = vmatmul.mubr.bf16.gmra.mrb[28].mxu0 %v2039_v51 }
  0x64   : > { %818 = vmatprep.mubr.bf16.mxu0 %v2041_v52 }
  0x68   : > { %1865 = vmatmul.mubr.msk.bf16.gmra.mrb[32].mxu1 %vm669_vm3, %v2044_v53 }
  0x69   : > { %1868 = vmatprep.mubr.msk.bf16.mxu1 %vm2161_vm0, %v2160_v2 }
  0x6b   : > { %819 = vmatmul.mubr.bf16.gmra.mrb[32].mxu0 %v2043_v54 }
  0x6c   : > { %826 = vmatprep.mubr.bf16.mxu0 %v2045_v55 }
  0x70   : > { %1869 = vmatmul.mubr.msk.bf16.gmra.mrb[36].mxu1 %vm669_vm3, %v2048_v56 }
  0x71   : > { %1872 = vmatprep.mubr.msk.bf16.mxu1 %vm2161_vm0, %v2160_v2 }
  0x73   : > { %827 = vmatmul.mubr.bf16.gmra.mrb[36].mxu0 %v2047_v57 }
  0x74   : > { %834 = vmatprep.mubr.bf16.mxu0 %v2049_v58 }
  0x78   : > { %1873 = vmatmul.mubr.msk.bf16.gmra.mrb[40].mxu1 %vm669_vm3, %v2052_v59 }
  0x79   : > { %1876 = vmatprep.mubr.msk.bf16.mxu1 %vm2161_vm0, %v2160_v2 }
  0x7b   : > { %835 = vmatmul.mubr.bf16.gmra.mrb[40].mxu0 %v2051_v60 }
  0x7c   : > { %842 = vmatprep.mubr.bf16.mxu0 %v2053_v61 }
  0x80   : > { %1877 = vmatmul.mubr.msk.bf16.gmra.mrb[44].mxu1 %vm669_vm3, %v2056_v62 }
  0x81   : > { %1880 = vmatprep.mubr.msk.bf16.mxu1 %vm2161_vm0, %v2160_v2 }
  0x83   : > { %843 = vmatmul.mubr.bf16.gmra.mrb[44].mxu0 %v2055_v63 }
  0x84   : > { %850 = vmatprep.mubr.bf16.mxu0 %v2057_v0 }
  0x88   : > { %1881 = vmatmul.mubr.msk.bf16.gmra.mrb[48].mxu1 %vm669_vm3, %v2060_v1 }
  0x89   : > { %1884 = vmatprep.mubr.msk.bf16.mxu1 %vm2161_vm0, %v2160_v2 }
  0x8b   : > { %851 = vmatmul.mubr.bf16.gmra.mrb[48].mxu0 %v2059_v3 }
  0x8c   : > { %858 = vmatprep.mubr.bf16.mxu0 %v2061_v4 }
  0x90   : > { %1885 = vmatmul.mubr.msk.bf16.gmra.mrb[52].mxu1 %vm669_vm3, %v2064_v6 }
  0x91   : > { %1888 = vmatprep.mubr.msk.bf16.mxu1 %vm2161_vm0, %v2160_v2 }
  0x93   : > { %859 = vmatmul.mubr.bf16.gmra.mrb[52].mxu0 %v2063_v7 }
  0x94   : > { %866 = vmatprep.mubr.bf16.mxu0 %v1579_v8 }
  0x98   : > { %1889 = vmatmul.mubr.msk.bf16.gmra.mrb[56].mxu1 %vm669_vm3, %v2067_v9 }
  0x9b   : > { %867 = vmatmul.mubr.bf16.gmra.mrb[56].mxu0 %v1578_v10 }
  0xfb   : > { %v908_v11 = vpop.f32.mrb[0].mxu1 }
  0xfc   : > { %v1834_v13 = vpop.f32.mrb[1].mxu1 }
  0xfd   : > { %v911_v16 = vpop.f32.mrb[2].mxu1 }
  0xfe   : > { %v1706_v12 = vpop.f32.mrb[0].mxu0  ;;  %v1835_v2 = vpop.f32.mrb[3].mxu1 }
  0xff   : > { %v1707_v14 = vpop.f32.mrb[1].mxu0 }
 0x100   : > { %v1708_v17 = vadd.f32 %v1707_v14, %v1706_v12  ;;  %v1709_v18 = vpop.f32.mrb[2].mxu0 }
 0x101   : > { %v1710_v19 = vpop.f32.mrb[3].mxu0 }
 0x102   : > { %v757_v20 = vadd.f32 %v1708_v17, %v2390_v15  ;;  %v1711_v21 = vadd.f32 %v1710_v19, %v1709_v18 }
 0x103   : > { %v916_v24 = vpop.f32.mrb[4].mxu1 }
 0x104   : > { %v909_v22 = vadd.f32 %v908_v11, %v757_v20  ;;  %v760_v23 = vadd.f32 %v1711_v21, %v2390_v15  ;;  %v1838_v28 = vpop.f32.mrb[5].mxu1 }
 0x105   : > { %v919_v30 = vpop.f32.mrb[6].mxu1 }
 0x106   : > { %v1026_v25 = vmax.f32 %v909_v22, 0.0  ;;  %v912_v26 = vadd.f32 %v911_v16, %v760_v23  ;;  %v1712_v27 = vpop.f32.mrb[4].mxu0  ;;  %v1839_v35 = vpop.f32.mrb[7].mxu1 }
 0x107   : > { %v1713_v29 = vpop.f32.mrb[5].mxu0 }
 0x108   : > { %v1660_v31 = vpack.c.bf16 %v1026_v25, %v1026_v25  ;;  %v1027_v32 = vmax.f32 %v912_v26, 0.0  ;;  %v1714_v33 = vadd.f32 %v1713_v29, %v1712_v27  ;;  %v1715_v34 = vpop.f32.mrb[6].mxu0 }
 0x109   : > { %v1716_v36 = vpop.f32.mrb[7].mxu0 }
 0x10a   : > { %1173 = vst.msk [vmem:[%s2395_s12] sm:$0xf] %vm1172_vm4, %v1660_v31  ;;  %v1661_v37 = vpack.c.bf16 %v1027_v32, %v1027_v32  ;;  %v765_v38 = vadd.f32 %v1714_v33, %v2390_v15  ;;  %v1717_v39 = vadd.f32 %v1716_v36, %v1715_v34 }
 0x10b   : > { %v924_v42 = vpop.f32.mrb[8].mxu1 }
 0x10c   : > { %1174 = vst.msk [vmem:[%s2395_s12 + $0x4] sm:$0xf] %vm1172_vm4, %v1661_v37  ;;  %v917_v40 = vadd.f32 %v916_v24, %v765_v38  ;;  %v768_v41 = vadd.f32 %v1717_v39, %v2390_v15  ;;  %v1842_v46 = vpop.f32.mrb[9].mxu1 }
 0x10d   : > { %v927_v48 = vpop.f32.mrb[10].mxu1 }
 0x10e   : > { %v1028_v43 = vmax.f32 %v917_v40, 0.0  ;;  %v920_v44 = vadd.f32 %v919_v30, %v768_v41  ;;  %v1718_v45 = vpop.f32.mrb[8].mxu0  ;;  %v1843_v53 = vpop.f32.mrb[11].mxu1 }
 0x10f   : > { %v1719_v47 = vpop.f32.mrb[9].mxu0 }
 0x110   : > { %v1662_v49 = vpack.c.bf16 %v1028_v43, %v1028_v43  ;;  %v1029_v50 = vmax.f32 %v920_v44, 0.0  ;;  %v1720_v51 = vadd.f32 %v1719_v47, %v1718_v45  ;;  %v1721_v52 = vpop.f32.mrb[10].mxu0 }
 0x111   : > { %v1722_v54 = vpop.f32.mrb[11].mxu0 }
 0x112   : > { %1175 = vst.msk [vmem:[%s2395_s12 + $0x8] sm:$0xf] %vm1172_vm4, %v1662_v49  ;;  %v1663_v55 = vpack.c.bf16 %v1029_v50, %v1029_v50  ;;  %v773_v56 = vadd.f32 %v1720_v51, %v2390_v15  ;;  %v1723_v57 = vadd.f32 %v1722_v54, %v1721_v52 }
 0x113   : > { %v932_v60 = vpop.f32.mrb[12].mxu1 }
 0x114   : > { %1176 = vst.msk [vmem:[%s2395_s12 + $0xc] sm:$0xf] %vm1172_vm4, %v1663_v55  ;;  %v925_v58 = vadd.f32 %v924_v42, %v773_v56  ;;  %v776_v59 = vadd.f32 %v1723_v57, %v2390_v15  ;;  %v1846_v0 = vpop.f32.mrb[13].mxu1 }
 0x115   : > { %v935_v3 = vpop.f32.mrb[14].mxu1 }
 0x116   : > { %v1030_v61 = vmax.f32 %v925_v58, 0.0  ;;  %v928_v62 = vadd.f32 %v927_v48, %v776_v59  ;;  %v1724_v63 = vpop.f32.mrb[12].mxu0  ;;  %v1847_v8 = vpop.f32.mrb[15].mxu1 }
 0x117   : > { %v1725_v1 = vpop.f32.mrb[13].mxu0 }
 0x118   : > { %v1664_v4 = vpack.c.bf16 %v1030_v61, %v1030_v61  ;;  %v1031_v5 = vmax.f32 %v928_v62, 0.0  ;;  %v1726_v6 = vadd.f32 %v1725_v1, %v1724_v63  ;;  %v1727_v7 = vpop.f32.mrb[14].mxu0 }
 0x119   : > { %v1728_v9 = vpop.f32.mrb[15].mxu0 }
 0x11a   : > { %1177 = vst.msk [vmem:[%s2395_s12 + $0x10] sm:$0xf] %vm1172_vm4, %v1664_v4  ;;  %v1665_v10 = vpack.c.bf16 %v1031_v5, %v1031_v5  ;;  %v781_v11 = vadd.f32 %v1726_v6, %v2390_v15  ;;  %v1729_v12 = vadd.f32 %v1728_v9, %v1727_v7 }
 0x11b   : > { %v940_v16 = vpop.f32.mrb[16].mxu1 }
 0x11c   : > { %1178 = vst.msk [vmem:[%s2395_s12 + $0x14] sm:$0xf] %vm1172_vm4, %v1665_v10  ;;  %v933_v13 = vadd.f32 %v932_v60, %v781_v11  ;;  %v784_v14 = vadd.f32 %v1729_v12, %v2390_v15  ;;  %v1850_v19 = vpop.f32.mrb[17].mxu1 }
 0x11d   : > { %v943_v21 = vpop.f32.mrb[18].mxu1 }
 0x11e   : > { %v1032_v17 = vmax.f32 %v933_v13, 0.0  ;;  %v936_v18 = vadd.f32 %v935_v3, %v784_v14  ;;  %v1730_v2 = vpop.f32.mrb[16].mxu0  ;;  %v1851_v26 = vpop.f32.mrb[19].mxu1 }
 0x11f   : > { %v1731_v20 = vpop.f32.mrb[17].mxu0 }
 0x120   : > { %v1666_v22 = vpack.c.bf16 %v1032_v17, %v1032_v17  ;;  %v1033_v23 = vmax.f32 %v936_v18, 0.0  ;;  %v1732_v24 = vadd.f32 %v1731_v20, %v1730_v2  ;;  %v1733_v25 = vpop.f32.mrb[18].mxu0 }
 0x121   : > { %v1734_v27 = vpop.f32.mrb[19].mxu0 }
 0x122   : > { %1179 = vst.msk [vmem:[%s2395_s12 + $0x18] sm:$0xf] %vm1172_vm4, %v1666_v22  ;;  %v1667_v28 = vpack.c.bf16 %v1033_v23, %v1033_v23  ;;  %v789_v29 = vadd.f32 %v1732_v24, %v2390_v15  ;;  %v1735_v30 = vadd.f32 %v1734_v27, %v1733_v25 }
 0x123   : > { %v948_v33 = vpop.f32.mrb[20].mxu1 }
 0x124   : > { %1180 = vst.msk [vmem:[%s2395_s12 + $0x1c] sm:$0xf] %vm1172_vm4, %v1667_v28  ;;  %v941_v31 = vadd.f32 %v940_v16, %v789_v29  ;;  %v792_v32 = vadd.f32 %v1735_v30, %v2390_v15  ;;  %v1854_v37 = vpop.f32.mrb[21].mxu1 }
 0x125   : > { %v951_v39 = vpop.f32.mrb[22].mxu1 }
 0x126   : > { %v1034_v34 = vmax.f32 %v941_v31, 0.0  ;;  %v944_v35 = vadd.f32 %v943_v21, %v792_v32  ;;  %v1736_v36 = vpop.f32.mrb[20].mxu0  ;;  %v1855_v44 = vpop.f32.mrb[23].mxu1 }
 0x127   : > { %v1737_v38 = vpop.f32.mrb[21].mxu0 }
 0x128   : > { %v1668_v40 = vpack.c.bf16 %v1034_v34, %v1034_v34  ;;  %v1035_v41 = vmax.f32 %v944_v35, 0.0  ;;  %v1738_v42 = vadd.f32 %v1737_v38, %v1736_v36  ;;  %v1739_v43 = vpop.f32.mrb[22].mxu0 }
 0x129   : > { %v1740_v45 = vpop.f32.mrb[23].mxu0 }
 0x12a   : > { %1181 = vst.msk [vmem:[%s2395_s12 + $0x20] sm:$0xf] %vm1172_vm4, %v1668_v40  ;;  %v1669_v46 = vpack.c.bf16 %v1035_v41, %v1035_v41  ;;  %v797_v47 = vadd.f32 %v1738_v42, %v2390_v15  ;;  %v1741_v48 = vadd.f32 %v1740_v45, %v1739_v43 }
 0x12b   : > { %v956_v51 = vpop.f32.mrb[24].mxu1 }
 0x12c   : > { %1182 = vst.msk [vmem:[%s2395_s12 + $0x24] sm:$0xf] %vm1172_vm4, %v1669_v46  ;;  %v949_v49 = vadd.f32 %v948_v33, %v797_v47  ;;  %v800_v50 = vadd.f32 %v1741_v48, %v2390_v15  ;;  %v1858_v55 = vpop.f32.mrb[25].mxu1 }
 0x12d   : > { %v959_v57 = vpop.f32.mrb[26].mxu1 }
 0x12e   : > { %v1036_v52 = vmax.f32 %v949_v49, 0.0  ;;  %v952_v53 = vadd.f32 %v951_v39, %v800_v50  ;;  %v1742_v54 = vpop.f32.mrb[24].mxu0  ;;  %v1859_v62 = vpop.f32.mrb[27].mxu1 }
 0x12f   : > { %v1743_v56 = vpop.f32.mrb[25].mxu0 }
 0x130   : > { %v1670_v58 = vpack.c.bf16 %v1036_v52, %v1036_v52  ;;  %v1037_v59 = vmax.f32 %v952_v53, 0.0  ;;  %v1744_v60 = vadd.f32 %v1743_v56, %v1742_v54  ;;  %v1745_v61 = vpop.f32.mrb[26].mxu0 }
 0x131   : > { %v1746_v63 = vpop.f32.mrb[27].mxu0 }
 0x132   : > { %1183 = vst.msk [vmem:[%s2395_s12 + $0x28] sm:$0xf] %vm1172_vm4, %v1670_v58  ;;  %v1671_v0 = vpack.c.bf16 %v1037_v59, %v1037_v59  ;;  %v805_v1 = vadd.f32 %v1744_v60, %v2390_v15  ;;  %v1747_v3 = vadd.f32 %v1746_v63, %v1745_v61 }
 0x133   : > { %v964_v6 = vpop.f32.mrb[28].mxu1 }
 0x134   : > { %1184 = vst.msk [vmem:[%s2395_s12 + $0x2c] sm:$0xf] %vm1172_vm4, %v1671_v0  ;;  %v957_v4 = vadd.f32 %v956_v51, %v805_v1  ;;  %v808_v5 = vadd.f32 %v1747_v3, %v2390_v15  ;;  %v1862_v10 = vpop.f32.mrb[29].mxu1 }
 0x135   : > { %v967_v12 = vpop.f32.mrb[30].mxu1 }
 0x136   : > { %v1038_v7 = vmax.f32 %v957_v4, 0.0  ;;  %v960_v8 = vadd.f32 %v959_v57, %v808_v5  ;;  %v1748_v9 = vpop.f32.mrb[28].mxu0  ;;  %v1863_v18 = vpop.f32.mrb[31].mxu1 }
 0x137   : > { %v1749_v11 = vpop.f32.mrb[29].mxu0 }
 0x138   : > { %v1672_v13 = vpack.c.bf16 %v1038_v7, %v1038_v7  ;;  %v1039_v14 = vmax.f32 %v960_v8, 0.0  ;;  %v1750_v16 = vadd.f32 %v1749_v11, %v1748_v9  ;;  %v1751_v17 = vpop.f32.mrb[30].mxu0 }
 0x139   : > { %v1752_v2 = vpop.f32.mrb[31].mxu0 }
 0x13a   : > { %1185 = vst.msk [vmem:[%s2395_s12 + $0x30] sm:$0xf] %vm1172_vm4, %v1672_v13  ;;  %v1673_v19 = vpack.c.bf16 %v1039_v14, %v1039_v14  ;;  %v813_v20 = vadd.f32 %v1750_v16, %v2390_v15  ;;  %v1753_v21 = vadd.f32 %v1752_v2, %v1751_v17 }
 0x13b   : > { %v972_v24 = vpop.f32.mrb[32].mxu1 }
 0x13c   : > { %1186 = vst.msk [vmem:[%s2395_s12 + $0x34] sm:$0xf] %vm1172_vm4, %v1673_v19  ;;  %v965_v22 = vadd.f32 %v964_v6, %v813_v20  ;;  %v816_v23 = vadd.f32 %v1753_v21, %v2390_v15  ;;  %v1866_v28 = vpop.f32.mrb[33].mxu1 }
 0x13d   : > { %v975_v30 = vpop.f32.mrb[34].mxu1 }
 0x13e   : > { %v1040_v25 = vmax.f32 %v965_v22, 0.0  ;;  %v968_v26 = vadd.f32 %v967_v12, %v816_v23  ;;  %v1754_v27 = vpop.f32.mrb[32].mxu0  ;;  %v1867_v35 = vpop.f32.mrb[35].mxu1 }
 0x13f   : > { %v1755_v29 = vpop.f32.mrb[33].mxu0 }
 0x140   : > { %v1674_v31 = vpack.c.bf16 %v1040_v25, %v1040_v25  ;;  %v1041_v32 = vmax.f32 %v968_v26, 0.0  ;;  %v1756_v33 = vadd.f32 %v1755_v29, %v1754_v27  ;;  %v1757_v34 = vpop.f32.mrb[34].mxu0 }
 0x141   : > { %v1758_v36 = vpop.f32.mrb[35].mxu0 }
 0x142   : > { %1187 = vst.msk [vmem:[%s2395_s12 + $0x38] sm:$0xf] %vm1172_vm4, %v1674_v31  ;;  %v1675_v37 = vpack.c.bf16 %v1041_v32, %v1041_v32  ;;  %v821_v38 = vadd.f32 %v1756_v33, %v2390_v15  ;;  %v1759_v39 = vadd.f32 %v1758_v36, %v1757_v34 }
 0x143   : > { %v980_v42 = vpop.f32.mrb[36].mxu1 }
 0x144   : > { %1188 = vst.msk [vmem:[%s2395_s12 + $0x3c] sm:$0xf] %vm1172_vm4, %v1675_v37  ;;  %v973_v40 = vadd.f32 %v972_v24, %v821_v38  ;;  %v824_v41 = vadd.f32 %v1759_v39, %v2390_v15  ;;  %v1870_v46 = vpop.f32.mrb[37].mxu1 }
 0x145   : > { %v983_v48 = vpop.f32.mrb[38].mxu1 }
 0x146   : > { %v1042_v43 = vmax.f32 %v973_v40, 0.0  ;;  %v976_v44 = vadd.f32 %v975_v30, %v824_v41  ;;  %v1760_v45 = vpop.f32.mrb[36].mxu0  ;;  %v1871_v53 = vpop.f32.mrb[39].mxu1 }
 0x147   : > { %v1761_v47 = vpop.f32.mrb[37].mxu0 }
 0x148   : > { %v1676_v49 = vpack.c.bf16 %v1042_v43, %v1042_v43  ;;  %v1043_v50 = vmax.f32 %v976_v44, 0.0  ;;  %v1762_v51 = vadd.f32 %v1761_v47, %v1760_v45  ;;  %v1763_v52 = vpop.f32.mrb[38].mxu0 }
 0x149   : > { %v1764_v54 = vpop.f32.mrb[39].mxu0 }
 0x14a   : > { %1189 = vst.msk [vmem:[%s2395_s12 + $0x40] sm:$0xf] %vm1172_vm4, %v1676_v49  ;;  %v1677_v55 = vpack.c.bf16 %v1043_v50, %v1043_v50  ;;  %v829_v56 = vadd.f32 %v1762_v51, %v2390_v15  ;;  %v1765_v57 = vadd.f32 %v1764_v54, %v1763_v52 }
 0x14b   : > { %v988_v60 = vpop.f32.mrb[40].mxu1 }
 0x14c   : > { %1190 = vst.msk [vmem:[%s2395_s12 + $0x44] sm:$0xf] %vm1172_vm4, %v1677_v55  ;;  %v981_v58 = vadd.f32 %v980_v42, %v829_v56  ;;  %v832_v59 = vadd.f32 %v1765_v57, %v2390_v15  ;;  %v1874_v0 = vpop.f32.mrb[41].mxu1 }
 0x14d   : > { %v991_v3 = vpop.f32.mrb[42].mxu1 }
 0x14e   : > { %v1044_v61 = vmax.f32 %v981_v58, 0.0  ;;  %v984_v62 = vadd.f32 %v983_v48, %v832_v59  ;;  %v1766_v63 = vpop.f32.mrb[40].mxu0  ;;  %v1875_v8 = vpop.f32.mrb[43].mxu1 }
 0x14f   : > { %v1767_v1 = vpop.f32.mrb[41].mxu0 }
 0x150   : > { %v1678_v4 = vpack.c.bf16 %v1044_v61, %v1044_v61  ;;  %v1045_v5 = vmax.f32 %v984_v62, 0.0  ;;  %v1768_v6 = vadd.f32 %v1767_v1, %v1766_v63  ;;  %v1769_v7 = vpop.f32.mrb[42].mxu0 }
 0x151   : > { %v1770_v9 = vpop.f32.mrb[43].mxu0 }
 0x152   : > { %1191 = vst.msk [vmem:[%s2395_s12 + $0x48] sm:$0xf] %vm1172_vm4, %v1678_v4  ;;  %v1679_v10 = vpack.c.bf16 %v1045_v5, %v1045_v5  ;;  %v837_v11 = vadd.f32 %v1768_v6, %v2390_v15  ;;  %v1771_v12 = vadd.f32 %v1770_v9, %v1769_v7 }
 0x153   : > { %v996_v16 = vpop.f32.mrb[44].mxu1 }
 0x154   : > { %1192 = vst.msk [vmem:[%s2395_s12 + $0x4c] sm:$0xf] %vm1172_vm4, %v1679_v10  ;;  %v989_v13 = vadd.f32 %v988_v60, %v837_v11  ;;  %v840_v14 = vadd.f32 %v1771_v12, %v2390_v15  ;;  %v1878_v19 = vpop.f32.mrb[45].mxu1 }
 0x155   : > { %v999_v21 = vpop.f32.mrb[46].mxu1 }
 0x156   : > { %v1046_v17 = vmax.f32 %v989_v13, 0.0  ;;  %v992_v18 = vadd.f32 %v991_v3, %v840_v14  ;;  %v1772_v2 = vpop.f32.mrb[44].mxu0  ;;  %v1879_v26 = vpop.f32.mrb[47].mxu1 }
 0x157   : > { %v1773_v20 = vpop.f32.mrb[45].mxu0 }
 0x158   : > { %v1680_v22 = vpack.c.bf16 %v1046_v17, %v1046_v17  ;;  %v1047_v23 = vmax.f32 %v992_v18, 0.0  ;;  %v1774_v24 = vadd.f32 %v1773_v20, %v1772_v2  ;;  %v1775_v25 = vpop.f32.mrb[46].mxu0 }
 0x159   : > { %v1776_v27 = vpop.f32.mrb[47].mxu0 }
 0x15a   : > { %1193 = vst.msk [vmem:[%s2395_s12 + $0x50] sm:$0xf] %vm1172_vm4, %v1680_v22  ;;  %v1681_v28 = vpack.c.bf16 %v1047_v23, %v1047_v23  ;;  %v845_v29 = vadd.f32 %v1774_v24, %v2390_v15  ;;  %v1777_v30 = vadd.f32 %v1776_v27, %v1775_v25 }
 0x15b   : > { %v1004_v33 = vpop.f32.mrb[48].mxu1 }
 0x15c   : > { %1194 = vst.msk [vmem:[%s2395_s12 + $0x54] sm:$0xf] %vm1172_vm4, %v1681_v28  ;;  %v997_v31 = vadd.f32 %v996_v16, %v845_v29  ;;  %v848_v32 = vadd.f32 %v1777_v30, %v2390_v15  ;;  %v1882_v37 = vpop.f32.mrb[49].mxu1 }
 0x15d   : > { %v1007_v39 = vpop.f32.mrb[50].mxu1 }
 0x15e   : > { %v1048_v34 = vmax.f32 %v997_v31, 0.0  ;;  %v1000_v35 = vadd.f32 %v999_v21, %v848_v32  ;;  %v1778_v36 = vpop.f32.mrb[48].mxu0  ;;  %v1883_v44 = vpop.f32.mrb[51].mxu1 }
 0x15f   : > { %v1779_v38 = vpop.f32.mrb[49].mxu0 }
 0x160   : > { %v1682_v40 = vpack.c.bf16 %v1048_v34, %v1048_v34  ;;  %v1049_v41 = vmax.f32 %v1000_v35, 0.0  ;;  %v1780_v42 = vadd.f32 %v1779_v38, %v1778_v36  ;;  %v1781_v43 = vpop.f32.mrb[50].mxu0 }
 0x161   : > { %v1782_v45 = vpop.f32.mrb[51].mxu0 }
 0x162   : > { %1195 = vst.msk [vmem:[%s2395_s12 + $0x58] sm:$0xf] %vm1172_vm4, %v1682_v40  ;;  %v1683_v46 = vpack.c.bf16 %v1049_v41, %v1049_v41  ;;  %v853_v47 = vadd.f32 %v1780_v42, %v2390_v15  ;;  %v1783_v48 = vadd.f32 %v1782_v45, %v1781_v43 }
 0x163   : > { %v1012_v51 = vpop.f32.mrb[52].mxu1 }
 0x164   : > { %1196 = vst.msk [vmem:[%s2395_s12 + $0x5c] sm:$0xf] %vm1172_vm4, %v1683_v46  ;;  %v1005_v49 = vadd.f32 %v1004_v33, %v853_v47  ;;  %v856_v50 = vadd.f32 %v1783_v48, %v2390_v15  ;;  %v1886_v55 = vpop.f32.mrb[53].mxu1 }
 0x165   : > { %v1015_v57 = vpop.f32.mrb[54].mxu1 }
 0x166   : > { %v1050_v52 = vmax.f32 %v1005_v49, 0.0  ;;  %v1008_v53 = vadd.f32 %v1007_v39, %v856_v50  ;;  %v1784_v54 = vpop.f32.mrb[52].mxu0  ;;  %v1887_v62 = vpop.f32.mrb[55].mxu1 }
 0x167   : > { %v1785_v56 = vpop.f32.mrb[53].mxu0 }
 0x168   : > { %v1684_v58 = vpack.c.bf16 %v1050_v52, %v1050_v52  ;;  %v1051_v59 = vmax.f32 %v1008_v53, 0.0  ;;  %v1786_v60 = vadd.f32 %v1785_v56, %v1784_v54  ;;  %v1787_v61 = vpop.f32.mrb[54].mxu0 }
 0x169   : > { %v1788_v63 = vpop.f32.mrb[55].mxu0 }
 0x16a   : > { %1197 = vst.msk [vmem:[%s2395_s12 + $0x60] sm:$0xf] %vm1172_vm4, %v1684_v58  ;;  %v1685_v0 = vpack.c.bf16 %v1051_v59, %v1051_v59  ;;  %v861_v1 = vadd.f32 %v1786_v60, %v2390_v15  ;;  %v1789_v3 = vadd.f32 %v1788_v63, %v1787_v61 }
 0x16b   : > { %v1020_v6 = vpop.f32.mrb[56].mxu1 }
 0x16c   : > { %1198 = vst.msk [vmem:[%s2395_s12 + $0x64] sm:$0xf] %vm1172_vm4, %v1685_v0  ;;  %v1013_v4 = vadd.f32 %v1012_v51, %v861_v1  ;;  %v864_v5 = vadd.f32 %v1789_v3, %v2390_v15  ;;  %v1890_v10 = vpop.f32.mrb[57].mxu1 }
 0x16d   : > { %v1023_v12 = vpop.f32.mrb[58].mxu1 }
 0x16e   : > { %v1052_v7 = vmax.f32 %v1013_v4, 0.0  ;;  %v1016_v8 = vadd.f32 %v1015_v57, %v864_v5  ;;  %v1790_v9 = vpop.f32.mrb[56].mxu0  ;;  %v1891_v18 = vpop.f32.mrb[59].mxu1 }
 0x16f   : > { %v1791_v11 = vpop.f32.mrb[57].mxu0 }
 0x170   : > { %v1686_v13 = vpack.c.bf16 %v1052_v7, %v1052_v7  ;;  %v1053_v14 = vmax.f32 %v1016_v8, 0.0  ;;  %v1792_v16 = vadd.f32 %v1791_v11, %v1790_v9  ;;  %v1793_v17 = vpop.f32.mrb[58].mxu0 }
 0x171   : > { %v1794_v2 = vpop.f32.mrb[59].mxu0 }
 0x172   : > { %1199 = vst.msk [vmem:[%s2395_s12 + $0x68] sm:$0xf] %vm1172_vm4, %v1686_v13  ;;  %v1687_v19 = vpack.c.bf16 %v1053_v14, %v1053_v14  ;;  %v869_v20 = vadd.f32 %v1792_v16, %v2390_v15 }
 0x174   : > { %1200 = vst.msk [vmem:[%s2395_s12 + $0x6c] sm:$0xf] %vm1172_vm4, %v1687_v19  ;;  %v1021_v21 = vadd.f32 %v1020_v6, %v869_v20  ;;  %1208 = sbr.rel (!%p2208_p4) target bundleno = 460 (0x1cc), region = 36 }
 0x176   : > { %v1054_v22 = vmax.f32 %v1021_v21, 0.0 }
 0x178   : > { %v1688_v23 = vpack.c.bf16 %v1054_v22, %v1054_v22 }
 0x17a   : > { %1201 = vst.msk [vmem:[%s2395_s12 + $0x70] sm:$0xf] %vm1172_vm4, %v1688_v23 }
 0x17b   : > { %s2618_s10 = smov (!%p1211_p8, %s1210_s10), 29 }
 0x17c   : > { %s1648_s21 = sshll.u32 %s2618_s10, 6 }
 0x17d   : > { %p1651_p9 = scmp.eq.s32.totalorder %s1648_s21, 0 }
 0x17e   : > { %2068 = sdivrem.u32 (!%p1651_p9), %s2618_s10, 29 }
 0x17f   : > { %1219 = sbr.rel (%p1651_p9) target bundleno = 460 (0x1cc), region = 40 }
 0x187   : > { %s2495_s20 = spop.drf %2068 }
 0x188   : > { %p1652_p10 = scmp.le.s32.totalorder %s2495_s20, 0 }
 0x189   : > { %s2611_s15 = smov (!%p1652_p10), %s2489_s18  ;;  %s2612_s4 = smov (!%p1652_p10), %s2395_s12 }
 0x18a   : > { %1486 = sbr.rel (%p1652_p10) target bundleno = 431 (0x1af), region = 112  ;;  %s2504_s22 = smov (!%p1652_p10), 0  }
 0x18b   : > { %s2506_s23 = smov (!%p1652_p10), 0  }
 0x191 LB: >> { %v1236_v15 = vld [vmem:[%s2134_s4] sm:$0xf]  ;;  %v1238_v24 = vld [vmem:[%s2134_s4 + $0x4] sm:$0xf]  ;;  %v1240_v25 = vld [vmem:[%s2134_s4 + $0x8] sm:$0xf]  ;;  %s2142_s23 = sphi %s2506_s23, %s1230_s23   ;;  %s2138_s22 = sphi %s2504_s22, %s2613_s22   ;;  %s2134_s4 = sphi %s2612_s4, %s1299_s4   ;;  %s2130_s15 = sphi %s2611_s15, %s1300_s15  }
 0x192   : >> { %1237 = vst [vmem:[%s2130_s15] sm:$0xf] %v1236_v15  ;;  %1239 = vst [vmem:[%s2130_s15 + $0x4] sm:$0xf] %v1238_v24  ;;  %v1242_v26 = vld [vmem:[%s2134_s4 + $0xc] sm:$0xf]  ;;  %s1294_s24 = sadd.s32 1, %s2138_s22 }
 0x193   : >> { %1241 = vst [vmem:[%s2130_s15 + $0x8] sm:$0xf] %v1240_v25  ;;  %v1244_v27 = vld [vmem:[%s2134_s4 + $0x10] sm:$0xf]  ;;  %v1246_v28 = vld [vmem:[%s2134_s4 + $0x14] sm:$0xf]  ;;  %p1295_p11 = scmp.ge.s32.totalorder %s1294_s24, %s2495_s20 }
 0x194   : >> { %1243 = vst [vmem:[%s2130_s15 + $0xc] sm:$0xf] %v1242_v26  ;;  %1245 = vst [vmem:[%s2130_s15 + $0x10] sm:$0xf] %v1244_v27  ;;  %v1248_v29 = vld [vmem:[%s2134_s4 + $0x18] sm:$0xf] }
 0x195   : >> { %1247 = vst [vmem:[%s2130_s15 + $0x14] sm:$0xf] %v1246_v28  ;;  %v1250_v30 = vld [vmem:[%s2134_s4 + $0x1c] sm:$0xf]  ;;  %v1252_v31 = vld [vmem:[%s2134_s4 + $0x20] sm:$0xf] }
 0x196   : >> { %1249 = vst [vmem:[%s2130_s15 + $0x18] sm:$0xf] %v1248_v29  ;;  %1251 = vst [vmem:[%s2130_s15 + $0x1c] sm:$0xf] %v1250_v30  ;;  %v1254_v32 = vld [vmem:[%s2134_s4 + $0x24] sm:$0xf] }
 0x197   : >> { %1253 = vst [vmem:[%s2130_s15 + $0x20] sm:$0xf] %v1252_v31  ;;  %v1256_v33 = vld [vmem:[%s2134_s4 + $0x28] sm:$0xf]  ;;  %v1258_v34 = vld [vmem:[%s2134_s4 + $0x2c] sm:$0xf] }
 0x198   : >> { %1255 = vst [vmem:[%s2130_s15 + $0x24] sm:$0xf] %v1254_v32  ;;  %1257 = vst [vmem:[%s2130_s15 + $0x28] sm:$0xf] %v1256_v33  ;;  %v1260_v35 = vld [vmem:[%s2134_s4 + $0x30] sm:$0xf] }
 0x199   : >> { %1259 = vst [vmem:[%s2130_s15 + $0x2c] sm:$0xf] %v1258_v34  ;;  %v1262_v36 = vld [vmem:[%s2134_s4 + $0x34] sm:$0xf]  ;;  %v1264_v37 = vld [vmem:[%s2134_s4 + $0x38] sm:$0xf] }
 0x19a   : >> { %1261 = vst [vmem:[%s2130_s15 + $0x30] sm:$0xf] %v1260_v35  ;;  %1263 = vst [vmem:[%s2130_s15 + $0x34] sm:$0xf] %v1262_v36  ;;  %v1266_v38 = vld [vmem:[%s2134_s4 + $0x3c] sm:$0xf] }
 0x19b   : >> { %1265 = vst [vmem:[%s2130_s15 + $0x38] sm:$0xf] %v1264_v37  ;;  %v1268_v39 = vld [vmem:[%s2134_s4 + $0x40] sm:$0xf]  ;;  %v1270_v40 = vld [vmem:[%s2134_s4 + $0x44] sm:$0xf] }
 0x19c   : >> { %1267 = vst [vmem:[%s2130_s15 + $0x3c] sm:$0xf] %v1266_v38  ;;  %1269 = vst [vmem:[%s2130_s15 + $0x40] sm:$0xf] %v1268_v39  ;;  %v1272_v41 = vld [vmem:[%s2134_s4 + $0x48] sm:$0xf] }
 0x19d   : >> { %1271 = vst [vmem:[%s2130_s15 + $0x44] sm:$0xf] %v1270_v40  ;;  %v1274_v42 = vld [vmem:[%s2134_s4 + $0x4c] sm:$0xf]  ;;  %v1276_v43 = vld [vmem:[%s2134_s4 + $0x50] sm:$0xf] }
 0x19e   : >> { %1273 = vst [vmem:[%s2130_s15 + $0x48] sm:$0xf] %v1272_v41  ;;  %1275 = vst [vmem:[%s2130_s15 + $0x4c] sm:$0xf] %v1274_v42  ;;  %v1278_v44 = vld [vmem:[%s2134_s4 + $0x54] sm:$0xf] }
 0x19f   : >> { %1277 = vst [vmem:[%s2130_s15 + $0x50] sm:$0xf] %v1276_v43  ;;  %v1280_v45 = vld [vmem:[%s2134_s4 + $0x58] sm:$0xf]  ;;  %v1282_v46 = vld [vmem:[%s2134_s4 + $0x5c] sm:$0xf] }
 0x1a0   : >> { %1279 = vst [vmem:[%s2130_s15 + $0x54] sm:$0xf] %v1278_v44  ;;  %1281 = vst [vmem:[%s2130_s15 + $0x58] sm:$0xf] %v1280_v45  ;;  %v1284_v47 = vld [vmem:[%s2134_s4 + $0x60] sm:$0xf] }
 0x1a1   : >> { %1283 = vst [vmem:[%s2130_s15 + $0x5c] sm:$0xf] %v1282_v46  ;;  %v1286_v48 = vld [vmem:[%s2134_s4 + $0x64] sm:$0xf]  ;;  %v1288_v49 = vld [vmem:[%s2134_s4 + $0x68] sm:$0xf] }
 0x1a2   : >> { %1285 = vst [vmem:[%s2130_s15 + $0x60] sm:$0xf] %v1284_v47  ;;  %1287 = vst [vmem:[%s2130_s15 + $0x64] sm:$0xf] %v1286_v48  ;;  %v1290_v50 = vld [vmem:[%s2134_s4 + $0x6c] sm:$0xf] }
 0x1a3   : >> { %1289 = vst [vmem:[%s2130_s15 + $0x68] sm:$0xf] %v1288_v49  ;;  %v1292_v51 = vld [vmem:[%s2134_s4 + $0x70] sm:$0xf]  ;;  %1291 = vst [vmem:[%s2130_s15 + $0x6c] sm:$0xf] %v1290_v50 }
 0x1a4   : >> { %1293 = vst [vmem:[%s2130_s15 + $0x70] sm:$0xf] %v1292_v51  ;;  %s2620_s24 = smov (%p1295_p11, %s1294_s24), 0  ;;  %s1230_s23 = sadd.s32 1, %s2142_s23  }
 0x1a5   : >> { %s1297_s25 = smul.u32 116, %s2620_s24  ;;  %p1229_p12 = scmp.ge.s32.totalorder %s1230_s23, %s2495_s20 }
 0x1a6   : >> { %s2613_s22 = smov %s2620_s24 }
 0x1a7   : >> { %s1299_s4 = scalar_lea.vmem %s2395_s12, %s1297_s25 [#allocation2]   ;;  %s1300_s15 = scalar_lea.vmem %s2489_s18, %s1297_s25  }
 0x1a8   : > { %1232 = sbr.rel (!%p1229_p12) target bundleno = 401 (0x191), region = 118 }
 0x1af PF: > { %2070 = sdivrem.u32 %s2618_s10, 29 }
 0x1b0   : > { %s1653_s26 = smul.u32 116, %s2495_s20 }
 0x1b2   : > { %s1305_s27 = scalar_lea.vmem %s2395_s12, %s1653_s26 [#allocation2]   ;;  %s1307_s28 = scalar_lea.vmem %s2489_s18, %s1653_s26  }
 0x1b8   : > { %s2071_s29 = spop.drf %2070 }
 0x1b9   : > { %p1655_p13 = scmp.le.s32.totalorder %s2071_s29, 0 }
 0x1ba   : > { %s2144_s30 = smov (!%p1655_p13), %s1307_s28   ;;  %s2148_s5 = smov (!%p1655_p13), %s1305_s27  }
 0x1bb   : > { %1500 = sbr.rel (%p1655_p13) target bundleno = 460 (0x1cc), region = 123  ;;  %s2152_s6 = smov (!%p1655_p13), 0  }
 0x1bc   : > { %s2156_s7 = smov (!%p1655_p13), 0  }
 0x1c2 LB: >> { %v1317_v52 = vld [vmem:[%s2150_s5] sm:$0xf]  ;;  %s1319_s8 = sadd.s32 1, %s2154_s6  ;;  %s1311_s7 = sadd.s32 1, %s2158_s7   ;;  %s2158_s7 = sphi %s2156_s7, %s1311_s7   ;;  %s2154_s6 = sphi %s2152_s6, %s2153_s6   ;;  %s2150_s5 = sphi %s2148_s5, %s1324_s5   ;;  %s2146_s30 = sphi %s2144_s30, %s1325_s30  }
 0x1c3   : >> { %1318 = vst [vmem:[%s2146_s30] sm:$0xf] %v1317_v52  ;;  %p1320_p0 = scmp.ge.s32.totalorder %s1319_s8, %s2071_s29  ;;  %p1310_p1 = scmp.ge.s32.totalorder %s1311_s7, %s2071_s29 }
 0x1c5   : >> { %s2622_s8 = smov (%p1320_p0, %s1319_s8), 0  ;;  %1313 = sbr.rel (!%p1310_p1) target bundleno = 450 (0x1c2), region = 129 }
 0x1c6   : >> { %s1656_s9 = sshll.u32 %s2622_s8, 2  ;;  %s2153_s6 = smov %s2622_s8  }
 0x1c7   : >> { %s1324_s5 = scalar_lea.vmem %s1305_s27, %s1656_s9 [#allocation2]   ;;  %s1325_s30 = scalar_lea.vmem %s1307_s28, %s1656_s9  }
 0x1cc PF: > { %p10_p2 = scmp.ge.s32.totalorder %s2198_s16, 4   ;;  %s2614_s12 = smov %s2122_s13 }
 0x1cd   : > { %s2615_s13 = smov %s2206_s19  ;;  %s2616_s14 = smov %s2198_s16 }
 0x1ce   :  { %12 = sbr.rel (!%p10_p2) target bundleno = 2 (0x2), region = 140 }

// kernel: new_alexnet_forward.6
= control target key start
LH: loop header
LB: loop body
LE: loop exit
PB: predicated region body
PF: predicated region fallthrough
CT: control target
= control target key end

     0   :  { %vm1753_vm0 = vcmask 523264   ;;  %vm2588_vm1 = vcmask 1043456   ;;  %vm2589_vm2 = vcmask 523268   ;;  %vm2603_vm4 = vcmask 1040384   ;;  %s4773_s1 = inlined_call_operand.vmem [shape: bf16[1600,192], index: 1, kind: input, shape index: {}]   ;;  %s4774_s0 = inlined_call_operand.vmem [shape: bf16[98,1600], index: 0, kind: input, shape index: {}]   ;;  %s4775_s2 = inlined_call_operand.vmem [shape: f32[1,192], index: 2, kind: input, shape index: {}]   ;;  %s4776_s3 = inlined_call_operand.vmem [shape: bf16[98,192], index: 3, kind: output, shape index: {}]  }
   0x1   :  { %v3156_v0 = vld [vmem:[%s4773_s1 + $0x4] ss:$8 sps:$4 sm:$0xff]   ;;  %v3160_v2 = vld [vmem:[%s4773_s1] ss:$8 sps:$4 sm:$0xff]   ;;  %v3162_v4 = vld [vmem:[%s4773_s1 + $0x14] ss:$8 sps:$4 sm:$0xff]  }
   0x2   :  { %v3158_v1 = vld [vmem:[%s4773_s1 + $0x304] ss:$8 sps:$4 sm:$0xff]   ;;  %1775 = vmatprep.subr.bf16.mxu1 %v3156_v0  ;;  %v3161_v3 = vld [vmem:[%s4773_s1 + $0x300] ss:$8 sps:$4 sm:$0xff]   ;;  %v3164_v5 = vld [vmem:[%s4773_s1 + $0x314] ss:$8 sps:$4 sm:$0xff]  }
   0x3   :  { %2078 = vmatprep.subr.bf16.mxu0 %v3158_v1  ;;  %1776 = vmatpush1.bf16.msra.mxu1 %v3160_v2  ;;  %v3166_v6 = vld [vmem:[%s4773_s1 + $0x10] ss:$8 sps:$4 sm:$0xff]   ;;  %v3168_v8 = vld [vmem:[%s4773_s1 + $0x24] ss:$8 sps:$4 sm:$0xff]   ;;  %v3172_v10 = vld [vmem:[%s4773_s1 + $0x20] ss:$8 sps:$4 sm:$0xff]  }
   0x4   :  { %2079 = vmatpush1.bf16.msra.mxu0 %v3161_v3  ;;  %1777 = vmatprep.subr.bf16.mxu1 %v3162_v4  ;;  %v3167_v7 = vld [vmem:[%s4773_s1 + $0x310] ss:$8 sps:$4 sm:$0xff]   ;;  %v3170_v9 = vld [vmem:[%s4773_s1 + $0x324] ss:$8 sps:$4 sm:$0xff]   ;;  %v3173_v11 = vld [vmem:[%s4773_s1 + $0x320] ss:$8 sps:$4 sm:$0xff]  }
   0x5   :  { %2080 = vmatprep.subr.bf16.mxu0 %v3164_v5  ;;  %v3174_v12 = vld [vmem:[%s4773_s1 + $0x34] ss:$8 sps:$4 sm:$0xff]   ;;  %v3178_v14 = vld [vmem:[%s4773_s1 + $0x30] ss:$8 sps:$4 sm:$0xff]   ;;  %v3180_v16 = vld [vmem:[%s4773_s1 + $0x44] ss:$8 sps:$4 sm:$0xff]  }
   0x6   :  { %v3176_v13 = vld [vmem:[%s4773_s1 + $0x334] ss:$8 sps:$4 sm:$0xff]   ;;  %v3179_v15 = vld [vmem:[%s4773_s1 + $0x330] ss:$8 sps:$4 sm:$0xff]   ;;  %v3182_v17 = vld [vmem:[%s4773_s1 + $0x344] ss:$8 sps:$4 sm:$0xff]  }
   0x7   :  { %1778 = vmatpush1.bf16.msra.mxu1 %v3166_v6  ;;  %v3184_v18 = vld [vmem:[%s4773_s1 + $0x40] ss:$8 sps:$4 sm:$0xff]   ;;  %v3186_v20 = vld [vmem:[%s4773_s1 + $0x54] ss:$8 sps:$4 sm:$0xff]   ;;  %v3190_v22 = vld [vmem:[%s4773_s1 + $0x50] ss:$8 sps:$4 sm:$0xff]  }
   0x8   :  { %2081 = vmatpush1.bf16.msra.mxu0 %v3167_v7  ;;  %1779 = vmatprep.subr.bf16.mxu1 %v3168_v8  ;;  %v3185_v19 = vld [vmem:[%s4773_s1 + $0x340] ss:$8 sps:$4 sm:$0xff]   ;;  %v3188_v21 = vld [vmem:[%s4773_s1 + $0x354] ss:$8 sps:$4 sm:$0xff]   ;;  %v3191_v23 = vld [vmem:[%s4773_s1 + $0x350] ss:$8 sps:$4 sm:$0xff]  }
   0x9   :  { %2082 = vmatprep.subr.bf16.mxu0 %v3170_v9  ;;  %v3192_v24 = vld [vmem:[%s4773_s1 + $0x64] ss:$8 sps:$4 sm:$0xff]   ;;  %v3196_v26 = vld [vmem:[%s4773_s1 + $0x60] ss:$8 sps:$4 sm:$0xff]   ;;  %v3198_v28 = vld [vmem:[%s4773_s1 + $0x74] ss:$8 sps:$4 sm:$0xff]  }
   0xa   :  { %v3194_v25 = vld [vmem:[%s4773_s1 + $0x364] ss:$8 sps:$4 sm:$0xff]   ;;  %v3197_v27 = vld [vmem:[%s4773_s1 + $0x360] ss:$8 sps:$4 sm:$0xff]   ;;  %v3200_v29 = vld [vmem:[%s4773_s1 + $0x374] ss:$8 sps:$4 sm:$0xff]  }
   0xb   :  { %1780 = vmatpush1.bf16.msra.mxu1 %v3172_v10  ;;  %v3202_v30 = vld [vmem:[%s4773_s1 + $0x70] ss:$8 sps:$4 sm:$0xff]   ;;  %v3204_v32 = vld [vmem:[%s4773_s1 + $0x84] ss:$8 sps:$4 sm:$0xff]   ;;  %v3208_v34 = vld [vmem:[%s4773_s1 + $0x80] ss:$8 sps:$4 sm:$0xff]  }
   0xc   :  { %2083 = vmatpush1.bf16.msra.mxu0 %v3173_v11  ;;  %1781 = vmatprep.subr.bf16.mxu1 %v3174_v12  ;;  %v3203_v31 = vld [vmem:[%s4773_s1 + $0x370] ss:$8 sps:$4 sm:$0xff]   ;;  %v3206_v33 = vld [vmem:[%s4773_s1 + $0x384] ss:$8 sps:$4 sm:$0xff]   ;;  %v3209_v35 = vld [vmem:[%s4773_s1 + $0x380] ss:$8 sps:$4 sm:$0xff]  }
   0xd   :  { %2084 = vmatprep.subr.bf16.mxu0 %v3176_v13  ;;  %v3210_v36 = vld [vmem:[%s4773_s1 + $0x94] ss:$8 sps:$4 sm:$0xff]   ;;  %v3214_v38 = vld [vmem:[%s4773_s1 + $0x90] ss:$8 sps:$4 sm:$0xff]   ;;  %v3216_v40 = vld [vmem:[%s4773_s1 + $0xa4] ss:$8 sps:$4 sm:$0xff]  }
   0xe   :  { %v3212_v37 = vld [vmem:[%s4773_s1 + $0x394] ss:$8 sps:$4 sm:$0xff]   ;;  %v3215_v39 = vld [vmem:[%s4773_s1 + $0x390] ss:$8 sps:$4 sm:$0xff]   ;;  %v3218_v41 = vld [vmem:[%s4773_s1 + $0x3a4] ss:$8 sps:$4 sm:$0xff]  }
   0xf   :  { %1782 = vmatpush1.bf16.msra.mxu1 %v3178_v14  ;;  %v3220_v42 = vld [vmem:[%s4773_s1 + $0xa0] ss:$8 sps:$4 sm:$0xff]   ;;  %v3222_v44 = vld [vmem:[%s4773_s1 + $0xb4] ss:$8 sps:$4 sm:$0xff]   ;;  %v3226_v46 = vld [vmem:[%s4773_s1 + $0xb0] ss:$8 sps:$4 sm:$0xff]  }
  0x10   :  { %2085 = vmatpush1.bf16.msra.mxu0 %v3179_v15  ;;  %1783 = vmatprep.subr.bf16.mxu1 %v3180_v16  ;;  %v3221_v43 = vld [vmem:[%s4773_s1 + $0x3a0] ss:$8 sps:$4 sm:$0xff]   ;;  %v3224_v45 = vld [vmem:[%s4773_s1 + $0x3b4] ss:$8 sps:$4 sm:$0xff]   ;;  %v3227_v47 = vld [vmem:[%s4773_s1 + $0x3b0] ss:$8 sps:$4 sm:$0xff]  }
  0x11   :  { %2086 = vmatprep.subr.bf16.mxu0 %v3182_v17  ;;  %v3254_v48 = vld [vmem:[%s4774_s0 + $0x4] ss:$52 sps:$4 sm:$0xff]   ;;  %v3260_v51 = vld [vmem:[%s4774_s0 + $0x1c] ss:$52 sps:$4 sm:$0xff]   ;;  %v3232_v52 = vld [vmem:[%s4773_s1 + $0xc0] ss:$8 sps:$4 sm:$0xff]  }
  0x12   :  { %v3228_v49 = vld [vmem:[%s4773_s1 + $0xc4] ss:$8 sps:$4 sm:$0xff]   ;;  %1807 = vmatprep.mubr.bf16.mxu1 %v3254_v48  ;;  %v3233_v53 = vld [vmem:[%s4773_s1 + $0x3c0] ss:$8 sps:$4 sm:$0xff]   ;;  %v3234_v54 = vld [vmem:[%s4773_s1 + $0xd4] ss:$8 sps:$4 sm:$0xff]   ;;  %2110 = vmatprep.mubr.bf16.mxu0 %v3260_v51 }
  0x13   :  { %1784 = vmatpush1.bf16.msra.mxu1 %v3184_v18  ;;  %v3230_v50 = vld [vmem:[%s4773_s1 + $0x3c4] ss:$8 sps:$4 sm:$0xff]   ;;  %v3236_v55 = vld [vmem:[%s4773_s1 + $0x3d4] ss:$8 sps:$4 sm:$0xff]   ;;  %v3238_v56 = vld [vmem:[%s4773_s1 + $0xd0] ss:$8 sps:$4 sm:$0xff]  }
  0x14   :  { %2087 = vmatpush1.bf16.msra.mxu0 %v3185_v19  ;;  %1785 = vmatprep.subr.bf16.mxu1 %v3186_v20  ;;  %v3239_v57 = vld [vmem:[%s4773_s1 + $0x3d0] ss:$8 sps:$4 sm:$0xff]   ;;  %v3240_v58 = vld [vmem:[%s4773_s1 + $0xe4] ss:$8 sps:$4 sm:$0xff]   ;;  %v3244_v60 = vld [vmem:[%s4773_s1 + $0xe0] ss:$8 sps:$4 sm:$0xff]  }
  0x15   :  { %2088 = vmatprep.subr.bf16.mxu0 %v3188_v21  ;;  %v3242_v59 = vld [vmem:[%s4773_s1 + $0x3e4] ss:$8 sps:$4 sm:$0xff]   ;;  %v3245_v61 = vld [vmem:[%s4773_s1 + $0x3e0] ss:$8 sps:$4 sm:$0xff]   ;;  %v3246_v62 = vld [vmem:[%s4773_s1 + $0xf4] ss:$8 sps:$4 sm:$0xff]  }
  0x16   :  { %v3248_v63 = vld [vmem:[%s4773_s1 + $0x3f4] ss:$8 sps:$4 sm:$0xff]   ;;  %v3250_v0 = vld [vmem:[%s4773_s1 + $0xf0] ss:$8 sps:$4 sm:$0xff]   ;;  %v3257_v2 = vld [vmem:[%s4773_s1 + $0x104] ss:$8 sps:$4 sm:$0xff]  }
  0x17   :  { %1786 = vmatpush1.bf16.msra.mxu1 %v3190_v22  ;;  %v3251_v1 = vld [vmem:[%s4773_s1 + $0x3f0] ss:$8 sps:$4 sm:$0xff]   ;;  %v3252_v3 = vld [vmem:[%s4774_s0] ss:$52 sps:$4 sm:$0xff]   ;;  %v3263_v4 = vld [vmem:[%s4773_s1 + $0x404] ss:$8 sps:$4 sm:$0xff]  }
  0x18   :  { %2089 = vmatpush1.bf16.msra.mxu0 %v3191_v23  ;;  %1787 = vmatprep.subr.bf16.mxu1 %v3192_v24  ;;  %v3255_v5 = vld [vmem:[%s4773_s1 + $0x100] ss:$8 sps:$4 sm:$0xff]   ;;  %v3258_v6 = vld [vmem:[%s4774_s0 + $0x18] ss:$52 sps:$4 sm:$0xff]   ;;  %v3266_v8 = vld [vmem:[%s4773_s1 + $0x114] ss:$8 sps:$4 sm:$0xff]  }
  0x19   :  { %2090 = vmatprep.subr.bf16.mxu0 %v3194_v25  ;;  %v3261_v7 = vld [vmem:[%s4773_s1 + $0x400] ss:$8 sps:$4 sm:$0xff]   ;;  %v3269_v9 = vld [vmem:[%s4773_s1 + $0x414] ss:$8 sps:$4 sm:$0xff]   ;;  %v3282_v10 = vld [vmem:[%s4774_s0 + $0x84] ss:$52 sps:$4 sm:$0xff]  }
  0x1a   :  { %v3284_v11 = vld [vmem:[%s4774_s0 + $0x6c] ss:$52 sps:$4 sm:$0xff]   ;;  %v3264_v12 = vld [vmem:[%s4773_s1 + $0x110] ss:$8 sps:$4 sm:$0xff]   ;;  %v3278_v18 = vld [vmem:[%s4773_s1 + $0x134] ss:$8 sps:$4 sm:$0xff]  }
  0x1b   :  { %1788 = vmatpush1.bf16.msra.mxu1 %v3196_v26  ;;  %v3267_v13 = vld [vmem:[%s4773_s1 + $0x410] ss:$8 sps:$4 sm:$0xff]   ;;  %v3272_v14 = vld [vmem:[%s4773_s1 + $0x124] ss:$8 sps:$4 sm:$0xff]   ;;  %v3270_v16 = vld [vmem:[%s4773_s1 + $0x120] ss:$8 sps:$4 sm:$0xff]  }
  0x1c   :  { %2091 = vmatpush1.bf16.msra.mxu0 %v3197_v27  ;;  %1789 = vmatprep.subr.bf16.mxu1 %v3198_v28  ;;  %v3275_v15 = vld [vmem:[%s4773_s1 + $0x424] ss:$8 sps:$4 sm:$0xff]   ;;  %v3273_v17 = vld [vmem:[%s4773_s1 + $0x420] ss:$8 sps:$4 sm:$0xff]   ;;  %v3281_v21 = vld [vmem:[%s4773_s1 + $0x434] ss:$8 sps:$4 sm:$0xff]  }
  0x1d   :  { %2092 = vmatprep.subr.bf16.mxu0 %v3200_v29  ;;  %v3289_v19 = vld [vmem:[%s4774_s0 + $0x80] ss:$52 sps:$4 sm:$0xff]   ;;  %v3293_v20 = vld [vmem:[%s4774_s0 + $0x68] ss:$52 sps:$4 sm:$0xff]   ;;  %v3276_v24 = vld [vmem:[%s4773_s1 + $0x130] ss:$8 sps:$4 sm:$0xff]  }
  0x1e   :  { %v3300_v22 = vld [vmem:[%s4774_s0 + $0xec] ss:$52 sps:$4 sm:$0xff]   ;;  %v3302_v23 = vld [vmem:[%s4774_s0 + $0xd4] ss:$52 sps:$4 sm:$0xff]   ;;  %v3279_v25 = vld [vmem:[%s4773_s1 + $0x430] ss:$8 sps:$4 sm:$0xff]  }
  0x1f   :  { %1790 = vmatpush1.bf16.msra.mxu1 %v3202_v30  ;;  %v3288_v26 = vld [vmem:[%s4773_s1 + $0x144] ss:$8 sps:$4 sm:$0xff]   ;;  %v3286_v28 = vld [vmem:[%s4773_s1 + $0x140] ss:$8 sps:$4 sm:$0xff]   ;;  %v3296_v30 = vld [vmem:[%s4773_s1 + $0x154] ss:$8 sps:$4 sm:$0xff]  }
  0x20   :  { %2093 = vmatpush1.bf16.msra.mxu0 %v3203_v31  ;;  %1791 = vmatprep.subr.bf16.mxu1 %v3204_v32  ;;  %v3292_v27 = vld [vmem:[%s4773_s1 + $0x444] ss:$8 sps:$4 sm:$0xff]   ;;  %v3290_v29 = vld [vmem:[%s4773_s1 + $0x440] ss:$8 sps:$4 sm:$0xff]   ;;  %v3312_v48 = vld [vmem:[%s4773_s1 + $0x170] ss:$8 sps:$4 sm:$0xff]  }
  0x21   :  { %2094 = vmatprep.subr.bf16.mxu0 %v3206_v33  ;;  %v3307_v31 = vld [vmem:[%s4774_s0 + $0xe8] ss:$52 sps:$4 sm:$0xff]   ;;  %v3311_v32 = vld [vmem:[%s4774_s0 + $0xd0] ss:$52 sps:$4 sm:$0xff]   ;;  %vm4646_vm3 = vmor %vm2589_vm2, %vm2588_vm1  ;;  %vm2604_vm5 = vcmask 520196  }
  0x22   :  { %v3299_v33 = vld [vmem:[%s4773_s1 + $0x454] ss:$8 sps:$4 sm:$0xff]   ;;  %v3328_v51 = vld [vmem:[%s4773_s1 + $0x484] ss:$8 sps:$4 sm:$0xff]   ;;  %vm2605_vm6 = vmor %vm2604_vm5, %vm2603_vm4 }
  0x23   :  { %1792 = vmatpush1.bf16.msra.mxu1 %v3208_v34  ;;  %v3318_v34 = vld [vmem:[%s4774_s0 + $0x154] ss:$52 sps:$4 sm:$0xff]  }
  0x24   :  { %2095 = vmatpush1.bf16.msra.mxu0 %v3209_v35  ;;  %1793 = vmatprep.subr.bf16.mxu1 %v3210_v36  ;;  %v3320_v35 = vld [vmem:[%s4774_s0 + $0x13c] ss:$52 sps:$4 sm:$0xff]  }
  0x25   :  { %2096 = vmatprep.subr.bf16.mxu0 %v3212_v37  ;;  %v3294_v36 = vld [vmem:[%s4773_s1 + $0x150] ss:$8 sps:$4 sm:$0xff]  }
  0x26   :  { %v3297_v37 = vld [vmem:[%s4773_s1 + $0x450] ss:$8 sps:$4 sm:$0xff]  }
  0x27   :  { %1794 = vmatpush1.bf16.msra.mxu1 %v3214_v38  ;;  %v3306_v38 = vld [vmem:[%s4773_s1 + $0x164] ss:$8 sps:$4 sm:$0xff]  }
  0x28   :  { %2097 = vmatpush1.bf16.msra.mxu0 %v3215_v39  ;;  %1795 = vmatprep.subr.bf16.mxu1 %v3216_v40  ;;  %v3310_v39 = vld [vmem:[%s4773_s1 + $0x464] ss:$8 sps:$4 sm:$0xff]   ;;  %v3304_v40 = vld [vmem:[%s4773_s1 + $0x160] ss:$8 sps:$4 sm:$0xff]  }
  0x29   :  { %2098 = vmatprep.subr.bf16.mxu0 %v3218_v41  ;;  %v3308_v41 = vld [vmem:[%s4773_s1 + $0x460] ss:$8 sps:$4 sm:$0xff]  }
  0x2b   :  { %1796 = vmatpush1.bf16.msra.mxu1 %v3220_v42  ;;  %v3314_v42 = vld [vmem:[%s4773_s1 + $0x174] ss:$8 sps:$4 sm:$0xff]  }
  0x2c   :  { %2099 = vmatpush1.bf16.msra.mxu0 %v3221_v43  ;;  %1797 = vmatprep.subr.bf16.mxu1 %v3222_v44  ;;  %v3325_v43 = vld [vmem:[%s4774_s0 + $0x150] ss:$52 sps:$4 sm:$0xff]   ;;  %v3329_v44 = vld [vmem:[%s4774_s0 + $0x138] ss:$52 sps:$4 sm:$0xff]  }
  0x2d   :  { %2100 = vmatprep.subr.bf16.mxu0 %v3224_v45  ;;  %v3317_v45 = vld [vmem:[%s4773_s1 + $0x474] ss:$8 sps:$4 sm:$0xff]  }
  0x2f   :  { %1798 = vmatpush1.bf16.msra.mxu1 %v3226_v46  ;;  %v3336_v46 = vld [vmem:[%s4774_s0 + $0x1bc] ss:$52 sps:$4 sm:$0xff]  }
  0x30   :  { %2101 = vmatpush1.bf16.msra.mxu0 %v3227_v47  ;;  %1799 = vmatprep.subr.bf16.mxu1 %v3228_v49  ;;  %v3338_v47 = vld [vmem:[%s4774_s0 + $0x1a4] ss:$52 sps:$4 sm:$0xff]  }
  0x31   :  { %2102 = vmatprep.subr.bf16.mxu0 %v3230_v50  ;;  %v3315_v49 = vld [vmem:[%s4773_s1 + $0x470] ss:$8 sps:$4 sm:$0xff]   ;;  %v3324_v50 = vld [vmem:[%s4773_s1 + $0x184] ss:$8 sps:$4 sm:$0xff]  }
  0x33   :  { %1800 = vmatpush1.bf16.msra.mxu1 %v3232_v52  ;;  %v3322_v52 = vld [vmem:[%s4773_s1 + $0x180] ss:$8 sps:$4 sm:$0xff]  }
  0x34   :  { %2103 = vmatpush1.bf16.msra.mxu0 %v3233_v53  ;;  %1801 = vmatprep.subr.bf16.mxu1 %v3234_v54  ;;  %v3343_v53 = vld [vmem:[%s4774_s0 + $0x1b8] ss:$52 sps:$4 sm:$0xff]   ;;  %v3347_v54 = vld [vmem:[%s4774_s0 + $0x1a0] ss:$52 sps:$4 sm:$0xff]  }
  0x35   :  { %2104 = vmatprep.subr.bf16.mxu0 %v3236_v55  ;;  %v3326_v55 = vld [vmem:[%s4773_s1 + $0x480] ss:$8 sps:$4 sm:$0xff]  }
  0x37   :  { %1802 = vmatpush1.bf16.msra.mxu1 %v3238_v56  ;;  %v3332_v56 = vld [vmem:[%s4773_s1 + $0x194] ss:$8 sps:$4 sm:$0xff]  }
  0x38   :  { %2105 = vmatpush1.bf16.msra.mxu0 %v3239_v57  ;;  %1803 = vmatprep.subr.bf16.mxu1 %v3240_v58  ;;  %v3335_v57 = vld [vmem:[%s4773_s1 + $0x494] ss:$8 sps:$4 sm:$0xff]   ;;  %v3354_v58 = vld [vmem:[%s4774_s0 + $0x224] ss:$52 sps:$4 sm:$0xff]  }
  0x39   :  { %2106 = vmatprep.subr.bf16.mxu0 %v3242_v59  ;;  %v3330_v59 = vld [vmem:[%s4773_s1 + $0x190] ss:$8 sps:$4 sm:$0xff]  }
  0x3b   :  { %1804 = vmatpush1.bf16.msra.mxu1 %v3244_v60  ;;  %v3356_v60 = vld [vmem:[%s4774_s0 + $0x20c] ss:$52 sps:$4 sm:$0xff]  }
  0x3c   :  { %2107 = vmatpush1.bf16.msra.mxu0 %v3245_v61  ;;  %1805 = vmatprep.subr.bf16.mxu1 %v3246_v62  ;;  %v3333_v61 = vld [vmem:[%s4773_s1 + $0x490] ss:$8 sps:$4 sm:$0xff]   ;;  %v3342_v62 = vld [vmem:[%s4773_s1 + $0x1a4] ss:$8 sps:$4 sm:$0xff]  }
  0x3d   :  { %2108 = vmatprep.subr.bf16.mxu0 %v3248_v63  ;;  %v3346_v63 = vld [vmem:[%s4773_s1 + $0x4a4] ss:$8 sps:$4 sm:$0xff]  }
  0x3f   :  { %1806 = vmatpush1.bf16.msra.mxu1 %v3250_v0  ;;  %v3361_v0 = vld [vmem:[%s4774_s0 + $0x220] ss:$52 sps:$4 sm:$0xff]  }
  0x40   :  { %2109 = vmatpush1.bf16.msra.mxu0 %v3251_v1  ;;  %1876 = vmatprep.subr.bf16.mxu1 %v3257_v2  ;;  %v3365_v1 = vld [vmem:[%s4774_s0 + $0x208] ss:$52 sps:$4 sm:$0xff]  }
  0x41   :  { %2179 = vmatprep.subr.bf16.mxu0 %v3263_v4  ;;  %v102_v2 = vld [vmem:[%s4774_s0 + $0x288] sm:$0x11] }
  0x42   :  { %1808 = vmatmul.mubr.bf16.vlgmr.msra.gmra.mrb[0].mxu1 %v3252_v3  ;;  %v99_v3 = vld [vmem:[%s4774_s0 + $0x270] sm:$0x11]  ;;  %v3340_v4 = vld [vmem:[%s4773_s1 + $0x1a0] ss:$8 sps:$4 sm:$0xff]  }
  0x43   :  { %2111 = vmatmul.mubr.bf16.vlgmr.msra.gmra.mrb[0].mxu0 %v3258_v6  ;;  %1877 = vmatpush1.bf16.msra.mxu1 %v3255_v5  ;;  %v3344_v5 = vld [vmem:[%s4773_s1 + $0x4a0] ss:$8 sps:$4 sm:$0xff]   ;;  %v3350_v6 = vld [vmem:[%s4773_s1 + $0x1b4] ss:$8 sps:$4 sm:$0xff]  }
  0x44   :  { %2180 = vmatpush1.bf16.msra.mxu0 %v3261_v7  ;;  %1878 = vmatprep.subr.bf16.mxu1 %v3266_v8  ;;  %v3353_v7 = vld [vmem:[%s4773_s1 + $0x4b4] ss:$8 sps:$4 sm:$0xff]   ;;  %v2696_v8 = vcombine.high %v102_v2, %v102_v2 }
  0x45   :  { %2181 = vmatprep.subr.bf16.mxu0 %v3269_v9  ;;  %2120 = vmatprep.mubr.bf16.mxu0 %v3282_v10  ;;  %v2690_v9 = vcombine.high %v99_v3, %v99_v3  ;;  %v3348_v10 = vld [vmem:[%s4773_s1 + $0x1b0] ss:$8 sps:$4 sm:$0xff]  }
  0x46   :  { %1817 = vmatprep.mubr.bf16.mxu1 %v3284_v11  ;;  %v3351_v11 = vld [vmem:[%s4773_s1 + $0x4b0] ss:$8 sps:$4 sm:$0xff]  }
  0x47   :  { %1879 = vmatpush1.bf16.msra.mxu1 %v3264_v12  ;;  %v3360_v12 = vld [vmem:[%s4773_s1 + $0x1c4] ss:$8 sps:$4 sm:$0xff]  }
  0x48   :  { %2182 = vmatpush1.bf16.msra.mxu0 %v3267_v13  ;;  %1880 = vmatprep.subr.bf16.mxu1 %v3272_v14  ;;  %v3364_v13 = vld [vmem:[%s4773_s1 + $0x4c4] ss:$8 sps:$4 sm:$0xff]   ;;  %v3358_v14 = vld [vmem:[%s4773_s1 + $0x1c0] ss:$8 sps:$4 sm:$0xff]  }
  0x49   :  { %2183 = vmatprep.subr.bf16.mxu0 %v3275_v15  ;;  %v2695_v15 = vcombine.low %v102_v2, %v102_v2  ;;  %v3433_v2 = vld [vmem:[%s4773_s1 + $0x250] ss:$8 sps:$4 sm:$0xff]  }
  0x4a   :  { %1818 = vmatmul.mubr.bf16.gmra.mrb[4].mxu1 %v3293_v20  ;;  %v3390_v20 = vld [vmem:[%s4774_s0 + $0x24] ss:$52 sps:$4 sm:$0xff]  }
  0x4b   :  { %2121 = vmatmul.mubr.bf16.gmra.mrb[4].mxu0 %v3289_v19  ;;  %1881 = vmatpush1.bf16.msra.mxu1 %v3270_v16  ;;  %v2689_v16 = vcombine.low %v99_v3, %v99_v3  ;;  %v3371_v19 = vld [vmem:[%s4773_s1 + $0x4d4] ss:$8 sps:$4 sm:$0xff]   ;;  %v4212_v3 = vld [vmem:[%s4773_s1 + $0x550] ss:$8 sps:$4 sm:$0xff]  }
  0x4c   :  { %2184 = vmatpush1.bf16.msra.mxu0 %v3273_v17  ;;  %1882 = vmatprep.subr.bf16.mxu1 %v3278_v18  ;;  %v3362_v17 = vld [vmem:[%s4773_s1 + $0x4c0] ss:$8 sps:$4 sm:$0xff]   ;;  %v3368_v18 = vld [vmem:[%s4773_s1 + $0x1d4] ss:$8 sps:$4 sm:$0xff]  }
  0x4d   :  { %2185 = vmatprep.subr.bf16.mxu0 %v3281_v21  ;;  %2130 = vmatprep.mubr.bf16.mxu0 %v3300_v22  ;;  %v3393_v21 = vld [vmem:[%s4774_s0 + $0xc] ss:$52 sps:$4 sm:$0xff]   ;;  %v3366_v22 = vld [vmem:[%s4773_s1 + $0x1d0] ss:$8 sps:$4 sm:$0xff]  }
  0x4e   :  { %1827 = vmatprep.mubr.bf16.mxu1 %v3302_v23  ;;  %v3369_v23 = vld [vmem:[%s4773_s1 + $0x4d0] ss:$8 sps:$4 sm:$0xff]  }
  0x4f   :  { %1883 = vmatpush1.bf16.msra.mxu1 %v3276_v24  ;;  %v3376_v24 = vld [vmem:[%s4773_s1 + $0x1e4] ss:$8 sps:$4 sm:$0xff]  }
  0x50   :  { %2186 = vmatpush1.bf16.msra.mxu0 %v3279_v25  ;;  %1884 = vmatprep.subr.bf16.mxu1 %v3288_v26  ;;  %v3380_v25 = vld [vmem:[%s4773_s1 + $0x4e4] ss:$8 sps:$4 sm:$0xff]   ;;  %v3374_v26 = vld [vmem:[%s4773_s1 + $0x1e0] ss:$8 sps:$4 sm:$0xff]  }
  0x51   :  { %2187 = vmatprep.subr.bf16.mxu0 %v3292_v27  ;;  %v3378_v27 = vld [vmem:[%s4773_s1 + $0x4e0] ss:$8 sps:$4 sm:$0xff]  }
  0x52   :  { %1828 = vmatmul.mubr.bf16.gmra.mrb[8].mxu1 %v3311_v32  ;;  %v3396_v32 = vld [vmem:[%s4773_s1 + $0x204] ss:$8 sps:$4 sm:$0xff]  }
  0x53   :  { %2131 = vmatmul.mubr.bf16.gmra.mrb[8].mxu0 %v3307_v31  ;;  %1885 = vmatpush1.bf16.msra.mxu1 %v3286_v28  ;;  %v3384_v28 = vld [vmem:[%s4773_s1 + $0x1f4] ss:$8 sps:$4 sm:$0xff]   ;;  %v3385_v31 = vld [vmem:[%s4773_s1 + $0x4f0] ss:$8 sps:$4 sm:$0xff]  }
  0x54   :  { %2188 = vmatpush1.bf16.msra.mxu0 %v3290_v29  ;;  %1886 = vmatprep.subr.bf16.mxu1 %v3296_v30  ;;  %v3387_v29 = vld [vmem:[%s4773_s1 + $0x4f4] ss:$8 sps:$4 sm:$0xff]   ;;  %v3382_v30 = vld [vmem:[%s4773_s1 + $0x1f0] ss:$8 sps:$4 sm:$0xff]  }
  0x55   :  { %2189 = vmatprep.subr.bf16.mxu0 %v3299_v33  ;;  %2140 = vmatprep.mubr.bf16.mxu0 %v3318_v34  ;;  %v4078_v33 = vld [vmem:[%s4773_s1 + $0x504] ss:$8 sps:$4 sm:$0xff]   ;;  %v3388_v34 = vld [vmem:[%s4774_s0 + $0x20] ss:$52 sps:$4 sm:$0xff]  }
  0x56   :  { %1837 = vmatprep.mubr.bf16.mxu1 %v3320_v35  ;;  %v3391_v35 = vld [vmem:[%s4774_s0 + $0x8] ss:$52 sps:$4 sm:$0xff]  }
  0x57   :  { %1887 = vmatpush1.bf16.msra.mxu1 %v3294_v36  ;;  %v3394_v36 = vld [vmem:[%s4773_s1 + $0x200] ss:$8 sps:$4 sm:$0xff]  }
  0x58   :  { %2190 = vmatpush1.bf16.msra.mxu0 %v3297_v37  ;;  %1888 = vmatprep.subr.bf16.mxu1 %v3306_v38  ;;  %v4092_v37 = vld [vmem:[%s4773_s1 + $0x500] ss:$8 sps:$4 sm:$0xff]   ;;  %v3402_v38 = vld [vmem:[%s4773_s1 + $0x214] ss:$8 sps:$4 sm:$0xff]  }
  0x59   :  { %2191 = vmatprep.subr.bf16.mxu0 %v3310_v39  ;;  %v4101_v39 = vld [vmem:[%s4773_s1 + $0x514] ss:$8 sps:$4 sm:$0xff]  }
  0x5a   :  { %1838 = vmatmul.mubr.bf16.gmra.mrb[12].mxu1 %v3329_v44  ;;  %v3410_v44 = vld [vmem:[%s4773_s1 + $0x224] ss:$8 sps:$4 sm:$0xff]  }
  0x5b   :  { %2141 = vmatmul.mubr.bf16.gmra.mrb[12].mxu0 %v3325_v43  ;;  %1889 = vmatpush1.bf16.msra.mxu1 %v3304_v40  ;;  %v3406_v40 = vld [vmem:[%s4774_s0 + $0x8c] ss:$52 sps:$4 sm:$0xff]   ;;  %v4116_v43 = vld [vmem:[%s4773_s1 + $0x510] ss:$8 sps:$4 sm:$0xff]  }
  0x5c   :  { %2192 = vmatpush1.bf16.msra.mxu0 %v3308_v41  ;;  %1890 = vmatprep.subr.bf16.mxu1 %v3314_v42  ;;  %v3421_v41 = vld [vmem:[%s4774_s0 + $0x74] ss:$52 sps:$4 sm:$0xff]   ;;  %v3400_v42 = vld [vmem:[%s4773_s1 + $0x210] ss:$8 sps:$4 sm:$0xff]  }
  0x5d   :  { %2193 = vmatprep.subr.bf16.mxu0 %v3317_v45  ;;  %2150 = vmatprep.mubr.bf16.mxu0 %v3336_v46  ;;  %v4125_v45 = vld [vmem:[%s4773_s1 + $0x524] ss:$8 sps:$4 sm:$0xff]   ;;  %v3408_v46 = vld [vmem:[%s4773_s1 + $0x220] ss:$8 sps:$4 sm:$0xff]  }
  0x5e   :  { %1847 = vmatprep.mubr.bf16.mxu1 %v3338_v47  ;;  %v3411_v47 = vld [vmem:[%s4774_s0 + $0x88] ss:$52 sps:$4 sm:$0xff]  }
  0x5f   :  { %1891 = vmatpush1.bf16.msra.mxu1 %v3312_v48  ;;  %v3425_v48 = vld [vmem:[%s4774_s0 + $0x70] ss:$52 sps:$4 sm:$0xff]  }
  0x60   :  { %2194 = vmatpush1.bf16.msra.mxu0 %v3315_v49  ;;  %1892 = vmatprep.subr.bf16.mxu1 %v3324_v50  ;;  %v4140_v49 = vld [vmem:[%s4773_s1 + $0x520] ss:$8 sps:$4 sm:$0xff]   ;;  %v3417_v50 = vld [vmem:[%s4773_s1 + $0x234] ss:$8 sps:$4 sm:$0xff]  }
  0x61   :  { %2195 = vmatprep.subr.bf16.mxu0 %v3328_v51  ;;  %v4149_v51 = vld [vmem:[%s4773_s1 + $0x534] ss:$8 sps:$4 sm:$0xff]  }
  0x62   :  { %1848 = vmatmul.mubr.bf16.gmra.mrb[16].mxu1 %v3347_v54  ;;  %v3415_v54 = vld [vmem:[%s4773_s1 + $0x230] ss:$8 sps:$4 sm:$0xff]  }
  0x63   :  { %2151 = vmatmul.mubr.bf16.gmra.mrb[16].mxu0 %v3343_v53  ;;  %1893 = vmatpush1.bf16.msra.mxu1 %v3322_v52  ;;  %v3423_v52 = vld [vmem:[%s4774_s0 + $0xf4] ss:$52 sps:$4 sm:$0xff]   ;;  %v3439_v53 = vld [vmem:[%s4774_s0 + $0xdc] ss:$52 sps:$4 sm:$0xff]  }
  0x64   :  { %2196 = vmatpush1.bf16.msra.mxu0 %v3326_v55  ;;  %1894 = vmatprep.subr.bf16.mxu1 %v3332_v56  ;;  %v4164_v55 = vld [vmem:[%s4773_s1 + $0x530] ss:$8 sps:$4 sm:$0xff]   ;;  %v3428_v56 = vld [vmem:[%s4773_s1 + $0x244] ss:$8 sps:$4 sm:$0xff]  }
  0x65   :  { %2197 = vmatprep.subr.bf16.mxu0 %v3335_v57  ;;  %2160 = vmatprep.mubr.bf16.mxu0 %v3354_v58  ;;  %v4173_v57 = vld [vmem:[%s4773_s1 + $0x544] ss:$8 sps:$4 sm:$0xff]   ;;  %v3426_v58 = vld [vmem:[%s4773_s1 + $0x240] ss:$8 sps:$4 sm:$0xff]  }
  0x66   :  { %1857 = vmatprep.mubr.bf16.mxu1 %v3356_v60  ;;  %v3443_v60 = vld [vmem:[%s4774_s0 + $0xd8] ss:$52 sps:$4 sm:$0xff]  }
  0x67   :  { %1895 = vmatpush1.bf16.msra.mxu1 %v3330_v59  ;;  %v3429_v59 = vld [vmem:[%s4774_s0 + $0xf0] ss:$52 sps:$4 sm:$0xff]  }
  0x68   :  { %2198 = vmatpush1.bf16.msra.mxu0 %v3333_v61  ;;  %1896 = vmatprep.subr.bf16.mxu1 %v3342_v62  ;;  %v4188_v61 = vld [vmem:[%s4773_s1 + $0x540] ss:$8 sps:$4 sm:$0xff]   ;;  %v3435_v62 = vld [vmem:[%s4773_s1 + $0x254] ss:$8 sps:$4 sm:$0xff]  }
  0x69   :  { %2199 = vmatprep.subr.bf16.mxu0 %v3346_v63  ;;  %v4197_v63 = vld [vmem:[%s4773_s1 + $0x554] ss:$8 sps:$4 sm:$0xff]  }
  0x6a   :  { %1858 = vmatmul.mubr.bf16.gmra.mrb[20].mxu1 %v3365_v1  ;;  %v3457_v1 = vld [vmem:[%s4774_s0 + $0x144] ss:$52 sps:$4 sm:$0xff]  }
  0x6b   :  { %2161 = vmatmul.mubr.bf16.gmra.mrb[20].mxu0 %v3361_v0  ;;  %1897 = vmatpush1.bf16.msra.mxu1 %v3340_v4  ;;  %v3441_v0 = vld [vmem:[%s4774_s0 + $0x15c] ss:$52 sps:$4 sm:$0xff]   ;;  %v3446_v4 = vld [vmem:[%s4773_s1 + $0x264] ss:$8 sps:$4 sm:$0xff]  }
  0x6c   :  { %2200 = vmatpush1.bf16.msra.mxu0 %v3344_v5  ;;  %1898 = vmatprep.subr.bf16.mxu1 %v3350_v6  ;;  %v4221_v5 = vld [vmem:[%s4773_s1 + $0x564] ss:$8 sps:$4 sm:$0xff]   ;;  %v3444_v6 = vld [vmem:[%s4773_s1 + $0x260] ss:$8 sps:$4 sm:$0xff]  }
  0x6d   :  { %2201 = vmatprep.subr.bf16.mxu0 %v3353_v7  ;;  %2170 = vmatprep.mubr.bf16.mxu0 %v2696_v8  ;;  %v3447_v7 = vld [vmem:[%s4774_s0 + $0x158] ss:$52 sps:$4 sm:$0xff]   ;;  %v4232_v8 = vld [vmem:[%s4773_s1 + $0x560] ss:$8 sps:$4 sm:$0xff]  }
  0x6e   :  { %1867 = vmatprep.mubr.bf16.mxu1 %v2690_v9  ;;  %v3461_v9 = vld [vmem:[%s4774_s0 + $0x140] ss:$52 sps:$4 sm:$0xff]  }
  0x6f   :  { %1899 = vmatpush1.bf16.msra.mxu1 %v3348_v10  ;;  %v3453_v10 = vld [vmem:[%s4773_s1 + $0x274] ss:$8 sps:$4 sm:$0xff]  }
  0x70   :  { %2202 = vmatpush1.bf16.msra.mxu0 %v3351_v11  ;;  %1900 = vmatprep.subr.bf16.mxu1 %v3360_v12  ;;  %v4244_v11 = vld [vmem:[%s4773_s1 + $0x574] ss:$8 sps:$4 sm:$0xff]   ;;  %v3459_v12 = vld [vmem:[%s4774_s0 + $0x1c4] ss:$52 sps:$4 sm:$0xff]  }
  0x71   :  { %2203 = vmatprep.subr.bf16.mxu0 %v3364_v13  ;;  %v3475_v13 = vld [vmem:[%s4774_s0 + $0x1ac] ss:$52 sps:$4 sm:$0xff]  }
  0x72   :  { %1868 = vmatmul.mubr.bf16.gmra.mrb[24].mxu1 %v2689_v16  ;;  %v3464_v16 = vld [vmem:[%s4773_s1 + $0x284] ss:$8 sps:$4 sm:$0xff]  }
  0x73   :  { %2171 = vmatmul.mubr.bf16.gmra.mrb[24].mxu0 %v2695_v15  ;;  %1901 = vmatpush1.bf16.msra.mxu1 %v3358_v14  ;;  %v3451_v14 = vld [vmem:[%s4773_s1 + $0x270] ss:$8 sps:$4 sm:$0xff]  }
  0x74   :  { %2204 = vmatpush1.bf16.msra.mxu0 %v3362_v17  ;;  %1902 = vmatprep.subr.bf16.mxu1 %v3368_v18  ;;  %v4259_v15 = vld [vmem:[%s4773_s1 + $0x570] ss:$8 sps:$4 sm:$0xff]   ;;  %v4269_v17 = vld [vmem:[%s4773_s1 + $0x584] ss:$8 sps:$4 sm:$0xff]   ;;  %v3462_v18 = vld [vmem:[%s4773_s1 + $0x280] ss:$8 sps:$4 sm:$0xff]  }
  0x75   :  { %2205 = vmatprep.subr.bf16.mxu0 %v3371_v19  ;;  %2211 = vmatprep.mubr.bf16.mxu0 %v3390_v20  ;;  %v3465_v19 = vld [vmem:[%s4774_s0 + $0x1c0] ss:$52 sps:$4 sm:$0xff]  }
  0x76   :  { %1908 = vmatprep.mubr.bf16.mxu1 %v3393_v21  ;;  %v4280_v20 = vld [vmem:[%s4773_s1 + $0x580] ss:$8 sps:$4 sm:$0xff]  }
  0x77   :  { %1903 = vmatpush1.bf16.msra.mxu1 %v3366_v22  ;;  %v3479_v21 = vld [vmem:[%s4774_s0 + $0x1a8] ss:$52 sps:$4 sm:$0xff]  }
  0x78   :  { %2206 = vmatpush1.bf16.msra.mxu0 %v3369_v23  ;;  %1904 = vmatprep.subr.bf16.mxu1 %v3376_v24  ;;  %v3471_v22 = vld [vmem:[%s4773_s1 + $0x294] ss:$8 sps:$4 sm:$0xff]   ;;  %v3477_v24 = vld [vmem:[%s4774_s0 + $0x22c] ss:$52 sps:$4 sm:$0xff]  }
  0x79   :  { %2207 = vmatprep.subr.bf16.mxu0 %v3380_v25  ;;  %v4293_v23 = vld [vmem:[%s4773_s1 + $0x594] ss:$8 sps:$4 sm:$0xff]  }
  0x7a   :  { %v3493_v25 = vld [vmem:[%s4774_s0 + $0x214] ss:$52 sps:$4 sm:$0xff]  }
  0x7b   :  { %1905 = vmatpush1.bf16.msra.mxu1 %v3374_v26  ;;  %v3469_v26 = vld [vmem:[%s4773_s1 + $0x290] ss:$8 sps:$4 sm:$0xff]  }
  0x7c   :  { %2208 = vmatpush1.bf16.msra.mxu0 %v3378_v27  ;;  %1906 = vmatprep.subr.bf16.mxu1 %v3384_v28  ;;  %v4307_v27 = vld [vmem:[%s4773_s1 + $0x590] ss:$8 sps:$4 sm:$0xff]   ;;  %v3482_v28 = vld [vmem:[%s4773_s1 + $0x2a4] ss:$8 sps:$4 sm:$0xff]  }
  0x7d   :  { %2209 = vmatprep.subr.bf16.mxu0 %v3387_v29  ;;  %v3483_v29 = vld [vmem:[%s4774_s0 + $0x228] ss:$52 sps:$4 sm:$0xff]  }
  0x7f   :  { %1907 = vmatpush1.bf16.msra.mxu1 %v3382_v30  ;;  %v4320_v30 = vld [vmem:[%s4773_s1 + $0x5a4] ss:$8 sps:$4 sm:$0xff]  }
  0x80   :  { %2210 = vmatpush1.bf16.msra.mxu0 %v3385_v31  ;;  %1977 = vmatprep.subr.bf16.mxu1 %v3396_v32  ;;  %v3480_v31 = vld [vmem:[%s4773_s1 + $0x2a0] ss:$8 sps:$4 sm:$0xff]  }
  0x81   :  { %2280 = vmatprep.subr.bf16.mxu0 %v4078_v33  ;;  %v4328_v32 = vld [vmem:[%s4773_s1 + $0x5a0] ss:$8 sps:$4 sm:$0xff]  }
  0x82   :  { %1909 = vmatmul.mubr.bf16.vlgmr.msra.gmra.mrb[0].mxu1 %v3391_v35  ;;  %v3496_v35 = vld [vmem:[%s4774_s0 + $0x210] ss:$52 sps:$4 sm:$0xff]  }
  0x83   :  { %2212 = vmatmul.mubr.bf16.vlgmr.msra.gmra.mrb[0].mxu0 %v3388_v34  ;;  %1978 = vmatpush1.bf16.msra.mxu1 %v3394_v36  ;;  %v103_v34 = vld [vmem:[%s4774_s0 + $0x290] sm:$0x11]  ;;  %v100_v36 = vld [vmem:[%s4774_s0 + $0x278] sm:$0x11] }
  0x84   :  { %2281 = vmatpush1.bf16.msra.mxu0 %v4092_v37  ;;  %1979 = vmatprep.subr.bf16.mxu1 %v3402_v38  ;;  %v3489_v38 = vld [vmem:[%s4773_s1 + $0x2b4] ss:$8 sps:$4 sm:$0xff]  }
  0x85   :  { %2282 = vmatprep.subr.bf16.mxu0 %v4101_v39  ;;  %2221 = vmatprep.mubr.bf16.mxu0 %v3406_v40  ;;  %v4347_v40 = vld [vmem:[%s4773_s1 + $0x5b4] ss:$8 sps:$4 sm:$0xff]  }
  0x86   :  { %1918 = vmatprep.mubr.bf16.mxu1 %v3421_v41  ;;  %v2698_v41 = vcombine.high %v103_v34, %v103_v34 }
  0x87   :  { %1980 = vmatpush1.bf16.msra.mxu1 %v3400_v42  ;;  %v2692_v42 = vcombine.high %v100_v36, %v100_v36 }
  0x88   :  { %2283 = vmatpush1.bf16.msra.mxu0 %v4116_v43  ;;  %1981 = vmatprep.subr.bf16.mxu1 %v3410_v44  ;;  %v3487_v44 = vld [vmem:[%s4773_s1 + $0x2b0] ss:$8 sps:$4 sm:$0xff]  }
  0x89   :  { %2284 = vmatprep.subr.bf16.mxu0 %v4125_v45 }
  0x8a   :  { %1919 = vmatmul.mubr.bf16.gmra.mrb[4].mxu1 %v3425_v48  ;;  %v4365_v48 = vld [vmem:[%s4773_s1 + $0x5c4] ss:$8 sps:$4 sm:$0xff]  }
  0x8b   :  { %2222 = vmatmul.mubr.bf16.gmra.mrb[4].mxu0 %v3411_v47  ;;  %1982 = vmatpush1.bf16.msra.mxu1 %v3408_v46  ;;  %v4355_v46 = vld [vmem:[%s4773_s1 + $0x5b0] ss:$8 sps:$4 sm:$0xff]   ;;  %v3499_v47 = vld [vmem:[%s4773_s1 + $0x2c4] ss:$8 sps:$4 sm:$0xff]  }
  0x8c   :  { %2285 = vmatpush1.bf16.msra.mxu0 %v4140_v49  ;;  %1983 = vmatprep.subr.bf16.mxu1 %v3417_v50  ;;  %v3497_v50 = vld [vmem:[%s4773_s1 + $0x2c0] ss:$8 sps:$4 sm:$0xff]  }
  0x8d   :  { %2286 = vmatprep.subr.bf16.mxu0 %v4149_v51  ;;  %2231 = vmatprep.mubr.bf16.mxu0 %v3423_v52  ;;  %v2697_v52 = vcombine.low %v103_v34, %v103_v34  ;;  %v3560_v34 = vld [vmem:[%s4774_s0 + $0x1b4] ss:$52 sps:$4 sm:$0xff]  }
  0x8e   :  { %1928 = vmatprep.mubr.bf16.mxu1 %v3439_v53  ;;  %v4373_v53 = vld [vmem:[%s4773_s1 + $0x5c0] ss:$8 sps:$4 sm:$0xff]  }
  0x8f   :  { %1984 = vmatpush1.bf16.msra.mxu1 %v3415_v54  ;;  %v2691_v54 = vcombine.low %v100_v36, %v100_v36  ;;  %v3576_v36 = vld [vmem:[%s4774_s0 + $0x234] ss:$52 sps:$4 sm:$0xff]  }
  0x90   :  { %2287 = vmatpush1.bf16.msra.mxu0 %v4164_v55  ;;  %1985 = vmatprep.subr.bf16.mxu1 %v3428_v56  ;;  %v3506_v56 = vld [vmem:[%s4773_s1 + $0x2d4] ss:$8 sps:$4 sm:$0xff]  }
  0x91   :  { %2288 = vmatprep.subr.bf16.mxu0 %v4173_v57 }
  0x92   :  { %1929 = vmatmul.mubr.bf16.gmra.mrb[8].mxu1 %v3443_v60  ;;  %v3529_v60 = vld [vmem:[%s4774_s0 + $0x2c] ss:$52 sps:$4 sm:$0xff]  }
  0x93   :  { %2232 = vmatmul.mubr.bf16.gmra.mrb[8].mxu0 %v3429_v59  ;;  %1986 = vmatpush1.bf16.msra.mxu1 %v3426_v58  ;;  %v4383_v58 = vld [vmem:[%s4773_s1 + $0x5d4] ss:$8 sps:$4 sm:$0xff]  }
  0x94   :  { %2289 = vmatpush1.bf16.msra.mxu0 %v4188_v61  ;;  %1987 = vmatprep.subr.bf16.mxu1 %v3435_v62  ;;  %v3526_v59 = vld [vmem:[%s4774_s0 + $0x14] ss:$52 sps:$4 sm:$0xff]   ;;  %v3504_v62 = vld [vmem:[%s4773_s1 + $0x2d0] ss:$8 sps:$4 sm:$0xff]  }
  0x95   :  { %2290 = vmatprep.subr.bf16.mxu0 %v4197_v63  ;;  %2241 = vmatprep.mubr.bf16.mxu0 %v3441_v0  ;;  %v4398_v0 = vld [vmem:[%s4773_s1 + $0x5d0] ss:$8 sps:$4 sm:$0xff]  }
  0x96   :  { %1938 = vmatprep.mubr.bf16.mxu1 %v3457_v1  ;;  %v3514_v1 = vld [vmem:[%s4773_s1 + $0x2e4] ss:$8 sps:$4 sm:$0xff]  }
  0x97   :  { %1988 = vmatpush1.bf16.msra.mxu1 %v3433_v2  ;;  %v4407_v2 = vld [vmem:[%s4773_s1 + $0x5e4] ss:$8 sps:$4 sm:$0xff]  }
  0x98   :  { %2291 = vmatpush1.bf16.msra.mxu0 %v4212_v3  ;;  %1989 = vmatprep.subr.bf16.mxu1 %v3446_v4  ;;  %v3512_v4 = vld [vmem:[%s4773_s1 + $0x2e0] ss:$8 sps:$4 sm:$0xff]  }
  0x99   :  { %2292 = vmatprep.subr.bf16.mxu0 %v4221_v5 }
  0x9a   :  { %1939 = vmatmul.mubr.bf16.gmra.mrb[12].mxu1 %v3461_v9  ;;  %v4425_v9 = vld [vmem:[%s4773_s1 + $0x5f4] ss:$8 sps:$4 sm:$0xff]  }
  0x9b   :  { %2242 = vmatmul.mubr.bf16.gmra.mrb[12].mxu0 %v3447_v7  ;;  %1990 = vmatpush1.bf16.msra.mxu1 %v3444_v6  ;;  %v4416_v6 = vld [vmem:[%s4773_s1 + $0x5e0] ss:$8 sps:$4 sm:$0xff]   ;;  %v3520_v7 = vld [vmem:[%s4773_s1 + $0x2f4] ss:$8 sps:$4 sm:$0xff]  }
  0x9c   :  { %2293 = vmatpush1.bf16.msra.mxu0 %v4232_v8  ;;  %1991 = vmatprep.subr.bf16.mxu1 %v3453_v10  ;;  %v3518_v10 = vld [vmem:[%s4773_s1 + $0x2f0] ss:$8 sps:$4 sm:$0xff]  }
  0x9d   :  { %2294 = vmatprep.subr.bf16.mxu0 %v4244_v11  ;;  %2251 = vmatprep.mubr.bf16.mxu0 %v3459_v12  ;;  %v4434_v12 = vld [vmem:[%s4773_s1 + $0x5f0] ss:$8 sps:$4 sm:$0xff]  }
  0x9e   :  { %1948 = vmatprep.mubr.bf16.mxu1 %v3475_v13  ;;  %v3532_v13 = vld [vmem:[%s4773_s1 + $0x604] ss:$8 sps:$4 sm:$0xff]  }
  0x9f   :  { %1992 = vmatpush1.bf16.msra.mxu1 %v3451_v14  ;;  %v3524_v14 = vld [vmem:[%s4774_s0 + $0x10] ss:$52 sps:$4 sm:$0xff]  }
  0xa0   :  { %2295 = vmatpush1.bf16.msra.mxu0 %v4259_v15  ;;  %1993 = vmatprep.subr.bf16.mxu1 %v3464_v16  ;;  %v3527_v16 = vld [vmem:[%s4774_s0 + $0x28] ss:$52 sps:$4 sm:$0xff]  }
  0xa1   :  { %2296 = vmatprep.subr.bf16.mxu0 %v4269_v17 }
  0xa2   :  { %1949 = vmatmul.mubr.bf16.gmra.mrb[16].mxu1 %v3479_v21  ;;  %v3535_v21 = vld [vmem:[%s4774_s0 + $0x94] ss:$52 sps:$4 sm:$0xff]  }
  0xa3   :  { %2252 = vmatmul.mubr.bf16.gmra.mrb[16].mxu0 %v3465_v19  ;;  %1994 = vmatpush1.bf16.msra.mxu1 %v3462_v18  ;;  %v3530_v18 = vld [vmem:[%s4773_s1 + $0x600] ss:$8 sps:$4 sm:$0xff]   ;;  %v3533_v19 = vld [vmem:[%s4774_s0 + $0x7c] ss:$52 sps:$4 sm:$0xff]  }
  0xa4   :  { %2297 = vmatpush1.bf16.msra.mxu0 %v4280_v20  ;;  %1995 = vmatprep.subr.bf16.mxu1 %v3471_v22  ;;  %v3541_v22 = vld [vmem:[%s4773_s1 + $0x614] ss:$8 sps:$4 sm:$0xff]  }
  0xa5   :  { %2298 = vmatprep.subr.bf16.mxu0 %v4293_v23  ;;  %2261 = vmatprep.mubr.bf16.mxu0 %v3477_v24  ;;  %v3550_v24 = vld [vmem:[%s4773_s1 + $0x624] ss:$8 sps:$4 sm:$0xff]  }
  0xa6   :  { %1958 = vmatprep.mubr.bf16.mxu1 %v3493_v25  ;;  %v3537_v25 = vld [vmem:[%s4774_s0 + $0x78] ss:$52 sps:$4 sm:$0xff]  }
  0xa7   :  { %1996 = vmatpush1.bf16.msra.mxu1 %v3469_v26  ;;  %v3544_v26 = vld [vmem:[%s4774_s0 + $0xfc] ss:$52 sps:$4 sm:$0xff]  }
  0xa8   :  { %2299 = vmatpush1.bf16.msra.mxu0 %v4307_v27  ;;  %1997 = vmatprep.subr.bf16.mxu1 %v3482_v28  ;;  %v3548_v28 = vld [vmem:[%s4773_s1 + $0x620] ss:$8 sps:$4 sm:$0xff]  }
  0xa9   :  { %2300 = vmatprep.subr.bf16.mxu0 %v4320_v30 }
  0xaa   :  { %1959 = vmatmul.mubr.bf16.gmra.mrb[20].mxu1 %v3496_v35  ;;  %v3575_v35 = vld [vmem:[%s4774_s0 + $0x1d0] ss:$52 sps:$4 sm:$0xff]  }
  0xab   :  { %2262 = vmatmul.mubr.bf16.gmra.mrb[20].mxu0 %v3483_v29  ;;  %1998 = vmatpush1.bf16.msra.mxu1 %v3480_v31  ;;  %v3546_v29 = vld [vmem:[%s4774_s0 + $0xe0] ss:$52 sps:$4 sm:$0xff]   ;;  %v3547_v31 = vld [vmem:[%s4774_s0 + $0xf8] ss:$52 sps:$4 sm:$0xff]  }
  0xac   :  { %2301 = vmatpush1.bf16.msra.mxu0 %v4328_v32  ;;  %1999 = vmatprep.subr.bf16.mxu1 %v3489_v38  ;;  %v104_v38 = vld [vmem:[%s4774_s0 + $0x298] sm:$0x11] }
  0xad   :  { %2302 = vmatprep.subr.bf16.mxu0 %v4347_v40  ;;  %2271 = vmatprep.mubr.bf16.mxu0 %v2698_v41  ;;  %v3579_v41 = vld [vmem:[%s4774_s0 + $0x238] ss:$52 sps:$4 sm:$0xff]  }
  0xae   :  { %1968 = vmatprep.mubr.bf16.mxu1 %v2692_v42  ;;  %v2700_v42 = vcombine.high %v104_v38, %v104_v38 }
  0xaf   :  { %2000 = vmatpush1.bf16.msra.mxu1 %v3487_v44  ;;  %v2699_v44 = vcombine.low %v104_v38, %v104_v38 }
  0xb0   :  { %2303 = vmatpush1.bf16.msra.mxu0 %v4355_v46  ;;  %2001 = vmatprep.subr.bf16.mxu1 %v3499_v47 }
  0xb1   :  { %2304 = vmatprep.subr.bf16.mxu0 %v4365_v48 }
  0xb2   :  { %1969 = vmatmul.mubr.bf16.gmra.mrb[24].mxu1 %v2691_v54 }
  0xb3   :  { %2272 = vmatmul.mubr.bf16.gmra.mrb[24].mxu0 %v2697_v52  ;;  %2002 = vmatpush1.bf16.msra.mxu1 %v3497_v50 }
  0xb4   :  { %2305 = vmatpush1.bf16.msra.mxu0 %v4373_v53  ;;  %2003 = vmatprep.subr.bf16.mxu1 %v3506_v56 }
  0xb5   :  { %2306 = vmatprep.subr.bf16.mxu0 %v4383_v58  ;;  %2009 = vmatprep.mubr.bf16.mxu1 %v3526_v59 }
  0xb6   :  { %2312 = vmatprep.mubr.bf16.mxu0 %v3529_v60 }
  0xb7   :  { %2004 = vmatpush1.bf16.msra.mxu1 %v3504_v62 }
  0xb8   :  { %2307 = vmatpush1.bf16.msra.mxu0 %v4398_v0  ;;  %2005 = vmatprep.subr.bf16.mxu1 %v3514_v1 }
  0xb9   :  { %2308 = vmatprep.subr.bf16.mxu0 %v4407_v2 }
  0xbb   :  { %2006 = vmatpush1.bf16.msra.mxu1 %v3512_v4 }
  0xbc   :  { %2309 = vmatpush1.bf16.msra.mxu0 %v4416_v6  ;;  %2007 = vmatprep.subr.bf16.mxu1 %v3520_v7 }
  0xbd   :  { %2310 = vmatprep.subr.bf16.mxu0 %v4425_v9 }
  0xbf   :  { %2008 = vmatpush1.bf16.msra.mxu1 %v3518_v10 }
  0xc0   :  { %2311 = vmatpush1.bf16.msra.mxu0 %v4434_v12  ;;  %2935 = vmatprep.subr.bf16.mxu1 %v4078_v33  ;;  %v3539_v33 = vld [vmem:[%s4773_s1 + $0x610] ss:$8 sps:$4 sm:$0xff]  }
  0xc1   :  { %2381 = vmatprep.subr.bf16.mxu0 %v3532_v13  ;;  %v308_v13 = vlaneseq }
  0xc2   :  { %2010 = vmatmul.mubr.bf16.vlgmr.msra.gmra.mrb[0].mxu1 %v3524_v14 }
  0xc3   :  { %2313 = vmatmul.mubr.bf16.vlgmr.msra.gmra.mrb[0].mxu0 %v3527_v16  ;;  %2951 = vmatpush1.bf16.msra.mxu1 %v4092_v37  ;;  %v3538_v37 = vld [vmem:[%s4774_s0 + $0x90] ss:$52 sps:$4 sm:$0xff]  }
  0xc4   :  { %2382 = vmatpush1.bf16.msra.mxu0 %v3530_v18  ;;  %2936 = vmatprep.subr.bf16.mxu1 %v4101_v39  ;;  %v3542_v39 = vld [vmem:[%s4774_s0 + $0xe4] ss:$52 sps:$4 sm:$0xff]  }
  0xc5   :  { %2019 = vmatprep.mubr.bf16.mxu1 %v3533_v19  ;;  %2322 = vmatprep.mubr.bf16.mxu0 %v3535_v21  ;;  %v309_v19 = vshrl.u32 %v308_v13, 7 }
  0xc6   :  { %2383 = vmatprep.subr.bf16.mxu0 %v3541_v22 }
  0xc7   :  { %2952 = vmatpush1.bf16.msra.mxu1 %v4116_v43  ;;  %v3559_v43 = vld [vmem:[%s4773_s1 + $0x634] ss:$8 sps:$4 sm:$0xff]   ;;  %v310_v22 = vsub.s32 0, %v309_v19 }
  0xc8   :  { %2384 = vmatpush1.bf16.msra.mxu0 %v3539_v33  ;;  %2937 = vmatprep.subr.bf16.mxu1 %v4125_v45  ;;  %v3557_v45 = vld [vmem:[%s4773_s1 + $0x630] ss:$8 sps:$4 sm:$0xff]   ;;  %v306_v33 = vld [vmem:[%s4775_s2] sm:$0x3] }
  0xc9   :  { %2385 = vmatprep.subr.bf16.mxu0 %v3550_v24  ;;  %v314_v24 = vsub.s32 1, %v309_v19 }
  0xca   :  { %2020 = vmatmul.mubr.bf16.gmra.mrb[4].mxu1 %v3537_v25 }
  0xcb   :  { %2323 = vmatmul.mubr.bf16.gmra.mrb[4].mxu0 %v3538_v37  ;;  %2953 = vmatpush1.bf16.msra.mxu1 %v4140_v49  ;;  %v3551_v49 = vld [vmem:[%s4774_s0 + $0x14c] ss:$52 sps:$4 sm:$0xff]  }
  0xcc   :  { %2029 = vmatprep.mubr.bf16.mxu1 %v3542_v39  ;;  %2938 = vmatprep.subr.bf16.mxu1 %v4149_v51  ;;  %v3553_v51 = vld [vmem:[%s4774_s0 + $0x164] ss:$52 sps:$4 sm:$0xff]  }
  0xcd   :  { %2332 = vmatprep.mubr.bf16.mxu0 %v3544_v26  ;;  %2386 = vmatpush1.bf16.msra.mxu0 %v3548_v28  ;;  %v4627_v26 = vrot.slane %v306_v33, %v310_v22 }
  0xce   :  { %2387 = vmatprep.subr.bf16.mxu0 %v3559_v43  ;;  %v4631_v43 = vrot.slane %v306_v33, %v314_v24 }
  0xcf   :  { %2954 = vmatpush1.bf16.msra.mxu1 %v4164_v55  ;;  %v3555_v55 = vld [vmem:[%s4774_s0 + $0x148] ss:$52 sps:$4 sm:$0xff]  }
  0xd0   :  { %2939 = vmatprep.subr.bf16.mxu1 %v4173_v57  ;;  %v3556_v57 = vld [vmem:[%s4774_s0 + $0x160] ss:$52 sps:$4 sm:$0xff]  }
  0xd1   :  { %2388 = vmatpush1.bf16.msra.mxu0 %v3557_v45 }
  0xd2   :  { %2030 = vmatmul.mubr.bf16.gmra.mrb[8].mxu1 %v3546_v29 }
  0xd3   :  { %2333 = vmatmul.mubr.bf16.gmra.mrb[8].mxu0 %v3547_v31  ;;  %2955 = vmatpush1.bf16.msra.mxu1 %v4188_v61  ;;  %v3583_v61 = vmov 0  }
  0xd4   :  { %2039 = vmatprep.mubr.bf16.mxu1 %v3551_v49  ;;  %2940 = vmatprep.subr.bf16.mxu1 %v4197_v63  ;;  %v3562_v63 = vld [vmem:[%s4774_s0 + $0x1b0] ss:$52 sps:$4 sm:$0xff]  }
  0xd5   :  { %2342 = vmatprep.mubr.bf16.mxu0 %v3553_v51 }
  0xd7   :  { %2956 = vmatpush1.bf16.msra.mxu1 %v4212_v3  ;;  %v3563_v3 = vld [vmem:[%s4774_s0 + $0x30] ss:$52 sps:$4 sm:$0xff]  }
  0xd8   :  { %2941 = vmatprep.subr.bf16.mxu1 %v4221_v5  ;;  %v3564_v5 = vld [vmem:[%s4774_s0 + $0x21c] ss:$52 sps:$4 sm:$0xff]  }
  0xda   :  { %2040 = vmatmul.mubr.bf16.gmra.mrb[12].mxu1 %v3555_v55 }
  0xdb   :  { %2343 = vmatmul.mubr.bf16.gmra.mrb[12].mxu0 %v3556_v57  ;;  %2957 = vmatpush1.bf16.msra.mxu1 %v4232_v8  ;;  %v101_v8 = vld [vmem:[%s4774_s0 + $0x280] sm:$0x11] }
  0xdc   :  { %2049 = vmatprep.mubr.bf16.mxu1 %v3560_v34  ;;  %2942 = vmatprep.subr.bf16.mxu1 %v4244_v11  ;;  %v3566_v11 = vld [vmem:[%s4774_s0 + $0x218] ss:$52 sps:$4 sm:$0xff]  }
  0xdd   :  { %2413 = vmatprep.mubr.bf16.mxu0 %v3583_v61 }
  0xdf   :  { %2958 = vmatpush1.bf16.msra.mxu1 %v4259_v15  ;;  %v3567_v15 = vld [vmem:[%s4774_s0 + $0x98] ss:$52 sps:$4 sm:$0xff]  }
  0xe0   :  { %2943 = vmatprep.subr.bf16.mxu1 %v4269_v17  ;;  %v2694_v17 = vcombine.high %v101_v8, %v101_v8 }
  0xe2   :  { %2050 = vmatmul.mubr.bf16.gmra.mrb[16].mxu1 %v3562_v63 }
  0xe3   :  { %2902 = vmatmul.mubr.msk.bf16.vlgmr.msra.gmra.mrb[0].mxu0 %vm1753_vm0, %v3563_v3  ;;  %2959 = vmatpush1.bf16.msra.mxu1 %v4280_v20  ;;  %v2693_v20 = vcombine.low %v101_v8, %v101_v8 }
  0xe4   :  { %2059 = vmatprep.mubr.bf16.mxu1 %v3564_v5  ;;  %2944 = vmatprep.subr.bf16.mxu1 %v4293_v23  ;;  %v3570_v23 = vld [vmem:[%s4774_s0 + $0x100] ss:$52 sps:$4 sm:$0xff]  }
  0xe5   :  { %2423 = vmatprep.mubr.bf16.mxu0 %v3583_v61 }
  0xe7   :  { %2960 = vmatpush1.bf16.msra.mxu1 %v4307_v27  ;;  %v3574_v27 = vld [vmem:[%s4774_s0 + $0x1cc] ss:$52 sps:$4 sm:$0xff]  }
  0xe8   :  { %2945 = vmatprep.subr.bf16.mxu1 %v4320_v30  ;;  %v3571_v30 = vld [vmem:[%s4774_s0 + $0x168] ss:$52 sps:$4 sm:$0xff]  }
  0xea   :  { %2060 = vmatmul.mubr.bf16.gmra.mrb[20].mxu1 %v3566_v11 }
  0xeb   :  { %2903 = vmatmul.mubr.msk.bf16.gmra.mrb[4].mxu0 %vm1753_vm0, %v3567_v15  ;;  %2961 = vmatpush1.bf16.msra.mxu1 %v4328_v32  ;;  %v3572_v32 = vld [vmem:[%s4774_s0 + $0x1c8] ss:$52 sps:$4 sm:$0xff]  }
  0xec   :  { %2069 = vmatprep.mubr.bf16.mxu1 %v2694_v17  ;;  %2946 = vmatprep.subr.bf16.mxu1 %v4347_v40  ;;  %v3578_v40 = vld [vmem:[%s4774_s0 + $0x230] ss:$52 sps:$4 sm:$0xff]  }
  0xed   :  { %2433 = vmatprep.mubr.bf16.mxu0 %v3583_v61 }
  0xef   :  { %2962 = vmatpush1.bf16.msra.mxu1 %v4355_v46  ;;  %v3582_v46 = vld [vmem:[%s4774_s0 + $0x2a0] ss:$0 sps:$4 sm:$0x11]  }
  0xf0   :  { %2947 = vmatprep.subr.bf16.mxu1 %v4365_v48 }
  0xf2   :  { %2070 = vmatmul.mubr.bf16.gmra.mrb[24].mxu1 %v2693_v20 }
  0xf3   :  { %2904 = vmatmul.mubr.msk.bf16.gmra.mrb[8].mxu0 %vm1753_vm0, %v3570_v23  ;;  %2963 = vmatpush1.bf16.msra.mxu1 %v4373_v53 }
  0xf4   :  { %2443 = vmatprep.mubr.bf16.mxu0 %v3583_v61  ;;  %2948 = vmatprep.subr.bf16.mxu1 %v4383_v58 }
  0xf5   :  { %2352 = vmatprep.mubr.bf16.mxu1 %v3574_v27 }
  0xf7   :  { %2964 = vmatpush1.bf16.msra.mxu1 %v4398_v0 }
  0xf8   :  { %2949 = vmatprep.subr.bf16.mxu1 %v4407_v2 }
  0xfb   :  { %2905 = vmatmul.mubr.msk.bf16.gmra.mrb[12].mxu0 %vm1753_vm0, %v3571_v30  ;;  %2965 = vmatpush1.bf16.msra.mxu1 %v4416_v6 }
  0xfc   :  { %2453 = vmatprep.mubr.bf16.mxu0 %v3583_v61  ;;  %2950 = vmatprep.subr.bf16.mxu1 %v4425_v9 }
  0xff   :  { %2966 = vmatpush1.bf16.msra.mxu1 %v4434_v12 }
 0x102   :  { %2353 = vmatmul.mubr.bf16.vlgmr.msra.gmra.mrb[28].mxu1 %v3572_v32 }
 0x103   :  { %2906 = vmatmul.mubr.msk.bf16.gmra.mrb[28].mxu0 %vm1753_vm0, %v3575_v35  ;;  %2362 = vmatprep.mubr.bf16.mxu1 %v3576_v36 }
 0x104   :  { %2463 = vmatprep.mubr.bf16.mxu0 %v3583_v61 }
 0x10a   :  { %2363 = vmatmul.mubr.bf16.gmra.mrb[32].mxu1 %v3578_v40 }
 0x10b   :  { %2907 = vmatmul.mubr.msk.bf16.gmra.mrb[32].mxu0 %vm1753_vm0, %v3579_v41  ;;  %2372 = vmatprep.mubr.bf16.mxu1 %v2700_v42 }
 0x10c   :  { %2473 = vmatprep.mubr.bf16.mxu0 %v3583_v61 }
 0x112   :  { %2373 = vmatmul.mubr.bf16.gmra.mrb[36].mxu1 %v2699_v44 }
 0x113   :  { %2908 = vmatmul.mubr.msk.bf16.gmra.mrb[36].mxu0 %vm1753_vm0, %v3582_v46 }
 0x176   :  { %v2253_v47 = vpop.f32.mrb[16].mxu0 }
 0x177   :  { %v2255_v48 = vpop.f32.mrb[17].mxu0 }
 0x178   :  { %v4594_v50 = vpop.f32.mrb[18].mxu0 }
 0x179   :  { %v4596_v52 = vpop.f32.mrb[19].mxu0 }
 0x17e   :  { %v4598_v53 = vpop.f32.mrb[20].mxu0 }
 0x17f   :  { %v4600_v54 = vpop.f32.mrb[21].mxu0 }
 0x180   :  { %v4602_v56 = vpop.f32.mrb[22].mxu0 }
 0x181   :  { %v4604_v58 = vpop.f32.mrb[23].mxu0 }
 0x186   :  { %v4606_v59 = vpop.f32.mrb[24].mxu0 }
 0x187   :  { %v4608_v60 = vpop.f32.mrb[25].mxu0 }
 0x188   :  { %v2277_v62 = vpop.f32.mrb[26].mxu0 }
 0x189   :  { %v2278_v0 = vpop.f32.mrb[27].mxu0 }
 0x195   :  { %v2011_v1 = vpop.f32.mrb[0].mxu1 }
 0x196   :  { %v2013_v2 = vpop.f32.mrb[1].mxu1  ;;  %v2967_v45 = vadd.f32 %v2011_v1, %v4627_v26 }
 0x197   :  { %v2015_v4 = vpop.f32.mrb[2].mxu1  ;;  %v2969_v29 = vadd.f32 %v2013_v2, %v4631_v43 }
 0x198   :  { %v2017_v6 = vpop.f32.mrb[3].mxu1  ;;  %v2971_v51 = vadd.f32 %v2015_v4, %v4627_v26 }
 0x199   :  { %v2973_v63 = vadd.f32 %v2017_v6, %v4631_v43 }
 0x19d   :  { %v2021_v7 = vpop.f32.mrb[4].mxu1 }
 0x19e   :  { %v2023_v9 = vpop.f32.mrb[5].mxu1  ;;  %v2975_v62 = vadd.f32 %v2021_v7, %v4627_v26 }
 0x19f   :  { %v2025_v10 = vpop.f32.mrb[6].mxu1  ;;  %v2977_v0 = vadd.f32 %v2023_v9, %v4631_v43 }
 0x1a0   :  { %v2027_v12 = vpop.f32.mrb[7].mxu1 }
 0x1a1   :  { %v2981_v7 = vadd.f32 %v2027_v12, %v4631_v43 }
 0x1a5   :  { %v4610_v14 = vpop.f32.mrb[8].mxu1 }
 0x1a6   :  { %v4612_v16 = vpop.f32.mrb[9].mxu1 }
 0x1a7   :  { %v4614_v18 = vpop.f32.mrb[10].mxu1 }
 0x1a8   :  { %v4616_v21 = vpop.f32.mrb[11].mxu1 }
 0x1ad   :  { %v4621_v25 = vpop.f32.mrb[12].mxu1 }
 0x1ae   :  { %v4623_v37 = vpop.f32.mrb[13].mxu1 }
 0x1af   :  { %v4625_v39 = vpop.f32.mrb[14].mxu1 }
 0x1b0   :  { %v4629_v28 = vpop.f32.mrb[15].mxu1 }
 0x1b5   :  { %v2051_v31 = vpop.f32.mrb[16].mxu1 }
 0x1b6   :  { %v2415_v49 = vpop.f32.mrb[0].mxu0  ;;  %v2999_v55 = vadd.f32 %v2051_v31, %v4627_v26  ;;  %v2053_v34 = vpop.f32.mrb[17].mxu1 }
 0x1b7   :  { %v2968_v57 = vadd.f32 %v2967_v45, %v2415_v49  ;;  %v2417_v61 = vpop.f32.mrb[1].mxu0  ;;  %v3003_v3 = vadd.f32 %v2053_v34, %v4631_v43  ;;  %v2055_v8 = vpop.f32.mrb[18].mxu1 }
 0x1b8   :  { %v2970_v5 = vadd.f32 %v2969_v29, %v2417_v61  ;;  %v2419_v11 = vpop.f32.mrb[2].mxu0  ;;  %v3007_v17 = vadd.f32 %v2055_v8, %v4627_v26  ;;  %v2057_v23 = vpop.f32.mrb[19].mxu1  ;;  %v4640_v30 = vadd.f32 %v2999_v55, %v2253_v47  ;;  %v2985_v8 = vadd.f32 %v4612_v16, %v4631_v43 }
 0x1b9   :  { %v2482_v15 = vmax.f32 %v2968_v57, 0.0  ;;  %v2972_v20 = vadd.f32 %v2971_v51, %v2419_v11  ;;  %v2421_v27 = vpop.f32.mrb[3].mxu0  ;;  %v3011_v35 = vadd.f32 %v2057_v23, %v4631_v43  ;;  %v4643_v38 = vadd.f32 %v3003_v3, %v2255_v48 }
 0x1ba   :  { %v2483_v32 = vmax.f32 %v2970_v5, 0.0  ;;  %v2974_v36 = vadd.f32 %v2973_v63, %v2421_v27  ;;  %v4651_v42 = vadd.f32 %v3007_v17, %v4594_v50  ;;  %v2979_v50 = vadd.f32 %v2025_v10, %v4627_v26 }
 0x1bb   :  { %v2484_v41 = vmax.f32 %v2972_v20, 0.0  ;;  %v4654_v47 = vadd.f32 %v3011_v35, %v4596_v52  ;;  %v2989_v16 = vadd.f32 %v4616_v21, %v4631_v43 }
 0x1bc   :  { %v2922_v44 = vpack.c.bf16 %v2483_v32, %v2482_v15  ;;  %v2485_v46 = vmax.f32 %v2974_v36, 0.0  ;;  %v2987_v15 = vadd.f32 %v4614_v18, %v4627_v26 }
 0x1bd   :  { %v2061_v1 = vpop.f32.mrb[20].mxu1 }
 0x1be   :  { %2591 = vst.msk [vmem:[%s4776_s3] sm:$0xff] %vm4646_vm3, %v2922_v44  ;;  %v2923_v48 = vpack.c.bf16 %v2485_v46, %v2484_v41  ;;  %v2425_v2 = vpop.f32.mrb[4].mxu0  ;;  %v3015_v4 = vadd.f32 %v2061_v1, %v4627_v26  ;;  %v2063_v52 = vpop.f32.mrb[21].mxu1 }
 0x1bf   :  { %v2976_v6 = vadd.f32 %v2975_v62, %v2425_v2  ;;  %v2427_v13 = vpop.f32.mrb[5].mxu0  ;;  %v3019_v9 = vadd.f32 %v2063_v52, %v4631_v43  ;;  %v2065_v22 = vpop.f32.mrb[22].mxu1 }
 0x1c0   :  { %2592 = vst.msk [vmem:[%s4776_s3 + $0x8] sm:$0xff] %vm4646_vm3, %v2923_v48  ;;  %v2978_v19 = vadd.f32 %v2977_v0, %v2427_v13  ;;  %v2429_v33 = vpop.f32.mrb[6].mxu0  ;;  %v3023_v10 = vadd.f32 %v2065_v22, %v4627_v26  ;;  %v2067_v29 = vpop.f32.mrb[23].mxu1  ;;  %v4674_v49 = vadd.f32 %v3015_v4, %v4598_v53  ;;  %v2983_v53 = vadd.f32 %v4610_v14, %v4627_v26 }
 0x1c1   :  { %v2486_v24 = vmax.f32 %v2976_v6, 0.0  ;;  %v2980_v45 = vadd.f32 %v2979_v50, %v2429_v33  ;;  %v2431_v31 = vpop.f32.mrb[7].mxu0  ;;  %v3027_v51 = vadd.f32 %v2067_v29, %v4631_v43  ;;  %v4678_v57 = vadd.f32 %v3019_v9, %v4600_v54 }
 0x1c2   :  { %v2487_v12 = vmax.f32 %v2978_v19, 0.0  ;;  %v2982_v55 = vadd.f32 %v2981_v7, %v2431_v31  ;;  %v4681_v61 = vadd.f32 %v3023_v10, %v4602_v56  ;;  %v2991_v50 = vadd.f32 %v4621_v25, %v4627_v26 }
 0x1c3   :  { %v2488_v34 = vmax.f32 %v2980_v45, 0.0  ;;  %v4684_v5 = vadd.f32 %v3027_v51, %v4604_v58  ;;  %v2993_v4 = vadd.f32 %v4623_v37, %v4631_v43  ;;  %v2997_v7 = vadd.f32 %v4629_v28, %v4631_v43 }
 0x1c4   :  { %v2924_v63 = vpack.c.bf16 %v2487_v12, %v2486_v24  ;;  %v2489_v3 = vmax.f32 %v2982_v55, 0.0 }
 0x1c5   :  { %v2071_v56 = vpop.f32.mrb[24].mxu1 }
 0x1c6   :  { %2593 = vst.msk [vmem:[%s4776_s3 + $0x10] sm:$0xff] %vm4646_vm3, %v2924_v63  ;;  %v2925_v54 = vpack.c.bf16 %v2489_v3, %v2488_v34  ;;  %v2435_v11 = vpop.f32.mrb[8].mxu0  ;;  %v3031_v58 = vadd.f32 %v2071_v56, %v4627_v26  ;;  %v2073_v20 = vpop.f32.mrb[25].mxu1 }
 0x1c7   :  { %v2984_v17 = vadd.f32 %v2983_v53, %v2435_v11  ;;  %v2437_v14 = vpop.f32.mrb[9].mxu0  ;;  %v3035_v23 = vadd.f32 %v2073_v20, %v4631_v43  ;;  %v2075_v32 = vpop.f32.mrb[26].mxu1 }
 0x1c8   :  { %2594 = vst.msk [vmem:[%s4776_s3 + $0x18] sm:$0xff] %vm4646_vm3, %v2925_v54  ;;  %v2986_v27 = vadd.f32 %v2985_v8, %v2437_v14  ;;  %v2439_v35 = vpop.f32.mrb[10].mxu0  ;;  %v2076_v41 = vpop.f32.mrb[27].mxu1  ;;  %v4707_v46 = vadd.f32 %v3031_v58, %v4606_v59 }
 0x1c9   :  { %v2490_v18 = vmax.f32 %v2984_v17, 0.0  ;;  %v2988_v36 = vadd.f32 %v2987_v15, %v2439_v35  ;;  %v2441_v44 = vpop.f32.mrb[11].mxu0  ;;  %v4710_v0 = vadd.f32 %v3035_v23, %v4608_v60  ;;  %v2995_v60 = vadd.f32 %v4625_v39, %v4627_v26 }
 0x1ca   :  { %v2491_v62 = vmax.f32 %v2986_v27, 0.0  ;;  %v2990_v21 = vadd.f32 %v2989_v16, %v2441_v44 }
 0x1cb   :  { %v2492_v48 = vmax.f32 %v2988_v36, 0.0 }
 0x1cc   :  { %v2926_v1 = vpack.c.bf16 %v2491_v62, %v2490_v18  ;;  %v2493_v2 = vmax.f32 %v2990_v21, 0.0 }
 0x1ce   :  { %2595 = vst.msk [vmem:[%s4776_s3 + $0x20] sm:$0xff] %vm4646_vm3, %v2926_v1  ;;  %v2927_v59 = vpack.c.bf16 %v2493_v2, %v2492_v48  ;;  %v2445_v6 = vpop.f32.mrb[12].mxu0 }
 0x1cf   :  { %v2992_v52 = vadd.f32 %v2991_v50, %v2445_v6  ;;  %v2447_v13 = vpop.f32.mrb[13].mxu0 }
 0x1d0   :  { %2596 = vst.msk [vmem:[%s4776_s3 + $0x28] sm:$0xff] %vm4646_vm3, %v2927_v59  ;;  %v2994_v25 = vadd.f32 %v2993_v4, %v2447_v13  ;;  %v2449_v37 = vpop.f32.mrb[14].mxu0 }
 0x1d1   :  { %v2494_v9 = vmax.f32 %v2992_v52, 0.0  ;;  %v2996_v19 = vadd.f32 %v2995_v60, %v2449_v37  ;;  %v2451_v22 = vpop.f32.mrb[15].mxu0 }
 0x1d2   :  { %v2495_v33 = vmax.f32 %v2994_v25, 0.0  ;;  %v2998_v24 = vadd.f32 %v2997_v7, %v2451_v22 }
 0x1d3   :  { %v2496_v10 = vmax.f32 %v2996_v19, 0.0 }
 0x1d4   :  { %v2928_v39 = vpack.c.bf16 %v2495_v33, %v2494_v9  ;;  %v2497_v26 = vmax.f32 %v2998_v24, 0.0 }
 0x1d5   :  { %v2354_v43 = vpop.f32.mrb[28].mxu1 }
 0x1d6   :  { %2597 = vst.msk [vmem:[%s4776_s3 + $0x30] sm:$0xff] %vm4646_vm3, %v2928_v39  ;;  %v2929_v28 = vpack.c.bf16 %v2497_v26, %v2496_v10  ;;  %v2455_v45 = vpop.f32.mrb[28].mxu0  ;;  %v3001_v29 = vadd.f32 %v4640_v30, %v2354_v43  ;;  %v2356_v31 = vpop.f32.mrb[29].mxu1 }
 0x1d7   :  { %v2457_v12 = vpop.f32.mrb[29].mxu0  ;;  %v3005_v51 = vadd.f32 %v4643_v38, %v2356_v31  ;;  %v2358_v55 = vpop.f32.mrb[30].mxu1 }
 0x1d8   :  { %2598 = vst.msk [vmem:[%s4776_s3 + $0x38] sm:$0xff] %vm4646_vm3, %v2929_v28  ;;  %v2459_v34 = vpop.f32.mrb[30].mxu0  ;;  %v3002_v63 = vadd.f32 %v3001_v29, %v2455_v45  ;;  %v3009_v3 = vadd.f32 %v4651_v42, %v2358_v55  ;;  %v2360_v53 = vpop.f32.mrb[31].mxu1 }
 0x1d9   :  { %v2461_v8 = vpop.f32.mrb[31].mxu0  ;;  %v3006_v54 = vadd.f32 %v3005_v51, %v2457_v12  ;;  %v3013_v30 = vadd.f32 %v4654_v47, %v2360_v53 }
 0x1da   :  { %v2498_v56 = vmax.f32 %v3002_v63, 0.0  ;;  %v3010_v11 = vadd.f32 %v3009_v3, %v2459_v34 }
 0x1db   :  { %v2499_v15 = vmax.f32 %v3006_v54, 0.0  ;;  %v3014_v58 = vadd.f32 %v3013_v30, %v2461_v8 }
 0x1dc   :  { %v2500_v17 = vmax.f32 %v3010_v11, 0.0 }
 0x1dd   :  { %v2930_v20 = vpack.c.bf16 %v2499_v15, %v2498_v56  ;;  %v2501_v14 = vmax.f32 %v3014_v58, 0.0  ;;  %v2364_v16 = vpop.f32.mrb[32].mxu1 }
 0x1de   :  { %v2465_v23 = vpop.f32.mrb[32].mxu0  ;;  %v3017_v38 = vadd.f32 %v4674_v49, %v2364_v16  ;;  %v2366_v27 = vpop.f32.mrb[33].mxu1 }
 0x1df   :  { %v2467_v32 = vpop.f32.mrb[33].mxu0  ;;  %2599 = vst.msk [vmem:[%s4776_s3 + $0x40] sm:$0xff] %vm4646_vm3, %v2930_v20  ;;  %v2931_v42 = vpack.c.bf16 %v2501_v14, %v2500_v17  ;;  %v3021_v47 = vadd.f32 %v4678_v57, %v2366_v27  ;;  %v2368_v35 = vpop.f32.mrb[34].mxu1 }
 0x1e0   :  { %v2469_v18 = vpop.f32.mrb[34].mxu0  ;;  %v3018_v36 = vadd.f32 %v3017_v38, %v2465_v23  ;;  %v3025_v41 = vadd.f32 %v4681_v61, %v2368_v35  ;;  %v2370_v44 = vpop.f32.mrb[35].mxu1 }
 0x1e1   :  { %v2471_v62 = vpop.f32.mrb[35].mxu0  ;;  %2600 = vst.msk [vmem:[%s4776_s3 + $0x48] sm:$0xff] %vm4646_vm3, %v2931_v42  ;;  %v3022_v49 = vadd.f32 %v3021_v47, %v2467_v32  ;;  %v3029_v21 = vadd.f32 %v4684_v5, %v2370_v44 }
 0x1e2   :  { %v2502_v48 = vmax.f32 %v3018_v36, 0.0  ;;  %v3026_v1 = vadd.f32 %v3025_v41, %v2469_v18 }
 0x1e3   :  { %v2503_v2 = vmax.f32 %v3022_v49, 0.0  ;;  %v3030_v57 = vadd.f32 %v3029_v21, %v2471_v62 }
 0x1e4   :  { %v2504_v50 = vmax.f32 %v3026_v1, 0.0 }
 0x1e5   :  { %v2932_v4 = vpack.c.bf16 %v2503_v2, %v2502_v48  ;;  %v2505_v59 = vmax.f32 %v3030_v57, 0.0  ;;  %v2374_v6 = vpop.f32.mrb[36].mxu1 }
 0x1e6   :  { %v2475_v61 = vpop.f32.mrb[36].mxu0  ;;  %v3033_v60 = vadd.f32 %v4707_v46, %v2374_v6  ;;  %v2376_v52 = vpop.f32.mrb[37].mxu1 }
 0x1e7   :  { %v2477_v13 = vpop.f32.mrb[37].mxu0  ;;  %2601 = vst.msk [vmem:[%s4776_s3 + $0x50] sm:$0xff] %vm4646_vm3, %v2932_v4  ;;  %v2933_v5 = vpack.c.bf16 %v2505_v59, %v2504_v50  ;;  %v3037_v7 = vadd.f32 %v4710_v0, %v2376_v52  ;;  %v2378_v25 = vpop.f32.mrb[38].mxu1 }
 0x1e8   :  { %v2479_v37 = vpop.f32.mrb[38].mxu0  ;;  %v3034_v9 = vadd.f32 %v3033_v60, %v2475_v61  ;;  %v2379_v19 = vpop.f32.mrb[39].mxu1 }
 0x1e9   :  { %v2480_v22 = vpop.f32.mrb[39].mxu0  ;;  %2602 = vst.msk [vmem:[%s4776_s3 + $0x58] sm:$0xff] %vm4646_vm3, %v2933_v5  ;;  %v3038_v46 = vadd.f32 %v3037_v7, %v2477_v13 }
 0x1ea   :  { %v2506_v33 = vmax.f32 %v3034_v9, 0.0 }
 0x1eb   :  { %v2507_v24 = vmax.f32 %v3038_v46, 0.0 }
 0x1ed   :  { %v2934_v10 = vpack.c.bf16 %v2507_v24, %v2506_v33 }
 0x1ef   :  { %2606 = vst.msk [vmem:[%s4776_s3 + $0x60] sm:$0x11] %vm2605_vm6, %v2934_v10 }

// kernel: new_alexnet_forward.7
= control target key start
LH: loop header
LB: loop body
LE: loop exit
PB: predicated region body
PF: predicated region fallthrough
CT: control target
= control target key end

     0   :  { %vm2330_vm0 = vcmask 523264   ;;  %s5359_s1 = inlined_call_operand.vmem [shape: bf16[1728,384], index: 1, kind: input, shape index: {}]   ;;  %s5360_s0 = inlined_call_operand.vmem [shape: bf16[18,1728], index: 0, kind: input, shape index: {}]   ;;  %s5361_s2 = inlined_call_operand.vmem [shape: f32[1,384], index: 2, kind: input, shape index: {}]   ;;  %s5362_s3 = inlined_call_operand.vmem [shape: bf16[18,384], index: 3, kind: output, shape index: {}]  }
   0x1   :  { %v3669_v0 = vld [vmem:[%s5359_s1 + $0x4] ss:$12 sps:$4 sm:$0xff]   ;;  %v3673_v2 = vld [vmem:[%s5359_s1] ss:$12 sps:$4 sm:$0xff]   ;;  %v3675_v4 = vld [vmem:[%s5359_s1 + $0x1c] ss:$12 sps:$4 sm:$0xff]  }
   0x2   :  { %v3671_v1 = vld [vmem:[%s5359_s1 + $0x184] ss:$12 sps:$4 sm:$0xff]   ;;  %2337 = vmatprep.subr.bf16.mxu1 %v3669_v0  ;;  %v3674_v3 = vld [vmem:[%s5359_s1 + $0x180] ss:$12 sps:$4 sm:$0xff]   ;;  %v3677_v5 = vld [vmem:[%s5359_s1 + $0x19c] ss:$12 sps:$4 sm:$0xff]  }
   0x3   :  { %2388 = vmatprep.subr.bf16.mxu0 %v3671_v1  ;;  %2338 = vmatpush1.bf16.msra.mxu1 %v3673_v2  ;;  %v3679_v6 = vld [vmem:[%s5359_s1 + $0x18] ss:$12 sps:$4 sm:$0xff]   ;;  %v3681_v8 = vld [vmem:[%s5359_s1 + $0x34] ss:$12 sps:$4 sm:$0xff]   ;;  %v3685_v10 = vld [vmem:[%s5359_s1 + $0x30] ss:$12 sps:$4 sm:$0xff]  }
   0x4   :  { %2389 = vmatpush1.bf16.msra.mxu0 %v3674_v3  ;;  %2339 = vmatprep.subr.bf16.mxu1 %v3675_v4  ;;  %v3680_v7 = vld [vmem:[%s5359_s1 + $0x198] ss:$12 sps:$4 sm:$0xff]   ;;  %v3683_v9 = vld [vmem:[%s5359_s1 + $0x1b4] ss:$12 sps:$4 sm:$0xff]   ;;  %v3686_v11 = vld [vmem:[%s5359_s1 + $0x1b0] ss:$12 sps:$4 sm:$0xff]  }
   0x5   :  { %2390 = vmatprep.subr.bf16.mxu0 %v3677_v5  ;;  %v3687_v12 = vld [vmem:[%s5359_s1 + $0x4c] ss:$12 sps:$4 sm:$0xff]   ;;  %v3691_v14 = vld [vmem:[%s5359_s1 + $0x48] ss:$12 sps:$4 sm:$0xff]   ;;  %v3693_v16 = vld [vmem:[%s5359_s1 + $0x64] ss:$12 sps:$4 sm:$0xff]  }
   0x6   :  { %v3689_v13 = vld [vmem:[%s5359_s1 + $0x1cc] ss:$12 sps:$4 sm:$0xff]   ;;  %v3692_v15 = vld [vmem:[%s5359_s1 + $0x1c8] ss:$12 sps:$4 sm:$0xff]   ;;  %v3695_v17 = vld [vmem:[%s5359_s1 + $0x1e4] ss:$12 sps:$4 sm:$0xff]  }
   0x7   :  { %2340 = vmatpush1.bf16.msra.mxu1 %v3679_v6  ;;  %v3697_v18 = vld [vmem:[%s5359_s1 + $0x60] ss:$12 sps:$4 sm:$0xff]   ;;  %v3699_v20 = vld [vmem:[%s5359_s1 + $0x7c] ss:$12 sps:$4 sm:$0xff]   ;;  %v3703_v22 = vld [vmem:[%s5359_s1 + $0x78] ss:$12 sps:$4 sm:$0xff]  }
   0x8   :  { %2391 = vmatpush1.bf16.msra.mxu0 %v3680_v7  ;;  %2341 = vmatprep.subr.bf16.mxu1 %v3681_v8  ;;  %v3698_v19 = vld [vmem:[%s5359_s1 + $0x1e0] ss:$12 sps:$4 sm:$0xff]   ;;  %v3701_v21 = vld [vmem:[%s5359_s1 + $0x1fc] ss:$12 sps:$4 sm:$0xff]   ;;  %v3704_v23 = vld [vmem:[%s5359_s1 + $0x1f8] ss:$12 sps:$4 sm:$0xff]  }
   0x9   :  { %2392 = vmatprep.subr.bf16.mxu0 %v3683_v9  ;;  %v3705_v24 = vld [vmem:[%s5359_s1 + $0x94] ss:$12 sps:$4 sm:$0xff]   ;;  %v3709_v26 = vld [vmem:[%s5359_s1 + $0x90] ss:$12 sps:$4 sm:$0xff]   ;;  %v3711_v28 = vld [vmem:[%s5359_s1 + $0xac] ss:$12 sps:$4 sm:$0xff]  }
   0xa   :  { %v3707_v25 = vld [vmem:[%s5359_s1 + $0x214] ss:$12 sps:$4 sm:$0xff]   ;;  %v3710_v27 = vld [vmem:[%s5359_s1 + $0x210] ss:$12 sps:$4 sm:$0xff]   ;;  %v3713_v29 = vld [vmem:[%s5359_s1 + $0x22c] ss:$12 sps:$4 sm:$0xff]  }
   0xb   :  { %2342 = vmatpush1.bf16.msra.mxu1 %v3685_v10  ;;  %v3715_v30 = vld [vmem:[%s5359_s1 + $0xa8] ss:$12 sps:$4 sm:$0xff]   ;;  %v3717_v32 = vld [vmem:[%s5359_s1 + $0xc4] ss:$12 sps:$4 sm:$0xff]   ;;  %v3721_v34 = vld [vmem:[%s5359_s1 + $0xc0] ss:$12 sps:$4 sm:$0xff]  }
   0xc   :  { %2393 = vmatpush1.bf16.msra.mxu0 %v3686_v11  ;;  %2343 = vmatprep.subr.bf16.mxu1 %v3687_v12  ;;  %v3716_v31 = vld [vmem:[%s5359_s1 + $0x228] ss:$12 sps:$4 sm:$0xff]   ;;  %v3719_v33 = vld [vmem:[%s5359_s1 + $0x244] ss:$12 sps:$4 sm:$0xff]   ;;  %v3722_v35 = vld [vmem:[%s5359_s1 + $0x240] ss:$12 sps:$4 sm:$0xff]  }
   0xd   :  { %2394 = vmatprep.subr.bf16.mxu0 %v3689_v13  ;;  %v3723_v36 = vld [vmem:[%s5359_s1 + $0xdc] ss:$12 sps:$4 sm:$0xff]   ;;  %v3727_v38 = vld [vmem:[%s5359_s1 + $0xd8] ss:$12 sps:$4 sm:$0xff]   ;;  %v3729_v40 = vld [vmem:[%s5359_s1 + $0xf4] ss:$12 sps:$4 sm:$0xff]  }
   0xe   :  { %v3725_v37 = vld [vmem:[%s5359_s1 + $0x25c] ss:$12 sps:$4 sm:$0xff]   ;;  %v3728_v39 = vld [vmem:[%s5359_s1 + $0x258] ss:$12 sps:$4 sm:$0xff]   ;;  %v3731_v41 = vld [vmem:[%s5359_s1 + $0x274] ss:$12 sps:$4 sm:$0xff]  }
   0xf   :  { %2344 = vmatpush1.bf16.msra.mxu1 %v3691_v14  ;;  %v3733_v42 = vld [vmem:[%s5359_s1 + $0xf0] ss:$12 sps:$4 sm:$0xff]   ;;  %v3735_v44 = vld [vmem:[%s5359_s1 + $0x10c] ss:$12 sps:$4 sm:$0xff]   ;;  %v3739_v46 = vld [vmem:[%s5359_s1 + $0x108] ss:$12 sps:$4 sm:$0xff]  }
  0x10   :  { %2395 = vmatpush1.bf16.msra.mxu0 %v3692_v15  ;;  %2345 = vmatprep.subr.bf16.mxu1 %v3693_v16  ;;  %v3734_v43 = vld [vmem:[%s5359_s1 + $0x270] ss:$12 sps:$4 sm:$0xff]   ;;  %v3737_v45 = vld [vmem:[%s5359_s1 + $0x28c] ss:$12 sps:$4 sm:$0xff]   ;;  %v3740_v47 = vld [vmem:[%s5359_s1 + $0x288] ss:$12 sps:$4 sm:$0xff]  }
  0x11   :  { %2396 = vmatprep.subr.bf16.mxu0 %v3695_v17  ;;  %v3741_v48 = vld [vmem:[%s5359_s1 + $0x124] ss:$12 sps:$4 sm:$0xff]   ;;  %v3745_v52 = vld [vmem:[%s5359_s1 + $0x120] ss:$12 sps:$4 sm:$0xff]   ;;  %v3747_v54 = vld [vmem:[%s5359_s1 + $0x13c] ss:$12 sps:$4 sm:$0xff]  }
  0x12   :  { %v4309_v49 = vld [vmem:[%s5360_s0 + $0x4] ss:$56 sps:$4 sm:$0xff]   ;;  %v3746_v53 = vld [vmem:[%s5359_s1 + $0x2a0] ss:$12 sps:$4 sm:$0xff]   ;;  %v3763_v0 = vld [vmem:[%s5359_s1 + $0x168] ss:$12 sps:$4 sm:$0xff]  }
  0x13   :  { %2346 = vmatpush1.bf16.msra.mxu1 %v3697_v18  ;;  %v3743_v50 = vld [vmem:[%s5359_s1 + $0x2a4] ss:$12 sps:$4 sm:$0xff]   ;;  %2369 = vmatprep.mubr.bf16.mxu1 %v4309_v49  ;;  %v3749_v55 = vld [vmem:[%s5359_s1 + $0x2bc] ss:$12 sps:$4 sm:$0xff]   ;;  %v3753_v58 = vld [vmem:[%s5359_s1 + $0x154] ss:$12 sps:$4 sm:$0xff]  }
  0x14   :  { %2397 = vmatpush1.bf16.msra.mxu0 %v3698_v19  ;;  %2347 = vmatprep.subr.bf16.mxu1 %v3699_v20  ;;  %v4317_v51 = vld [vmem:[%s5360_s0 + $0xc] ss:$56 sps:$4 sm:$0xff]   ;;  %v3755_v59 = vld [vmem:[%s5359_s1 + $0x2d4] ss:$12 sps:$4 sm:$0xff]   ;;  %v3757_v60 = vld [vmem:[%s5359_s1 + $0x150] ss:$12 sps:$4 sm:$0xff]  }
  0x15   :  { %2398 = vmatprep.subr.bf16.mxu0 %v3701_v21  ;;  %2420 = vmatprep.mubr.bf16.mxu0 %v4317_v51  ;;  %v3751_v56 = vld [vmem:[%s5359_s1 + $0x138] ss:$12 sps:$4 sm:$0xff]   ;;  %v3758_v61 = vld [vmem:[%s5359_s1 + $0x2d0] ss:$12 sps:$4 sm:$0xff]   ;;  %v3764_v1 = vld [vmem:[%s5359_s1 + $0x2e8] ss:$12 sps:$4 sm:$0xff]  }
  0x16   :  { %v3752_v57 = vld [vmem:[%s5359_s1 + $0x2b8] ss:$12 sps:$4 sm:$0xff]   ;;  %v4377_v5 = vld [vmem:[%s5360_s0 + $0x8] ss:$56 sps:$4 sm:$0xff]   ;;  %v3783_v14 = vld [vmem:[%s5359_s1 + $0x330] ss:$12 sps:$4 sm:$0xff]  }
  0x17   :  { %2348 = vmatpush1.bf16.msra.mxu1 %v3703_v22  ;;  %v3759_v62 = vld [vmem:[%s5359_s1 + $0x16c] ss:$12 sps:$4 sm:$0xff]   ;;  %v3773_v2 = vld [vmem:[%s5359_s1 + $0x304] ss:$12 sps:$4 sm:$0xff]   ;;  %v3779_v8 = vld [vmem:[%s5359_s1 + $0x31c] ss:$12 sps:$4 sm:$0xff]  }
  0x18   :  { %2399 = vmatpush1.bf16.msra.mxu0 %v3704_v23  ;;  %2349 = vmatprep.subr.bf16.mxu1 %v3705_v24  ;;  %v3761_v63 = vld [vmem:[%s5359_s1 + $0x2ec] ss:$12 sps:$4 sm:$0xff]   ;;  %v3776_v3 = vld [vmem:[%s5359_s1 + $0x904] ss:$12 sps:$4 sm:$0xff]   ;;  %v3782_v9 = vld [vmem:[%s5359_s1 + $0x91c] ss:$12 sps:$4 sm:$0xff]  }
  0x19   :  { %2400 = vmatprep.subr.bf16.mxu0 %v3707_v25  ;;  %v4372_v4 = vld [vmem:[%s5360_s0] ss:$56 sps:$4 sm:$0xff]   ;;  %v3786_v15 = vld [vmem:[%s5359_s1 + $0x930] ss:$12 sps:$4 sm:$0xff]   ;;  %v3789_v21 = vld [vmem:[%s5359_s1 + $0x348] ss:$12 sps:$4 sm:$0xff]  }
  0x1a   :  { %v3771_v6 = vld [vmem:[%s5359_s1 + $0x300] ss:$12 sps:$4 sm:$0xff]   ;;  %v3777_v10 = vld [vmem:[%s5359_s1 + $0x318] ss:$12 sps:$4 sm:$0xff]   ;;  %v29_v16 = vld [vmem:[%s5360_s0 + $0x70] sm:$0x11] }
  0x1b   :  { %2350 = vmatpush1.bf16.msra.mxu1 %v3709_v26  ;;  %v3774_v7 = vld [vmem:[%s5359_s1 + $0x900] ss:$12 sps:$4 sm:$0xff]   ;;  %v3780_v11 = vld [vmem:[%s5359_s1 + $0x918] ss:$12 sps:$4 sm:$0xff]   ;;  %v4420_v19 = vcombine.high %v29_v16, %v29_v16  ;;  %v4422_v20 = vcombine.low %v29_v16, %v29_v16  ;;  %v3792_v22 = vld [vmem:[%s5359_s1 + $0x948] ss:$12 sps:$4 sm:$0xff]  }
  0x1c   :  { %2401 = vmatpush1.bf16.msra.mxu0 %v3710_v27  ;;  %2351 = vmatprep.subr.bf16.mxu1 %v3711_v28  ;;  %v3785_v12 = vld [vmem:[%s5359_s1 + $0x334] ss:$12 sps:$4 sm:$0xff]   ;;  %v3791_v17 = vld [vmem:[%s5359_s1 + $0x34c] ss:$12 sps:$4 sm:$0xff]   ;;  %v3797_v23 = vld [vmem:[%s5359_s1 + $0x364] ss:$12 sps:$4 sm:$0xff]  }
  0x1d   :  { %2402 = vmatprep.subr.bf16.mxu0 %v3713_v29  ;;  %v3788_v13 = vld [vmem:[%s5359_s1 + $0x934] ss:$12 sps:$4 sm:$0xff]   ;;  %v3794_v18 = vld [vmem:[%s5359_s1 + $0x94c] ss:$12 sps:$4 sm:$0xff]   ;;  %v3800_v24 = vld [vmem:[%s5359_s1 + $0x964] ss:$12 sps:$4 sm:$0xff]  }
  0x1e   :  { %v3795_v25 = vld [vmem:[%s5359_s1 + $0x360] ss:$12 sps:$4 sm:$0xff]   ;;  %v3803_v28 = vld [vmem:[%s5359_s1 + $0x37c] ss:$12 sps:$4 sm:$0xff]  }
  0x1f   :  { %2352 = vmatpush1.bf16.msra.mxu1 %v3715_v30  ;;  %v3847_v26 = vld [vmem:[%s5360_s0 + $0x34] ss:$56 sps:$4 sm:$0xff]   ;;  %v3806_v29 = vld [vmem:[%s5359_s1 + $0x97c] ss:$12 sps:$4 sm:$0xff]   ;;  %v3801_v30 = vld [vmem:[%s5359_s1 + $0x378] ss:$12 sps:$4 sm:$0xff]  }
  0x20   :  { %2403 = vmatpush1.bf16.msra.mxu0 %v3716_v31  ;;  %2353 = vmatprep.subr.bf16.mxu1 %v3717_v32  ;;  %v3798_v27 = vld [vmem:[%s5359_s1 + $0x960] ss:$12 sps:$4 sm:$0xff]   ;;  %v3804_v31 = vld [vmem:[%s5359_s1 + $0x978] ss:$12 sps:$4 sm:$0xff]  }
  0x21   :  { %2404 = vmatprep.subr.bf16.mxu0 %v3719_v33  ;;  %v3809_v32 = vld [vmem:[%s5359_s1 + $0x394] ss:$12 sps:$4 sm:$0xff]   ;;  %v3867_v16 = vld [vmem:[%s5359_s1 + $0x46c] ss:$12 sps:$4 sm:$0xff]  }
  0x22   :  { %v3812_v33 = vld [vmem:[%s5359_s1 + $0x994] ss:$12 sps:$4 sm:$0xff]  }
  0x23   :  { %2354 = vmatpush1.bf16.msra.mxu1 %v3721_v34  ;;  %v30_v34 = vld [vmem:[%s5360_s0 + $0x78] sm:$0x11] }
  0x24   :  { %2405 = vmatpush1.bf16.msra.mxu0 %v3722_v35  ;;  %2355 = vmatprep.subr.bf16.mxu1 %v3723_v36  ;;  %v3807_v35 = vld [vmem:[%s5359_s1 + $0x390] ss:$12 sps:$4 sm:$0xff]   ;;  %v4472_v36 = vcombine.high %v30_v34, %v30_v34 }
  0x25   :  { %2406 = vmatprep.subr.bf16.mxu0 %v3725_v37  ;;  %v3810_v37 = vld [vmem:[%s5359_s1 + $0x990] ss:$12 sps:$4 sm:$0xff]  }
  0x27   :  { %2356 = vmatpush1.bf16.msra.mxu1 %v3727_v38  ;;  %v4477_v38 = vcombine.low %v30_v34, %v30_v34  ;;  %v3892_v34 = vld [vmem:[%s5359_s1 + $0x4cc] ss:$12 sps:$4 sm:$0xff]  }
  0x28   :  { %2407 = vmatpush1.bf16.msra.mxu0 %v3728_v39  ;;  %2357 = vmatprep.subr.bf16.mxu1 %v3729_v40  ;;  %v3815_v39 = vld [vmem:[%s5359_s1 + $0x3ac] ss:$12 sps:$4 sm:$0xff]  }
  0x29   :  { %2408 = vmatprep.subr.bf16.mxu0 %v3731_v41  ;;  %v3818_v40 = vld [vmem:[%s5359_s1 + $0x9ac] ss:$12 sps:$4 sm:$0xff]   ;;  %v3813_v41 = vld [vmem:[%s5359_s1 + $0x3a8] ss:$12 sps:$4 sm:$0xff]  }
  0x2b   :  { %2358 = vmatpush1.bf16.msra.mxu1 %v3733_v42  ;;  %v3816_v42 = vld [vmem:[%s5359_s1 + $0x9a8] ss:$12 sps:$4 sm:$0xff]  }
  0x2c   :  { %2409 = vmatpush1.bf16.msra.mxu0 %v3734_v43  ;;  %2359 = vmatprep.subr.bf16.mxu1 %v3735_v44  ;;  %v3821_v43 = vld [vmem:[%s5359_s1 + $0x3c4] ss:$12 sps:$4 sm:$0xff]  }
  0x2d   :  { %2410 = vmatprep.subr.bf16.mxu0 %v3737_v45  ;;  %v3824_v44 = vld [vmem:[%s5359_s1 + $0x9c4] ss:$12 sps:$4 sm:$0xff]   ;;  %v4502_v45 = vld [vmem:[%s5360_s0 + $0x14] ss:$56 sps:$4 sm:$0xff]  }
  0x2f   :  { %2360 = vmatpush1.bf16.msra.mxu1 %v3739_v46  ;;  %v3819_v46 = vld [vmem:[%s5359_s1 + $0x3c0] ss:$12 sps:$4 sm:$0xff]  }
  0x30   :  { %2411 = vmatpush1.bf16.msra.mxu0 %v3740_v47  ;;  %2361 = vmatprep.subr.bf16.mxu1 %v3741_v48  ;;  %v3822_v47 = vld [vmem:[%s5359_s1 + $0x9c0] ss:$12 sps:$4 sm:$0xff]   ;;  %v3827_v48 = vld [vmem:[%s5359_s1 + $0x3dc] ss:$12 sps:$4 sm:$0xff]  }
  0x31   :  { %2412 = vmatprep.subr.bf16.mxu0 %v3743_v50  ;;  %v3830_v50 = vld [vmem:[%s5359_s1 + $0x9dc] ss:$12 sps:$4 sm:$0xff]  }
  0x33   :  { %2362 = vmatpush1.bf16.msra.mxu1 %v3745_v52  ;;  %v3825_v52 = vld [vmem:[%s5359_s1 + $0x3d8] ss:$12 sps:$4 sm:$0xff]  }
  0x34   :  { %2413 = vmatpush1.bf16.msra.mxu0 %v3746_v53  ;;  %2363 = vmatprep.subr.bf16.mxu1 %v3747_v54  ;;  %v3828_v53 = vld [vmem:[%s5359_s1 + $0x9d8] ss:$12 sps:$4 sm:$0xff]   ;;  %v3835_v54 = vld [vmem:[%s5359_s1 + $0x3f4] ss:$12 sps:$4 sm:$0xff]  }
  0x35   :  { %2414 = vmatprep.subr.bf16.mxu0 %v3749_v55  ;;  %v3838_v55 = vld [vmem:[%s5359_s1 + $0x9f4] ss:$12 sps:$4 sm:$0xff]  }
  0x37   :  { %2364 = vmatpush1.bf16.msra.mxu1 %v3751_v56  ;;  %v3833_v56 = vld [vmem:[%s5359_s1 + $0x3f0] ss:$12 sps:$4 sm:$0xff]  }
  0x38   :  { %2415 = vmatpush1.bf16.msra.mxu0 %v3752_v57  ;;  %2365 = vmatprep.subr.bf16.mxu1 %v3753_v58  ;;  %v3836_v57 = vld [vmem:[%s5359_s1 + $0x9f0] ss:$12 sps:$4 sm:$0xff]   ;;  %v3841_v58 = vld [vmem:[%s5359_s1 + $0x40c] ss:$12 sps:$4 sm:$0xff]  }
  0x39   :  { %2416 = vmatprep.subr.bf16.mxu0 %v3755_v59  ;;  %v3844_v59 = vld [vmem:[%s5359_s1 + $0xa0c] ss:$12 sps:$4 sm:$0xff]  }
  0x3b   :  { %2366 = vmatpush1.bf16.msra.mxu1 %v3757_v60  ;;  %v3839_v60 = vld [vmem:[%s5359_s1 + $0x408] ss:$12 sps:$4 sm:$0xff]  }
  0x3c   :  { %2417 = vmatpush1.bf16.msra.mxu0 %v3758_v61  ;;  %2367 = vmatprep.subr.bf16.mxu1 %v3759_v62  ;;  %v3842_v61 = vld [vmem:[%s5359_s1 + $0xa08] ss:$12 sps:$4 sm:$0xff]   ;;  %v3850_v62 = vld [vmem:[%s5359_s1 + $0x424] ss:$12 sps:$4 sm:$0xff]  }
  0x3d   :  { %2418 = vmatprep.subr.bf16.mxu0 %v3761_v63  ;;  %v3845_v63 = vld [vmem:[%s5360_s0 + $0x30] ss:$56 sps:$4 sm:$0xff]  }
  0x3f   :  { %2368 = vmatpush1.bf16.msra.mxu1 %v3763_v0  ;;  %v3851_v0 = vld [vmem:[%s5359_s1 + $0xc8] ss:$12 sps:$4 sm:$0xff]  }
  0x40   :  { %2419 = vmatpush1.bf16.msra.mxu0 %v3764_v1  ;;  %2643 = vmatprep.subr.bf16.mxu1 %v3776_v3  ;;  %v3848_v1 = vld [vmem:[%s5359_s1 + $0x420] ss:$12 sps:$4 sm:$0xff]  }
  0x41   :  { %2439 = vmatprep.subr.bf16.mxu0 %v3773_v2  ;;  %v3852_v2 = vld [vmem:[%s5359_s1 + $0x8] ss:$12 sps:$4 sm:$0xff]   ;;  %v35_v3 = vld [vmem:[%s5360_s0 + $0xa0] sm:$0x11] }
  0x42   :  { %2370 = vmatmul.mubr.bf16.vlgmr.msra.gmra.mrb[0].mxu1 %v4372_v4 }
  0x43   :  { %2421 = vmatmul.mubr.bf16.vlgmr.msra.gmra.mrb[0].mxu0 %v4377_v5  ;;  %2644 = vmatpush1.bf16.msra.mxu1 %v3774_v7  ;;  %v3856_v7 = vld [vmem:[%s5359_s1 + $0xe0] ss:$12 sps:$4 sm:$0xff]  }
  0x44   :  { %2440 = vmatpush1.bf16.msra.mxu0 %v3771_v6  ;;  %2645 = vmatprep.subr.bf16.mxu1 %v3782_v9  ;;  %v3855_v6 = vld [vmem:[%s5359_s1 + $0x43c] ss:$12 sps:$4 sm:$0xff]   ;;  %v3853_v9 = vld [vmem:[%s5359_s1 + $0x438] ss:$12 sps:$4 sm:$0xff]  }
  0x45   :  { %2441 = vmatprep.subr.bf16.mxu0 %v3779_v8  ;;  %2379 = vmatprep.mubr.bf16.mxu1 %v4420_v19  ;;  %v4571_v8 = vcombine.high %v35_v3, %v35_v3 }
  0x46   :  { %2430 = vmatprep.mubr.bf16.mxu0 %v4472_v36 }
  0x47   :  { %2646 = vmatpush1.bf16.msra.mxu1 %v3780_v11  ;;  %v3861_v11 = vld [vmem:[%s5359_s1 + $0x454] ss:$12 sps:$4 sm:$0xff]  }
  0x48   :  { %2442 = vmatpush1.bf16.msra.mxu0 %v3777_v10  ;;  %2647 = vmatprep.subr.bf16.mxu1 %v3788_v13  ;;  %v3857_v10 = vld [vmem:[%s5359_s1 + $0x20] ss:$12 sps:$4 sm:$0xff]   ;;  %v3859_v13 = vld [vmem:[%s5359_s1 + $0x450] ss:$12 sps:$4 sm:$0xff]  }
  0x49   :  { %2443 = vmatprep.subr.bf16.mxu0 %v3785_v12  ;;  %v3862_v12 = vld [vmem:[%s5359_s1 + $0xf8] ss:$12 sps:$4 sm:$0xff]  }
  0x4a   :  { %2380 = vmatmul.mubr.bf16.gmra.mrb[4].mxu1 %v4422_v20 }
  0x4b   :  { %2648 = vmatpush1.bf16.msra.mxu1 %v3786_v15  ;;  %3434 = vmatprep.mubr.msk.bf16.mxu1 %vm2330_vm0, %v3847_v26  ;;  %v4593_v15 = vcombine.low %v35_v3, %v35_v3  ;;  %v3877_v26 = vld [vmem:[%s5359_s1 + $0x68] ss:$12 sps:$4 sm:$0xff]  }
  0x4c   :  { %2444 = vmatpush1.bf16.msra.mxu0 %v3783_v14  ;;  %2649 = vmatprep.subr.bf16.mxu1 %v3794_v18  ;;  %v3864_v14 = vld [vmem:[%s5359_s1 + $0x38] ss:$12 sps:$4 sm:$0xff]   ;;  %v3865_v18 = vld [vmem:[%s5359_s1 + $0x468] ss:$12 sps:$4 sm:$0xff]  }
  0x4d   :  { %2445 = vmatprep.subr.bf16.mxu0 %v3791_v17  ;;  %2431 = vmatmul.mubr.bf16.gmra.mrb[4].mxu0 %v4477_v38  ;;  %v3868_v17 = vld [vmem:[%s5359_s1 + $0x110] ss:$12 sps:$4 sm:$0xff]   ;;  %v3927_v3 = vld [vmem:[%s5359_s1 + $0x574] ss:$12 sps:$4 sm:$0xff]  }
  0x4e   :  { %2471 = vmatprep.mubr.bf16.mxu0 %v4502_v45 }
  0x4f   :  { %2650 = vmatpush1.bf16.msra.mxu1 %v3792_v22  ;;  %v3875_v22 = vld [vmem:[%s5359_s1 + $0x484] ss:$12 sps:$4 sm:$0xff]  }
  0x50   :  { %2446 = vmatpush1.bf16.msra.mxu0 %v3789_v21  ;;  %2651 = vmatprep.subr.bf16.mxu1 %v3800_v24  ;;  %v3869_v21 = vld [vmem:[%s5359_s1 + $0x50] ss:$12 sps:$4 sm:$0xff]  }
  0x51   :  { %2447 = vmatprep.subr.bf16.mxu0 %v3797_v23  ;;  %v3876_v23 = vld [vmem:[%s5359_s1 + $0x128] ss:$12 sps:$4 sm:$0xff]  }
  0x52   :  { %v4617_v24 = vld [vmem:[%s5360_s0 + $0x10] ss:$56 sps:$4 sm:$0xff]  }
  0x53   :  { %2652 = vmatpush1.bf16.msra.mxu1 %v3798_v27  ;;  %v3880_v27 = vld [vmem:[%s5359_s1 + $0x49c] ss:$12 sps:$4 sm:$0xff]  }
  0x54   :  { %2448 = vmatpush1.bf16.msra.mxu0 %v3795_v25  ;;  %2653 = vmatprep.subr.bf16.mxu1 %v3806_v29  ;;  %v3873_v25 = vld [vmem:[%s5359_s1 + $0x480] ss:$12 sps:$4 sm:$0xff]  }
  0x55   :  { %2449 = vmatprep.subr.bf16.mxu0 %v3803_v28  ;;  %v3878_v28 = vld [vmem:[%s5359_s1 + $0x498] ss:$12 sps:$4 sm:$0xff]   ;;  %v3883_v29 = vld [vmem:[%s5359_s1 + $0x80] ss:$12 sps:$4 sm:$0xff]  }
  0x57   :  { %2654 = vmatpush1.bf16.msra.mxu1 %v3804_v31  ;;  %v3888_v31 = vld [vmem:[%s5359_s1 + $0x158] ss:$12 sps:$4 sm:$0xff]  }
  0x58   :  { %2450 = vmatpush1.bf16.msra.mxu0 %v3801_v30  ;;  %2655 = vmatprep.subr.bf16.mxu1 %v3812_v33  ;;  %v3887_v30 = vld [vmem:[%s5359_s1 + $0x4b4] ss:$12 sps:$4 sm:$0xff]   ;;  %v3889_v33 = vld [vmem:[%s5359_s1 + $0x98] ss:$12 sps:$4 sm:$0xff]  }
  0x59   :  { %2451 = vmatprep.subr.bf16.mxu0 %v3809_v32  ;;  %v3885_v32 = vld [vmem:[%s5359_s1 + $0x4b0] ss:$12 sps:$4 sm:$0xff]  }
  0x5b   :  { %2656 = vmatpush1.bf16.msra.mxu1 %v3810_v37  ;;  %v3890_v37 = vld [vmem:[%s5359_s1 + $0x4c8] ss:$12 sps:$4 sm:$0xff]  }
  0x5c   :  { %2452 = vmatpush1.bf16.msra.mxu0 %v3807_v35  ;;  %2657 = vmatprep.subr.bf16.mxu1 %v3818_v40  ;;  %v3893_v35 = vld [vmem:[%s5359_s1 + $0x170] ss:$12 sps:$4 sm:$0xff]  }
  0x5d   :  { %2453 = vmatprep.subr.bf16.mxu0 %v3815_v39  ;;  %v3894_v39 = vld [vmem:[%s5359_s1 + $0xb0] ss:$12 sps:$4 sm:$0xff]  }
  0x5e   :  { %v3897_v40 = vld [vmem:[%s5359_s1 + $0x4e4] ss:$12 sps:$4 sm:$0xff]  }
  0x5f   :  { %2658 = vmatpush1.bf16.msra.mxu1 %v3816_v42  ;;  %v31_v42 = vld [vmem:[%s5360_s0 + $0x80] sm:$0x11] }
  0x60   :  { %2454 = vmatpush1.bf16.msra.mxu0 %v3813_v41  ;;  %2659 = vmatprep.subr.bf16.mxu1 %v3824_v44  ;;  %v3898_v41 = vld [vmem:[%s5359_s1 + $0x248] ss:$12 sps:$4 sm:$0xff]   ;;  %v3895_v44 = vld [vmem:[%s5359_s1 + $0x4e0] ss:$12 sps:$4 sm:$0xff]  }
  0x61   :  { %2455 = vmatprep.subr.bf16.mxu0 %v3821_v43  ;;  %v4672_v43 = vcombine.high %v31_v42, %v31_v42 }
  0x63   :  { %2660 = vmatpush1.bf16.msra.mxu1 %v3822_v47  ;;  %v3899_v47 = vld [vmem:[%s5359_s1 + $0x188] ss:$12 sps:$4 sm:$0xff]  }
  0x64   :  { %2456 = vmatpush1.bf16.msra.mxu0 %v3819_v46  ;;  %2661 = vmatprep.subr.bf16.mxu1 %v3830_v50  ;;  %v4677_v46 = vcombine.low %v31_v42, %v31_v42  ;;  %v3903_v50 = vld [vmem:[%s5359_s1 + $0x260] ss:$12 sps:$4 sm:$0xff]   ;;  %v3973_v42 = vld [vmem:[%s5359_s1 + $0x458] ss:$12 sps:$4 sm:$0xff]  }
  0x65   :  { %2457 = vmatprep.subr.bf16.mxu0 %v3827_v48  ;;  %v3902_v48 = vld [vmem:[%s5359_s1 + $0x4fc] ss:$12 sps:$4 sm:$0xff]  }
  0x67   :  { %2662 = vmatpush1.bf16.msra.mxu1 %v3828_v53  ;;  %v3904_v53 = vld [vmem:[%s5359_s1 + $0x1a0] ss:$12 sps:$4 sm:$0xff]  }
  0x68   :  { %2458 = vmatpush1.bf16.msra.mxu0 %v3825_v52  ;;  %2663 = vmatprep.subr.bf16.mxu1 %v3838_v55  ;;  %v3900_v52 = vld [vmem:[%s5359_s1 + $0x4f8] ss:$12 sps:$4 sm:$0xff]  }
  0x69   :  { %2459 = vmatprep.subr.bf16.mxu0 %v3835_v54  ;;  %v3907_v54 = vld [vmem:[%s5359_s1 + $0x514] ss:$12 sps:$4 sm:$0xff]   ;;  %v3908_v55 = vld [vmem:[%s5359_s1 + $0x278] ss:$12 sps:$4 sm:$0xff]  }
  0x6b   :  { %2664 = vmatpush1.bf16.msra.mxu1 %v3836_v57  ;;  %v3909_v57 = vld [vmem:[%s5359_s1 + $0x1b8] ss:$12 sps:$4 sm:$0xff]  }
  0x6c   :  { %2460 = vmatpush1.bf16.msra.mxu0 %v3833_v56  ;;  %2665 = vmatprep.subr.bf16.mxu1 %v3844_v59  ;;  %v4706_v56 = vld [vmem:[%s5360_s0 + $0x1c] ss:$56 sps:$4 sm:$0xff]  }
  0x6d   :  { %2461 = vmatprep.subr.bf16.mxu0 %v3841_v58  ;;  %v3912_v58 = vld [vmem:[%s5359_s1 + $0x52c] ss:$12 sps:$4 sm:$0xff]   ;;  %v3910_v59 = vld [vmem:[%s5359_s1 + $0x528] ss:$12 sps:$4 sm:$0xff]  }
  0x6f   :  { %2666 = vmatpush1.bf16.msra.mxu1 %v3842_v61  ;;  %v3917_v61 = vld [vmem:[%s5359_s1 + $0x544] ss:$12 sps:$4 sm:$0xff]  }
  0x70   :  { %2462 = vmatpush1.bf16.msra.mxu0 %v3839_v60  ;;  %3450 = vmatprep.subr.bf16.mxu1 %v3851_v0  ;;  %v3914_v60 = vld [vmem:[%s5359_s1 + $0x1d0] ss:$12 sps:$4 sm:$0xff]  }
  0x71   :  { %2463 = vmatprep.subr.bf16.mxu0 %v3850_v62  ;;  %v3918_v62 = vld [vmem:[%s5359_s1 + $0x2a8] ss:$12 sps:$4 sm:$0xff]  }
  0x72   :  { %2676 = vmatmul.mubr.bf16.vlgmr.msra.gmra.mrb[8].mxu1 %v3845_v63  ;;  %v3915_v63 = vld [vmem:[%s5359_s1 + $0x540] ss:$12 sps:$4 sm:$0xff]   ;;  %v3922_v0 = vld [vmem:[%s5359_s1 + $0x55c] ss:$12 sps:$4 sm:$0xff]  }
  0x73   :  { %3451 = vmatpush3.bf16.msra.mxu1 %v3852_v2  ;;  %3435 = vmatprep.mubr.msk.bf16.mxu1 %vm2330_vm0, %v4571_v8  ;;  %v3924_v2 = vld [vmem:[%s5359_s1 + $0x200] ss:$12 sps:$4 sm:$0xff]  }
  0x74   :  { %2464 = vmatpush1.bf16.msra.mxu0 %v3848_v1  ;;  %3452 = vmatprep.subr.bf16.mxu1 %v3856_v7  ;;  %v3920_v1 = vld [vmem:[%s5359_s1 + $0x558] ss:$12 sps:$4 sm:$0xff]   ;;  %v3925_v7 = vld [vmem:[%s5359_s1 + $0x570] ss:$12 sps:$4 sm:$0xff]  }
  0x75   :  { %2465 = vmatprep.subr.bf16.mxu0 %v3855_v6  ;;  %v3928_v6 = vld [vmem:[%s5359_s1 + $0x2d8] ss:$12 sps:$4 sm:$0xff]  }
  0x77   :  { %3453 = vmatpush3.bf16.msra.mxu1 %v3857_v10  ;;  %v3932_v10 = vld [vmem:[%s5359_s1 + $0x58c] ss:$12 sps:$4 sm:$0xff]  }
  0x78   :  { %2466 = vmatpush1.bf16.msra.mxu0 %v3853_v9  ;;  %3454 = vmatprep.subr.bf16.mxu1 %v3862_v12  ;;  %v3929_v9 = vld [vmem:[%s5359_s1 + $0x218] ss:$12 sps:$4 sm:$0xff]   ;;  %v3930_v12 = vld [vmem:[%s5359_s1 + $0x588] ss:$12 sps:$4 sm:$0xff]  }
  0x79   :  { %2467 = vmatprep.subr.bf16.mxu0 %v3861_v11  ;;  %v3933_v11 = vld [vmem:[%s5359_s1 + $0x2f0] ss:$12 sps:$4 sm:$0xff]  }
  0x7a   :  { %2686 = vmatmul.mubr.bf16.gmra.mrb[12].mxu1 %v4593_v15 }
  0x7b   :  { %3455 = vmatpush3.bf16.msra.mxu1 %v3864_v14  ;;  %2726 = vmatprep.mubr.bf16.mxu1 %v4309_v49  ;;  %v3881_v49 = vld [vmem:[%s5359_s1 + $0x140] ss:$12 sps:$4 sm:$0xff]   ;;  %v3937_v14 = vld [vmem:[%s5359_s1 + $0x5a4] ss:$12 sps:$4 sm:$0xff]  }
  0x7c   :  { %2468 = vmatpush1.bf16.msra.mxu0 %v3859_v13  ;;  %3456 = vmatprep.subr.bf16.mxu1 %v3868_v17  ;;  %v3934_v13 = vld [vmem:[%s5359_s1 + $0x230] ss:$12 sps:$4 sm:$0xff]   ;;  %v3935_v17 = vld [vmem:[%s5359_s1 + $0x5a0] ss:$12 sps:$4 sm:$0xff]  }
  0x7d   :  { %2469 = vmatprep.subr.bf16.mxu0 %v3867_v16  ;;  %v3938_v16 = vld [vmem:[%s5359_s1 + $0x3c8] ss:$12 sps:$4 sm:$0xff]  }
  0x7f   :  { %3457 = vmatpush3.bf16.msra.mxu1 %v3869_v21  ;;  %v3942_v21 = vld [vmem:[%s5359_s1 + $0x5bc] ss:$12 sps:$4 sm:$0xff]  }
  0x80   :  { %2470 = vmatpush1.bf16.msra.mxu0 %v3865_v18  ;;  %3458 = vmatprep.subr.bf16.mxu1 %v3876_v23  ;;  %v3939_v18 = vld [vmem:[%s5359_s1 + $0x308] ss:$12 sps:$4 sm:$0xff]   ;;  %v3940_v23 = vld [vmem:[%s5359_s1 + $0x5b8] ss:$12 sps:$4 sm:$0xff]  }
  0x81   :  { %2490 = vmatprep.subr.bf16.mxu0 %v3875_v22  ;;  %v3943_v22 = vld [vmem:[%s5359_s1 + $0x3e0] ss:$12 sps:$4 sm:$0xff]  }
  0x83   :  { %2472 = vmatmul.mubr.bf16.vlgmr.msra.gmra.mrb[0].mxu0 %v4617_v24  ;;  %3459 = vmatpush3.bf16.msra.mxu1 %v3877_v26  ;;  %v3948_v26 = vld [vmem:[%s5359_s1 + $0x5d4] ss:$12 sps:$4 sm:$0xff]  }
  0x84   :  { %2491 = vmatpush1.bf16.msra.mxu0 %v3873_v25  ;;  %3460 = vmatprep.subr.bf16.mxu1 %v3881_v49  ;;  %v3944_v25 = vld [vmem:[%s5359_s1 + $0x320] ss:$12 sps:$4 sm:$0xff]   ;;  %v3951_v49 = vld [vmem:[%s5359_s1 + $0x338] ss:$12 sps:$4 sm:$0xff]  }
  0x85   :  { %2492 = vmatprep.subr.bf16.mxu0 %v3880_v27  ;;  %2481 = vmatprep.mubr.bf16.mxu0 %v4672_v43  ;;  %v3946_v27 = vld [vmem:[%s5359_s1 + $0x5d0] ss:$12 sps:$4 sm:$0xff]  }
  0x87   :  { %3461 = vmatpush3.bf16.msra.mxu1 %v3883_v29  ;;  %v3952_v29 = vld [vmem:[%s5359_s1 + $0x5e8] ss:$12 sps:$4 sm:$0xff]  }
  0x88   :  { %2493 = vmatpush1.bf16.msra.mxu0 %v3878_v28  ;;  %3462 = vmatprep.subr.bf16.mxu1 %v3888_v31  ;;  %v3954_v28 = vld [vmem:[%s5359_s1 + $0x5ec] ss:$12 sps:$4 sm:$0xff]   ;;  %v3962_v31 = vld [vmem:[%s5359_s1 + $0x604] ss:$12 sps:$4 sm:$0xff]  }
  0x89   :  { %2494 = vmatprep.subr.bf16.mxu0 %v3887_v30  ;;  %v3956_v30 = vld [vmem:[%s5359_s1 + $0x350] ss:$12 sps:$4 sm:$0xff]  }
  0x8b   :  { %3463 = vmatpush3.bf16.msra.mxu1 %v3889_v33  ;;  %2482 = vmatmul.mubr.bf16.gmra.mrb[4].mxu0 %v4677_v46  ;;  %v3960_v33 = vld [vmem:[%s5359_s1 + $0x600] ss:$12 sps:$4 sm:$0xff]  }
  0x8c   :  { %2495 = vmatpush1.bf16.msra.mxu0 %v3885_v32  ;;  %3464 = vmatprep.subr.bf16.mxu1 %v3893_v35  ;;  %v3963_v32 = vld [vmem:[%s5359_s1 + $0x428] ss:$12 sps:$4 sm:$0xff]  }
  0x8d   :  { %2496 = vmatprep.subr.bf16.mxu0 %v3892_v34  ;;  %2522 = vmatprep.mubr.bf16.mxu0 %v4706_v56  ;;  %v3964_v34 = vld [vmem:[%s5359_s1 + $0x368] ss:$12 sps:$4 sm:$0xff]  }
  0x8e   :  { %v3967_v35 = vld [vmem:[%s5359_s1 + $0x61c] ss:$12 sps:$4 sm:$0xff]  }
  0x8f   :  { %3465 = vmatpush3.bf16.msra.mxu1 %v3894_v39  ;;  %v3969_v39 = vld [vmem:[%s5359_s1 + $0x380] ss:$12 sps:$4 sm:$0xff]  }
  0x90   :  { %2497 = vmatpush1.bf16.msra.mxu0 %v3890_v37  ;;  %3478 = vmatprep.subr.bf16.mxu1 %v3898_v41  ;;  %v3965_v37 = vld [vmem:[%s5359_s1 + $0x618] ss:$12 sps:$4 sm:$0xff]   ;;  %v3972_v41 = vld [vmem:[%s5359_s1 + $0x634] ss:$12 sps:$4 sm:$0xff]  }
  0x91   :  { %2498 = vmatprep.subr.bf16.mxu0 %v3897_v40  ;;  %v32_v40 = vld [vmem:[%s5360_s0 + $0x88] sm:$0x11] }
  0x92   :  { %2727 = vmatmul.mubr.bf16.vlgmr.msra.gmra.mrb[16].mxu1 %v4372_v4  ;;  %v3905_v4 = vld [vmem:[%s5359_s1 + $0x510] ss:$12 sps:$4 sm:$0xff]  }
  0x93   :  { %3479 = vmatpush3.bf16.msra.mxu1 %v3899_v47  ;;  %2734 = vmatprep.mubr.bf16.mxu1 %v4420_v19  ;;  %v3913_v19 = vld [vmem:[%s5359_s1 + $0x290] ss:$12 sps:$4 sm:$0xff]  }
  0x94   :  { %2499 = vmatpush1.bf16.msra.mxu0 %v3895_v44  ;;  %3480 = vmatprep.subr.bf16.mxu1 %v3903_v50  ;;  %v4869_v44 = vcombine.high %v32_v40, %v32_v40  ;;  %v3970_v47 = vld [vmem:[%s5359_s1 + $0x630] ss:$12 sps:$4 sm:$0xff]   ;;  %v3974_v50 = vld [vmem:[%s5359_s1 + $0x398] ss:$12 sps:$4 sm:$0xff]  }
  0x95   :  { %2500 = vmatprep.subr.bf16.mxu0 %v3902_v48  ;;  %v4875_v48 = vcombine.low %v32_v40, %v32_v40  ;;  %v4048_v40 = vld [vmem:[%s5359_s1 + $0x728] ss:$12 sps:$4 sm:$0xff]  }
  0x97   :  { %3481 = vmatpush3.bf16.msra.mxu1 %v3904_v53  ;;  %v3978_v53 = vld [vmem:[%s5359_s1 + $0x470] ss:$12 sps:$4 sm:$0xff]  }
  0x98   :  { %2501 = vmatpush1.bf16.msra.mxu0 %v3900_v52  ;;  %3482 = vmatprep.subr.bf16.mxu1 %v3908_v55  ;;  %v3977_v52 = vld [vmem:[%s5359_s1 + $0x64c] ss:$12 sps:$4 sm:$0xff]   ;;  %v3979_v55 = vld [vmem:[%s5359_s1 + $0x3b0] ss:$12 sps:$4 sm:$0xff]  }
  0x99   :  { %2502 = vmatprep.subr.bf16.mxu0 %v3907_v54  ;;  %v3975_v54 = vld [vmem:[%s5359_s1 + $0x648] ss:$12 sps:$4 sm:$0xff]  }
  0x9a   :  { %2735 = vmatmul.mubr.bf16.gmra.mrb[20].mxu1 %v4422_v20  ;;  %v3919_v20 = vld [vmem:[%s5359_s1 + $0x1e8] ss:$12 sps:$4 sm:$0xff]  }
  0x9b   :  { %3483 = vmatpush3.bf16.msra.mxu1 %v3909_v57  ;;  %2774 = vmatprep.mubr.bf16.mxu1 %v4317_v51  ;;  %v3923_v51 = vld [vmem:[%s5359_s1 + $0x2c0] ss:$12 sps:$4 sm:$0xff]   ;;  %v3982_v57 = vld [vmem:[%s5359_s1 + $0x664] ss:$12 sps:$4 sm:$0xff]  }
  0x9c   :  { %2503 = vmatpush1.bf16.msra.mxu0 %v3905_v4  ;;  %3484 = vmatprep.subr.bf16.mxu1 %v3913_v19  ;;  %v4896_v4 = vld [vmem:[%s5360_s0 + $0x24] ss:$56 sps:$4 sm:$0xff]   ;;  %v3980_v19 = vld [vmem:[%s5359_s1 + $0x660] ss:$12 sps:$4 sm:$0xff]  }
  0x9d   :  { %2504 = vmatprep.subr.bf16.mxu0 %v3912_v58  ;;  %v3983_v58 = vld [vmem:[%s5359_s1 + $0x548] ss:$12 sps:$4 sm:$0xff]  }
  0x9f   :  { %3485 = vmatpush3.bf16.msra.mxu1 %v3914_v60  ;;  %v3987_v60 = vld [vmem:[%s5359_s1 + $0x67c] ss:$12 sps:$4 sm:$0xff]  }
  0xa0   :  { %2505 = vmatpush1.bf16.msra.mxu0 %v3910_v59  ;;  %3486 = vmatprep.subr.bf16.mxu1 %v3918_v62  ;;  %v3984_v59 = vld [vmem:[%s5359_s1 + $0x488] ss:$12 sps:$4 sm:$0xff]   ;;  %v3985_v62 = vld [vmem:[%s5359_s1 + $0x678] ss:$12 sps:$4 sm:$0xff]  }
  0xa1   :  { %2506 = vmatprep.subr.bf16.mxu0 %v3917_v61  ;;  %v3988_v61 = vld [vmem:[%s5359_s1 + $0x560] ss:$12 sps:$4 sm:$0xff]  }
  0xa3   :  { %3487 = vmatpush3.bf16.msra.mxu1 %v3919_v20  ;;  %v3992_v20 = vld [vmem:[%s5359_s1 + $0x694] ss:$12 sps:$4 sm:$0xff]  }
  0xa4   :  { %2507 = vmatpush1.bf16.msra.mxu0 %v3915_v63  ;;  %3488 = vmatprep.subr.bf16.mxu1 %v3923_v51  ;;  %v3989_v63 = vld [vmem:[%s5359_s1 + $0x4a0] ss:$12 sps:$4 sm:$0xff]   ;;  %v3994_v51 = vld [vmem:[%s5359_s1 + $0x4b8] ss:$12 sps:$4 sm:$0xff]  }
  0xa5   :  { %2508 = vmatprep.subr.bf16.mxu0 %v3922_v0  ;;  %v3993_v0 = vld [vmem:[%s5359_s1 + $0x578] ss:$12 sps:$4 sm:$0xff]  }
  0xa7   :  { %3489 = vmatpush3.bf16.msra.mxu1 %v3924_v2  ;;  %v3995_v2 = vld [vmem:[%s5359_s1 + $0x6a8] ss:$12 sps:$4 sm:$0xff]  }
  0xa8   :  { %2509 = vmatpush1.bf16.msra.mxu0 %v3920_v1  ;;  %3490 = vmatprep.subr.bf16.mxu1 %v3928_v6  ;;  %v3997_v1 = vld [vmem:[%s5359_s1 + $0x6ac] ss:$12 sps:$4 sm:$0xff]   ;;  %v4002_v6 = vld [vmem:[%s5359_s1 + $0x6c4] ss:$12 sps:$4 sm:$0xff]  }
  0xa9   :  { %2510 = vmatprep.subr.bf16.mxu0 %v3927_v3  ;;  %v3999_v3 = vld [vmem:[%s5359_s1 + $0x4d0] ss:$12 sps:$4 sm:$0xff]  }
  0xab   :  { %3491 = vmatpush3.bf16.msra.mxu1 %v3929_v9  ;;  %v4004_v9 = vld [vmem:[%s5359_s1 + $0x4e8] ss:$12 sps:$4 sm:$0xff]  }
  0xac   :  { %2511 = vmatpush1.bf16.msra.mxu0 %v3925_v7  ;;  %3492 = vmatprep.subr.bf16.mxu1 %v3933_v11  ;;  %v4003_v7 = vld [vmem:[%s5359_s1 + $0x5a8] ss:$12 sps:$4 sm:$0xff]   ;;  %v4005_v11 = vld [vmem:[%s5359_s1 + $0x6d8] ss:$12 sps:$4 sm:$0xff]  }
  0xad   :  { %2512 = vmatprep.subr.bf16.mxu0 %v3932_v10  ;;  %v4007_v10 = vld [vmem:[%s5359_s1 + $0x6dc] ss:$12 sps:$4 sm:$0xff]  }
  0xaf   :  { %3493 = vmatpush3.bf16.msra.mxu1 %v3934_v13  ;;  %v4012_v13 = vld [vmem:[%s5359_s1 + $0x6f4] ss:$12 sps:$4 sm:$0xff]  }
  0xb0   :  { %2513 = vmatpush1.bf16.msra.mxu0 %v3930_v12  ;;  %3506 = vmatprep.subr.bf16.mxu1 %v3938_v16  ;;  %v4009_v12 = vld [vmem:[%s5359_s1 + $0x500] ss:$12 sps:$4 sm:$0xff]   ;;  %v4010_v16 = vld [vmem:[%s5359_s1 + $0x6f0] ss:$12 sps:$4 sm:$0xff]  }
  0xb1   :  { %2514 = vmatprep.subr.bf16.mxu0 %v3937_v14  ;;  %v4013_v14 = vld [vmem:[%s5359_s1 + $0x5d8] ss:$12 sps:$4 sm:$0xff]  }
  0xb2   :  { %2775 = vmatmul.mubr.bf16.vlgmr.msra.gmra.mrb[24].mxu1 %v4377_v5  ;;  %v3949_v5 = vld [vmem:[%s5359_s1 + $0x3f8] ss:$12 sps:$4 sm:$0xff]  }
  0xb3   :  { %3507 = vmatpush3.bf16.msra.mxu1 %v3939_v18  ;;  %2782 = vmatprep.mubr.bf16.mxu1 %v4472_v36  ;;  %v3955_v36 = vld [vmem:[%s5359_s1 + $0x410] ss:$12 sps:$4 sm:$0xff]   ;;  %v4017_v18 = vld [vmem:[%s5359_s1 + $0x70c] ss:$12 sps:$4 sm:$0xff]  }
  0xb4   :  { %2515 = vmatpush1.bf16.msra.mxu0 %v3935_v17  ;;  %3508 = vmatprep.subr.bf16.mxu1 %v3943_v22  ;;  %v4014_v17 = vld [vmem:[%s5359_s1 + $0x518] ss:$12 sps:$4 sm:$0xff]   ;;  %v4015_v22 = vld [vmem:[%s5359_s1 + $0x708] ss:$12 sps:$4 sm:$0xff]  }
  0xb5   :  { %2516 = vmatprep.subr.bf16.mxu0 %v3942_v21  ;;  %v4018_v21 = vld [vmem:[%s5359_s1 + $0x5f0] ss:$12 sps:$4 sm:$0xff]  }
  0xb7   :  { %3509 = vmatpush3.bf16.msra.mxu1 %v3944_v25  ;;  %v4022_v25 = vld [vmem:[%s5359_s1 + $0x724] ss:$12 sps:$4 sm:$0xff]  }
  0xb8   :  { %2517 = vmatpush1.bf16.msra.mxu0 %v3940_v23  ;;  %3510 = vmatprep.subr.bf16.mxu1 %v3949_v5  ;;  %v4019_v23 = vld [vmem:[%s5359_s1 + $0x530] ss:$12 sps:$4 sm:$0xff]   ;;  %v4020_v5 = vld [vmem:[%s5359_s1 + $0x720] ss:$12 sps:$4 sm:$0xff]  }
  0xb9   :  { %2518 = vmatprep.subr.bf16.mxu0 %v3948_v26  ;;  %v4023_v26 = vld [vmem:[%s5359_s1 + $0x6c8] ss:$12 sps:$4 sm:$0xff]  }
  0xba   :  { %2783 = vmatmul.mubr.bf16.gmra.mrb[28].mxu1 %v4477_v38  ;;  %v4838_v38 = vld [vmem:[%s5360_s0 + $0x18] ss:$56 sps:$4 sm:$0xff]  }
  0xbb   :  { %3511 = vmatpush3.bf16.msra.mxu1 %v3951_v49  ;;  %2822 = vmatprep.mubr.bf16.mxu1 %v4502_v45  ;;  %v3968_v45 = vld [vmem:[%s5359_s1 + $0x440] ss:$12 sps:$4 sm:$0xff]   ;;  %v4027_v49 = vld [vmem:[%s5359_s1 + $0x73c] ss:$12 sps:$4 sm:$0xff]  }
  0xbc   :  { %2519 = vmatpush1.bf16.msra.mxu0 %v3946_v27  ;;  %3512 = vmatprep.subr.bf16.mxu1 %v3955_v36  ;;  %v4024_v27 = vld [vmem:[%s5359_s1 + $0x608] ss:$12 sps:$4 sm:$0xff]   ;;  %v4025_v36 = vld [vmem:[%s5359_s1 + $0x738] ss:$12 sps:$4 sm:$0xff]  }
  0xbd   :  { %2520 = vmatprep.subr.bf16.mxu0 %v3954_v28  ;;  %v4028_v28 = vld [vmem:[%s5359_s1 + $0x6e0] ss:$12 sps:$4 sm:$0xff]  }
  0xbf   :  { %3513 = vmatpush3.bf16.msra.mxu1 %v3956_v30  ;;  %v4033_v30 = vld [vmem:[%s5359_s1 + $0x754] ss:$12 sps:$4 sm:$0xff]  }
  0xc0   :  { %2521 = vmatpush1.bf16.msra.mxu0 %v3952_v29  ;;  %3514 = vmatprep.subr.bf16.mxu1 %v3963_v32  ;;  %v4029_v29 = vld [vmem:[%s5359_s1 + $0x620] ss:$12 sps:$4 sm:$0xff]   ;;  %v4031_v32 = vld [vmem:[%s5359_s1 + $0x750] ss:$12 sps:$4 sm:$0xff]  }
  0xc1   :  { %2541 = vmatprep.subr.bf16.mxu0 %v3962_v31  ;;  %v4035_v31 = vld [vmem:[%s5359_s1 + $0x6f8] ss:$12 sps:$4 sm:$0xff]  }
  0xc3   :  { %2523 = vmatmul.mubr.bf16.vlgmr.msra.gmra.mrb[0].mxu0 %v4838_v38  ;;  %3515 = vmatpush3.bf16.msra.mxu1 %v3964_v34  ;;  %v4040_v34 = vld [vmem:[%s5359_s1 + $0x710] ss:$12 sps:$4 sm:$0xff]  }
  0xc4   :  { %2542 = vmatpush1.bf16.msra.mxu0 %v3960_v33  ;;  %3516 = vmatprep.subr.bf16.mxu1 %v3968_v45  ;;  %v4039_v33 = vld [vmem:[%s5359_s1 + $0x76c] ss:$12 sps:$4 sm:$0xff]   ;;  %v4041_v45 = vld [vmem:[%s5359_s1 + $0x650] ss:$12 sps:$4 sm:$0xff]  }
  0xc5   :  { %2543 = vmatprep.subr.bf16.mxu0 %v3967_v35  ;;  %2532 = vmatprep.mubr.bf16.mxu0 %v4869_v44  ;;  %v4037_v35 = vld [vmem:[%s5359_s1 + $0x768] ss:$12 sps:$4 sm:$0xff]  }
  0xc7   :  { %3517 = vmatpush3.bf16.msra.mxu1 %v3969_v39  ;;  %v4042_v39 = vld [vmem:[%s5360_s0 + $0x20] ss:$56 sps:$4 sm:$0xff]  }
  0xc8   :  { %2544 = vmatpush1.bf16.msra.mxu0 %v3965_v37  ;;  %3518 = vmatprep.subr.bf16.mxu1 %v3973_v42  ;;  %v4047_v37 = vld [vmem:[%s5359_s1 + $0x784] ss:$12 sps:$4 sm:$0xff]   ;;  %v4049_v42 = vld [vmem:[%s5359_s1 + $0x668] ss:$12 sps:$4 sm:$0xff]  }
  0xc9   :  { %2545 = vmatprep.subr.bf16.mxu0 %v3972_v41  ;;  %v4045_v41 = vld [vmem:[%s5359_s1 + $0x780] ss:$12 sps:$4 sm:$0xff]  }
  0xcb   :  { %2533 = vmatmul.mubr.bf16.gmra.mrb[4].mxu0 %v4875_v48  ;;  %3519 = vmatpush3.bf16.msra.mxu1 %v3974_v50  ;;  %v4050_v50 = vld [vmem:[%s5359_s1 + $0x798] ss:$12 sps:$4 sm:$0xff]  }
  0xcc   :  { %2546 = vmatpush1.bf16.msra.mxu0 %v3970_v47  ;;  %3520 = vmatprep.subr.bf16.mxu1 %v3978_v53  ;;  %v4053_v47 = vld [vmem:[%s5359_s1 + $0x740] ss:$12 sps:$4 sm:$0xff]  }
  0xcd   :  { %2547 = vmatprep.subr.bf16.mxu0 %v3977_v52  ;;  %2573 = vmatprep.mubr.bf16.mxu0 %v4896_v4  ;;  %v4054_v52 = vld [vmem:[%s5359_s1 + $0x680] ss:$12 sps:$4 sm:$0xff]  }
  0xce   :  { %v4057_v53 = vld [vmem:[%s5359_s1 + $0x7b4] ss:$12 sps:$4 sm:$0xff]  }
  0xcf   :  { %3521 = vmatpush3.bf16.msra.mxu1 %v3979_v55  ;;  %v4058_v55 = vld [vmem:[%s5359_s1 + $0x758] ss:$12 sps:$4 sm:$0xff]  }
  0xd0   :  { %2548 = vmatpush1.bf16.msra.mxu0 %v3975_v54  ;;  %3534 = vmatprep.subr.bf16.mxu1 %v3983_v58  ;;  %v4062_v58 = vld [vmem:[%s5359_s1 + $0x7cc] ss:$12 sps:$4 sm:$0xff]  }
  0xd1   :  { %2549 = vmatprep.subr.bf16.mxu0 %v3982_v57  ;;  %v4059_v57 = vld [vmem:[%s5359_s1 + $0x698] ss:$12 sps:$4 sm:$0xff]  }
  0xd2   :  { %2823 = vmatmul.mubr.bf16.vlgmr.msra.gmra.mrb[32].mxu1 %v4617_v24  ;;  %v3990_v24 = vld [vmem:[%s5359_s1 + $0x690] ss:$12 sps:$4 sm:$0xff]  }
  0xd3   :  { %3535 = vmatpush3.bf16.msra.mxu1 %v3984_v59  ;;  %2830 = vmatprep.mubr.bf16.mxu1 %v4672_v43  ;;  %v3998_v43 = vld [vmem:[%s5359_s1 + $0x590] ss:$12 sps:$4 sm:$0xff]  }
  0xd4   :  { %2550 = vmatpush1.bf16.msra.mxu0 %v3980_v19  ;;  %3536 = vmatprep.subr.bf16.mxu1 %v3988_v61  ;;  %v4063_v19 = vld [vmem:[%s5359_s1 + $0x770] ss:$12 sps:$4 sm:$0xff]  }
  0xd5   :  { %2551 = vmatprep.subr.bf16.mxu0 %v3987_v60  ;;  %v4060_v60 = vld [vmem:[%s5359_s1 + $0x7c8] ss:$12 sps:$4 sm:$0xff]   ;;  %v4064_v61 = vld [vmem:[%s5359_s1 + $0x6b0] ss:$12 sps:$4 sm:$0xff]  }
  0xd7   :  { %3537 = vmatpush3.bf16.msra.mxu1 %v3989_v63  ;;  %v4067_v63 = vld [vmem:[%s5359_s1 + $0x7e4] ss:$12 sps:$4 sm:$0xff]  }
  0xd8   :  { %2552 = vmatpush1.bf16.msra.mxu0 %v3985_v62  ;;  %3538 = vmatprep.subr.bf16.mxu1 %v3993_v0  ;;  %v4109_v62 = vld [vmem:[%s5360_s0 + $0x2c] ss:$56 sps:$4 sm:$0xff]  }
  0xd9   :  { %2553 = vmatprep.subr.bf16.mxu0 %v3992_v20  ;;  %v4068_v20 = vld [vmem:[%s5359_s1 + $0x848] ss:$12 sps:$4 sm:$0xff]   ;;  %v4065_v0 = vld [vmem:[%s5359_s1 + $0x7e0] ss:$12 sps:$4 sm:$0xff]  }
  0xda   :  { %2831 = vmatmul.mubr.bf16.gmra.mrb[36].mxu1 %v4677_v46  ;;  %v4000_v46 = vld [vmem:[%s5359_s1 + $0x6c0] ss:$12 sps:$4 sm:$0xff]  }
  0xdb   :  { %3539 = vmatpush3.bf16.msra.mxu1 %v3994_v51  ;;  %2870 = vmatprep.mubr.bf16.mxu1 %v4706_v56  ;;  %v4008_v56 = vld [vmem:[%s5359_s1 + $0x5c0] ss:$12 sps:$4 sm:$0xff]   ;;  %v4072_v51 = vld [vmem:[%s5359_s1 + $0x7fc] ss:$12 sps:$4 sm:$0xff]  }
  0xdc   :  { %2554 = vmatpush1.bf16.msra.mxu0 %v3990_v24  ;;  %3540 = vmatprep.subr.bf16.mxu1 %v3998_v43  ;;  %v4069_v24 = vld [vmem:[%s5359_s1 + $0x788] ss:$12 sps:$4 sm:$0xff]   ;;  %v4070_v43 = vld [vmem:[%s5359_s1 + $0x7f8] ss:$12 sps:$4 sm:$0xff]  }
  0xdd   :  { %2555 = vmatprep.subr.bf16.mxu0 %v3997_v1  ;;  %v4073_v1 = vld [vmem:[%s5359_s1 + $0x860] ss:$12 sps:$4 sm:$0xff]  }
  0xdf   :  { %3541 = vmatpush3.bf16.msra.mxu1 %v3999_v3  ;;  %v4078_v3 = vld [vmem:[%s5359_s1 + $0x814] ss:$12 sps:$4 sm:$0xff]  }
  0xe0   :  { %2556 = vmatpush1.bf16.msra.mxu0 %v3995_v2  ;;  %3542 = vmatprep.subr.bf16.mxu1 %v4003_v7  ;;  %v4074_v2 = vld [vmem:[%s5359_s1 + $0x7a0] ss:$12 sps:$4 sm:$0xff]  }
  0xe1   :  { %2557 = vmatprep.subr.bf16.mxu0 %v4002_v6  ;;  %v4080_v6 = vld [vmem:[%s5359_s1 + $0x878] ss:$12 sps:$4 sm:$0xff]  }
  0xe3   :  { %3543 = vmatpush3.bf16.msra.mxu1 %v4004_v9 }
  0xe4   :  { %2558 = vmatpush1.bf16.msra.mxu0 %v4000_v46  ;;  %3544 = vmatprep.subr.bf16.mxu1 %v4008_v56  ;;  %v4081_v56 = vld [vmem:[%s5359_s1 + $0x7b8] ss:$12 sps:$4 sm:$0xff]  }
  0xe5   :  { %2559 = vmatprep.subr.bf16.mxu0 %v4007_v10  ;;  %v4076_v10 = vld [vmem:[%s5359_s1 + $0x810] ss:$12 sps:$4 sm:$0xff]  }
  0xe7   :  { %3545 = vmatpush3.bf16.msra.mxu1 %v4009_v12  ;;  %v4084_v12 = vld [vmem:[%s5359_s1 + $0x82c] ss:$12 sps:$4 sm:$0xff]  }
  0xe8   :  { %2560 = vmatpush1.bf16.msra.mxu0 %v4005_v11  ;;  %3546 = vmatprep.subr.bf16.mxu1 %v4013_v14  ;;  %v4082_v14 = vld [vmem:[%s5359_s1 + $0x828] ss:$12 sps:$4 sm:$0xff]  }
  0xe9   :  { %2561 = vmatprep.subr.bf16.mxu0 %v4012_v13  ;;  %v4085_v13 = vld [vmem:[%s5359_s1 + $0x890] ss:$12 sps:$4 sm:$0xff]  }
  0xeb   :  { %3547 = vmatpush3.bf16.msra.mxu1 %v4014_v17  ;;  %v4089_v17 = vld [vmem:[%s5359_s1 + $0x844] ss:$12 sps:$4 sm:$0xff]  }
  0xec   :  { %2562 = vmatpush1.bf16.msra.mxu0 %v4010_v16  ;;  %3548 = vmatprep.subr.bf16.mxu1 %v4018_v21  ;;  %v4086_v16 = vld [vmem:[%s5359_s1 + $0x7d0] ss:$12 sps:$4 sm:$0xff]   ;;  %v4087_v21 = vld [vmem:[%s5359_s1 + $0x840] ss:$12 sps:$4 sm:$0xff]  }
  0xed   :  { %2563 = vmatprep.subr.bf16.mxu0 %v4017_v18  ;;  %v4090_v18 = vld [vmem:[%s5359_s1 + $0x8a8] ss:$12 sps:$4 sm:$0xff]  }
  0xef   :  { %3549 = vmatpush3.bf16.msra.mxu1 %v4019_v23  ;;  %v4094_v23 = vld [vmem:[%s5359_s1 + $0x85c] ss:$12 sps:$4 sm:$0xff]  }
  0xf0   :  { %2564 = vmatpush1.bf16.msra.mxu0 %v4015_v22  ;;  %3562 = vmatprep.subr.bf16.mxu1 %v4023_v26  ;;  %v4091_v22 = vld [vmem:[%s5359_s1 + $0x7e8] ss:$12 sps:$4 sm:$0xff]  }
  0xf1   :  { %2565 = vmatprep.subr.bf16.mxu0 %v4022_v25  ;;  %v4095_v25 = vld [vmem:[%s5359_s1 + $0x8c0] ss:$12 sps:$4 sm:$0xff]  }
  0xf2   :  { %2871 = vmatmul.mubr.bf16.vlgmr.msra.gmra.mrb[40].mxu1 %v4838_v38  ;;  %v4036_v38 = vld [vmem:[%s5359_s1 + $0x638] ss:$12 sps:$4 sm:$0xff]  }
  0xf3   :  { %3563 = vmatpush3.bf16.msra.mxu1 %v4024_v27  ;;  %2878 = vmatprep.mubr.bf16.mxu1 %v4869_v44  ;;  %v4052_v44 = vld [vmem:[%s5359_s1 + $0x79c] ss:$12 sps:$4 sm:$0xff]  }
  0xf4   :  { %2566 = vmatpush1.bf16.msra.mxu0 %v4020_v5  ;;  %3564 = vmatprep.subr.bf16.mxu1 %v4028_v28  ;;  %v4096_v28 = vld [vmem:[%s5359_s1 + $0x800] ss:$12 sps:$4 sm:$0xff]  }
  0xf5   :  { %2567 = vmatprep.subr.bf16.mxu0 %v4027_v49  ;;  %v4092_v49 = vld [vmem:[%s5359_s1 + $0x858] ss:$12 sps:$4 sm:$0xff]  }
  0xf7   :  { %3565 = vmatpush3.bf16.msra.mxu1 %v4029_v29  ;;  %v4099_v29 = vld [vmem:[%s5359_s1 + $0x874] ss:$12 sps:$4 sm:$0xff]  }
  0xf8   :  { %2568 = vmatpush1.bf16.msra.mxu0 %v4025_v36  ;;  %3566 = vmatprep.subr.bf16.mxu1 %v4035_v31  ;;  %v4097_v31 = vld [vmem:[%s5359_s1 + $0x870] ss:$12 sps:$4 sm:$0xff]  }
  0xf9   :  { %2569 = vmatprep.subr.bf16.mxu0 %v4033_v30  ;;  %v4100_v30 = vld [vmem:[%s5359_s1 + $0x8d8] ss:$12 sps:$4 sm:$0xff]  }
  0xfa   :  { %2879 = vmatmul.mubr.bf16.gmra.mrb[44].mxu1 %v4875_v48  ;;  %v33_v48 = vld [vmem:[%s5360_s0 + $0x90] sm:$0x11] }
  0xfb   :  { %3567 = vmatpush3.bf16.msra.mxu1 %v4036_v38  ;;  %2918 = vmatprep.mubr.bf16.mxu1 %v4896_v4  ;;  %v3105_v54 = vcombine.high %v33_v48, %v33_v48  ;;  %v4055_v4 = vld [vmem:[%s5359_s1 + $0x7b0] ss:$12 sps:$4 sm:$0xff]   ;;  %v3104_v59 = vcombine.low %v33_v48, %v33_v48  ;;  %v4104_v38 = vld [vmem:[%s5359_s1 + $0x88c] ss:$12 sps:$4 sm:$0xff]  }
  0xfc   :  { %2570 = vmatpush1.bf16.msra.mxu0 %v4031_v32  ;;  %3568 = vmatprep.subr.bf16.mxu1 %v4040_v34  ;;  %v4101_v32 = vld [vmem:[%s5359_s1 + $0x818] ss:$12 sps:$4 sm:$0xff]   ;;  %v4102_v34 = vld [vmem:[%s5359_s1 + $0x888] ss:$12 sps:$4 sm:$0xff]  }
  0xfd   :  { %2571 = vmatprep.subr.bf16.mxu0 %v4039_v33  ;;  %v4105_v33 = vld [vmem:[%s5359_s1 + $0x8f0] ss:$12 sps:$4 sm:$0xff]   ;;  %v4114_v48 = vld [vmem:[%s5359_s1 + $0x8b8] ss:$12 sps:$4 sm:$0xff]  }
  0xff   :  { %3569 = vmatpush3.bf16.msra.mxu1 %v4041_v45  ;;  %v4112_v45 = vld [vmem:[%s5359_s1 + $0x8a4] ss:$12 sps:$4 sm:$0xff]  }
 0x100   :  { %2572 = vmatpush1.bf16.msra.mxu0 %v4037_v35  ;;  %3570 = vmatprep.subr.bf16.mxu1 %v4048_v40  ;;  %v4106_v35 = vld [vmem:[%s5359_s1 + $0x830] ss:$12 sps:$4 sm:$0xff]   ;;  %v4110_v40 = vld [vmem:[%s5359_s1 + $0x8a0] ss:$12 sps:$4 sm:$0xff]  }
 0x101   :  { %2592 = vmatprep.subr.bf16.mxu0 %v4047_v37  ;;  %v4107_v37 = vld [vmem:[%s5360_s0 + $0x28] ss:$56 sps:$4 sm:$0xff]  }
 0x103   :  { %2574 = vmatmul.mubr.bf16.vlgmr.msra.gmra.mrb[0].mxu0 %v4042_v39  ;;  %3571 = vmatpush3.bf16.msra.mxu1 %v4049_v42  ;;  %v4138_v42 = vmov 0  }
 0x104   :  { %2593 = vmatpush1.bf16.msra.mxu0 %v4045_v41  ;;  %3572 = vmatprep.subr.bf16.mxu1 %v4053_v47  ;;  %v4113_v41 = vld [vmem:[%s5359_s1 + $0x908] ss:$12 sps:$4 sm:$0xff]  }
 0x105   :  { %2594 = vmatprep.subr.bf16.mxu0 %v4052_v44  ;;  %2583 = vmatprep.mubr.bf16.mxu0 %v3105_v54  ;;  %v4116_v44 = vld [vmem:[%s5359_s1 + $0x8bc] ss:$12 sps:$4 sm:$0xff]  }
 0x107   :  { %3573 = vmatpush3.bf16.msra.mxu1 %v4054_v52  ;;  %v4121_v52 = vld [vmem:[%s5359_s1 + $0x8d4] ss:$12 sps:$4 sm:$0xff]  }
 0x108   :  { %2595 = vmatpush1.bf16.msra.mxu0 %v4050_v50  ;;  %3574 = vmatprep.subr.bf16.mxu1 %v4058_v55  ;;  %v4117_v50 = vld [vmem:[%s5359_s1 + $0x920] ss:$12 sps:$4 sm:$0xff]   ;;  %v4123_v55 = vld [vmem:[%s5359_s1 + $0x938] ss:$12 sps:$4 sm:$0xff]  }
 0x109   :  { %2596 = vmatprep.subr.bf16.mxu0 %v4057_v53 }
 0x10b   :  { %2584 = vmatmul.mubr.bf16.gmra.mrb[4].mxu0 %v3104_v59  ;;  %3575 = vmatpush3.bf16.msra.mxu1 %v4059_v57  ;;  %v4124_v57 = vld [vmem:[%s5359_s1 + $0x8e8] ss:$12 sps:$4 sm:$0xff]  }
 0x10c   :  { %2597 = vmatpush1.bf16.msra.mxu0 %v4055_v4  ;;  %3576 = vmatprep.subr.bf16.mxu1 %v4063_v19  ;;  %v4126_v4 = vld [vmem:[%s5359_s1 + $0x8ec] ss:$12 sps:$4 sm:$0xff]  }
 0x10d   :  { %2598 = vmatprep.subr.bf16.mxu0 %v4062_v58  ;;  %2624 = vmatprep.mubr.bf16.mxu0 %v4109_v62  ;;  %v4127_v58 = vld [vmem:[%s5359_s1 + $0x950] ss:$12 sps:$4 sm:$0xff]   ;;  %v4136_v19 = vld [vmem:[%s5360_s0 + $0x34] ss:$56 sps:$4 sm:$0xff]  }
 0x10f   :  { %3577 = vmatpush3.bf16.msra.mxu1 %v4064_v61 }
 0x110   :  { %2599 = vmatpush1.bf16.msra.mxu0 %v4060_v60  ;;  %3590 = vmatprep.subr.bf16.mxu1 %v4068_v20  ;;  %v4129_v60 = vld [vmem:[%s5359_s1 + $0x980] ss:$12 sps:$4 sm:$0xff]   ;;  %v4130_v20 = vld [vmem:[%s5359_s1 + $0x998] ss:$12 sps:$4 sm:$0xff]  }
 0x111   :  { %2600 = vmatprep.subr.bf16.mxu0 %v4067_v63 }
 0x112   :  { %2919 = vmatmul.mubr.bf16.vlgmr.msra.gmra.mrb[48].mxu1 %v4042_v39  ;;  %v34_v39 = vld [vmem:[%s5360_s0 + $0x98] sm:$0x11] }
 0x113   :  { %3591 = vmatpush3.bf16.msra.mxu1 %v4069_v24  ;;  %2926 = vmatprep.mubr.bf16.mxu1 %v3105_v54  ;;  %v3107_v47 = vcombine.high %v34_v39, %v34_v39  ;;  %v3106_v53 = vcombine.low %v34_v39, %v34_v39  ;;  %v4119_v54 = vld [vmem:[%s5359_s1 + $0x8d0] ss:$12 sps:$4 sm:$0xff]  }
 0x114   :  { %2601 = vmatpush1.bf16.msra.mxu0 %v4065_v0  ;;  %3592 = vmatprep.subr.bf16.mxu1 %v4073_v1  ;;  %v4131_v24 = vld [vmem:[%s5359_s1 + $0x9b0] ss:$12 sps:$4 sm:$0xff]  }
 0x115   :  { %2602 = vmatprep.subr.bf16.mxu0 %v4072_v51  ;;  %v5138_v7 = vpop.f32.mrb[0].mxu1 }
 0x116   :  { %v5140_v46 = vpop.f32.mrb[1].mxu1 }
 0x117   :  { %v5142_v9 = vpop.f32.mrb[2].mxu1  ;;  %3593 = vmatpush3.bf16.msra.mxu1 %v4074_v2 }
 0x118   :  { %2603 = vmatpush1.bf16.msra.mxu0 %v4070_v43  ;;  %v5150_v11 = vpop.f32.mrb[3].mxu1  ;;  %3594 = vmatprep.subr.bf16.mxu1 %v4080_v6  ;;  %v4132_v43 = vld [vmem:[%s5359_s1 + $0x9c8] ss:$12 sps:$4 sm:$0xff]   ;;  %v4133_v6 = vld [vmem:[%s5359_s1 + $0x9e0] ss:$12 sps:$4 sm:$0xff]  }
 0x119   :  { %2604 = vmatprep.subr.bf16.mxu0 %v4078_v3 }
 0x11a   :  { %2927 = vmatmul.mubr.bf16.gmra.mrb[52].mxu1 %v3104_v59  ;;  %v4128_v59 = vld [vmem:[%s5359_s1 + $0x968] ss:$12 sps:$4 sm:$0xff]  }
 0x11b   :  { %3595 = vmatpush3.bf16.msra.mxu1 %v4081_v56  ;;  %2966 = vmatprep.mubr.bf16.mxu1 %v4109_v62  ;;  %v4135_v56 = vld [vmem:[%s5359_s1 + $0xa10] ss:$12 sps:$4 sm:$0xff]  }
 0x11c   :  { %2605 = vmatpush1.bf16.msra.mxu0 %v4076_v10  ;;  %3596 = vmatprep.subr.bf16.mxu1 %v4085_v13  ;;  %v4134_v10 = vld [vmem:[%s5359_s1 + $0x9f8] ss:$12 sps:$4 sm:$0xff]  }
 0x11d   :  { %2606 = vmatprep.subr.bf16.mxu0 %v4084_v12  ;;  %v5182_v26 = vpop.f32.mrb[4].mxu1  ;;  %v4137_v12 = vld [vmem:[%s5360_s0 + $0x30] ss:$56 sps:$4 sm:$0xff]  }
 0x11e   :  { %v5184_v5 = vpop.f32.mrb[5].mxu1 }
 0x11f   :  { %3597 = vmatpush3.bf16.msra.mxu1 %v4086_v16  ;;  %v2385_v27 = vpop.f32.mrb[6].mxu1 }
 0x120   :  { %2607 = vmatpush1.bf16.msra.mxu0 %v4082_v14  ;;  %3598 = vmatprep.subr.bf16.mxu1 %v4090_v18  ;;  %v2386_v36 = vpop.f32.mrb[7].mxu1 }
 0x121   :  { %2608 = vmatprep.subr.bf16.mxu0 %v4089_v17 }
 0x123   :  { %3599 = vmatpush3.bf16.msra.mxu1 %v4091_v22 }
 0x124   :  { %2609 = vmatpush1.bf16.msra.mxu0 %v4087_v21  ;;  %3600 = vmatprep.subr.bf16.mxu1 %v4095_v25 }
 0x125   :  { %2610 = vmatprep.subr.bf16.mxu0 %v4094_v23 }
 0x127   :  { %3601 = vmatpush3.bf16.msra.mxu1 %v4096_v28  ;;  %v470_v28 = vlaneseq }
 0x128   :  { %2611 = vmatpush1.bf16.msra.mxu0 %v4092_v49  ;;  %3602 = vmatprep.subr.bf16.mxu1 %v4100_v30 }
 0x129   :  { %2612 = vmatprep.subr.bf16.mxu0 %v4099_v29  ;;  %v5316_v36 = vshrl.u32 %v470_v28, 7 }
 0x12b   :  { %3603 = vmatpush3.bf16.msra.mxu1 %v4101_v32  ;;  %v480_v29 = vsub.s32 2, %v5316_v36 }
 0x12c   :  { %2613 = vmatpush1.bf16.msra.mxu0 %v4097_v31  ;;  %3604 = vmatprep.subr.bf16.mxu1 %v4105_v33 }
 0x12d   :  { %2614 = vmatprep.subr.bf16.mxu0 %v4104_v38 }
 0x12f   :  { %3605 = vmatpush3.bf16.msra.mxu1 %v4106_v35 }
 0x130   :  { %2615 = vmatpush1.bf16.msra.mxu0 %v4102_v34  ;;  %2982 = vmatprep.subr.bf16.mxu1 %v4138_v42 }
 0x131   :  { %2616 = vmatprep.subr.bf16.mxu0 %v4112_v45 }
 0x132   :  { %2967 = vmatmul.mubr.bf16.vlgmr.msra.gmra.mrb[56].mxu1 %v4107_v37 }
 0x133   :  { %2983 = vmatpush1.bf16.msra.mxu1 %v4113_v41  ;;  %2974 = vmatprep.mubr.bf16.mxu1 %v3107_v47 }
 0x134   :  { %2617 = vmatpush1.bf16.msra.mxu0 %v4110_v40  ;;  %2984 = vmatprep.subr.bf16.mxu1 %v4138_v42 }
 0x135   :  { %2618 = vmatprep.subr.bf16.mxu0 %v4116_v44 }
 0x137   :  { %2985 = vmatpush1.bf16.msra.mxu1 %v4117_v50 }
 0x138   :  { %2619 = vmatpush1.bf16.msra.mxu0 %v4114_v48  ;;  %2986 = vmatprep.subr.bf16.mxu1 %v4138_v42 }
 0x139   :  { %2620 = vmatprep.subr.bf16.mxu0 %v4121_v52 }
 0x13a   :  { %2975 = vmatmul.mubr.bf16.gmra.mrb[60].mxu1 %v3106_v53 }
 0x13b   :  { %2987 = vmatpush1.bf16.msra.mxu1 %v4123_v55  ;;  %3436 = vmatprep.mubr.msk.bf16.mxu1 %vm2330_vm0, %v4136_v19 }
 0x13c   :  { %2621 = vmatpush1.bf16.msra.mxu0 %v4119_v54  ;;  %2988 = vmatprep.subr.bf16.mxu1 %v4138_v42 }
 0x13d   :  { %2622 = vmatprep.subr.bf16.mxu0 %v4126_v4 }
 0x13f   :  { %2989 = vmatpush1.bf16.msra.mxu1 %v4127_v58 }
 0x140   :  { %2623 = vmatpush1.bf16.msra.mxu0 %v4124_v57  ;;  %2990 = vmatprep.subr.bf16.mxu1 %v4138_v42 }
 0x143   :  { %2625 = vmatmul.mubr.bf16.vlgmr.msra.gmra.mrb[0].mxu0 %v4107_v37  ;;  %2991 = vmatpush1.bf16.msra.mxu1 %v4128_v59 }
 0x144   :  { %2634 = vmatprep.mubr.bf16.mxu0 %v3107_v47  ;;  %2992 = vmatprep.subr.bf16.mxu1 %v4138_v42 }
 0x145   :  { %v5274_v61 = vpop.f32.mrb[8].mxu1 }
 0x146   :  { %v5276_v62 = vpop.f32.mrb[9].mxu1 }
 0x147   :  { %v5278_v63 = vpop.f32.mrb[10].mxu1  ;;  %2993 = vmatpush1.bf16.msra.mxu1 %v4129_v60 }
 0x148   :  { %v5283_v0 = vpop.f32.mrb[11].mxu1  ;;  %2994 = vmatprep.subr.bf16.mxu1 %v4138_v42 }
 0x14b   :  { %2635 = vmatmul.mubr.bf16.gmra.mrb[4].mxu0 %v3106_v53  ;;  %2995 = vmatpush1.bf16.msra.mxu1 %v4130_v20 }
 0x14c   :  { %2996 = vmatprep.subr.bf16.mxu1 %v4138_v42 }
 0x14d   :  { %v5290_v51 = vpop.f32.mrb[12].mxu1 }
 0x14e   :  { %v5292_v1 = vpop.f32.mrb[13].mxu1 }
 0x14f   :  { %2997 = vmatpush1.bf16.msra.mxu1 %v4131_v24  ;;  %v2691_v2 = vpop.f32.mrb[14].mxu1 }
 0x150   :  { %2998 = vmatprep.subr.bf16.mxu1 %v4138_v42  ;;  %v2692_v3 = vpop.f32.mrb[15].mxu1 }
 0x153   :  { %2999 = vmatpush1.bf16.msra.mxu1 %v4132_v43 }
 0x154   :  { %3000 = vmatprep.subr.bf16.mxu1 %v4138_v42 }
 0x157   :  { %3001 = vmatpush1.bf16.msra.mxu1 %v4133_v6 }
 0x158   :  { %3002 = vmatprep.subr.bf16.mxu1 %v4138_v42 }
 0x15b   :  { %3003 = vmatpush1.bf16.msra.mxu1 %v4134_v10 }
 0x15c   :  { %3004 = vmatprep.subr.bf16.mxu1 %v4138_v42 }
 0x15f   :  { %3005 = vmatpush1.bf16.msra.mxu1 %v4135_v56 }
 0x162   :  { %3015 = vmatmul.mubr.bf16.vlgmr.msra.gmra.mrb[64].mxu1 %v4137_v12 }
 0x163   :  { %3437 = vmatprep.mubr.msk.bf16.mxu1 %vm2330_vm0, %v4571_v8  ;;  %v5322_v8 = vld [vmem:[%s5361_s2] sm:$0x7] }
 0x164   :  { %v481_v30 = vrot.slane %v5322_v8, %v480_v29 }
 0x165   :  { %v3466_v13 = vpop.f32.mrb[16].mxu1 }
 0x166   :  { %v3467_v14 = vpop.f32.mrb[17].mxu1 }
 0x167   :  { %v3468_v16 = vadd.f32 %v3467_v14, %v3466_v13  ;;  %v3469_v17 = vpop.f32.mrb[18].mxu1 }
 0x168   :  { %v3470_v18 = vpop.f32.mrb[19].mxu1 }
 0x169   :  { %v3471_v21 = vadd.f32 %v3470_v18, %v3469_v17 }
 0x16a   :  { %3023 = vmatmul.mubr.bf16.gmra.mrb[68].mxu1 %v4593_v15  ;;  %v2729_v15 = vadd.f32 %v3468_v16, %v481_v30 }
 0x16b   :  { %v2732_v35 = vadd.f32 %v3471_v21, %v481_v30 }
 0x16d   :  { %v3472_v22 = vpop.f32.mrb[20].mxu1 }
 0x16e   :  { %v3473_v23 = vpop.f32.mrb[21].mxu1 }
 0x16f   :  { %v3474_v25 = vadd.f32 %v3473_v23, %v3472_v22  ;;  %v3475_v27 = vpop.f32.mrb[22].mxu1 }
 0x170   :  { %v3476_v49 = vpop.f32.mrb[23].mxu1 }
 0x171   :  { %v2737_v42 = vadd.f32 %v3474_v25, %v481_v30 }
 0x185   :  { %v3494_v31 = vpop.f32.mrb[24].mxu1 }
 0x186   :  { %v3495_v32 = vpop.f32.mrb[25].mxu1 }
 0x187   :  { %v3496_v38 = vadd.f32 %v3495_v32, %v3494_v31  ;;  %v3497_v33 = vpop.f32.mrb[26].mxu1 }
 0x188   :  { %v3498_v34 = vpop.f32.mrb[27].mxu1 }
 0x189   :  { %v2777_v45 = vadd.f32 %v3496_v38, %v2729_v15  ;;  %v3499_v37 = vadd.f32 %v3498_v34, %v3497_v33 }
 0x18b   :  { %v2780_v39 = vadd.f32 %v3499_v37, %v2732_v35 }
 0x18d   :  { %v3500_v40 = vpop.f32.mrb[28].mxu1 }
 0x18e   :  { %v3501_v41 = vpop.f32.mrb[29].mxu1 }
 0x18f   :  { %v3502_v44 = vadd.f32 %v3501_v41, %v3500_v40  ;;  %v3503_v47 = vpop.f32.mrb[30].mxu1 }
 0x190   :  { %v3504_v48 = vpop.f32.mrb[31].mxu1 }
 0x191   :  { %v2785_v50 = vadd.f32 %v3502_v44, %v2737_v42 }
 0x1a5   :  { %v3522_v52 = vpop.f32.mrb[32].mxu1 }
 0x1a6   :  { %v3523_v53 = vpop.f32.mrb[33].mxu1 }
 0x1a7   :  { %v3524_v54 = vadd.f32 %v3523_v53, %v3522_v52  ;;  %v3525_v55 = vpop.f32.mrb[34].mxu1  ;;  %v472_v52 = vsub.s32 0, %v5316_v36  ;;  %v476_v53 = vsub.s32 1, %v5316_v36 }
 0x1a8   :  { %v3526_v4 = vpop.f32.mrb[35].mxu1 }
 0x1a9   :  { %v2825_v57 = vadd.f32 %v3524_v54, %v2777_v45  ;;  %v3527_v58 = vadd.f32 %v3526_v4, %v3525_v55 }
 0x1ab   :  { %v2828_v19 = vadd.f32 %v3527_v58, %v2780_v39  ;;  %v473_v58 = vrot.slane %v5322_v8, %v472_v52 }
 0x1ad   :  { %v3528_v59 = vpop.f32.mrb[36].mxu1 }
 0x1ae   :  { %v3529_v60 = vpop.f32.mrb[37].mxu1 }
 0x1af   :  { %v3530_v20 = vadd.f32 %v3529_v60, %v3528_v59  ;;  %v3531_v24 = vpop.f32.mrb[38].mxu1  ;;  %v477_v59 = vrot.slane %v5322_v8, %v476_v53 }
 0x1b0   :  { %v3532_v43 = vpop.f32.mrb[39].mxu1 }
 0x1b1   :  { %v2833_v2 = vadd.f32 %v3530_v20, %v2785_v50  ;;  %v2372_v20 = vadd.f32 %v5138_v7, %v473_v58  ;;  %v2374_v24 = vadd.f32 %v5140_v46, %v477_v59  ;;  %v2378_v36 = vadd.f32 %v5150_v11, %v477_v59 }
 0x1b2   :  { %v2384_v11 = vadd.f32 %v5184_v5, %v477_v59 }
 0x1c5   :  { %v3550_v3 = vpop.f32.mrb[40].mxu1 }
 0x1c6   :  { %v3551_v6 = vpop.f32.mrb[41].mxu1 }
 0x1c7   :  { %v3552_v10 = vadd.f32 %v3551_v6, %v3550_v3  ;;  %v3553_v56 = vpop.f32.mrb[42].mxu1 }
 0x1c8   :  { %v3554_v12 = vpop.f32.mrb[43].mxu1 }
 0x1c9   :  { %v2873_v13 = vadd.f32 %v3552_v10, %v2825_v57  ;;  %v3555_v14 = vadd.f32 %v3554_v12, %v3553_v56 }
 0x1cb   :  { %v2876_v16 = vadd.f32 %v3555_v14, %v2828_v19 }
 0x1cd   :  { %v3556_v17 = vpop.f32.mrb[44].mxu1 }
 0x1ce   :  { %v3557_v18 = vpop.f32.mrb[45].mxu1 }
 0x1cf   :  { %v3558_v21 = vadd.f32 %v3557_v18, %v3556_v17  ;;  %v3559_v22 = vpop.f32.mrb[46].mxu1 }
 0x1d0   :  { %v3560_v23 = vpop.f32.mrb[47].mxu1 }
 0x1d1   :  { %v2881_v25 = vadd.f32 %v3558_v21, %v2833_v2  ;;  %v2376_v2 = vadd.f32 %v5142_v9, %v473_v58  ;;  %v2382_v9 = vadd.f32 %v5182_v26, %v473_v58 }
 0x1e5   :  { %v3578_v27 = vpop.f32.mrb[48].mxu1 }
 0x1e6   :  { %v3579_v49 = vpop.f32.mrb[49].mxu1 }
 0x1e7   :  { %v3580_v28 = vadd.f32 %v3579_v49, %v3578_v27  ;;  %v3581_v29 = vpop.f32.mrb[50].mxu1 }
 0x1e8   :  { %v3582_v30 = vpop.f32.mrb[51].mxu1 }
 0x1e9   :  { %v2921_v31 = vadd.f32 %v3580_v28, %v2873_v13  ;;  %v3583_v32 = vadd.f32 %v3582_v30, %v3581_v29 }
 0x1eb   :  { %v2924_v15 = vadd.f32 %v3583_v32, %v2876_v16 }
 0x1ed   :  { %v3584_v38 = vpop.f32.mrb[52].mxu1 }
 0x1ee   :  { %v3585_v33 = vpop.f32.mrb[53].mxu1 }
 0x1ef   :  { %v3586_v34 = vadd.f32 %v3585_v33, %v3584_v38  ;;  %v3587_v35 = vpop.f32.mrb[54].mxu1 }
 0x1f0   :  { %v3588_v45 = vpop.f32.mrb[55].mxu1 }
 0x1f1   :  { %v2929_v37 = vadd.f32 %v3586_v34, %v2881_v25 }
 0x205   :  { %v3606_v39 = vpop.f32.mrb[56].mxu1 }
 0x206   :  { %v3607_v40 = vpop.f32.mrb[57].mxu1 }
 0x207   :  { %v3608_v41 = vadd.f32 %v3607_v40, %v3606_v39  ;;  %v3609_v42 = vpop.f32.mrb[58].mxu1 }
 0x208   :  { %v3610_v44 = vpop.f32.mrb[59].mxu1 }
 0x209   :  { %v3611_v47 = vadd.f32 %v3610_v44, %v3609_v42  ;;  %v2969_v48 = vadd.f32 %v3608_v41, %v2921_v31 }
 0x20b   :  { %v2972_v50 = vadd.f32 %v3611_v47, %v2924_v15 }
 0x20d   :  { %v3612_v54 = vpop.f32.mrb[60].mxu1 }
 0x20e   :  { %v3613_v55 = vpop.f32.mrb[61].mxu1 }
 0x20f   :  { %v3614_v4 = vadd.f32 %v3613_v55, %v3612_v54  ;;  %v3615_v57 = vpop.f32.mrb[62].mxu1 }
 0x210   :  { %v3616_v19 = vpop.f32.mrb[63].mxu1 }
 0x211   :  { %v2977_v60 = vadd.f32 %v3614_v4, %v2929_v37 }
 0x216   :  { %v2626_v43 = vpop.f32.mrb[0].mxu0 }
 0x217   :  { %v3619_v3 = vadd.f32 %v2626_v43, %v2372_v20  ;;  %v2628_v6 = vpop.f32.mrb[1].mxu0 }
 0x218   :  { %v3622_v10 = vadd.f32 %v2628_v6, %v2374_v24  ;;  %v2630_v56 = vpop.f32.mrb[2].mxu0 }
 0x219   :  { %v3620_v12 = vadd.f32 %v3619_v3, %v5274_v61  ;;  %v3625_v13 = vadd.f32 %v2630_v56, %v2376_v2  ;;  %v2632_v14 = vpop.f32.mrb[3].mxu0 }
 0x21a   :  { %v3623_v8 = vadd.f32 %v3622_v10, %v5276_v62  ;;  %v3628_v16 = vadd.f32 %v2632_v14, %v2378_v36 }
 0x21b   :  { %v3030_v17 = vmax.f32 %v3620_v12, 0.0  ;;  %v3626_v7 = vadd.f32 %v3625_v13, %v5278_v63 }
 0x21c   :  { %v3031_v46 = vmax.f32 %v3623_v8, 0.0  ;;  %v3629_v18 = vadd.f32 %v3628_v16, %v5283_v0 }
 0x21d   :  { %v3033_v21 = vmax.f32 %v3626_v7, 0.0 }
 0x21e   :  { %v3444_v22 = vpack.c.bf16 %v3031_v46, %v3030_v17  ;;  %v3034_v23 = vmax.f32 %v3629_v18, 0.0  ;;  %v2636_v25 = vpop.f32.mrb[4].mxu0 }
 0x21f   :  { %v3631_v61 = vadd.f32 %v2636_v25, %v2382_v9  ;;  %v2638_v27 = vpop.f32.mrb[5].mxu0 }
 0x220   :  { %3072 = vst [vmem:[%s5362_s3] sm:$0xff] %v3444_v22  ;;  %v3446_v62 = vpack.c.bf16 %v3034_v23, %v3033_v21  ;;  %v3634_v49 = vadd.f32 %v2638_v27, %v2384_v11  ;;  %v2640_v63 = vpop.f32.mrb[6].mxu0 }
 0x221   :  { %v3632_v28 = vadd.f32 %v3631_v61, %v5290_v51  ;;  %v2641_v0 = vpop.f32.mrb[7].mxu0 }
 0x222   :  { %3074 = vst [vmem:[%s5362_s3 + $0xc] sm:$0xff] %v3446_v62  ;;  %v3635_v26 = vadd.f32 %v3634_v49, %v5292_v1 }
 0x223   :  { %v3036_v5 = vmax.f32 %v3632_v28, 0.0 }
 0x224   :  { %v3037_v29 = vmax.f32 %v3635_v26, 0.0 }
 0x226   :  { %v3448_v30 = vpack.c.bf16 %v3037_v29, %v3036_v5 }
 0x228   :  { %3076 = vst [vmem:[%s5362_s3 + $0x18] sm:$0x11] %v3448_v30 }
 0x235   :  { %v3016_v31 = vpop.f32.mrb[64].mxu1 }
 0x236   :  { %v3017_v32 = vadd.f32 %v3016_v31, %v2969_v48  ;;  %v3018_v15 = vpop.f32.mrb[65].mxu1 }
 0x237   :  { %v3019_v38 = vpop.f32.mrb[66].mxu1 }
 0x238   :  { %v3032_v33 = vmax.f32 %v3017_v32, 0.0  ;;  %v3020_v51 = vadd.f32 %v3019_v38, %v2972_v50  ;;  %v3021_v34 = vpop.f32.mrb[67].mxu1 }
 0x23a   :  { %v3445_v35 = vpack.c.bf16 %v3032_v33, %v3032_v33  ;;  %v3035_v45 = vmax.f32 %v3020_v51, 0.0 }
 0x23c   :  { %3073 = vst [vmem:[%s5362_s3 + $0x8] sm:$0xf] %v3445_v35  ;;  %v3447_v1 = vpack.c.bf16 %v3035_v45, %v3035_v45 }
 0x23d   :  { %v3024_v37 = vpop.f32.mrb[68].mxu1 }
 0x23e   :  { %3075 = vst [vmem:[%s5362_s3 + $0x14] sm:$0xf] %v3447_v1  ;;  %v3025_v39 = vadd.f32 %v3024_v37, %v2977_v60  ;;  %v3026_v40 = vpop.f32.mrb[69].mxu1 }
 0x23f   :  { %v3027_v41 = vpop.f32.mrb[70].mxu1 }
 0x240   :  { %v3038_v42 = vmax.f32 %v3025_v39, 0.0  ;;  %v3028_v44 = vpop.f32.mrb[71].mxu1 }
 0x242   :  { %v3449_v47 = vpack.c.bf16 %v3038_v42, %v3038_v42 }
 0x244   :  { %3077 = vst [vmem:[%s5362_s3 + $0x20] sm:$0x1] %v3449_v47 }

// kernel: new_alexnet_forward.8
= control target key start
LH: loop header
LB: loop body
LE: loop exit
PB: predicated region body
PF: predicated region fallthrough
CT: control target
= control target key end

     0   :  { %s6407_s1 = inlined_call_operand.vmem [shape: bf16[3456,256], index: 1, kind: input, shape index: {}]   ;;  %s6408_s0 = inlined_call_operand.vmem [shape: bf16[18,3456], index: 0, kind: input, shape index: {}]   ;;  %s6409_s2 = inlined_call_operand.vmem [shape: f32[1,256], index: 2, kind: input, shape index: {}]   ;;  %s6410_s3 = inlined_call_operand.vmem [shape: bf16[18,256], index: 3, kind: output, shape index: {}]  }
   0x1   :  { %v4240_v0 = vld [vmem:[%s6407_s1 + $0x4] ss:$8 sps:$4 sm:$0xff]   ;;  %v4244_v2 = vld [vmem:[%s6407_s1] ss:$8 sps:$4 sm:$0xff]   ;;  %v4246_v4 = vld [vmem:[%s6407_s1 + $0x14] ss:$8 sps:$4 sm:$0xff]  }
   0x2   :  { %v4242_v1 = vld [vmem:[%s6407_s1 + $0x704] ss:$8 sps:$4 sm:$0xff]   ;;  %2892 = vmatprep.subr.bf16.mxu1 %v4240_v0  ;;  %v4245_v3 = vld [vmem:[%s6407_s1 + $0x700] ss:$8 sps:$4 sm:$0xff]   ;;  %v4248_v5 = vld [vmem:[%s6407_s1 + $0x714] ss:$8 sps:$4 sm:$0xff]  }
   0x3   :  { %3249 = vmatprep.subr.bf16.mxu0 %v4242_v1  ;;  %2893 = vmatpush1.bf16.msra.mxu1 %v4244_v2  ;;  %v4250_v6 = vld [vmem:[%s6407_s1 + $0x10] ss:$8 sps:$4 sm:$0xff]   ;;  %v4252_v8 = vld [vmem:[%s6407_s1 + $0x24] ss:$8 sps:$4 sm:$0xff]   ;;  %v4256_v10 = vld [vmem:[%s6407_s1 + $0x20] ss:$8 sps:$4 sm:$0xff]  }
   0x4   :  { %3250 = vmatpush1.bf16.msra.mxu0 %v4245_v3  ;;  %2894 = vmatprep.subr.bf16.mxu1 %v4246_v4  ;;  %v4251_v7 = vld [vmem:[%s6407_s1 + $0x710] ss:$8 sps:$4 sm:$0xff]   ;;  %v4254_v9 = vld [vmem:[%s6407_s1 + $0x724] ss:$8 sps:$4 sm:$0xff]   ;;  %v4257_v11 = vld [vmem:[%s6407_s1 + $0x720] ss:$8 sps:$4 sm:$0xff]  }
   0x5   :  { %3251 = vmatprep.subr.bf16.mxu0 %v4248_v5  ;;  %v4258_v12 = vld [vmem:[%s6407_s1 + $0x34] ss:$8 sps:$4 sm:$0xff]   ;;  %v4262_v14 = vld [vmem:[%s6407_s1 + $0x30] ss:$8 sps:$4 sm:$0xff]   ;;  %v4264_v16 = vld [vmem:[%s6407_s1 + $0x44] ss:$8 sps:$4 sm:$0xff]  }
   0x6   :  { %v4260_v13 = vld [vmem:[%s6407_s1 + $0x734] ss:$8 sps:$4 sm:$0xff]   ;;  %v4263_v15 = vld [vmem:[%s6407_s1 + $0x730] ss:$8 sps:$4 sm:$0xff]   ;;  %v4266_v17 = vld [vmem:[%s6407_s1 + $0x744] ss:$8 sps:$4 sm:$0xff]  }
   0x7   :  { %2895 = vmatpush1.bf16.msra.mxu1 %v4250_v6  ;;  %v4268_v18 = vld [vmem:[%s6407_s1 + $0x40] ss:$8 sps:$4 sm:$0xff]   ;;  %v4270_v20 = vld [vmem:[%s6407_s1 + $0x54] ss:$8 sps:$4 sm:$0xff]   ;;  %v4274_v22 = vld [vmem:[%s6407_s1 + $0x50] ss:$8 sps:$4 sm:$0xff]  }
   0x8   :  { %3252 = vmatpush1.bf16.msra.mxu0 %v4251_v7  ;;  %2896 = vmatprep.subr.bf16.mxu1 %v4252_v8  ;;  %v4269_v19 = vld [vmem:[%s6407_s1 + $0x740] ss:$8 sps:$4 sm:$0xff]   ;;  %v4272_v21 = vld [vmem:[%s6407_s1 + $0x754] ss:$8 sps:$4 sm:$0xff]   ;;  %v4275_v23 = vld [vmem:[%s6407_s1 + $0x750] ss:$8 sps:$4 sm:$0xff]  }
   0x9   :  { %3253 = vmatprep.subr.bf16.mxu0 %v4254_v9  ;;  %v4276_v24 = vld [vmem:[%s6407_s1 + $0x64] ss:$8 sps:$4 sm:$0xff]   ;;  %v4280_v26 = vld [vmem:[%s6407_s1 + $0x60] ss:$8 sps:$4 sm:$0xff]   ;;  %v4282_v28 = vld [vmem:[%s6407_s1 + $0x74] ss:$8 sps:$4 sm:$0xff]  }
   0xa   :  { %v4278_v25 = vld [vmem:[%s6407_s1 + $0x764] ss:$8 sps:$4 sm:$0xff]   ;;  %v4281_v27 = vld [vmem:[%s6407_s1 + $0x760] ss:$8 sps:$4 sm:$0xff]   ;;  %v4284_v29 = vld [vmem:[%s6407_s1 + $0x774] ss:$8 sps:$4 sm:$0xff]  }
   0xb   :  { %2897 = vmatpush1.bf16.msra.mxu1 %v4256_v10  ;;  %v4286_v30 = vld [vmem:[%s6407_s1 + $0x70] ss:$8 sps:$4 sm:$0xff]   ;;  %v4288_v32 = vld [vmem:[%s6407_s1 + $0x84] ss:$8 sps:$4 sm:$0xff]   ;;  %v4292_v34 = vld [vmem:[%s6407_s1 + $0x80] ss:$8 sps:$4 sm:$0xff]  }
   0xc   :  { %3254 = vmatpush1.bf16.msra.mxu0 %v4257_v11  ;;  %2898 = vmatprep.subr.bf16.mxu1 %v4258_v12  ;;  %v4287_v31 = vld [vmem:[%s6407_s1 + $0x770] ss:$8 sps:$4 sm:$0xff]   ;;  %v4290_v33 = vld [vmem:[%s6407_s1 + $0x784] ss:$8 sps:$4 sm:$0xff]   ;;  %v4293_v35 = vld [vmem:[%s6407_s1 + $0x780] ss:$8 sps:$4 sm:$0xff]  }
   0xd   :  { %3255 = vmatprep.subr.bf16.mxu0 %v4260_v13  ;;  %v4294_v36 = vld [vmem:[%s6407_s1 + $0x94] ss:$8 sps:$4 sm:$0xff]   ;;  %v4298_v38 = vld [vmem:[%s6407_s1 + $0x90] ss:$8 sps:$4 sm:$0xff]   ;;  %v4300_v40 = vld [vmem:[%s6407_s1 + $0xa4] ss:$8 sps:$4 sm:$0xff]  }
   0xe   :  { %v4296_v37 = vld [vmem:[%s6407_s1 + $0x794] ss:$8 sps:$4 sm:$0xff]   ;;  %v4299_v39 = vld [vmem:[%s6407_s1 + $0x790] ss:$8 sps:$4 sm:$0xff]   ;;  %v4302_v41 = vld [vmem:[%s6407_s1 + $0x7a4] ss:$8 sps:$4 sm:$0xff]  }
   0xf   :  { %2899 = vmatpush1.bf16.msra.mxu1 %v4262_v14  ;;  %v4304_v42 = vld [vmem:[%s6407_s1 + $0xa0] ss:$8 sps:$4 sm:$0xff]   ;;  %v4306_v44 = vld [vmem:[%s6407_s1 + $0xb4] ss:$8 sps:$4 sm:$0xff]   ;;  %v4310_v46 = vld [vmem:[%s6407_s1 + $0xb0] ss:$8 sps:$4 sm:$0xff]  }
  0x10   :  { %3256 = vmatpush1.bf16.msra.mxu0 %v4263_v15  ;;  %2900 = vmatprep.subr.bf16.mxu1 %v4264_v16  ;;  %v4305_v43 = vld [vmem:[%s6407_s1 + $0x7a0] ss:$8 sps:$4 sm:$0xff]   ;;  %v4308_v45 = vld [vmem:[%s6407_s1 + $0x7b4] ss:$8 sps:$4 sm:$0xff]   ;;  %v4311_v47 = vld [vmem:[%s6407_s1 + $0x7b0] ss:$8 sps:$4 sm:$0xff]  }
  0x11   :  { %3257 = vmatprep.subr.bf16.mxu0 %v4266_v17  ;;  %v4338_v48 = vld [vmem:[%s6408_s0 + $0x4] ss:$108 sps:$4 sm:$0xff]   ;;  %v4344_v51 = vld [vmem:[%s6408_s0 + $0x3c] ss:$108 sps:$4 sm:$0xff]   ;;  %v4336_v4 = vld [vmem:[%s6408_s0] ss:$108 sps:$4 sm:$0xff]  }
  0x12   :  { %v4312_v49 = vld [vmem:[%s6407_s1 + $0xc4] ss:$8 sps:$4 sm:$0xff]   ;;  %2924 = vmatprep.mubr.bf16.mxu1 %v4338_v48  ;;  %v4316_v52 = vld [vmem:[%s6407_s1 + $0xc0] ss:$8 sps:$4 sm:$0xff]   ;;  %v4318_v54 = vld [vmem:[%s6407_s1 + $0xd4] ss:$8 sps:$4 sm:$0xff]   ;;  %3281 = vmatprep.mubr.bf16.mxu0 %v4344_v51 }
  0x13   :  { %2901 = vmatpush1.bf16.msra.mxu1 %v4268_v18  ;;  %v4314_v50 = vld [vmem:[%s6407_s1 + $0x7c4] ss:$8 sps:$4 sm:$0xff]   ;;  %v4317_v53 = vld [vmem:[%s6407_s1 + $0x7c0] ss:$8 sps:$4 sm:$0xff]   ;;  %v4320_v55 = vld [vmem:[%s6407_s1 + $0x7d4] ss:$8 sps:$4 sm:$0xff]  }
  0x14   :  { %3258 = vmatpush1.bf16.msra.mxu0 %v4269_v19  ;;  %2902 = vmatprep.subr.bf16.mxu1 %v4270_v20  ;;  %v4322_v56 = vld [vmem:[%s6407_s1 + $0xd0] ss:$8 sps:$4 sm:$0xff]   ;;  %v4324_v58 = vld [vmem:[%s6407_s1 + $0xe4] ss:$8 sps:$4 sm:$0xff]   ;;  %v4328_v60 = vld [vmem:[%s6407_s1 + $0xe0] ss:$8 sps:$4 sm:$0xff]  }
  0x15   :  { %3259 = vmatprep.subr.bf16.mxu0 %v4272_v21  ;;  %v4323_v57 = vld [vmem:[%s6407_s1 + $0x7d0] ss:$8 sps:$4 sm:$0xff]   ;;  %v4326_v59 = vld [vmem:[%s6407_s1 + $0x7e4] ss:$8 sps:$4 sm:$0xff]   ;;  %v4329_v61 = vld [vmem:[%s6407_s1 + $0x7e0] ss:$8 sps:$4 sm:$0xff]  }
  0x16   :  { %v4330_v62 = vld [vmem:[%s6407_s1 + $0xf4] ss:$8 sps:$4 sm:$0xff]   ;;  %v4334_v0 = vld [vmem:[%s6407_s1 + $0xf0] ss:$8 sps:$4 sm:$0xff]   ;;  %v4341_v2 = vld [vmem:[%s6407_s1 + $0x104] ss:$8 sps:$4 sm:$0xff]  }
  0x17   :  { %2903 = vmatpush1.bf16.msra.mxu1 %v4274_v22  ;;  %v4332_v63 = vld [vmem:[%s6407_s1 + $0x7f4] ss:$8 sps:$4 sm:$0xff]   ;;  %v4335_v1 = vld [vmem:[%s6407_s1 + $0x7f0] ss:$8 sps:$4 sm:$0xff]   ;;  %v4347_v3 = vld [vmem:[%s6407_s1 + $0x804] ss:$8 sps:$4 sm:$0xff]  }
  0x18   :  { %3260 = vmatpush1.bf16.msra.mxu0 %v4275_v23  ;;  %2904 = vmatprep.subr.bf16.mxu1 %v4276_v24  ;;  %v4339_v5 = vld [vmem:[%s6407_s1 + $0x100] ss:$8 sps:$4 sm:$0xff]   ;;  %v4342_v6 = vld [vmem:[%s6408_s0 + $0x38] ss:$108 sps:$4 sm:$0xff]   ;;  %v4350_v8 = vld [vmem:[%s6407_s1 + $0x114] ss:$8 sps:$4 sm:$0xff]  }
  0x19   :  { %3261 = vmatprep.subr.bf16.mxu0 %v4278_v25  ;;  %v4345_v7 = vld [vmem:[%s6407_s1 + $0x800] ss:$8 sps:$4 sm:$0xff]   ;;  %v4353_v9 = vld [vmem:[%s6407_s1 + $0x814] ss:$8 sps:$4 sm:$0xff]   ;;  %v4348_v10 = vld [vmem:[%s6407_s1 + $0x110] ss:$8 sps:$4 sm:$0xff]  }
  0x1a   :  { %v4351_v11 = vld [vmem:[%s6407_s1 + $0x810] ss:$8 sps:$4 sm:$0xff]   ;;  %v4356_v12 = vld [vmem:[%s6407_s1 + $0x124] ss:$8 sps:$4 sm:$0xff]   ;;  %v4354_v14 = vld [vmem:[%s6407_s1 + $0x120] ss:$8 sps:$4 sm:$0xff]  }
  0x1b   :  { %2905 = vmatpush1.bf16.msra.mxu1 %v4280_v26  ;;  %v4359_v13 = vld [vmem:[%s6407_s1 + $0x824] ss:$8 sps:$4 sm:$0xff]   ;;  %v4357_v15 = vld [vmem:[%s6407_s1 + $0x820] ss:$8 sps:$4 sm:$0xff]   ;;  %v4362_v16 = vld [vmem:[%s6407_s1 + $0x134] ss:$8 sps:$4 sm:$0xff]  }
  0x1c   :  { %3262 = vmatpush1.bf16.msra.mxu0 %v4281_v27  ;;  %2906 = vmatprep.subr.bf16.mxu1 %v4282_v28  ;;  %v4365_v17 = vld [vmem:[%s6407_s1 + $0x834] ss:$8 sps:$4 sm:$0xff]   ;;  %v4360_v18 = vld [vmem:[%s6407_s1 + $0x130] ss:$8 sps:$4 sm:$0xff]   ;;  %v4368_v20 = vld [vmem:[%s6407_s1 + $0x144] ss:$8 sps:$4 sm:$0xff]  }
  0x1d   :  { %3263 = vmatprep.subr.bf16.mxu0 %v4284_v29  ;;  %v4363_v19 = vld [vmem:[%s6407_s1 + $0x830] ss:$8 sps:$4 sm:$0xff]   ;;  %v4371_v21 = vld [vmem:[%s6407_s1 + $0x844] ss:$8 sps:$4 sm:$0xff]   ;;  %v4366_v22 = vld [vmem:[%s6407_s1 + $0x140] ss:$8 sps:$4 sm:$0xff]  }
  0x1e   :  { %v4369_v23 = vld [vmem:[%s6407_s1 + $0x840] ss:$8 sps:$4 sm:$0xff]   ;;  %v4374_v24 = vld [vmem:[%s6407_s1 + $0x154] ss:$8 sps:$4 sm:$0xff]   ;;  %v4372_v27 = vld [vmem:[%s6407_s1 + $0x150] ss:$8 sps:$4 sm:$0xff]  }
  0x1f   :  { %2907 = vmatpush1.bf16.msra.mxu1 %v4286_v30  ;;  %v4377_v25 = vld [vmem:[%s6407_s1 + $0x854] ss:$8 sps:$4 sm:$0xff]   ;;  %v4375_v30 = vld [vmem:[%s6407_s1 + $0x850] ss:$8 sps:$4 sm:$0xff]  }
  0x20   :  { %3264 = vmatpush1.bf16.msra.mxu0 %v4287_v31  ;;  %2908 = vmatprep.subr.bf16.mxu1 %v4288_v32  ;;  %v43_v26 = vld [vmem:[%s6408_s0 + $0xd8] sm:$0x11]  ;;  %v50_v31 = vld [vmem:[%s6408_s0 + $0x110] sm:$0x11]  ;;  %v4380_v32 = vld [vmem:[%s6407_s1 + $0x164] ss:$8 sps:$4 sm:$0xff]  }
  0x21   :  { %3265 = vmatprep.subr.bf16.mxu0 %v4290_v33  ;;  %v3667_v28 = vcombine.high %v43_v26, %v43_v26  ;;  %v3666_v29 = vcombine.low %v43_v26, %v43_v26  ;;  %v4383_v33 = vld [vmem:[%s6407_s1 + $0x864] ss:$8 sps:$4 sm:$0xff]   ;;  %v4398_v48 = vld [vmem:[%s6407_s1 + $0x194] ss:$8 sps:$4 sm:$0xff]   ;;  %v4399_v51 = vld [vmem:[%s6407_s1 + $0x890] ss:$8 sps:$4 sm:$0xff]  }
  0x22   :  { %v4462_v26 = vld [vmem:[%s6407_s1 + $0x224] ss:$8 sps:$4 sm:$0xff]  }
  0x23   :  { %2909 = vmatpush1.bf16.msra.mxu1 %v4292_v34  ;;  %v3681_v34 = vcombine.high %v50_v31, %v50_v31 }
  0x24   :  { %3266 = vmatpush1.bf16.msra.mxu0 %v4293_v35  ;;  %2910 = vmatprep.subr.bf16.mxu1 %v4294_v36  ;;  %v3680_v35 = vcombine.low %v50_v31, %v50_v31  ;;  %v4378_v36 = vld [vmem:[%s6407_s1 + $0x160] ss:$8 sps:$4 sm:$0xff]  }
  0x25   :  { %3267 = vmatprep.subr.bf16.mxu0 %v4296_v37  ;;  %v4381_v37 = vld [vmem:[%s6407_s1 + $0x860] ss:$8 sps:$4 sm:$0xff]  }
  0x27   :  { %2911 = vmatpush1.bf16.msra.mxu1 %v4298_v38  ;;  %v4386_v38 = vld [vmem:[%s6407_s1 + $0x174] ss:$8 sps:$4 sm:$0xff]  }
  0x28   :  { %3268 = vmatpush1.bf16.msra.mxu0 %v4299_v39  ;;  %2912 = vmatprep.subr.bf16.mxu1 %v4300_v40  ;;  %v4389_v39 = vld [vmem:[%s6407_s1 + $0x874] ss:$8 sps:$4 sm:$0xff]   ;;  %v4444_v40 = vld [vmem:[%s6408_s0 + $0xc] ss:$108 sps:$4 sm:$0xff]  }
  0x29   :  { %3269 = vmatprep.subr.bf16.mxu0 %v4302_v41  ;;  %v4384_v41 = vld [vmem:[%s6407_s1 + $0x170] ss:$8 sps:$4 sm:$0xff]  }
  0x2b   :  { %2913 = vmatpush1.bf16.msra.mxu1 %v4304_v42  ;;  %v4387_v42 = vld [vmem:[%s6407_s1 + $0x870] ss:$8 sps:$4 sm:$0xff]  }
  0x2c   :  { %3270 = vmatpush1.bf16.msra.mxu0 %v4305_v43  ;;  %2914 = vmatprep.subr.bf16.mxu1 %v4306_v44  ;;  %v4450_v43 = vld [vmem:[%s6408_s0 + $0x44] ss:$108 sps:$4 sm:$0xff]  }
  0x2d   :  { %3271 = vmatprep.subr.bf16.mxu0 %v4308_v45  ;;  %v4392_v44 = vld [vmem:[%s6407_s1 + $0x184] ss:$8 sps:$4 sm:$0xff]  }
  0x2e   :  { %v4395_v45 = vld [vmem:[%s6407_s1 + $0x884] ss:$8 sps:$4 sm:$0xff]  }
  0x2f   :  { %2915 = vmatpush1.bf16.msra.mxu1 %v4310_v46  ;;  %v4390_v46 = vld [vmem:[%s6407_s1 + $0x180] ss:$8 sps:$4 sm:$0xff]  }
  0x30   :  { %3272 = vmatpush1.bf16.msra.mxu0 %v4311_v47  ;;  %2916 = vmatprep.subr.bf16.mxu1 %v4312_v49  ;;  %v4393_v47 = vld [vmem:[%s6407_s1 + $0x880] ss:$8 sps:$4 sm:$0xff]   ;;  %v4401_v49 = vld [vmem:[%s6407_s1 + $0x894] ss:$8 sps:$4 sm:$0xff]  }
  0x31   :  { %3273 = vmatprep.subr.bf16.mxu0 %v4314_v50  ;;  %v4396_v50 = vld [vmem:[%s6407_s1 + $0x190] ss:$8 sps:$4 sm:$0xff]  }
  0x33   :  { %2917 = vmatpush1.bf16.msra.mxu1 %v4316_v52  ;;  %v4404_v52 = vld [vmem:[%s6407_s1 + $0x1a4] ss:$8 sps:$4 sm:$0xff]  }
  0x34   :  { %3274 = vmatpush1.bf16.msra.mxu0 %v4317_v53  ;;  %2918 = vmatprep.subr.bf16.mxu1 %v4318_v54  ;;  %v4407_v53 = vld [vmem:[%s6407_s1 + $0x8a4] ss:$8 sps:$4 sm:$0xff]   ;;  %v4402_v54 = vld [vmem:[%s6407_s1 + $0x1a0] ss:$8 sps:$4 sm:$0xff]  }
  0x35   :  { %3275 = vmatprep.subr.bf16.mxu0 %v4320_v55  ;;  %v4405_v55 = vld [vmem:[%s6407_s1 + $0x8a0] ss:$8 sps:$4 sm:$0xff]  }
  0x37   :  { %2919 = vmatpush1.bf16.msra.mxu1 %v4322_v56  ;;  %v4410_v56 = vld [vmem:[%s6407_s1 + $0x1b4] ss:$8 sps:$4 sm:$0xff]  }
  0x38   :  { %3276 = vmatpush1.bf16.msra.mxu0 %v4323_v57  ;;  %2920 = vmatprep.subr.bf16.mxu1 %v4324_v58  ;;  %v4413_v57 = vld [vmem:[%s6407_s1 + $0x8b4] ss:$8 sps:$4 sm:$0xff]   ;;  %v4408_v58 = vld [vmem:[%s6407_s1 + $0x1b0] ss:$8 sps:$4 sm:$0xff]  }
  0x39   :  { %3277 = vmatprep.subr.bf16.mxu0 %v4326_v59  ;;  %v4411_v59 = vld [vmem:[%s6407_s1 + $0x8b0] ss:$8 sps:$4 sm:$0xff]  }
  0x3b   :  { %2921 = vmatpush1.bf16.msra.mxu1 %v4328_v60  ;;  %v4416_v60 = vld [vmem:[%s6407_s1 + $0x1c4] ss:$8 sps:$4 sm:$0xff]  }
  0x3c   :  { %3278 = vmatpush1.bf16.msra.mxu0 %v4329_v61  ;;  %2922 = vmatprep.subr.bf16.mxu1 %v4330_v62  ;;  %v4419_v61 = vld [vmem:[%s6407_s1 + $0x8c4] ss:$8 sps:$4 sm:$0xff]   ;;  %v4414_v62 = vld [vmem:[%s6407_s1 + $0x1c0] ss:$8 sps:$4 sm:$0xff]  }
  0x3d   :  { %3279 = vmatprep.subr.bf16.mxu0 %v4332_v63  ;;  %v4417_v63 = vld [vmem:[%s6407_s1 + $0x8c0] ss:$8 sps:$4 sm:$0xff]  }
  0x3f   :  { %2923 = vmatpush1.bf16.msra.mxu1 %v4334_v0  ;;  %v4422_v0 = vld [vmem:[%s6407_s1 + $0x1d4] ss:$8 sps:$4 sm:$0xff]  }
  0x40   :  { %3280 = vmatpush1.bf16.msra.mxu0 %v4335_v1  ;;  %2943 = vmatprep.subr.bf16.mxu1 %v4341_v2  ;;  %v4425_v1 = vld [vmem:[%s6407_s1 + $0x8d4] ss:$8 sps:$4 sm:$0xff]   ;;  %v4420_v2 = vld [vmem:[%s6407_s1 + $0x1d0] ss:$8 sps:$4 sm:$0xff]  }
  0x41   :  { %3300 = vmatprep.subr.bf16.mxu0 %v4347_v3  ;;  %v4423_v3 = vld [vmem:[%s6407_s1 + $0x8d0] ss:$8 sps:$4 sm:$0xff]  }
  0x42   :  { %2925 = vmatmul.mubr.bf16.vlgmr.msra.gmra.mrb[0].mxu1 %v4336_v4  ;;  %v4429_v4 = vld [vmem:[%s6407_s1 + $0x1e4] ss:$8 sps:$4 sm:$0xff]  }
  0x43   :  { %3282 = vmatmul.mubr.bf16.vlgmr.msra.gmra.mrb[0].mxu0 %v4342_v6  ;;  %2944 = vmatpush1.bf16.msra.mxu1 %v4339_v5  ;;  %v4433_v5 = vld [vmem:[%s6407_s1 + $0x8e4] ss:$8 sps:$4 sm:$0xff]   ;;  %v4427_v6 = vld [vmem:[%s6407_s1 + $0x1e0] ss:$8 sps:$4 sm:$0xff]  }
  0x44   :  { %3301 = vmatpush1.bf16.msra.mxu0 %v4345_v7  ;;  %2945 = vmatprep.subr.bf16.mxu1 %v4350_v8  ;;  %v4431_v7 = vld [vmem:[%s6407_s1 + $0x8e0] ss:$8 sps:$4 sm:$0xff]   ;;  %v4438_v8 = vld [vmem:[%s6407_s1 + $0x1f4] ss:$8 sps:$4 sm:$0xff]  }
  0x45   :  { %3302 = vmatprep.subr.bf16.mxu0 %v4353_v9  ;;  %2934 = vmatprep.mubr.bf16.mxu1 %v3667_v28  ;;  %v4441_v9 = vld [vmem:[%s6407_s1 + $0x8f4] ss:$8 sps:$4 sm:$0xff]   ;;  %v4460_v28 = vld [vmem:[%s6407_s1 + $0x220] ss:$8 sps:$4 sm:$0xff]  }
  0x46   :  { %3291 = vmatprep.mubr.bf16.mxu0 %v3681_v34  ;;  %v4550_v34 = vld [vmem:[%s6408_s0 + $0x14] ss:$108 sps:$4 sm:$0xff]  }
  0x47   :  { %2946 = vmatpush1.bf16.msra.mxu1 %v4348_v10  ;;  %v4436_v10 = vld [vmem:[%s6407_s1 + $0x1f0] ss:$8 sps:$4 sm:$0xff]  }
  0x48   :  { %3303 = vmatpush1.bf16.msra.mxu0 %v4351_v11  ;;  %2947 = vmatprep.subr.bf16.mxu1 %v4356_v12  ;;  %v4439_v11 = vld [vmem:[%s6407_s1 + $0x8f0] ss:$8 sps:$4 sm:$0xff]   ;;  %v4442_v12 = vld [vmem:[%s6408_s0 + $0x8] ss:$108 sps:$4 sm:$0xff]  }
  0x49   :  { %3304 = vmatprep.subr.bf16.mxu0 %v4359_v13  ;;  %v4447_v13 = vld [vmem:[%s6407_s1 + $0x204] ss:$8 sps:$4 sm:$0xff]  }
  0x4a   :  { %2935 = vmatmul.mubr.bf16.gmra.mrb[4].mxu1 %v3666_v29  ;;  %v4463_v29 = vld [vmem:[%s6407_s1 + $0x920] ss:$8 sps:$4 sm:$0xff]  }
  0x4b   :  { %2948 = vmatpush1.bf16.msra.mxu1 %v4354_v14  ;;  %3292 = vmatmul.mubr.bf16.gmra.mrb[4].mxu0 %v3680_v35  ;;  %v4453_v14 = vld [vmem:[%s6407_s1 + $0x904] ss:$8 sps:$4 sm:$0xff]  }
  0x4c   :  { %3305 = vmatpush1.bf16.msra.mxu0 %v4357_v15  ;;  %2949 = vmatprep.subr.bf16.mxu1 %v4362_v16  ;;  %v4445_v15 = vld [vmem:[%s6407_s1 + $0x200] ss:$8 sps:$4 sm:$0xff]   ;;  %v4556_v35 = vld [vmem:[%s6408_s0 + $0x4c] ss:$108 sps:$4 sm:$0xff]  }
  0x4d   :  { %3306 = vmatprep.subr.bf16.mxu0 %v4365_v17  ;;  %2975 = vmatprep.mubr.bf16.mxu1 %v4444_v40  ;;  %v4448_v16 = vld [vmem:[%s6408_s0 + $0x40] ss:$108 sps:$4 sm:$0xff]  }
  0x4e   :  { %3332 = vmatprep.mubr.bf16.mxu0 %v4450_v43  ;;  %v4451_v17 = vld [vmem:[%s6407_s1 + $0x900] ss:$8 sps:$4 sm:$0xff]   ;;  %v4483_v43 = vld [vmem:[%s6407_s1 + $0x954] ss:$8 sps:$4 sm:$0xff]  }
  0x4f   :  { %2950 = vmatpush1.bf16.msra.mxu1 %v4360_v18  ;;  %v4456_v18 = vld [vmem:[%s6407_s1 + $0x214] ss:$8 sps:$4 sm:$0xff]   ;;  %v4472_v40 = vld [vmem:[%s6407_s1 + $0x240] ss:$8 sps:$4 sm:$0xff]  }
  0x50   :  { %3307 = vmatpush1.bf16.msra.mxu0 %v4363_v19  ;;  %2951 = vmatprep.subr.bf16.mxu1 %v4368_v20  ;;  %v44_v19 = vld [vmem:[%s6408_s0 + $0xe0] sm:$0x11]  ;;  %v4459_v20 = vld [vmem:[%s6407_s1 + $0x914] ss:$8 sps:$4 sm:$0xff]  }
  0x51   :  { %3308 = vmatprep.subr.bf16.mxu0 %v4371_v21  ;;  %v3669_v21 = vcombine.high %v44_v19, %v44_v19 }
  0x53   :  { %2952 = vmatpush1.bf16.msra.mxu1 %v4366_v22  ;;  %v51_v22 = vld [vmem:[%s6408_s0 + $0x118] sm:$0x11] }
  0x54   :  { %3309 = vmatpush1.bf16.msra.mxu0 %v4369_v23  ;;  %2953 = vmatprep.subr.bf16.mxu1 %v4374_v24  ;;  %v4454_v23 = vld [vmem:[%s6407_s1 + $0x210] ss:$8 sps:$4 sm:$0xff]   ;;  %v3682_v31 = vcombine.low %v51_v22, %v51_v22 }
  0x55   :  { %3310 = vmatprep.subr.bf16.mxu0 %v4377_v25  ;;  %v4457_v24 = vld [vmem:[%s6407_s1 + $0x910] ss:$8 sps:$4 sm:$0xff]   ;;  %v3683_v25 = vcombine.high %v51_v22, %v51_v22  ;;  %v4553_v22 = vld [vmem:[%s6407_s1 + $0x304] ss:$8 sps:$4 sm:$0xff]  }
  0x57   :  { %2954 = vmatpush1.bf16.msra.mxu1 %v4372_v27  ;;  %v4465_v27 = vld [vmem:[%s6407_s1 + $0x924] ss:$8 sps:$4 sm:$0xff]  }
  0x58   :  { %3311 = vmatpush1.bf16.msra.mxu0 %v4375_v30  ;;  %2955 = vmatprep.subr.bf16.mxu1 %v4380_v32  ;;  %v3668_v30 = vcombine.low %v44_v19, %v44_v19  ;;  %v4468_v32 = vld [vmem:[%s6407_s1 + $0x234] ss:$8 sps:$4 sm:$0xff]  }
  0x59   :  { %3312 = vmatprep.subr.bf16.mxu0 %v4383_v33  ;;  %v4471_v33 = vld [vmem:[%s6407_s1 + $0x934] ss:$8 sps:$4 sm:$0xff]  }
  0x5a   :  { %v4547_v19 = vld [vmem:[%s6407_s1 + $0x9f4] ss:$8 sps:$4 sm:$0xff]  }
  0x5b   :  { %2956 = vmatpush1.bf16.msra.mxu1 %v4378_v36  ;;  %v4466_v36 = vld [vmem:[%s6407_s1 + $0x230] ss:$8 sps:$4 sm:$0xff]  }
  0x5c   :  { %3313 = vmatpush1.bf16.msra.mxu0 %v4381_v37  ;;  %2957 = vmatprep.subr.bf16.mxu1 %v4386_v38  ;;  %v4469_v37 = vld [vmem:[%s6407_s1 + $0x930] ss:$8 sps:$4 sm:$0xff]   ;;  %v4474_v38 = vld [vmem:[%s6407_s1 + $0x244] ss:$8 sps:$4 sm:$0xff]  }
  0x5d   :  { %3314 = vmatprep.subr.bf16.mxu0 %v4389_v39  ;;  %v4477_v39 = vld [vmem:[%s6407_s1 + $0x944] ss:$8 sps:$4 sm:$0xff]  }
  0x5f   :  { %2958 = vmatpush1.bf16.msra.mxu1 %v4384_v41  ;;  %v4475_v41 = vld [vmem:[%s6407_s1 + $0x940] ss:$8 sps:$4 sm:$0xff]  }
  0x60   :  { %3315 = vmatpush1.bf16.msra.mxu0 %v4387_v42  ;;  %2959 = vmatprep.subr.bf16.mxu1 %v4392_v44  ;;  %v4480_v42 = vld [vmem:[%s6407_s1 + $0x254] ss:$8 sps:$4 sm:$0xff]   ;;  %v4478_v44 = vld [vmem:[%s6407_s1 + $0x250] ss:$8 sps:$4 sm:$0xff]  }
  0x61   :  { %3316 = vmatprep.subr.bf16.mxu0 %v4395_v45  ;;  %v4481_v45 = vld [vmem:[%s6407_s1 + $0x950] ss:$8 sps:$4 sm:$0xff]  }
  0x63   :  { %2960 = vmatpush1.bf16.msra.mxu1 %v4390_v46  ;;  %v4486_v46 = vld [vmem:[%s6407_s1 + $0x264] ss:$8 sps:$4 sm:$0xff]  }
  0x64   :  { %3317 = vmatpush1.bf16.msra.mxu0 %v4393_v47  ;;  %2961 = vmatprep.subr.bf16.mxu1 %v4398_v48  ;;  %v4489_v47 = vld [vmem:[%s6407_s1 + $0x964] ss:$8 sps:$4 sm:$0xff]   ;;  %v4484_v48 = vld [vmem:[%s6407_s1 + $0x260] ss:$8 sps:$4 sm:$0xff]  }
  0x65   :  { %3318 = vmatprep.subr.bf16.mxu0 %v4401_v49  ;;  %v4487_v49 = vld [vmem:[%s6407_s1 + $0x960] ss:$8 sps:$4 sm:$0xff]  }
  0x67   :  { %2962 = vmatpush1.bf16.msra.mxu1 %v4396_v50  ;;  %v4492_v50 = vld [vmem:[%s6407_s1 + $0x274] ss:$8 sps:$4 sm:$0xff]  }
  0x68   :  { %3319 = vmatpush1.bf16.msra.mxu0 %v4399_v51  ;;  %2963 = vmatprep.subr.bf16.mxu1 %v4404_v52  ;;  %v4495_v51 = vld [vmem:[%s6407_s1 + $0x974] ss:$8 sps:$4 sm:$0xff]   ;;  %v4490_v52 = vld [vmem:[%s6407_s1 + $0x270] ss:$8 sps:$4 sm:$0xff]  }
  0x69   :  { %3320 = vmatprep.subr.bf16.mxu0 %v4407_v53  ;;  %v4493_v53 = vld [vmem:[%s6407_s1 + $0x970] ss:$8 sps:$4 sm:$0xff]  }
  0x6b   :  { %2964 = vmatpush1.bf16.msra.mxu1 %v4402_v54  ;;  %v4498_v54 = vld [vmem:[%s6407_s1 + $0x284] ss:$8 sps:$4 sm:$0xff]  }
  0x6c   :  { %3321 = vmatpush1.bf16.msra.mxu0 %v4405_v55  ;;  %2965 = vmatprep.subr.bf16.mxu1 %v4410_v56  ;;  %v4501_v55 = vld [vmem:[%s6407_s1 + $0x984] ss:$8 sps:$4 sm:$0xff]   ;;  %v4496_v56 = vld [vmem:[%s6407_s1 + $0x280] ss:$8 sps:$4 sm:$0xff]  }
  0x6d   :  { %3322 = vmatprep.subr.bf16.mxu0 %v4413_v57  ;;  %v4499_v57 = vld [vmem:[%s6407_s1 + $0x980] ss:$8 sps:$4 sm:$0xff]  }
  0x6f   :  { %2966 = vmatpush1.bf16.msra.mxu1 %v4408_v58  ;;  %v4504_v58 = vld [vmem:[%s6407_s1 + $0x294] ss:$8 sps:$4 sm:$0xff]  }
  0x70   :  { %3323 = vmatpush1.bf16.msra.mxu0 %v4411_v59  ;;  %2967 = vmatprep.subr.bf16.mxu1 %v4416_v60  ;;  %v4507_v59 = vld [vmem:[%s6407_s1 + $0x994] ss:$8 sps:$4 sm:$0xff]   ;;  %v4502_v60 = vld [vmem:[%s6407_s1 + $0x290] ss:$8 sps:$4 sm:$0xff]  }
  0x71   :  { %3324 = vmatprep.subr.bf16.mxu0 %v4419_v61  ;;  %v4505_v61 = vld [vmem:[%s6407_s1 + $0x990] ss:$8 sps:$4 sm:$0xff]  }
  0x73   :  { %2968 = vmatpush1.bf16.msra.mxu1 %v4414_v62  ;;  %v4510_v62 = vld [vmem:[%s6407_s1 + $0x2a4] ss:$8 sps:$4 sm:$0xff]  }
  0x74   :  { %3325 = vmatpush1.bf16.msra.mxu0 %v4417_v63  ;;  %2969 = vmatprep.subr.bf16.mxu1 %v4422_v0  ;;  %v4513_v63 = vld [vmem:[%s6407_s1 + $0x9a4] ss:$8 sps:$4 sm:$0xff]   ;;  %v4508_v0 = vld [vmem:[%s6407_s1 + $0x2a0] ss:$8 sps:$4 sm:$0xff]  }
  0x75   :  { %3326 = vmatprep.subr.bf16.mxu0 %v4425_v1  ;;  %v4511_v1 = vld [vmem:[%s6407_s1 + $0x9a0] ss:$8 sps:$4 sm:$0xff]  }
  0x77   :  { %2970 = vmatpush1.bf16.msra.mxu1 %v4420_v2  ;;  %v4516_v2 = vld [vmem:[%s6407_s1 + $0x2b4] ss:$8 sps:$4 sm:$0xff]  }
  0x78   :  { %3327 = vmatpush1.bf16.msra.mxu0 %v4423_v3  ;;  %2971 = vmatprep.subr.bf16.mxu1 %v4429_v4  ;;  %v4519_v3 = vld [vmem:[%s6407_s1 + $0x9b4] ss:$8 sps:$4 sm:$0xff]   ;;  %v4514_v4 = vld [vmem:[%s6407_s1 + $0x2b0] ss:$8 sps:$4 sm:$0xff]  }
  0x79   :  { %3328 = vmatprep.subr.bf16.mxu0 %v4433_v5  ;;  %v4517_v5 = vld [vmem:[%s6407_s1 + $0x9b0] ss:$8 sps:$4 sm:$0xff]  }
  0x7b   :  { %2972 = vmatpush1.bf16.msra.mxu1 %v4427_v6  ;;  %v4522_v6 = vld [vmem:[%s6407_s1 + $0x2c4] ss:$8 sps:$4 sm:$0xff]  }
  0x7c   :  { %3329 = vmatpush1.bf16.msra.mxu0 %v4431_v7  ;;  %2973 = vmatprep.subr.bf16.mxu1 %v4438_v8  ;;  %v4525_v7 = vld [vmem:[%s6407_s1 + $0x9c4] ss:$8 sps:$4 sm:$0xff]   ;;  %v4520_v8 = vld [vmem:[%s6407_s1 + $0x2c0] ss:$8 sps:$4 sm:$0xff]  }
  0x7d   :  { %3330 = vmatprep.subr.bf16.mxu0 %v4441_v9  ;;  %v4523_v9 = vld [vmem:[%s6407_s1 + $0x9c0] ss:$8 sps:$4 sm:$0xff]  }
  0x7f   :  { %2974 = vmatpush1.bf16.msra.mxu1 %v4436_v10  ;;  %v4528_v10 = vld [vmem:[%s6407_s1 + $0x2d4] ss:$8 sps:$4 sm:$0xff]  }
  0x80   :  { %3331 = vmatpush1.bf16.msra.mxu0 %v4439_v11  ;;  %2994 = vmatprep.subr.bf16.mxu1 %v4447_v13  ;;  %v4531_v11 = vld [vmem:[%s6407_s1 + $0x9d4] ss:$8 sps:$4 sm:$0xff]   ;;  %v4529_v13 = vld [vmem:[%s6407_s1 + $0x9d0] ss:$8 sps:$4 sm:$0xff]  }
  0x81   :  { %3351 = vmatprep.subr.bf16.mxu0 %v4453_v14  ;;  %v4535_v14 = vld [vmem:[%s6407_s1 + $0x2e4] ss:$8 sps:$4 sm:$0xff]  }
  0x82   :  { %2976 = vmatmul.mubr.bf16.vlgmr.msra.gmra.mrb[0].mxu1 %v4442_v12  ;;  %v4526_v12 = vld [vmem:[%s6407_s1 + $0x2d0] ss:$8 sps:$4 sm:$0xff]  }
  0x83   :  { %3333 = vmatmul.mubr.bf16.vlgmr.msra.gmra.mrb[0].mxu0 %v4448_v16  ;;  %2995 = vmatpush1.bf16.msra.mxu1 %v4445_v15  ;;  %v4539_v15 = vld [vmem:[%s6407_s1 + $0x9e4] ss:$8 sps:$4 sm:$0xff]   ;;  %v4533_v16 = vld [vmem:[%s6407_s1 + $0x2e0] ss:$8 sps:$4 sm:$0xff]  }
  0x84   :  { %3352 = vmatpush1.bf16.msra.mxu0 %v4451_v17  ;;  %2996 = vmatprep.subr.bf16.mxu1 %v4456_v18  ;;  %v4537_v17 = vld [vmem:[%s6407_s1 + $0x9e0] ss:$8 sps:$4 sm:$0xff]   ;;  %v4544_v18 = vld [vmem:[%s6407_s1 + $0x2f4] ss:$8 sps:$4 sm:$0xff]  }
  0x85   :  { %3353 = vmatprep.subr.bf16.mxu0 %v4459_v20  ;;  %2985 = vmatprep.mubr.bf16.mxu1 %v3669_v21  ;;  %v4542_v20 = vld [vmem:[%s6407_s1 + $0x2f0] ss:$8 sps:$4 sm:$0xff]  }
  0x86   :  { %3342 = vmatprep.mubr.bf16.mxu0 %v3683_v25  ;;  %v4545_v21 = vld [vmem:[%s6407_s1 + $0x9f0] ss:$8 sps:$4 sm:$0xff]   ;;  %v4559_v25 = vld [vmem:[%s6407_s1 + $0xa04] ss:$8 sps:$4 sm:$0xff]  }
  0x87   :  { %2997 = vmatpush1.bf16.msra.mxu1 %v4454_v23  ;;  %v4548_v23 = vld [vmem:[%s6408_s0 + $0x10] ss:$108 sps:$4 sm:$0xff]  }
  0x88   :  { %3354 = vmatpush1.bf16.msra.mxu0 %v4457_v24  ;;  %2998 = vmatprep.subr.bf16.mxu1 %v4462_v26  ;;  %v4554_v24 = vld [vmem:[%s6408_s0 + $0x48] ss:$108 sps:$4 sm:$0xff]  }
  0x89   :  { %3355 = vmatprep.subr.bf16.mxu0 %v4465_v27  ;;  %v45_v26 = vld [vmem:[%s6408_s0 + $0xe8] sm:$0x11]  ;;  %v52_v27 = vld [vmem:[%s6408_s0 + $0x120] sm:$0x11] }
  0x8a   :  { %2986 = vmatmul.mubr.bf16.gmra.mrb[4].mxu1 %v3668_v30  ;;  %v4562_v30 = vld [vmem:[%s6407_s1 + $0x314] ss:$8 sps:$4 sm:$0xff]  }
  0x8b   :  { %3343 = vmatmul.mubr.bf16.gmra.mrb[4].mxu0 %v3682_v31  ;;  %2999 = vmatpush1.bf16.msra.mxu1 %v4460_v28  ;;  %v4551_v28 = vld [vmem:[%s6407_s1 + $0x300] ss:$8 sps:$4 sm:$0xff]   ;;  %v4565_v31 = vld [vmem:[%s6407_s1 + $0xa14] ss:$8 sps:$4 sm:$0xff]  }
  0x8c   :  { %3356 = vmatpush1.bf16.msra.mxu0 %v4463_v29  ;;  %3000 = vmatprep.subr.bf16.mxu1 %v4468_v32  ;;  %v4557_v29 = vld [vmem:[%s6407_s1 + $0xa00] ss:$8 sps:$4 sm:$0xff]   ;;  %v3671_v32 = vcombine.high %v45_v26, %v45_v26 }
  0x8d   :  { %3357 = vmatprep.subr.bf16.mxu0 %v4471_v33  ;;  %3026 = vmatprep.mubr.bf16.mxu1 %v4550_v34  ;;  %v3685_v33 = vcombine.high %v52_v27, %v52_v27  ;;  %v4560_v34 = vld [vmem:[%s6407_s1 + $0x310] ss:$8 sps:$4 sm:$0xff]  }
  0x8e   :  { %3383 = vmatprep.mubr.bf16.mxu0 %v4556_v35  ;;  %v4563_v35 = vld [vmem:[%s6407_s1 + $0xa10] ss:$8 sps:$4 sm:$0xff]  }
  0x8f   :  { %3001 = vmatpush1.bf16.msra.mxu1 %v4466_v36  ;;  %v4568_v36 = vld [vmem:[%s6407_s1 + $0x324] ss:$8 sps:$4 sm:$0xff]  }
  0x90   :  { %3358 = vmatpush1.bf16.msra.mxu0 %v4469_v37  ;;  %3002 = vmatprep.subr.bf16.mxu1 %v4474_v38  ;;  %v4571_v37 = vld [vmem:[%s6407_s1 + $0xa24] ss:$8 sps:$4 sm:$0xff]   ;;  %v4566_v38 = vld [vmem:[%s6407_s1 + $0x320] ss:$8 sps:$4 sm:$0xff]  }
  0x91   :  { %3359 = vmatprep.subr.bf16.mxu0 %v4477_v39  ;;  %v3670_v39 = vcombine.low %v45_v26, %v45_v26  ;;  %v4639_v26 = vld [vmem:[%s6407_s1 + $0x3e0] ss:$8 sps:$4 sm:$0xff]  }
  0x93   :  { %3003 = vmatpush1.bf16.msra.mxu1 %v4472_v40  ;;  %v3684_v40 = vcombine.low %v52_v27, %v52_v27  ;;  %v4643_v27 = vld [vmem:[%s6407_s1 + $0xae0] ss:$8 sps:$4 sm:$0xff]  }
  0x94   :  { %3360 = vmatpush1.bf16.msra.mxu0 %v4475_v41  ;;  %3004 = vmatprep.subr.bf16.mxu1 %v4480_v42  ;;  %v4569_v41 = vld [vmem:[%s6407_s1 + $0xa20] ss:$8 sps:$4 sm:$0xff]   ;;  %v4574_v42 = vld [vmem:[%s6407_s1 + $0x334] ss:$8 sps:$4 sm:$0xff]  }
  0x95   :  { %3361 = vmatprep.subr.bf16.mxu0 %v4483_v43  ;;  %v4577_v43 = vld [vmem:[%s6407_s1 + $0xa34] ss:$8 sps:$4 sm:$0xff]  }
  0x97   :  { %3005 = vmatpush1.bf16.msra.mxu1 %v4478_v44  ;;  %v4656_v44 = vld [vmem:[%s6408_s0 + $0x1c] ss:$108 sps:$4 sm:$0xff]  }
  0x98   :  { %3362 = vmatpush1.bf16.msra.mxu0 %v4481_v45  ;;  %3006 = vmatprep.subr.bf16.mxu1 %v4486_v46  ;;  %v4662_v45 = vld [vmem:[%s6408_s0 + $0x54] ss:$108 sps:$4 sm:$0xff]   ;;  %v4572_v46 = vld [vmem:[%s6407_s1 + $0x330] ss:$8 sps:$4 sm:$0xff]  }
  0x99   :  { %3363 = vmatprep.subr.bf16.mxu0 %v4489_v47  ;;  %v4575_v47 = vld [vmem:[%s6407_s1 + $0xa30] ss:$8 sps:$4 sm:$0xff]  }
  0x9b   :  { %3007 = vmatpush1.bf16.msra.mxu1 %v4484_v48  ;;  %v4580_v48 = vld [vmem:[%s6407_s1 + $0x344] ss:$8 sps:$4 sm:$0xff]  }
  0x9c   :  { %3364 = vmatpush1.bf16.msra.mxu0 %v4487_v49  ;;  %3008 = vmatprep.subr.bf16.mxu1 %v4492_v50  ;;  %v4583_v49 = vld [vmem:[%s6407_s1 + $0xa44] ss:$8 sps:$4 sm:$0xff]   ;;  %v4578_v50 = vld [vmem:[%s6407_s1 + $0x340] ss:$8 sps:$4 sm:$0xff]  }
  0x9d   :  { %3365 = vmatprep.subr.bf16.mxu0 %v4495_v51  ;;  %v4581_v51 = vld [vmem:[%s6407_s1 + $0xa40] ss:$8 sps:$4 sm:$0xff]  }
  0x9f   :  { %3009 = vmatpush1.bf16.msra.mxu1 %v4490_v52  ;;  %v4586_v52 = vld [vmem:[%s6407_s1 + $0x354] ss:$8 sps:$4 sm:$0xff]  }
  0xa0   :  { %3366 = vmatpush1.bf16.msra.mxu0 %v4493_v53  ;;  %3010 = vmatprep.subr.bf16.mxu1 %v4498_v54  ;;  %v4589_v53 = vld [vmem:[%s6407_s1 + $0xa54] ss:$8 sps:$4 sm:$0xff]   ;;  %v4584_v54 = vld [vmem:[%s6407_s1 + $0x350] ss:$8 sps:$4 sm:$0xff]  }
  0xa1   :  { %3367 = vmatprep.subr.bf16.mxu0 %v4501_v55  ;;  %v4587_v55 = vld [vmem:[%s6407_s1 + $0xa50] ss:$8 sps:$4 sm:$0xff]  }
  0xa3   :  { %3011 = vmatpush1.bf16.msra.mxu1 %v4496_v56  ;;  %v4592_v56 = vld [vmem:[%s6407_s1 + $0x364] ss:$8 sps:$4 sm:$0xff]  }
  0xa4   :  { %3368 = vmatpush1.bf16.msra.mxu0 %v4499_v57  ;;  %3012 = vmatprep.subr.bf16.mxu1 %v4504_v58  ;;  %v4595_v57 = vld [vmem:[%s6407_s1 + $0xa64] ss:$8 sps:$4 sm:$0xff]   ;;  %v4590_v58 = vld [vmem:[%s6407_s1 + $0x360] ss:$8 sps:$4 sm:$0xff]  }
  0xa5   :  { %3369 = vmatprep.subr.bf16.mxu0 %v4507_v59  ;;  %v4593_v59 = vld [vmem:[%s6407_s1 + $0xa60] ss:$8 sps:$4 sm:$0xff]  }
  0xa7   :  { %3013 = vmatpush1.bf16.msra.mxu1 %v4502_v60  ;;  %v4598_v60 = vld [vmem:[%s6407_s1 + $0x374] ss:$8 sps:$4 sm:$0xff]  }
  0xa8   :  { %3370 = vmatpush1.bf16.msra.mxu0 %v4505_v61  ;;  %3014 = vmatprep.subr.bf16.mxu1 %v4510_v62  ;;  %v4601_v61 = vld [vmem:[%s6407_s1 + $0xa74] ss:$8 sps:$4 sm:$0xff]   ;;  %v4596_v62 = vld [vmem:[%s6407_s1 + $0x370] ss:$8 sps:$4 sm:$0xff]  }
  0xa9   :  { %3371 = vmatprep.subr.bf16.mxu0 %v4513_v63  ;;  %v4599_v63 = vld [vmem:[%s6407_s1 + $0xa70] ss:$8 sps:$4 sm:$0xff]  }
  0xab   :  { %3015 = vmatpush1.bf16.msra.mxu1 %v4508_v0  ;;  %v4604_v0 = vld [vmem:[%s6407_s1 + $0x384] ss:$8 sps:$4 sm:$0xff]  }
  0xac   :  { %3372 = vmatpush1.bf16.msra.mxu0 %v4511_v1  ;;  %3016 = vmatprep.subr.bf16.mxu1 %v4516_v2  ;;  %v4607_v1 = vld [vmem:[%s6407_s1 + $0xa84] ss:$8 sps:$4 sm:$0xff]   ;;  %v4602_v2 = vld [vmem:[%s6407_s1 + $0x380] ss:$8 sps:$4 sm:$0xff]  }
  0xad   :  { %3373 = vmatprep.subr.bf16.mxu0 %v4519_v3  ;;  %v4605_v3 = vld [vmem:[%s6407_s1 + $0xa80] ss:$8 sps:$4 sm:$0xff]  }
  0xaf   :  { %3017 = vmatpush1.bf16.msra.mxu1 %v4514_v4  ;;  %v4610_v4 = vld [vmem:[%s6407_s1 + $0x394] ss:$8 sps:$4 sm:$0xff]  }
  0xb0   :  { %3374 = vmatpush1.bf16.msra.mxu0 %v4517_v5  ;;  %3018 = vmatprep.subr.bf16.mxu1 %v4522_v6  ;;  %v4613_v5 = vld [vmem:[%s6407_s1 + $0xa94] ss:$8 sps:$4 sm:$0xff]   ;;  %v4608_v6 = vld [vmem:[%s6407_s1 + $0x390] ss:$8 sps:$4 sm:$0xff]  }
  0xb1   :  { %3375 = vmatprep.subr.bf16.mxu0 %v4525_v7  ;;  %v4611_v7 = vld [vmem:[%s6407_s1 + $0xa90] ss:$8 sps:$4 sm:$0xff]  }
  0xb3   :  { %3019 = vmatpush1.bf16.msra.mxu1 %v4520_v8  ;;  %v4616_v8 = vld [vmem:[%s6407_s1 + $0x3a4] ss:$8 sps:$4 sm:$0xff]  }
  0xb4   :  { %3376 = vmatpush1.bf16.msra.mxu0 %v4523_v9  ;;  %3020 = vmatprep.subr.bf16.mxu1 %v4528_v10  ;;  %v4619_v9 = vld [vmem:[%s6407_s1 + $0xaa4] ss:$8 sps:$4 sm:$0xff]   ;;  %v4614_v10 = vld [vmem:[%s6407_s1 + $0x3a0] ss:$8 sps:$4 sm:$0xff]  }
  0xb5   :  { %3377 = vmatprep.subr.bf16.mxu0 %v4531_v11  ;;  %v4617_v11 = vld [vmem:[%s6407_s1 + $0xaa0] ss:$8 sps:$4 sm:$0xff]  }
  0xb7   :  { %3021 = vmatpush1.bf16.msra.mxu1 %v4526_v12  ;;  %v4622_v12 = vld [vmem:[%s6407_s1 + $0x3b4] ss:$8 sps:$4 sm:$0xff]  }
  0xb8   :  { %3378 = vmatpush1.bf16.msra.mxu0 %v4529_v13  ;;  %3022 = vmatprep.subr.bf16.mxu1 %v4535_v14  ;;  %v4625_v13 = vld [vmem:[%s6407_s1 + $0xab4] ss:$8 sps:$4 sm:$0xff]   ;;  %v4620_v14 = vld [vmem:[%s6407_s1 + $0x3b0] ss:$8 sps:$4 sm:$0xff]  }
  0xb9   :  { %3379 = vmatprep.subr.bf16.mxu0 %v4539_v15  ;;  %v4623_v15 = vld [vmem:[%s6407_s1 + $0xab0] ss:$8 sps:$4 sm:$0xff]  }
  0xbb   :  { %3023 = vmatpush1.bf16.msra.mxu1 %v4533_v16  ;;  %v4628_v16 = vld [vmem:[%s6407_s1 + $0x3c4] ss:$8 sps:$4 sm:$0xff]  }
  0xbc   :  { %3380 = vmatpush1.bf16.msra.mxu0 %v4537_v17  ;;  %3024 = vmatprep.subr.bf16.mxu1 %v4544_v18  ;;  %v4631_v17 = vld [vmem:[%s6407_s1 + $0xac4] ss:$8 sps:$4 sm:$0xff]   ;;  %v4626_v18 = vld [vmem:[%s6407_s1 + $0x3c0] ss:$8 sps:$4 sm:$0xff]  }
  0xbd   :  { %3381 = vmatprep.subr.bf16.mxu0 %v4547_v19  ;;  %v4629_v19 = vld [vmem:[%s6407_s1 + $0xac0] ss:$8 sps:$4 sm:$0xff]  }
  0xbf   :  { %3025 = vmatpush1.bf16.msra.mxu1 %v4542_v20  ;;  %v4634_v20 = vld [vmem:[%s6407_s1 + $0x3d4] ss:$8 sps:$4 sm:$0xff]  }
  0xc0   :  { %3382 = vmatpush1.bf16.msra.mxu0 %v4545_v21  ;;  %3045 = vmatprep.subr.bf16.mxu1 %v4553_v22  ;;  %v4637_v21 = vld [vmem:[%s6407_s1 + $0xad4] ss:$8 sps:$4 sm:$0xff]   ;;  %v4632_v22 = vld [vmem:[%s6407_s1 + $0x3d0] ss:$8 sps:$4 sm:$0xff]  }
  0xc1   :  { %3402 = vmatprep.subr.bf16.mxu0 %v4559_v25  ;;  %v4645_v25 = vld [vmem:[%s6407_s1 + $0xae4] ss:$8 sps:$4 sm:$0xff]  }
  0xc2   :  { %3027 = vmatmul.mubr.bf16.vlgmr.msra.gmra.mrb[0].mxu1 %v4548_v23  ;;  %v4635_v23 = vld [vmem:[%s6407_s1 + $0xad0] ss:$8 sps:$4 sm:$0xff]  }
  0xc3   :  { %3384 = vmatmul.mubr.bf16.vlgmr.msra.gmra.mrb[0].mxu0 %v4554_v24  ;;  %3046 = vmatpush1.bf16.msra.mxu1 %v4551_v28  ;;  %v4641_v24 = vld [vmem:[%s6407_s1 + $0x3e4] ss:$8 sps:$4 sm:$0xff]   ;;  %v4650_v28 = vld [vmem:[%s6407_s1 + $0x3f4] ss:$8 sps:$4 sm:$0xff]  }
  0xc4   :  { %3403 = vmatpush1.bf16.msra.mxu0 %v4557_v29  ;;  %3047 = vmatprep.subr.bf16.mxu1 %v4562_v30  ;;  %v4653_v29 = vld [vmem:[%s6407_s1 + $0xaf4] ss:$8 sps:$4 sm:$0xff]   ;;  %v4648_v30 = vld [vmem:[%s6407_s1 + $0x3f0] ss:$8 sps:$4 sm:$0xff]  }
  0xc5   :  { %3404 = vmatprep.subr.bf16.mxu0 %v4565_v31  ;;  %3036 = vmatprep.mubr.bf16.mxu1 %v3671_v32  ;;  %v4651_v31 = vld [vmem:[%s6407_s1 + $0xaf0] ss:$8 sps:$4 sm:$0xff]   ;;  %v4659_v32 = vld [vmem:[%s6407_s1 + $0x404] ss:$8 sps:$4 sm:$0xff]  }
  0xc6   :  { %3393 = vmatprep.mubr.bf16.mxu0 %v3685_v33  ;;  %v4654_v33 = vld [vmem:[%s6408_s0 + $0x18] ss:$108 sps:$4 sm:$0xff]  }
  0xc7   :  { %3048 = vmatpush1.bf16.msra.mxu1 %v4560_v34  ;;  %v4665_v34 = vld [vmem:[%s6407_s1 + $0xb04] ss:$8 sps:$4 sm:$0xff]  }
  0xc8   :  { %3405 = vmatpush1.bf16.msra.mxu0 %v4563_v35  ;;  %3049 = vmatprep.subr.bf16.mxu1 %v4568_v36  ;;  %v4657_v35 = vld [vmem:[%s6407_s1 + $0x400] ss:$8 sps:$4 sm:$0xff]   ;;  %v4660_v36 = vld [vmem:[%s6408_s0 + $0x50] ss:$108 sps:$4 sm:$0xff]  }
  0xc9   :  { %3406 = vmatprep.subr.bf16.mxu0 %v4571_v37  ;;  %v4663_v37 = vld [vmem:[%s6407_s1 + $0xb00] ss:$8 sps:$4 sm:$0xff]  }
  0xca   :  { %3037 = vmatmul.mubr.bf16.gmra.mrb[4].mxu1 %v3670_v39  ;;  %v53_v39 = vld [vmem:[%s6408_s0 + $0x128] sm:$0x11] }
  0xcb   :  { %3394 = vmatmul.mubr.bf16.gmra.mrb[4].mxu0 %v3684_v40  ;;  %3050 = vmatpush1.bf16.msra.mxu1 %v4566_v38  ;;  %v46_v38 = vld [vmem:[%s6408_s0 + $0xf0] sm:$0x11] }
  0xcc   :  { %3407 = vmatpush1.bf16.msra.mxu0 %v4569_v41  ;;  %3051 = vmatprep.subr.bf16.mxu1 %v4574_v42  ;;  %v4668_v40 = vld [vmem:[%s6407_s1 + $0x414] ss:$8 sps:$4 sm:$0xff]   ;;  %v3673_v42 = vcombine.high %v46_v38, %v46_v38 }
  0xcd   :  { %3408 = vmatprep.subr.bf16.mxu0 %v4577_v43  ;;  %3077 = vmatprep.mubr.bf16.mxu1 %v4656_v44  ;;  %v4671_v41 = vld [vmem:[%s6407_s1 + $0xb14] ss:$8 sps:$4 sm:$0xff]   ;;  %v3687_v43 = vcombine.high %v53_v39, %v53_v39  ;;  %v4666_v44 = vld [vmem:[%s6407_s1 + $0x410] ss:$8 sps:$4 sm:$0xff]  }
  0xce   :  { %3434 = vmatprep.mubr.bf16.mxu0 %v4662_v45  ;;  %v4669_v45 = vld [vmem:[%s6407_s1 + $0xb10] ss:$8 sps:$4 sm:$0xff]  }
  0xcf   :  { %3052 = vmatpush1.bf16.msra.mxu1 %v4572_v46  ;;  %v4674_v46 = vld [vmem:[%s6407_s1 + $0x424] ss:$8 sps:$4 sm:$0xff]  }
  0xd0   :  { %3409 = vmatpush1.bf16.msra.mxu0 %v4575_v47  ;;  %3053 = vmatprep.subr.bf16.mxu1 %v4580_v48  ;;  %v4677_v47 = vld [vmem:[%s6407_s1 + $0xb24] ss:$8 sps:$4 sm:$0xff]   ;;  %v4672_v48 = vld [vmem:[%s6407_s1 + $0x420] ss:$8 sps:$4 sm:$0xff]  }
  0xd1   :  { %3410 = vmatprep.subr.bf16.mxu0 %v4583_v49  ;;  %v4675_v49 = vld [vmem:[%s6407_s1 + $0xb20] ss:$8 sps:$4 sm:$0xff]  }
  0xd3   :  { %3054 = vmatpush1.bf16.msra.mxu1 %v4578_v50  ;;  %v3672_v50 = vcombine.low %v46_v38, %v46_v38  ;;  %v4756_v38 = vld [vmem:[%s6407_s1 + $0x4f4] ss:$8 sps:$4 sm:$0xff]  }
  0xd4   :  { %3411 = vmatpush1.bf16.msra.mxu0 %v4581_v51  ;;  %3055 = vmatprep.subr.bf16.mxu1 %v4586_v52  ;;  %v3686_v51 = vcombine.low %v53_v39, %v53_v39  ;;  %v4680_v52 = vld [vmem:[%s6407_s1 + $0x434] ss:$8 sps:$4 sm:$0xff]  }
  0xd5   :  { %3412 = vmatprep.subr.bf16.mxu0 %v4589_v53  ;;  %v4683_v53 = vld [vmem:[%s6407_s1 + $0xb34] ss:$8 sps:$4 sm:$0xff]  }
  0xd6   :  { %v4759_v39 = vld [vmem:[%s6407_s1 + $0xbf4] ss:$8 sps:$4 sm:$0xff]  }
  0xd7   :  { %3056 = vmatpush1.bf16.msra.mxu1 %v4584_v54  ;;  %v4762_v54 = vld [vmem:[%s6408_s0 + $0x24] ss:$108 sps:$4 sm:$0xff]  }
  0xd8   :  { %3413 = vmatpush1.bf16.msra.mxu0 %v4587_v55  ;;  %3057 = vmatprep.subr.bf16.mxu1 %v4592_v56  ;;  %v4768_v55 = vld [vmem:[%s6408_s0 + $0x5c] ss:$108 sps:$4 sm:$0xff]   ;;  %v4678_v56 = vld [vmem:[%s6407_s1 + $0x430] ss:$8 sps:$4 sm:$0xff]  }
  0xd9   :  { %3414 = vmatprep.subr.bf16.mxu0 %v4595_v57  ;;  %v4681_v57 = vld [vmem:[%s6407_s1 + $0xb30] ss:$8 sps:$4 sm:$0xff]  }
  0xdb   :  { %3058 = vmatpush1.bf16.msra.mxu1 %v4590_v58  ;;  %v4686_v58 = vld [vmem:[%s6407_s1 + $0x444] ss:$8 sps:$4 sm:$0xff]  }
  0xdc   :  { %3415 = vmatpush1.bf16.msra.mxu0 %v4593_v59  ;;  %3059 = vmatprep.subr.bf16.mxu1 %v4598_v60  ;;  %v4689_v59 = vld [vmem:[%s6407_s1 + $0xb44] ss:$8 sps:$4 sm:$0xff]   ;;  %v4684_v60 = vld [vmem:[%s6407_s1 + $0x440] ss:$8 sps:$4 sm:$0xff]  }
  0xdd   :  { %3416 = vmatprep.subr.bf16.mxu0 %v4601_v61  ;;  %v4687_v61 = vld [vmem:[%s6407_s1 + $0xb40] ss:$8 sps:$4 sm:$0xff]  }
  0xdf   :  { %3060 = vmatpush1.bf16.msra.mxu1 %v4596_v62  ;;  %v4692_v62 = vld [vmem:[%s6407_s1 + $0x454] ss:$8 sps:$4 sm:$0xff]  }
  0xe0   :  { %3417 = vmatpush1.bf16.msra.mxu0 %v4599_v63  ;;  %3061 = vmatprep.subr.bf16.mxu1 %v4604_v0  ;;  %v4695_v63 = vld [vmem:[%s6407_s1 + $0xb54] ss:$8 sps:$4 sm:$0xff]   ;;  %v4690_v0 = vld [vmem:[%s6407_s1 + $0x450] ss:$8 sps:$4 sm:$0xff]  }
  0xe1   :  { %3418 = vmatprep.subr.bf16.mxu0 %v4607_v1  ;;  %v4693_v1 = vld [vmem:[%s6407_s1 + $0xb50] ss:$8 sps:$4 sm:$0xff]  }
  0xe3   :  { %3062 = vmatpush1.bf16.msra.mxu1 %v4602_v2  ;;  %v4698_v2 = vld [vmem:[%s6407_s1 + $0x464] ss:$8 sps:$4 sm:$0xff]  }
  0xe4   :  { %3419 = vmatpush1.bf16.msra.mxu0 %v4605_v3  ;;  %3063 = vmatprep.subr.bf16.mxu1 %v4610_v4  ;;  %v4701_v3 = vld [vmem:[%s6407_s1 + $0xb64] ss:$8 sps:$4 sm:$0xff]   ;;  %v4696_v4 = vld [vmem:[%s6407_s1 + $0x460] ss:$8 sps:$4 sm:$0xff]  }
  0xe5   :  { %3420 = vmatprep.subr.bf16.mxu0 %v4613_v5  ;;  %v4699_v5 = vld [vmem:[%s6407_s1 + $0xb60] ss:$8 sps:$4 sm:$0xff]  }
  0xe7   :  { %3064 = vmatpush1.bf16.msra.mxu1 %v4608_v6  ;;  %v4704_v6 = vld [vmem:[%s6407_s1 + $0x474] ss:$8 sps:$4 sm:$0xff]  }
  0xe8   :  { %3421 = vmatpush1.bf16.msra.mxu0 %v4611_v7  ;;  %3065 = vmatprep.subr.bf16.mxu1 %v4616_v8  ;;  %v4707_v7 = vld [vmem:[%s6407_s1 + $0xb74] ss:$8 sps:$4 sm:$0xff]   ;;  %v4702_v8 = vld [vmem:[%s6407_s1 + $0x470] ss:$8 sps:$4 sm:$0xff]  }
  0xe9   :  { %3422 = vmatprep.subr.bf16.mxu0 %v4619_v9  ;;  %v4705_v9 = vld [vmem:[%s6407_s1 + $0xb70] ss:$8 sps:$4 sm:$0xff]  }
  0xeb   :  { %3066 = vmatpush1.bf16.msra.mxu1 %v4614_v10  ;;  %v4710_v10 = vld [vmem:[%s6407_s1 + $0x484] ss:$8 sps:$4 sm:$0xff]  }
  0xec   :  { %3423 = vmatpush1.bf16.msra.mxu0 %v4617_v11  ;;  %3067 = vmatprep.subr.bf16.mxu1 %v4622_v12  ;;  %v4713_v11 = vld [vmem:[%s6407_s1 + $0xb84] ss:$8 sps:$4 sm:$0xff]   ;;  %v4708_v12 = vld [vmem:[%s6407_s1 + $0x480] ss:$8 sps:$4 sm:$0xff]  }
  0xed   :  { %3424 = vmatprep.subr.bf16.mxu0 %v4625_v13  ;;  %v4711_v13 = vld [vmem:[%s6407_s1 + $0xb80] ss:$8 sps:$4 sm:$0xff]  }
  0xef   :  { %3068 = vmatpush1.bf16.msra.mxu1 %v4620_v14  ;;  %v4716_v14 = vld [vmem:[%s6407_s1 + $0x494] ss:$8 sps:$4 sm:$0xff]  }
  0xf0   :  { %3425 = vmatpush1.bf16.msra.mxu0 %v4623_v15  ;;  %3069 = vmatprep.subr.bf16.mxu1 %v4628_v16  ;;  %v4719_v15 = vld [vmem:[%s6407_s1 + $0xb94] ss:$8 sps:$4 sm:$0xff]   ;;  %v4714_v16 = vld [vmem:[%s6407_s1 + $0x490] ss:$8 sps:$4 sm:$0xff]  }
  0xf1   :  { %3426 = vmatprep.subr.bf16.mxu0 %v4631_v17  ;;  %v4717_v17 = vld [vmem:[%s6407_s1 + $0xb90] ss:$8 sps:$4 sm:$0xff]  }
  0xf3   :  { %3070 = vmatpush1.bf16.msra.mxu1 %v4626_v18  ;;  %v4722_v18 = vld [vmem:[%s6407_s1 + $0x4a4] ss:$8 sps:$4 sm:$0xff]  }
  0xf4   :  { %3427 = vmatpush1.bf16.msra.mxu0 %v4629_v19  ;;  %3071 = vmatprep.subr.bf16.mxu1 %v4634_v20  ;;  %v4725_v19 = vld [vmem:[%s6407_s1 + $0xba4] ss:$8 sps:$4 sm:$0xff]   ;;  %v4720_v20 = vld [vmem:[%s6407_s1 + $0x4a0] ss:$8 sps:$4 sm:$0xff]  }
  0xf5   :  { %3428 = vmatprep.subr.bf16.mxu0 %v4637_v21  ;;  %v4723_v21 = vld [vmem:[%s6407_s1 + $0xba0] ss:$8 sps:$4 sm:$0xff]  }
  0xf7   :  { %3072 = vmatpush1.bf16.msra.mxu1 %v4632_v22  ;;  %v4728_v22 = vld [vmem:[%s6407_s1 + $0x4b4] ss:$8 sps:$4 sm:$0xff]  }
  0xf8   :  { %3429 = vmatpush1.bf16.msra.mxu0 %v4635_v23  ;;  %3073 = vmatprep.subr.bf16.mxu1 %v4641_v24  ;;  %v4731_v23 = vld [vmem:[%s6407_s1 + $0xbb4] ss:$8 sps:$4 sm:$0xff]   ;;  %v4726_v24 = vld [vmem:[%s6407_s1 + $0x4b0] ss:$8 sps:$4 sm:$0xff]  }
  0xf9   :  { %3430 = vmatprep.subr.bf16.mxu0 %v4645_v25  ;;  %v4729_v25 = vld [vmem:[%s6407_s1 + $0xbb0] ss:$8 sps:$4 sm:$0xff]  }
  0xfb   :  { %3074 = vmatpush1.bf16.msra.mxu1 %v4639_v26  ;;  %v4734_v26 = vld [vmem:[%s6407_s1 + $0x4c4] ss:$8 sps:$4 sm:$0xff]  }
  0xfc   :  { %3431 = vmatpush1.bf16.msra.mxu0 %v4643_v27  ;;  %3075 = vmatprep.subr.bf16.mxu1 %v4650_v28  ;;  %v4737_v27 = vld [vmem:[%s6407_s1 + $0xbc4] ss:$8 sps:$4 sm:$0xff]   ;;  %v4732_v28 = vld [vmem:[%s6407_s1 + $0x4c0] ss:$8 sps:$4 sm:$0xff]  }
  0xfd   :  { %3432 = vmatprep.subr.bf16.mxu0 %v4653_v29  ;;  %v4735_v29 = vld [vmem:[%s6407_s1 + $0xbc0] ss:$8 sps:$4 sm:$0xff]  }
  0xff   :  { %3076 = vmatpush1.bf16.msra.mxu1 %v4648_v30  ;;  %v4740_v30 = vld [vmem:[%s6407_s1 + $0x4d4] ss:$8 sps:$4 sm:$0xff]  }
 0x100   :  { %3433 = vmatpush1.bf16.msra.mxu0 %v4651_v31  ;;  %3096 = vmatprep.subr.bf16.mxu1 %v4659_v32  ;;  %v4743_v31 = vld [vmem:[%s6407_s1 + $0xbd4] ss:$8 sps:$4 sm:$0xff]   ;;  %v4738_v32 = vld [vmem:[%s6407_s1 + $0x4d0] ss:$8 sps:$4 sm:$0xff]  }
 0x101   :  { %3453 = vmatprep.subr.bf16.mxu0 %v4665_v34  ;;  %v4747_v34 = vld [vmem:[%s6407_s1 + $0x4e4] ss:$8 sps:$4 sm:$0xff]  }
 0x102   :  { %3078 = vmatmul.mubr.bf16.vlgmr.msra.gmra.mrb[0].mxu1 %v4654_v33  ;;  %v4741_v33 = vld [vmem:[%s6407_s1 + $0xbd0] ss:$8 sps:$4 sm:$0xff]  }
 0x103   :  { %3435 = vmatmul.mubr.bf16.vlgmr.msra.gmra.mrb[0].mxu0 %v4660_v36  ;;  %3097 = vmatpush1.bf16.msra.mxu1 %v4657_v35  ;;  %v4751_v35 = vld [vmem:[%s6407_s1 + $0xbe4] ss:$8 sps:$4 sm:$0xff]   ;;  %v4745_v36 = vld [vmem:[%s6407_s1 + $0x4e0] ss:$8 sps:$4 sm:$0xff]  }
 0x104   :  { %3454 = vmatpush1.bf16.msra.mxu0 %v4663_v37  ;;  %3098 = vmatprep.subr.bf16.mxu1 %v4668_v40  ;;  %v4749_v37 = vld [vmem:[%s6407_s1 + $0xbe0] ss:$8 sps:$4 sm:$0xff]   ;;  %v4754_v40 = vld [vmem:[%s6407_s1 + $0x4f0] ss:$8 sps:$4 sm:$0xff]  }
 0x105   :  { %3455 = vmatprep.subr.bf16.mxu0 %v4671_v41  ;;  %3087 = vmatprep.mubr.bf16.mxu1 %v3673_v42  ;;  %v4757_v41 = vld [vmem:[%s6407_s1 + $0xbf0] ss:$8 sps:$4 sm:$0xff]   ;;  %v4765_v42 = vld [vmem:[%s6407_s1 + $0x504] ss:$8 sps:$4 sm:$0xff]  }
 0x106   :  { %3444 = vmatprep.mubr.bf16.mxu0 %v3687_v43  ;;  %v4771_v43 = vld [vmem:[%s6407_s1 + $0xc04] ss:$8 sps:$4 sm:$0xff]  }
 0x107   :  { %3099 = vmatpush1.bf16.msra.mxu1 %v4666_v44  ;;  %v4760_v44 = vld [vmem:[%s6408_s0 + $0x20] ss:$108 sps:$4 sm:$0xff]  }
 0x108   :  { %3456 = vmatpush1.bf16.msra.mxu0 %v4669_v45  ;;  %3100 = vmatprep.subr.bf16.mxu1 %v4674_v46  ;;  %v4766_v45 = vld [vmem:[%s6408_s0 + $0x58] ss:$108 sps:$4 sm:$0xff]  }
 0x109   :  { %3457 = vmatprep.subr.bf16.mxu0 %v4677_v47  ;;  %v47_v46 = vld [vmem:[%s6408_s0 + $0xf8] sm:$0x11]  ;;  %v54_v47 = vld [vmem:[%s6408_s0 + $0x130] sm:$0x11] }
 0x10a   :  { %3088 = vmatmul.mubr.bf16.gmra.mrb[4].mxu1 %v3672_v50  ;;  %v4774_v50 = vld [vmem:[%s6407_s1 + $0x514] ss:$8 sps:$4 sm:$0xff]  }
 0x10b   :  { %3445 = vmatmul.mubr.bf16.gmra.mrb[4].mxu0 %v3686_v51  ;;  %3101 = vmatpush1.bf16.msra.mxu1 %v4672_v48  ;;  %v4763_v48 = vld [vmem:[%s6407_s1 + $0x500] ss:$8 sps:$4 sm:$0xff]   ;;  %v4777_v51 = vld [vmem:[%s6407_s1 + $0xc14] ss:$8 sps:$4 sm:$0xff]  }
 0x10c   :  { %3458 = vmatpush1.bf16.msra.mxu0 %v4675_v49  ;;  %3102 = vmatprep.subr.bf16.mxu1 %v4680_v52  ;;  %v4769_v49 = vld [vmem:[%s6407_s1 + $0xc00] ss:$8 sps:$4 sm:$0xff]   ;;  %v3675_v52 = vcombine.high %v47_v46, %v47_v46 }
 0x10d   :  { %3459 = vmatprep.subr.bf16.mxu0 %v4683_v53  ;;  %3128 = vmatprep.mubr.bf16.mxu1 %v4762_v54  ;;  %v3689_v53 = vcombine.high %v54_v47, %v54_v47  ;;  %v4772_v54 = vld [vmem:[%s6407_s1 + $0x510] ss:$8 sps:$4 sm:$0xff]  }
 0x10e   :  { %3485 = vmatprep.mubr.bf16.mxu0 %v4768_v55  ;;  %v4775_v55 = vld [vmem:[%s6407_s1 + $0xc10] ss:$8 sps:$4 sm:$0xff]  }
 0x10f   :  { %3103 = vmatpush1.bf16.msra.mxu1 %v4678_v56  ;;  %v4780_v56 = vld [vmem:[%s6407_s1 + $0x524] ss:$8 sps:$4 sm:$0xff]  }
 0x110   :  { %3460 = vmatpush1.bf16.msra.mxu0 %v4681_v57  ;;  %3104 = vmatprep.subr.bf16.mxu1 %v4686_v58  ;;  %v4783_v57 = vld [vmem:[%s6407_s1 + $0xc24] ss:$8 sps:$4 sm:$0xff]   ;;  %v3674_v58 = vcombine.low %v47_v46, %v47_v46  ;;  %v4851_v46 = vld [vmem:[%s6407_s1 + $0x5e0] ss:$8 sps:$4 sm:$0xff]  }
 0x111   :  { %3461 = vmatprep.subr.bf16.mxu0 %v4689_v59  ;;  %v3688_v59 = vcombine.low %v54_v47, %v54_v47  ;;  %v4855_v47 = vld [vmem:[%s6407_s1 + $0xce0] ss:$8 sps:$4 sm:$0xff]  }
 0x113   :  { %3105 = vmatpush1.bf16.msra.mxu1 %v4684_v60  ;;  %v4778_v60 = vld [vmem:[%s6407_s1 + $0x520] ss:$8 sps:$4 sm:$0xff]  }
 0x114   :  { %3462 = vmatpush1.bf16.msra.mxu0 %v4687_v61  ;;  %3106 = vmatprep.subr.bf16.mxu1 %v4692_v62  ;;  %v4781_v61 = vld [vmem:[%s6407_s1 + $0xc20] ss:$8 sps:$4 sm:$0xff]   ;;  %v4786_v62 = vld [vmem:[%s6407_s1 + $0x534] ss:$8 sps:$4 sm:$0xff]  }
 0x115   :  { %3463 = vmatprep.subr.bf16.mxu0 %v4695_v63  ;;  %v4789_v63 = vld [vmem:[%s6407_s1 + $0xc34] ss:$8 sps:$4 sm:$0xff]  }
 0x117   :  { %3107 = vmatpush1.bf16.msra.mxu1 %v4690_v0  ;;  %v4868_v0 = vld [vmem:[%s6408_s0 + $0x2c] ss:$108 sps:$4 sm:$0xff]  }
 0x118   :  { %3464 = vmatpush1.bf16.msra.mxu0 %v4693_v1  ;;  %3108 = vmatprep.subr.bf16.mxu1 %v4698_v2  ;;  %v4874_v1 = vld [vmem:[%s6408_s0 + $0x64] ss:$108 sps:$4 sm:$0xff]  }
 0x119   :  { %3465 = vmatprep.subr.bf16.mxu0 %v4701_v3  ;;  %v4784_v2 = vld [vmem:[%s6407_s1 + $0x530] ss:$8 sps:$4 sm:$0xff]  }
 0x11a   :  { %v4787_v3 = vld [vmem:[%s6407_s1 + $0xc30] ss:$8 sps:$4 sm:$0xff]  }
 0x11b   :  { %3109 = vmatpush1.bf16.msra.mxu1 %v4696_v4  ;;  %v4792_v4 = vld [vmem:[%s6407_s1 + $0x544] ss:$8 sps:$4 sm:$0xff]  }
 0x11c   :  { %3466 = vmatpush1.bf16.msra.mxu0 %v4699_v5  ;;  %3110 = vmatprep.subr.bf16.mxu1 %v4704_v6  ;;  %v4795_v5 = vld [vmem:[%s6407_s1 + $0xc44] ss:$8 sps:$4 sm:$0xff]   ;;  %v4790_v6 = vld [vmem:[%s6407_s1 + $0x540] ss:$8 sps:$4 sm:$0xff]  }
 0x11d   :  { %3467 = vmatprep.subr.bf16.mxu0 %v4707_v7  ;;  %v4793_v7 = vld [vmem:[%s6407_s1 + $0xc40] ss:$8 sps:$4 sm:$0xff]  }
 0x11f   :  { %3111 = vmatpush1.bf16.msra.mxu1 %v4702_v8  ;;  %v4798_v8 = vld [vmem:[%s6407_s1 + $0x554] ss:$8 sps:$4 sm:$0xff]  }
 0x120   :  { %3468 = vmatpush1.bf16.msra.mxu0 %v4705_v9  ;;  %3112 = vmatprep.subr.bf16.mxu1 %v4710_v10  ;;  %v4801_v9 = vld [vmem:[%s6407_s1 + $0xc54] ss:$8 sps:$4 sm:$0xff]   ;;  %v4796_v10 = vld [vmem:[%s6407_s1 + $0x550] ss:$8 sps:$4 sm:$0xff]  }
 0x121   :  { %3469 = vmatprep.subr.bf16.mxu0 %v4713_v11  ;;  %v4799_v11 = vld [vmem:[%s6407_s1 + $0xc50] ss:$8 sps:$4 sm:$0xff]  }
 0x123   :  { %3113 = vmatpush1.bf16.msra.mxu1 %v4708_v12  ;;  %v4804_v12 = vld [vmem:[%s6407_s1 + $0x564] ss:$8 sps:$4 sm:$0xff]  }
 0x124   :  { %3470 = vmatpush1.bf16.msra.mxu0 %v4711_v13  ;;  %3114 = vmatprep.subr.bf16.mxu1 %v4716_v14  ;;  %v4807_v13 = vld [vmem:[%s6407_s1 + $0xc64] ss:$8 sps:$4 sm:$0xff]   ;;  %v4802_v14 = vld [vmem:[%s6407_s1 + $0x560] ss:$8 sps:$4 sm:$0xff]  }
 0x125   :  { %3471 = vmatprep.subr.bf16.mxu0 %v4719_v15  ;;  %v4805_v15 = vld [vmem:[%s6407_s1 + $0xc60] ss:$8 sps:$4 sm:$0xff]  }
 0x127   :  { %3115 = vmatpush1.bf16.msra.mxu1 %v4714_v16  ;;  %v4810_v16 = vld [vmem:[%s6407_s1 + $0x574] ss:$8 sps:$4 sm:$0xff]  }
 0x128   :  { %3472 = vmatpush1.bf16.msra.mxu0 %v4717_v17  ;;  %3116 = vmatprep.subr.bf16.mxu1 %v4722_v18  ;;  %v4813_v17 = vld [vmem:[%s6407_s1 + $0xc74] ss:$8 sps:$4 sm:$0xff]   ;;  %v4808_v18 = vld [vmem:[%s6407_s1 + $0x570] ss:$8 sps:$4 sm:$0xff]  }
 0x129   :  { %3473 = vmatprep.subr.bf16.mxu0 %v4725_v19  ;;  %v4811_v19 = vld [vmem:[%s6407_s1 + $0xc70] ss:$8 sps:$4 sm:$0xff]  }
 0x12b   :  { %3117 = vmatpush1.bf16.msra.mxu1 %v4720_v20  ;;  %v4816_v20 = vld [vmem:[%s6407_s1 + $0x584] ss:$8 sps:$4 sm:$0xff]  }
 0x12c   :  { %3474 = vmatpush1.bf16.msra.mxu0 %v4723_v21  ;;  %3118 = vmatprep.subr.bf16.mxu1 %v4728_v22  ;;  %v4819_v21 = vld [vmem:[%s6407_s1 + $0xc84] ss:$8 sps:$4 sm:$0xff]   ;;  %v4814_v22 = vld [vmem:[%s6407_s1 + $0x580] ss:$8 sps:$4 sm:$0xff]  }
 0x12d   :  { %3475 = vmatprep.subr.bf16.mxu0 %v4731_v23  ;;  %v4817_v23 = vld [vmem:[%s6407_s1 + $0xc80] ss:$8 sps:$4 sm:$0xff]  }
 0x12f   :  { %3119 = vmatpush1.bf16.msra.mxu1 %v4726_v24  ;;  %v4822_v24 = vld [vmem:[%s6407_s1 + $0x594] ss:$8 sps:$4 sm:$0xff]  }
 0x130   :  { %3476 = vmatpush1.bf16.msra.mxu0 %v4729_v25  ;;  %3120 = vmatprep.subr.bf16.mxu1 %v4734_v26  ;;  %v4825_v25 = vld [vmem:[%s6407_s1 + $0xc94] ss:$8 sps:$4 sm:$0xff]   ;;  %v4820_v26 = vld [vmem:[%s6407_s1 + $0x590] ss:$8 sps:$4 sm:$0xff]  }
 0x131   :  { %3477 = vmatprep.subr.bf16.mxu0 %v4737_v27  ;;  %v4823_v27 = vld [vmem:[%s6407_s1 + $0xc90] ss:$8 sps:$4 sm:$0xff]  }
 0x133   :  { %3121 = vmatpush1.bf16.msra.mxu1 %v4732_v28  ;;  %v4828_v28 = vld [vmem:[%s6407_s1 + $0x5a4] ss:$8 sps:$4 sm:$0xff]  }
 0x134   :  { %3478 = vmatpush1.bf16.msra.mxu0 %v4735_v29  ;;  %3122 = vmatprep.subr.bf16.mxu1 %v4740_v30  ;;  %v4831_v29 = vld [vmem:[%s6407_s1 + $0xca4] ss:$8 sps:$4 sm:$0xff]   ;;  %v4826_v30 = vld [vmem:[%s6407_s1 + $0x5a0] ss:$8 sps:$4 sm:$0xff]  }
 0x135   :  { %3479 = vmatprep.subr.bf16.mxu0 %v4743_v31  ;;  %v4829_v31 = vld [vmem:[%s6407_s1 + $0xca0] ss:$8 sps:$4 sm:$0xff]  }
 0x137   :  { %3123 = vmatpush1.bf16.msra.mxu1 %v4738_v32  ;;  %v4834_v32 = vld [vmem:[%s6407_s1 + $0x5b4] ss:$8 sps:$4 sm:$0xff]  }
 0x138   :  { %3480 = vmatpush1.bf16.msra.mxu0 %v4741_v33  ;;  %3124 = vmatprep.subr.bf16.mxu1 %v4747_v34  ;;  %v4837_v33 = vld [vmem:[%s6407_s1 + $0xcb4] ss:$8 sps:$4 sm:$0xff]   ;;  %v4832_v34 = vld [vmem:[%s6407_s1 + $0x5b0] ss:$8 sps:$4 sm:$0xff]  }
 0x139   :  { %3481 = vmatprep.subr.bf16.mxu0 %v4751_v35  ;;  %v4835_v35 = vld [vmem:[%s6407_s1 + $0xcb0] ss:$8 sps:$4 sm:$0xff]  }
 0x13b   :  { %3125 = vmatpush1.bf16.msra.mxu1 %v4745_v36  ;;  %v4840_v36 = vld [vmem:[%s6407_s1 + $0x5c4] ss:$8 sps:$4 sm:$0xff]  }
 0x13c   :  { %3482 = vmatpush1.bf16.msra.mxu0 %v4749_v37  ;;  %3126 = vmatprep.subr.bf16.mxu1 %v4756_v38  ;;  %v4843_v37 = vld [vmem:[%s6407_s1 + $0xcc4] ss:$8 sps:$4 sm:$0xff]   ;;  %v4838_v38 = vld [vmem:[%s6407_s1 + $0x5c0] ss:$8 sps:$4 sm:$0xff]  }
 0x13d   :  { %3483 = vmatprep.subr.bf16.mxu0 %v4759_v39  ;;  %v4841_v39 = vld [vmem:[%s6407_s1 + $0xcc0] ss:$8 sps:$4 sm:$0xff]  }
 0x13f   :  { %3127 = vmatpush1.bf16.msra.mxu1 %v4754_v40  ;;  %v4846_v40 = vld [vmem:[%s6407_s1 + $0x5d4] ss:$8 sps:$4 sm:$0xff]  }
 0x140   :  { %3484 = vmatpush1.bf16.msra.mxu0 %v4757_v41  ;;  %3147 = vmatprep.subr.bf16.mxu1 %v4765_v42  ;;  %v4849_v41 = vld [vmem:[%s6407_s1 + $0xcd4] ss:$8 sps:$4 sm:$0xff]   ;;  %v4844_v42 = vld [vmem:[%s6407_s1 + $0x5d0] ss:$8 sps:$4 sm:$0xff]  }
 0x141   :  { %3504 = vmatprep.subr.bf16.mxu0 %v4771_v43  ;;  %v4847_v43 = vld [vmem:[%s6407_s1 + $0xcd0] ss:$8 sps:$4 sm:$0xff]  }
 0x142   :  { %3129 = vmatmul.mubr.bf16.vlgmr.msra.gmra.mrb[0].mxu1 %v4760_v44  ;;  %v4853_v44 = vld [vmem:[%s6407_s1 + $0x5e4] ss:$8 sps:$4 sm:$0xff]  }
 0x143   :  { %3486 = vmatmul.mubr.bf16.vlgmr.msra.gmra.mrb[0].mxu0 %v4766_v45  ;;  %3148 = vmatpush1.bf16.msra.mxu1 %v4763_v48  ;;  %v4857_v45 = vld [vmem:[%s6407_s1 + $0xce4] ss:$8 sps:$4 sm:$0xff]   ;;  %v4862_v48 = vld [vmem:[%s6407_s1 + $0x5f4] ss:$8 sps:$4 sm:$0xff]  }
 0x144   :  { %3505 = vmatpush1.bf16.msra.mxu0 %v4769_v49  ;;  %3149 = vmatprep.subr.bf16.mxu1 %v4774_v50  ;;  %v4865_v49 = vld [vmem:[%s6407_s1 + $0xcf4] ss:$8 sps:$4 sm:$0xff]   ;;  %v4860_v50 = vld [vmem:[%s6407_s1 + $0x5f0] ss:$8 sps:$4 sm:$0xff]  }
 0x145   :  { %3506 = vmatprep.subr.bf16.mxu0 %v4777_v51  ;;  %3138 = vmatprep.mubr.bf16.mxu1 %v3675_v52  ;;  %v4863_v51 = vld [vmem:[%s6407_s1 + $0xcf0] ss:$8 sps:$4 sm:$0xff]   ;;  %v4871_v52 = vld [vmem:[%s6407_s1 + $0x604] ss:$8 sps:$4 sm:$0xff]  }
 0x146   :  { %3495 = vmatprep.mubr.bf16.mxu0 %v3689_v53  ;;  %v4877_v53 = vld [vmem:[%s6407_s1 + $0xd04] ss:$8 sps:$4 sm:$0xff]  }
 0x147   :  { %3150 = vmatpush1.bf16.msra.mxu1 %v4772_v54  ;;  %v4866_v54 = vld [vmem:[%s6408_s0 + $0x28] ss:$108 sps:$4 sm:$0xff]  }
 0x148   :  { %3507 = vmatpush1.bf16.msra.mxu0 %v4775_v55  ;;  %3151 = vmatprep.subr.bf16.mxu1 %v4780_v56  ;;  %v4872_v55 = vld [vmem:[%s6408_s0 + $0x60] ss:$108 sps:$4 sm:$0xff]   ;;  %v55_v56 = vld [vmem:[%s6408_s0 + $0x138] sm:$0x11] }
 0x149   :  { %3508 = vmatprep.subr.bf16.mxu0 %v4783_v57  ;;  %v48_v57 = vld [vmem:[%s6408_s0 + $0x100] sm:$0x11] }
 0x14a   :  { %3139 = vmatmul.mubr.bf16.gmra.mrb[4].mxu1 %v3674_v58  ;;  %v4869_v58 = vld [vmem:[%s6407_s1 + $0x600] ss:$8 sps:$4 sm:$0xff]  }
 0x14b   :  { %3496 = vmatmul.mubr.bf16.gmra.mrb[4].mxu0 %v3688_v59  ;;  %3152 = vmatpush1.bf16.msra.mxu1 %v4778_v60  ;;  %v4875_v59 = vld [vmem:[%s6407_s1 + $0xd00] ss:$8 sps:$4 sm:$0xff]   ;;  %v4880_v60 = vld [vmem:[%s6407_s1 + $0x614] ss:$8 sps:$4 sm:$0xff]  }
 0x14c   :  { %3509 = vmatpush1.bf16.msra.mxu0 %v4781_v61  ;;  %3153 = vmatprep.subr.bf16.mxu1 %v4786_v62  ;;  %v4883_v61 = vld [vmem:[%s6407_s1 + $0xd14] ss:$8 sps:$4 sm:$0xff]   ;;  %v3691_v62 = vcombine.high %v55_v56, %v55_v56 }
 0x14d   :  { %3510 = vmatprep.subr.bf16.mxu0 %v4789_v63  ;;  %3179 = vmatprep.mubr.bf16.mxu1 %v4868_v0  ;;  %v3677_v63 = vcombine.high %v48_v57, %v48_v57  ;;  %v4878_v0 = vld [vmem:[%s6407_s1 + $0x610] ss:$8 sps:$4 sm:$0xff]  }
 0x14e   :  { %3536 = vmatprep.mubr.bf16.mxu0 %v4874_v1  ;;  %v4881_v1 = vld [vmem:[%s6407_s1 + $0xd10] ss:$8 sps:$4 sm:$0xff]  }
 0x14f   :  { %3154 = vmatpush1.bf16.msra.mxu1 %v4784_v2  ;;  %v4886_v2 = vld [vmem:[%s6407_s1 + $0x624] ss:$8 sps:$4 sm:$0xff]  }
 0x150   :  { %3511 = vmatpush1.bf16.msra.mxu0 %v4787_v3  ;;  %3155 = vmatprep.subr.bf16.mxu1 %v4792_v4  ;;  %v4889_v3 = vld [vmem:[%s6407_s1 + $0xd24] ss:$8 sps:$4 sm:$0xff]   ;;  %v3690_v4 = vcombine.low %v55_v56, %v55_v56 }
 0x151   :  { %3512 = vmatprep.subr.bf16.mxu0 %v4795_v5  ;;  %v3676_v5 = vcombine.low %v48_v57, %v48_v57 }
 0x153   :  { %3156 = vmatpush1.bf16.msra.mxu1 %v4790_v6  ;;  %v4884_v6 = vld [vmem:[%s6407_s1 + $0x620] ss:$8 sps:$4 sm:$0xff]  }
 0x154   :  { %3513 = vmatpush1.bf16.msra.mxu0 %v4793_v7  ;;  %3157 = vmatprep.subr.bf16.mxu1 %v4798_v8  ;;  %v4887_v7 = vld [vmem:[%s6407_s1 + $0xd20] ss:$8 sps:$4 sm:$0xff]   ;;  %v4892_v8 = vld [vmem:[%s6407_s1 + $0x634] ss:$8 sps:$4 sm:$0xff]  }
 0x155   :  { %3514 = vmatprep.subr.bf16.mxu0 %v4801_v9  ;;  %v4895_v9 = vld [vmem:[%s6407_s1 + $0xd34] ss:$8 sps:$4 sm:$0xff]  }
 0x157   :  { %3158 = vmatpush1.bf16.msra.mxu1 %v4796_v10  ;;  %v4952_v10 = vld [vmem:[%s6408_s0 + $0x34] ss:$108 sps:$4 sm:$0xff]  }
 0x158   :  { %3515 = vmatpush1.bf16.msra.mxu0 %v4799_v11  ;;  %3159 = vmatprep.subr.bf16.mxu1 %v4804_v12  ;;  %v4890_v11 = vld [vmem:[%s6407_s1 + $0x630] ss:$8 sps:$4 sm:$0xff]  }
 0x159   :  { %3516 = vmatprep.subr.bf16.mxu0 %v4807_v13  ;;  %v4893_v12 = vld [vmem:[%s6407_s1 + $0xd30] ss:$8 sps:$4 sm:$0xff]   ;;  %v4898_v13 = vld [vmem:[%s6407_s1 + $0x644] ss:$8 sps:$4 sm:$0xff]  }
 0x15b   :  { %3160 = vmatpush1.bf16.msra.mxu1 %v4802_v14  ;;  %v4901_v14 = vld [vmem:[%s6407_s1 + $0xd44] ss:$8 sps:$4 sm:$0xff]  }
 0x15c   :  { %3517 = vmatpush1.bf16.msra.mxu0 %v4805_v15  ;;  %3161 = vmatprep.subr.bf16.mxu1 %v4810_v16  ;;  %v4955_v15 = vmov 0   ;;  %v4896_v16 = vld [vmem:[%s6407_s1 + $0x640] ss:$8 sps:$4 sm:$0xff]  }
 0x15d   :  { %3518 = vmatprep.subr.bf16.mxu0 %v4813_v17  ;;  %v4899_v17 = vld [vmem:[%s6407_s1 + $0xd40] ss:$8 sps:$4 sm:$0xff]  }
 0x15f   :  { %3162 = vmatpush1.bf16.msra.mxu1 %v4808_v18  ;;  %v4904_v18 = vld [vmem:[%s6407_s1 + $0x654] ss:$8 sps:$4 sm:$0xff]  }
 0x160   :  { %3519 = vmatpush1.bf16.msra.mxu0 %v4811_v19  ;;  %3163 = vmatprep.subr.bf16.mxu1 %v4816_v20  ;;  %v4907_v19 = vld [vmem:[%s6407_s1 + $0xd54] ss:$8 sps:$4 sm:$0xff]   ;;  %v4902_v20 = vld [vmem:[%s6407_s1 + $0x650] ss:$8 sps:$4 sm:$0xff]  }
 0x161   :  { %3520 = vmatprep.subr.bf16.mxu0 %v4819_v21  ;;  %v4905_v21 = vld [vmem:[%s6407_s1 + $0xd50] ss:$8 sps:$4 sm:$0xff]  }
 0x163   :  { %3164 = vmatpush1.bf16.msra.mxu1 %v4814_v22  ;;  %v4911_v22 = vld [vmem:[%s6407_s1 + $0x664] ss:$8 sps:$4 sm:$0xff]  }
 0x164   :  { %3521 = vmatpush1.bf16.msra.mxu0 %v4817_v23  ;;  %3165 = vmatprep.subr.bf16.mxu1 %v4822_v24  ;;  %v4915_v23 = vld [vmem:[%s6407_s1 + $0xd64] ss:$8 sps:$4 sm:$0xff]   ;;  %v4909_v24 = vld [vmem:[%s6407_s1 + $0x660] ss:$8 sps:$4 sm:$0xff]  }
 0x165   :  { %3522 = vmatprep.subr.bf16.mxu0 %v4825_v25  ;;  %v4913_v25 = vld [vmem:[%s6407_s1 + $0xd60] ss:$8 sps:$4 sm:$0xff]  }
 0x167   :  { %3166 = vmatpush1.bf16.msra.mxu1 %v4820_v26  ;;  %v4918_v26 = vld [vmem:[%s6407_s1 + $0x674] ss:$8 sps:$4 sm:$0xff]  }
 0x168   :  { %3523 = vmatpush1.bf16.msra.mxu0 %v4823_v27  ;;  %3167 = vmatprep.subr.bf16.mxu1 %v4828_v28  ;;  %v4921_v27 = vld [vmem:[%s6407_s1 + $0xd74] ss:$8 sps:$4 sm:$0xff]   ;;  %v4916_v28 = vld [vmem:[%s6407_s1 + $0x670] ss:$8 sps:$4 sm:$0xff]  }
 0x169   :  { %3524 = vmatprep.subr.bf16.mxu0 %v4831_v29  ;;  %v4919_v29 = vld [vmem:[%s6407_s1 + $0xd70] ss:$8 sps:$4 sm:$0xff]  }
 0x16b   :  { %3168 = vmatpush1.bf16.msra.mxu1 %v4826_v30  ;;  %v4924_v30 = vld [vmem:[%s6407_s1 + $0x684] ss:$8 sps:$4 sm:$0xff]  }
 0x16c   :  { %3525 = vmatpush1.bf16.msra.mxu0 %v4829_v31  ;;  %3169 = vmatprep.subr.bf16.mxu1 %v4834_v32  ;;  %v4925_v31 = vld [vmem:[%s6408_s0 + $0x68] ss:$108 sps:$4 sm:$0xff]  }
 0x16d   :  { %3526 = vmatprep.subr.bf16.mxu0 %v4837_v33  ;;  %v4922_v32 = vld [vmem:[%s6407_s1 + $0x680] ss:$8 sps:$4 sm:$0xff]   ;;  %v4928_v33 = vld [vmem:[%s6407_s1 + $0x694] ss:$8 sps:$4 sm:$0xff]  }
 0x16f   :  { %3170 = vmatpush1.bf16.msra.mxu1 %v4832_v34  ;;  %v4926_v34 = vld [vmem:[%s6407_s1 + $0x690] ss:$8 sps:$4 sm:$0xff]  }
 0x170   :  { %3527 = vmatpush1.bf16.msra.mxu0 %v4835_v35  ;;  %3171 = vmatprep.subr.bf16.mxu1 %v4840_v36  ;;  %v4931_v35 = vld [vmem:[%s6407_s1 + $0x6a4] ss:$8 sps:$4 sm:$0xff]   ;;  %v4932_v36 = vld [vmem:[%s6408_s0 + $0x140] ss:$0 sps:$4 sm:$0x11]  }
 0x171   :  { %3528 = vmatprep.subr.bf16.mxu0 %v4843_v37  ;;  %v4929_v37 = vld [vmem:[%s6407_s1 + $0x6a0] ss:$8 sps:$4 sm:$0xff]  }
 0x173   :  { %3172 = vmatpush1.bf16.msra.mxu1 %v4838_v38  ;;  %v4935_v38 = vld [vmem:[%s6407_s1 + $0x6b4] ss:$8 sps:$4 sm:$0xff]  }
 0x174   :  { %3529 = vmatpush1.bf16.msra.mxu0 %v4841_v39  ;;  %3173 = vmatprep.subr.bf16.mxu1 %v4846_v40  ;;  %v4933_v39 = vld [vmem:[%s6407_s1 + $0x6b0] ss:$8 sps:$4 sm:$0xff]   ;;  %v4938_v40 = vld [vmem:[%s6407_s1 + $0x6c4] ss:$8 sps:$4 sm:$0xff]  }
 0x175   :  { %3530 = vmatprep.subr.bf16.mxu0 %v4849_v41  ;;  %v4936_v41 = vld [vmem:[%s6407_s1 + $0x6c0] ss:$8 sps:$4 sm:$0xff]  }
 0x177   :  { %3174 = vmatpush1.bf16.msra.mxu1 %v4844_v42  ;;  %v4941_v42 = vld [vmem:[%s6407_s1 + $0x6d4] ss:$8 sps:$4 sm:$0xff]  }
 0x178   :  { %3531 = vmatpush1.bf16.msra.mxu0 %v4847_v43  ;;  %3175 = vmatprep.subr.bf16.mxu1 %v4853_v44  ;;  %v4939_v43 = vld [vmem:[%s6407_s1 + $0x6d0] ss:$8 sps:$4 sm:$0xff]   ;;  %v4946_v44 = vld [vmem:[%s6407_s1 + $0x6e4] ss:$8 sps:$4 sm:$0xff]  }
 0x179   :  { %3532 = vmatprep.subr.bf16.mxu0 %v4857_v45  ;;  %v4944_v45 = vld [vmem:[%s6407_s1 + $0x6e0] ss:$8 sps:$4 sm:$0xff]  }
 0x17b   :  { %3176 = vmatpush1.bf16.msra.mxu1 %v4851_v46  ;;  %v4949_v46 = vld [vmem:[%s6407_s1 + $0x6f4] ss:$8 sps:$4 sm:$0xff]  }
 0x17c   :  { %3533 = vmatpush1.bf16.msra.mxu0 %v4855_v47  ;;  %3177 = vmatprep.subr.bf16.mxu1 %v4862_v48  ;;  %v4947_v47 = vld [vmem:[%s6407_s1 + $0x6f0] ss:$8 sps:$4 sm:$0xff]   ;;  %v49_v48 = vld [vmem:[%s6408_s0 + $0x108] sm:$0x11] }
 0x17d   :  { %3534 = vmatprep.subr.bf16.mxu0 %v4865_v49  ;;  %v4950_v49 = vld [vmem:[%s6408_s0 + $0x30] ss:$108 sps:$4 sm:$0xff]  }
 0x17f   :  { %3178 = vmatpush1.bf16.msra.mxu1 %v4860_v50  ;;  %v3679_v50 = vcombine.high %v49_v48, %v49_v48 }
 0x180   :  { %3535 = vmatpush1.bf16.msra.mxu0 %v4863_v51  ;;  %3198 = vmatprep.subr.bf16.mxu1 %v4871_v52  ;;  %v3678_v51 = vcombine.low %v49_v48, %v49_v48 }
 0x181   :  { %3555 = vmatprep.subr.bf16.mxu0 %v4877_v53 }
 0x182   :  { %3180 = vmatmul.mubr.bf16.vlgmr.msra.gmra.mrb[0].mxu1 %v4866_v54 }
 0x183   :  { %3537 = vmatmul.mubr.bf16.vlgmr.msra.gmra.mrb[0].mxu0 %v4872_v55  ;;  %3199 = vmatpush1.bf16.msra.mxu1 %v4869_v58 }
 0x184   :  { %3556 = vmatpush1.bf16.msra.mxu0 %v4875_v59  ;;  %3200 = vmatprep.subr.bf16.mxu1 %v4880_v60  ;;  %v491_v60 = vlaneseq }
 0x185   :  { %3557 = vmatprep.subr.bf16.mxu0 %v4883_v61  ;;  %3546 = vmatprep.mubr.bf16.mxu0 %v3691_v62 }
 0x186   :  { %3189 = vmatprep.mubr.bf16.mxu1 %v3677_v63  ;;  %v492_v61 = vshrl.u32 %v491_v60, 7  ;;  %v489_v63 = vld [vmem:[%s6409_s2] sm:$0x3] }
 0x187   :  { %3201 = vmatpush1.bf16.msra.mxu1 %v4878_v0 }
 0x188   :  { %3558 = vmatpush1.bf16.msra.mxu0 %v4881_v1  ;;  %3202 = vmatprep.subr.bf16.mxu1 %v4886_v2  ;;  %v493_v62 = vsub.s32 0, %v492_v61  ;;  %v497_v0 = vsub.s32 1, %v492_v61 }
 0x189   :  { %3559 = vmatprep.subr.bf16.mxu0 %v4889_v3 }
 0x18a   :  { %3190 = vmatmul.mubr.bf16.gmra.mrb[4].mxu1 %v3676_v5  ;;  %v494_v1 = vrot.slane %v489_v63, %v493_v62  ;;  %v498_v2 = vrot.slane %v489_v63, %v497_v0 }
 0x18b   :  { %3547 = vmatmul.mubr.bf16.gmra.mrb[4].mxu0 %v3690_v4  ;;  %3203 = vmatpush1.bf16.msra.mxu1 %v4884_v6 }
 0x18c   :  { %3560 = vmatpush1.bf16.msra.mxu0 %v4887_v7  ;;  %3204 = vmatprep.subr.bf16.mxu1 %v4892_v8 }
 0x18d   :  { %3561 = vmatprep.subr.bf16.mxu0 %v4895_v9  ;;  %3587 = vmatprep.mubr.bf16.mxu0 %v4955_v15 }
 0x18e   :  { %3230 = vmatprep.mubr.bf16.mxu1 %v4952_v10 }
 0x18f   :  { %3205 = vmatpush1.bf16.msra.mxu1 %v4890_v11 }
 0x190   :  { %3562 = vmatpush1.bf16.msra.mxu0 %v4893_v12  ;;  %3206 = vmatprep.subr.bf16.mxu1 %v4898_v13 }
 0x191   :  { %3563 = vmatprep.subr.bf16.mxu0 %v4901_v14 }
 0x193   :  { %3207 = vmatpush1.bf16.msra.mxu1 %v4896_v16 }
 0x194   :  { %3564 = vmatpush1.bf16.msra.mxu0 %v4899_v17  ;;  %3208 = vmatprep.subr.bf16.mxu1 %v4904_v18 }
 0x195   :  { %3565 = vmatprep.subr.bf16.mxu0 %v4907_v19 }
 0x197   :  { %3209 = vmatpush1.bf16.msra.mxu1 %v4902_v20 }
 0x198   :  { %3566 = vmatpush1.bf16.msra.mxu0 %v4905_v21  ;;  %3210 = vmatprep.subr.bf16.mxu1 %v4911_v22 }
 0x199   :  { %3567 = vmatprep.subr.bf16.mxu0 %v4915_v23 }
 0x19b   :  { %3211 = vmatpush1.bf16.msra.mxu1 %v4909_v24 }
 0x19c   :  { %3568 = vmatpush1.bf16.msra.mxu0 %v4913_v25  ;;  %3212 = vmatprep.subr.bf16.mxu1 %v4918_v26 }
 0x19d   :  { %3569 = vmatprep.subr.bf16.mxu0 %v4921_v27 }
 0x19f   :  { %3213 = vmatpush1.bf16.msra.mxu1 %v4916_v28 }
 0x1a0   :  { %3570 = vmatpush1.bf16.msra.mxu0 %v4919_v29  ;;  %3214 = vmatprep.subr.bf16.mxu1 %v4924_v30 }
 0x1a3   :  { %3588 = vmatmul.mubr.bf16.vlgmr.msra.gmra.mrb[0].mxu0 %v4925_v31  ;;  %3215 = vmatpush1.bf16.msra.mxu1 %v4922_v32 }
 0x1a4   :  { %3597 = vmatprep.mubr.bf16.mxu0 %v4955_v15  ;;  %3216 = vmatprep.subr.bf16.mxu1 %v4928_v33 }
 0x1a7   :  { %3217 = vmatpush1.bf16.msra.mxu1 %v4926_v34 }
 0x1a8   :  { %3218 = vmatprep.subr.bf16.mxu1 %v4931_v35 }
 0x1ab   :  { %3598 = vmatmul.mubr.bf16.gmra.mrb[4].mxu0 %v4932_v36  ;;  %3219 = vmatpush1.bf16.msra.mxu1 %v4929_v37 }
 0x1ac   :  { %3220 = vmatprep.subr.bf16.mxu1 %v4935_v38 }
 0x1af   :  { %3221 = vmatpush1.bf16.msra.mxu1 %v4933_v39 }
 0x1b0   :  { %3222 = vmatprep.subr.bf16.mxu1 %v4938_v40 }
 0x1b3   :  { %3223 = vmatpush1.bf16.msra.mxu1 %v4936_v41 }
 0x1b4   :  { %3224 = vmatprep.subr.bf16.mxu1 %v4941_v42 }
 0x1b7   :  { %3225 = vmatpush1.bf16.msra.mxu1 %v4939_v43 }
 0x1b8   :  { %3226 = vmatprep.subr.bf16.mxu1 %v4946_v44 }
 0x1bb   :  { %3227 = vmatpush1.bf16.msra.mxu1 %v4944_v45 }
 0x1bc   :  { %3228 = vmatprep.subr.bf16.mxu1 %v4949_v46 }
 0x1bf   :  { %3229 = vmatpush1.bf16.msra.mxu1 %v4947_v47 }
 0x1c2   :  { %3231 = vmatmul.mubr.bf16.vlgmr.msra.gmra.mrb[0].mxu1 %v4950_v49 }
 0x1c3   :  { %3240 = vmatprep.mubr.bf16.mxu1 %v3679_v50 }
 0x1ca   :  { %3241 = vmatmul.mubr.bf16.gmra.mrb[4].mxu1 %v3678_v51 }
 0x276   :  { %v3589_v52 = vpop.f32.mrb[0].mxu0 }
 0x277   :  { %v3591_v53 = vpop.f32.mrb[1].mxu0 }
 0x278   :  { %v3593_v54 = vpop.f32.mrb[2].mxu0 }
 0x279   :  { %v3595_v55 = vpop.f32.mrb[3].mxu0 }
 0x27e   :  { %v3599_v56 = vpop.f32.mrb[4].mxu0 }
 0x27f   :  { %v3601_v57 = vpop.f32.mrb[5].mxu0 }
 0x280   :  { %v3603_v58 = vpop.f32.mrb[6].mxu0 }
 0x281   :  { %v3604_v59 = vpop.f32.mrb[7].mxu0 }
 0x295   :  { %v3232_v3 = vpop.f32.mrb[0].mxu1 }
 0x296   :  { %v4131_v4 = vadd.f32 %v3232_v3, %v494_v1  ;;  %v3234_v5 = vpop.f32.mrb[1].mxu1 }
 0x297   :  { %v4133_v6 = vadd.f32 %v3234_v5, %v498_v2  ;;  %v3236_v7 = vpop.f32.mrb[2].mxu1 }
 0x298   :  { %v4132_v8 = vadd.f32 %v4131_v4, %v3589_v52  ;;  %v4135_v9 = vadd.f32 %v3236_v7, %v494_v1  ;;  %v3238_v10 = vpop.f32.mrb[3].mxu1 }
 0x299   :  { %v4134_v11 = vadd.f32 %v4133_v6, %v3591_v53  ;;  %v4137_v12 = vadd.f32 %v3238_v10, %v498_v2 }
 0x29a   :  { %v3606_v13 = vmax.f32 %v4132_v8, 0.0  ;;  %v4136_v14 = vadd.f32 %v4135_v9, %v3593_v54 }
 0x29b   :  { %v3607_v15 = vmax.f32 %v4134_v11, 0.0  ;;  %v4138_v16 = vadd.f32 %v4137_v12, %v3595_v55 }
 0x29c   :  { %v3608_v17 = vmax.f32 %v4136_v14, 0.0 }
 0x29d   :  { %v4128_v18 = vpack.c.bf16 %v3607_v15, %v3606_v13  ;;  %v3609_v19 = vmax.f32 %v4138_v16, 0.0  ;;  %v3242_v20 = vpop.f32.mrb[4].mxu1 }
 0x29e   :  { %v4139_v21 = vadd.f32 %v3242_v20, %v494_v1  ;;  %v3244_v22 = vpop.f32.mrb[5].mxu1 }
 0x29f   :  { %3632 = vst [vmem:[%s6410_s3] sm:$0xff] %v4128_v18  ;;  %v4129_v23 = vpack.c.bf16 %v3609_v19, %v3608_v17  ;;  %v4141_v24 = vadd.f32 %v3244_v22, %v498_v2  ;;  %v3246_v25 = vpop.f32.mrb[6].mxu1 }
 0x2a0   :  { %v4140_v26 = vadd.f32 %v4139_v21, %v3599_v56  ;;  %v3247_v27 = vpop.f32.mrb[7].mxu1 }
 0x2a1   :  { %3633 = vst [vmem:[%s6410_s3 + $0x8] sm:$0xff] %v4129_v23  ;;  %v4142_v28 = vadd.f32 %v4141_v24, %v3601_v57 }
 0x2a2   :  { %v3610_v29 = vmax.f32 %v4140_v26, 0.0 }
 0x2a3   :  { %v3611_v30 = vmax.f32 %v4142_v28, 0.0 }
 0x2a5   :  { %v4130_v31 = vpack.c.bf16 %v3611_v30, %v3610_v29 }
 0x2a7   :  { %3634 = vst [vmem:[%s6410_s3 + $0x10] sm:$0x11] %v4130_v31 }

// kernel: new_alexnet_forward.9
= control target key start
LH: loop header
LB: loop body
LE: loop exit
PB: predicated region body
PF: predicated region fallthrough
CT: control target
= control target key end

     0   :  { %s4308_s1 = inlined_call_operand.vmem [shape: bf16[2304,256], index: 1, kind: input, shape index: {}]   ;;  %s4309_s0 = inlined_call_operand.vmem [shape: bf16[18,2304], index: 0, kind: input, shape index: {}]   ;;  %s4310_s2 = inlined_call_operand.vmem [shape: f32[1,256], index: 2, kind: input, shape index: {}]   ;;  %s4311_s3 = inlined_call_operand.vmem [shape: bf16[18,256], index: 3, kind: output, shape index: {}]  }
   0x1   :  { %v2848_v0 = vld [vmem:[%s4308_s1 + $0x4] ss:$8 sps:$4 sm:$0xff]   ;;  %v2852_v2 = vld [vmem:[%s4308_s1] ss:$8 sps:$4 sm:$0xff]   ;;  %v2854_v4 = vld [vmem:[%s4308_s1 + $0x14] ss:$8 sps:$4 sm:$0xff]  }
   0x2   :  { %v2850_v1 = vld [vmem:[%s4308_s1 + $0x404] ss:$8 sps:$4 sm:$0xff]   ;;  %1934 = vmatprep.subr.bf16.mxu1 %v2848_v0  ;;  %v2853_v3 = vld [vmem:[%s4308_s1 + $0x400] ss:$8 sps:$4 sm:$0xff]   ;;  %v2856_v5 = vld [vmem:[%s4308_s1 + $0x414] ss:$8 sps:$4 sm:$0xff]  }
   0x3   :  { %2138 = vmatprep.subr.bf16.mxu0 %v2850_v1  ;;  %1935 = vmatpush1.bf16.msra.mxu1 %v2852_v2  ;;  %v2858_v6 = vld [vmem:[%s4308_s1 + $0x10] ss:$8 sps:$4 sm:$0xff]   ;;  %v2860_v8 = vld [vmem:[%s4308_s1 + $0x24] ss:$8 sps:$4 sm:$0xff]   ;;  %v2864_v10 = vld [vmem:[%s4308_s1 + $0x20] ss:$8 sps:$4 sm:$0xff]  }
   0x4   :  { %2139 = vmatpush1.bf16.msra.mxu0 %v2853_v3  ;;  %1936 = vmatprep.subr.bf16.mxu1 %v2854_v4  ;;  %v2859_v7 = vld [vmem:[%s4308_s1 + $0x410] ss:$8 sps:$4 sm:$0xff]   ;;  %v2862_v9 = vld [vmem:[%s4308_s1 + $0x424] ss:$8 sps:$4 sm:$0xff]   ;;  %v2865_v11 = vld [vmem:[%s4308_s1 + $0x420] ss:$8 sps:$4 sm:$0xff]  }
   0x5   :  { %2140 = vmatprep.subr.bf16.mxu0 %v2856_v5  ;;  %v2866_v12 = vld [vmem:[%s4308_s1 + $0x34] ss:$8 sps:$4 sm:$0xff]   ;;  %v2870_v14 = vld [vmem:[%s4308_s1 + $0x30] ss:$8 sps:$4 sm:$0xff]   ;;  %v2872_v16 = vld [vmem:[%s4308_s1 + $0x44] ss:$8 sps:$4 sm:$0xff]  }
   0x6   :  { %v2868_v13 = vld [vmem:[%s4308_s1 + $0x434] ss:$8 sps:$4 sm:$0xff]   ;;  %v2871_v15 = vld [vmem:[%s4308_s1 + $0x430] ss:$8 sps:$4 sm:$0xff]   ;;  %v2874_v17 = vld [vmem:[%s4308_s1 + $0x444] ss:$8 sps:$4 sm:$0xff]  }
   0x7   :  { %1937 = vmatpush1.bf16.msra.mxu1 %v2858_v6  ;;  %v2876_v18 = vld [vmem:[%s4308_s1 + $0x40] ss:$8 sps:$4 sm:$0xff]   ;;  %v2878_v20 = vld [vmem:[%s4308_s1 + $0x54] ss:$8 sps:$4 sm:$0xff]   ;;  %v2882_v22 = vld [vmem:[%s4308_s1 + $0x50] ss:$8 sps:$4 sm:$0xff]  }
   0x8   :  { %2141 = vmatpush1.bf16.msra.mxu0 %v2859_v7  ;;  %1938 = vmatprep.subr.bf16.mxu1 %v2860_v8  ;;  %v2877_v19 = vld [vmem:[%s4308_s1 + $0x440] ss:$8 sps:$4 sm:$0xff]   ;;  %v2880_v21 = vld [vmem:[%s4308_s1 + $0x454] ss:$8 sps:$4 sm:$0xff]   ;;  %v2883_v23 = vld [vmem:[%s4308_s1 + $0x450] ss:$8 sps:$4 sm:$0xff]  }
   0x9   :  { %2142 = vmatprep.subr.bf16.mxu0 %v2862_v9  ;;  %v2884_v24 = vld [vmem:[%s4308_s1 + $0x64] ss:$8 sps:$4 sm:$0xff]   ;;  %v2888_v26 = vld [vmem:[%s4308_s1 + $0x60] ss:$8 sps:$4 sm:$0xff]   ;;  %v2890_v28 = vld [vmem:[%s4308_s1 + $0x74] ss:$8 sps:$4 sm:$0xff]  }
   0xa   :  { %v2886_v25 = vld [vmem:[%s4308_s1 + $0x464] ss:$8 sps:$4 sm:$0xff]   ;;  %v2889_v27 = vld [vmem:[%s4308_s1 + $0x460] ss:$8 sps:$4 sm:$0xff]   ;;  %v2892_v29 = vld [vmem:[%s4308_s1 + $0x474] ss:$8 sps:$4 sm:$0xff]  }
   0xb   :  { %1939 = vmatpush1.bf16.msra.mxu1 %v2864_v10  ;;  %v2894_v30 = vld [vmem:[%s4308_s1 + $0x70] ss:$8 sps:$4 sm:$0xff]   ;;  %v2896_v32 = vld [vmem:[%s4308_s1 + $0x84] ss:$8 sps:$4 sm:$0xff]   ;;  %v2900_v34 = vld [vmem:[%s4308_s1 + $0x80] ss:$8 sps:$4 sm:$0xff]  }
   0xc   :  { %2143 = vmatpush1.bf16.msra.mxu0 %v2865_v11  ;;  %1940 = vmatprep.subr.bf16.mxu1 %v2866_v12  ;;  %v2895_v31 = vld [vmem:[%s4308_s1 + $0x470] ss:$8 sps:$4 sm:$0xff]   ;;  %v2898_v33 = vld [vmem:[%s4308_s1 + $0x484] ss:$8 sps:$4 sm:$0xff]   ;;  %v2901_v35 = vld [vmem:[%s4308_s1 + $0x480] ss:$8 sps:$4 sm:$0xff]  }
   0xd   :  { %2144 = vmatprep.subr.bf16.mxu0 %v2868_v13  ;;  %v2902_v36 = vld [vmem:[%s4308_s1 + $0x94] ss:$8 sps:$4 sm:$0xff]   ;;  %v2906_v38 = vld [vmem:[%s4308_s1 + $0x90] ss:$8 sps:$4 sm:$0xff]   ;;  %v2908_v40 = vld [vmem:[%s4308_s1 + $0xa4] ss:$8 sps:$4 sm:$0xff]  }
   0xe   :  { %v2904_v37 = vld [vmem:[%s4308_s1 + $0x494] ss:$8 sps:$4 sm:$0xff]   ;;  %v2907_v39 = vld [vmem:[%s4308_s1 + $0x490] ss:$8 sps:$4 sm:$0xff]   ;;  %v2910_v41 = vld [vmem:[%s4308_s1 + $0x4a4] ss:$8 sps:$4 sm:$0xff]  }
   0xf   :  { %1941 = vmatpush1.bf16.msra.mxu1 %v2870_v14  ;;  %v2912_v42 = vld [vmem:[%s4308_s1 + $0xa0] ss:$8 sps:$4 sm:$0xff]   ;;  %v2914_v44 = vld [vmem:[%s4308_s1 + $0xb4] ss:$8 sps:$4 sm:$0xff]   ;;  %v2918_v46 = vld [vmem:[%s4308_s1 + $0xb0] ss:$8 sps:$4 sm:$0xff]  }
  0x10   :  { %2145 = vmatpush1.bf16.msra.mxu0 %v2871_v15  ;;  %1942 = vmatprep.subr.bf16.mxu1 %v2872_v16  ;;  %v2913_v43 = vld [vmem:[%s4308_s1 + $0x4a0] ss:$8 sps:$4 sm:$0xff]   ;;  %v2916_v45 = vld [vmem:[%s4308_s1 + $0x4b4] ss:$8 sps:$4 sm:$0xff]   ;;  %v2919_v47 = vld [vmem:[%s4308_s1 + $0x4b0] ss:$8 sps:$4 sm:$0xff]  }
  0x11   :  { %2146 = vmatprep.subr.bf16.mxu0 %v2874_v17  ;;  %v2946_v48 = vld [vmem:[%s4309_s0 + $0x4] ss:$72 sps:$4 sm:$0xff]   ;;  %v2924_v52 = vld [vmem:[%s4308_s1 + $0xc0] ss:$8 sps:$4 sm:$0xff]   ;;  %v2926_v54 = vld [vmem:[%s4308_s1 + $0xd4] ss:$8 sps:$4 sm:$0xff]  }
  0x12   :  { %v2920_v49 = vld [vmem:[%s4308_s1 + $0xc4] ss:$8 sps:$4 sm:$0xff]   ;;  %1966 = vmatprep.mubr.bf16.mxu1 %v2946_v48  ;;  %v2925_v53 = vld [vmem:[%s4308_s1 + $0x4c0] ss:$8 sps:$4 sm:$0xff]   ;;  %v2928_v55 = vld [vmem:[%s4308_s1 + $0x4d4] ss:$8 sps:$4 sm:$0xff]  }
  0x13   :  { %1943 = vmatpush1.bf16.msra.mxu1 %v2876_v18  ;;  %v2922_v50 = vld [vmem:[%s4308_s1 + $0x4c4] ss:$8 sps:$4 sm:$0xff]   ;;  %v2930_v56 = vld [vmem:[%s4308_s1 + $0xd0] ss:$8 sps:$4 sm:$0xff]   ;;  %v2936_v60 = vld [vmem:[%s4308_s1 + $0xe0] ss:$8 sps:$4 sm:$0xff]  }
  0x14   :  { %2147 = vmatpush1.bf16.msra.mxu0 %v2877_v19  ;;  %1944 = vmatprep.subr.bf16.mxu1 %v2878_v20  ;;  %v2952_v51 = vld [vmem:[%s4309_s0 + $0x24] ss:$72 sps:$4 sm:$0xff]   ;;  %v2931_v57 = vld [vmem:[%s4308_s1 + $0x4d0] ss:$8 sps:$4 sm:$0xff]   ;;  %v2937_v61 = vld [vmem:[%s4308_s1 + $0x4e0] ss:$8 sps:$4 sm:$0xff]  }
  0x15   :  { %2148 = vmatprep.subr.bf16.mxu0 %v2880_v21  ;;  %2170 = vmatprep.mubr.bf16.mxu0 %v2952_v51  ;;  %v2932_v58 = vld [vmem:[%s4308_s1 + $0xe4] ss:$8 sps:$4 sm:$0xff]   ;;  %v2938_v62 = vld [vmem:[%s4308_s1 + $0xf4] ss:$8 sps:$4 sm:$0xff]   ;;  %v2942_v0 = vld [vmem:[%s4308_s1 + $0xf0] ss:$8 sps:$4 sm:$0xff]  }
  0x16   :  { %v2934_v59 = vld [vmem:[%s4308_s1 + $0x4e4] ss:$8 sps:$4 sm:$0xff]   ;;  %v2940_v63 = vld [vmem:[%s4308_s1 + $0x4f4] ss:$8 sps:$4 sm:$0xff]   ;;  %v2943_v1 = vld [vmem:[%s4308_s1 + $0x4f0] ss:$8 sps:$4 sm:$0xff]  }
  0x17   :  { %1945 = vmatpush1.bf16.msra.mxu1 %v2882_v22  ;;  %v2949_v2 = vld [vmem:[%s4308_s1 + $0x104] ss:$8 sps:$4 sm:$0xff]   ;;  %v2944_v4 = vld [vmem:[%s4309_s0] ss:$72 sps:$4 sm:$0xff]   ;;  %v2958_v8 = vld [vmem:[%s4308_s1 + $0x114] ss:$8 sps:$4 sm:$0xff]  }
  0x18   :  { %2149 = vmatpush1.bf16.msra.mxu0 %v2883_v23  ;;  %1946 = vmatprep.subr.bf16.mxu1 %v2884_v24  ;;  %v2955_v3 = vld [vmem:[%s4308_s1 + $0x504] ss:$8 sps:$4 sm:$0xff]   ;;  %v2947_v5 = vld [vmem:[%s4308_s1 + $0x100] ss:$8 sps:$4 sm:$0xff]   ;;  %v2961_v9 = vld [vmem:[%s4308_s1 + $0x514] ss:$8 sps:$4 sm:$0xff]  }
  0x19   :  { %2150 = vmatprep.subr.bf16.mxu0 %v2886_v25  ;;  %v2950_v6 = vld [vmem:[%s4309_s0 + $0x20] ss:$72 sps:$4 sm:$0xff]   ;;  %v2956_v10 = vld [vmem:[%s4308_s1 + $0x110] ss:$8 sps:$4 sm:$0xff]   ;;  %v2964_v12 = vld [vmem:[%s4308_s1 + $0x124] ss:$8 sps:$4 sm:$0xff]  }
  0x1a   :  { %v2953_v7 = vld [vmem:[%s4308_s1 + $0x500] ss:$8 sps:$4 sm:$0xff]   ;;  %v2959_v11 = vld [vmem:[%s4308_s1 + $0x510] ss:$8 sps:$4 sm:$0xff]   ;;  %v2967_v13 = vld [vmem:[%s4308_s1 + $0x524] ss:$8 sps:$4 sm:$0xff]  }
  0x1b   :  { %1947 = vmatpush1.bf16.msra.mxu1 %v2888_v26  ;;  %v2962_v14 = vld [vmem:[%s4308_s1 + $0x120] ss:$8 sps:$4 sm:$0xff]   ;;  %v2970_v16 = vld [vmem:[%s4308_s1 + $0x134] ss:$8 sps:$4 sm:$0xff]   ;;  %v2968_v18 = vld [vmem:[%s4308_s1 + $0x130] ss:$8 sps:$4 sm:$0xff]  }
  0x1c   :  { %2151 = vmatpush1.bf16.msra.mxu0 %v2889_v27  ;;  %1948 = vmatprep.subr.bf16.mxu1 %v2890_v28  ;;  %v2965_v15 = vld [vmem:[%s4308_s1 + $0x520] ss:$8 sps:$4 sm:$0xff]   ;;  %v2973_v17 = vld [vmem:[%s4308_s1 + $0x534] ss:$8 sps:$4 sm:$0xff]   ;;  %v2971_v19 = vld [vmem:[%s4308_s1 + $0x530] ss:$8 sps:$4 sm:$0xff]  }
  0x1d   :  { %2152 = vmatprep.subr.bf16.mxu0 %v2892_v29  ;;  %v2976_v20 = vld [vmem:[%s4308_s1 + $0x144] ss:$8 sps:$4 sm:$0xff]   ;;  %v2974_v22 = vld [vmem:[%s4308_s1 + $0x140] ss:$8 sps:$4 sm:$0xff]   ;;  %v2982_v24 = vld [vmem:[%s4308_s1 + $0x154] ss:$8 sps:$4 sm:$0xff]  }
  0x1e   :  { %v2979_v21 = vld [vmem:[%s4308_s1 + $0x544] ss:$8 sps:$4 sm:$0xff]   ;;  %v2977_v23 = vld [vmem:[%s4308_s1 + $0x540] ss:$8 sps:$4 sm:$0xff]   ;;  %v2985_v25 = vld [vmem:[%s4308_s1 + $0x554] ss:$8 sps:$4 sm:$0xff]  }
  0x1f   :  { %1949 = vmatpush1.bf16.msra.mxu1 %v2894_v30  ;;  %v32_v26 = vld [vmem:[%s4309_s0 + $0x90] sm:$0x11] }
  0x20   :  { %2153 = vmatpush1.bf16.msra.mxu0 %v2895_v31  ;;  %1950 = vmatprep.subr.bf16.mxu1 %v2896_v32  ;;  %v2980_v27 = vld [vmem:[%s4308_s1 + $0x150] ss:$8 sps:$4 sm:$0xff]   ;;  %v2439_v28 = vcombine.high %v32_v26, %v32_v26  ;;  %v2438_v29 = vcombine.low %v32_v26, %v32_v26  ;;  %v2988_v32 = vld [vmem:[%s4308_s1 + $0x164] ss:$8 sps:$4 sm:$0xff]   ;;  %v3006_v48 = vld [vmem:[%s4308_s1 + $0x194] ss:$8 sps:$4 sm:$0xff]  }
  0x21   :  { %2154 = vmatprep.subr.bf16.mxu0 %v2898_v33  ;;  %v2983_v30 = vld [vmem:[%s4308_s1 + $0x550] ss:$8 sps:$4 sm:$0xff]   ;;  %v2991_v33 = vld [vmem:[%s4308_s1 + $0x564] ss:$8 sps:$4 sm:$0xff]  }
  0x22   :  { %v36_v31 = vld [vmem:[%s4309_s0 + $0xb0] sm:$0x11]  ;;  %v3070_v26 = vld [vmem:[%s4308_s1 + $0x224] ss:$8 sps:$4 sm:$0xff]  }
  0x23   :  { %1951 = vmatpush1.bf16.msra.mxu1 %v2900_v34  ;;  %v2447_v34 = vcombine.high %v36_v31, %v36_v31  ;;  %v3007_v51 = vld [vmem:[%s4308_s1 + $0x590] ss:$8 sps:$4 sm:$0xff]  }
  0x24   :  { %2155 = vmatpush1.bf16.msra.mxu0 %v2901_v35  ;;  %1952 = vmatprep.subr.bf16.mxu1 %v2902_v36  ;;  %v2446_v35 = vcombine.low %v36_v31, %v36_v31  ;;  %v2986_v36 = vld [vmem:[%s4308_s1 + $0x160] ss:$8 sps:$4 sm:$0xff]  }
  0x25   :  { %2156 = vmatprep.subr.bf16.mxu0 %v2904_v37  ;;  %v2989_v37 = vld [vmem:[%s4308_s1 + $0x560] ss:$8 sps:$4 sm:$0xff]  }
  0x27   :  { %1953 = vmatpush1.bf16.msra.mxu1 %v2906_v38  ;;  %v2994_v38 = vld [vmem:[%s4308_s1 + $0x174] ss:$8 sps:$4 sm:$0xff]  }
  0x28   :  { %2157 = vmatpush1.bf16.msra.mxu0 %v2907_v39  ;;  %1954 = vmatprep.subr.bf16.mxu1 %v2908_v40  ;;  %v2997_v39 = vld [vmem:[%s4308_s1 + $0x574] ss:$8 sps:$4 sm:$0xff]  }
  0x29   :  { %2158 = vmatprep.subr.bf16.mxu0 %v2910_v41  ;;  %v3052_v40 = vld [vmem:[%s4309_s0 + $0xc] ss:$72 sps:$4 sm:$0xff]   ;;  %v2992_v41 = vld [vmem:[%s4308_s1 + $0x170] ss:$8 sps:$4 sm:$0xff]  }
  0x2b   :  { %1955 = vmatpush1.bf16.msra.mxu1 %v2912_v42  ;;  %v2995_v42 = vld [vmem:[%s4308_s1 + $0x570] ss:$8 sps:$4 sm:$0xff]  }
  0x2c   :  { %2159 = vmatpush1.bf16.msra.mxu0 %v2913_v43  ;;  %1956 = vmatprep.subr.bf16.mxu1 %v2914_v44  ;;  %v3058_v43 = vld [vmem:[%s4309_s0 + $0x2c] ss:$72 sps:$4 sm:$0xff]  }
  0x2d   :  { %2160 = vmatprep.subr.bf16.mxu0 %v2916_v45  ;;  %v3000_v44 = vld [vmem:[%s4308_s1 + $0x184] ss:$8 sps:$4 sm:$0xff]  }
  0x2e   :  { %v3003_v45 = vld [vmem:[%s4308_s1 + $0x584] ss:$8 sps:$4 sm:$0xff]  }
  0x2f   :  { %1957 = vmatpush1.bf16.msra.mxu1 %v2918_v46  ;;  %v2998_v46 = vld [vmem:[%s4308_s1 + $0x180] ss:$8 sps:$4 sm:$0xff]  }
  0x30   :  { %2161 = vmatpush1.bf16.msra.mxu0 %v2919_v47  ;;  %1958 = vmatprep.subr.bf16.mxu1 %v2920_v49  ;;  %v3001_v47 = vld [vmem:[%s4308_s1 + $0x580] ss:$8 sps:$4 sm:$0xff]   ;;  %v3009_v49 = vld [vmem:[%s4308_s1 + $0x594] ss:$8 sps:$4 sm:$0xff]  }
  0x31   :  { %2162 = vmatprep.subr.bf16.mxu0 %v2922_v50  ;;  %v3004_v50 = vld [vmem:[%s4308_s1 + $0x190] ss:$8 sps:$4 sm:$0xff]  }
  0x33   :  { %1959 = vmatpush1.bf16.msra.mxu1 %v2924_v52  ;;  %v3012_v52 = vld [vmem:[%s4308_s1 + $0x1a4] ss:$8 sps:$4 sm:$0xff]  }
  0x34   :  { %2163 = vmatpush1.bf16.msra.mxu0 %v2925_v53  ;;  %1960 = vmatprep.subr.bf16.mxu1 %v2926_v54  ;;  %v3015_v53 = vld [vmem:[%s4308_s1 + $0x5a4] ss:$8 sps:$4 sm:$0xff]   ;;  %v3010_v54 = vld [vmem:[%s4308_s1 + $0x1a0] ss:$8 sps:$4 sm:$0xff]  }
  0x35   :  { %2164 = vmatprep.subr.bf16.mxu0 %v2928_v55  ;;  %v3013_v55 = vld [vmem:[%s4308_s1 + $0x5a0] ss:$8 sps:$4 sm:$0xff]  }
  0x37   :  { %1961 = vmatpush1.bf16.msra.mxu1 %v2930_v56  ;;  %v3018_v56 = vld [vmem:[%s4308_s1 + $0x1b4] ss:$8 sps:$4 sm:$0xff]  }
  0x38   :  { %2165 = vmatpush1.bf16.msra.mxu0 %v2931_v57  ;;  %1962 = vmatprep.subr.bf16.mxu1 %v2932_v58  ;;  %v3021_v57 = vld [vmem:[%s4308_s1 + $0x5b4] ss:$8 sps:$4 sm:$0xff]   ;;  %v3016_v58 = vld [vmem:[%s4308_s1 + $0x1b0] ss:$8 sps:$4 sm:$0xff]  }
  0x39   :  { %2166 = vmatprep.subr.bf16.mxu0 %v2934_v59  ;;  %v3019_v59 = vld [vmem:[%s4308_s1 + $0x5b0] ss:$8 sps:$4 sm:$0xff]  }
  0x3b   :  { %1963 = vmatpush1.bf16.msra.mxu1 %v2936_v60  ;;  %v3024_v60 = vld [vmem:[%s4308_s1 + $0x1c4] ss:$8 sps:$4 sm:$0xff]  }
  0x3c   :  { %2167 = vmatpush1.bf16.msra.mxu0 %v2937_v61  ;;  %1964 = vmatprep.subr.bf16.mxu1 %v2938_v62  ;;  %v3027_v61 = vld [vmem:[%s4308_s1 + $0x5c4] ss:$8 sps:$4 sm:$0xff]   ;;  %v3022_v62 = vld [vmem:[%s4308_s1 + $0x1c0] ss:$8 sps:$4 sm:$0xff]  }
  0x3d   :  { %2168 = vmatprep.subr.bf16.mxu0 %v2940_v63  ;;  %v3025_v63 = vld [vmem:[%s4308_s1 + $0x5c0] ss:$8 sps:$4 sm:$0xff]  }
  0x3f   :  { %1965 = vmatpush1.bf16.msra.mxu1 %v2942_v0  ;;  %v3030_v0 = vld [vmem:[%s4308_s1 + $0x1d4] ss:$8 sps:$4 sm:$0xff]  }
  0x40   :  { %2169 = vmatpush1.bf16.msra.mxu0 %v2943_v1  ;;  %1985 = vmatprep.subr.bf16.mxu1 %v2949_v2  ;;  %v3033_v1 = vld [vmem:[%s4308_s1 + $0x5d4] ss:$8 sps:$4 sm:$0xff]   ;;  %v3028_v2 = vld [vmem:[%s4308_s1 + $0x1d0] ss:$8 sps:$4 sm:$0xff]  }
  0x41   :  { %2189 = vmatprep.subr.bf16.mxu0 %v2955_v3  ;;  %v3031_v3 = vld [vmem:[%s4308_s1 + $0x5d0] ss:$8 sps:$4 sm:$0xff]  }
  0x42   :  { %1967 = vmatmul.mubr.bf16.vlgmr.msra.gmra.mrb[0].mxu1 %v2944_v4  ;;  %v3037_v4 = vld [vmem:[%s4308_s1 + $0x1e4] ss:$8 sps:$4 sm:$0xff]  }
  0x43   :  { %2171 = vmatmul.mubr.bf16.vlgmr.msra.gmra.mrb[0].mxu0 %v2950_v6  ;;  %1986 = vmatpush1.bf16.msra.mxu1 %v2947_v5  ;;  %v3041_v5 = vld [vmem:[%s4308_s1 + $0x5e4] ss:$8 sps:$4 sm:$0xff]   ;;  %v3035_v6 = vld [vmem:[%s4308_s1 + $0x1e0] ss:$8 sps:$4 sm:$0xff]  }
  0x44   :  { %2190 = vmatpush1.bf16.msra.mxu0 %v2953_v7  ;;  %1987 = vmatprep.subr.bf16.mxu1 %v2958_v8  ;;  %v3039_v7 = vld [vmem:[%s4308_s1 + $0x5e0] ss:$8 sps:$4 sm:$0xff]   ;;  %v3046_v8 = vld [vmem:[%s4308_s1 + $0x1f4] ss:$8 sps:$4 sm:$0xff]  }
  0x45   :  { %2191 = vmatprep.subr.bf16.mxu0 %v2961_v9  ;;  %1976 = vmatprep.mubr.bf16.mxu1 %v2439_v28  ;;  %v3049_v9 = vld [vmem:[%s4308_s1 + $0x5f4] ss:$8 sps:$4 sm:$0xff]   ;;  %v3068_v28 = vld [vmem:[%s4308_s1 + $0x220] ss:$8 sps:$4 sm:$0xff]  }
  0x46   :  { %2180 = vmatprep.mubr.bf16.mxu0 %v2447_v34  ;;  %v3158_v34 = vld [vmem:[%s4309_s0 + $0x14] ss:$72 sps:$4 sm:$0xff]  }
  0x47   :  { %1988 = vmatpush1.bf16.msra.mxu1 %v2956_v10  ;;  %v3044_v10 = vld [vmem:[%s4308_s1 + $0x1f0] ss:$8 sps:$4 sm:$0xff]  }
  0x48   :  { %2192 = vmatpush1.bf16.msra.mxu0 %v2959_v11  ;;  %1989 = vmatprep.subr.bf16.mxu1 %v2964_v12  ;;  %v3047_v11 = vld [vmem:[%s4308_s1 + $0x5f0] ss:$8 sps:$4 sm:$0xff]  }
  0x49   :  { %2193 = vmatprep.subr.bf16.mxu0 %v2967_v13  ;;  %v3050_v12 = vld [vmem:[%s4309_s0 + $0x8] ss:$72 sps:$4 sm:$0xff]   ;;  %v3055_v13 = vld [vmem:[%s4308_s1 + $0x204] ss:$8 sps:$4 sm:$0xff]  }
  0x4a   :  { %1977 = vmatmul.mubr.bf16.gmra.mrb[4].mxu1 %v2438_v29  ;;  %v3071_v29 = vld [vmem:[%s4308_s1 + $0x620] ss:$8 sps:$4 sm:$0xff]  }
  0x4b   :  { %1990 = vmatpush1.bf16.msra.mxu1 %v2962_v14  ;;  %2181 = vmatmul.mubr.bf16.gmra.mrb[4].mxu0 %v2446_v35  ;;  %v3061_v14 = vld [vmem:[%s4308_s1 + $0x604] ss:$8 sps:$4 sm:$0xff]   ;;  %v3164_v35 = vld [vmem:[%s4309_s0 + $0x34] ss:$72 sps:$4 sm:$0xff]  }
  0x4c   :  { %2194 = vmatpush1.bf16.msra.mxu0 %v2965_v15  ;;  %1991 = vmatprep.subr.bf16.mxu1 %v2970_v16  ;;  %v3053_v15 = vld [vmem:[%s4308_s1 + $0x200] ss:$8 sps:$4 sm:$0xff]  }
  0x4d   :  { %2195 = vmatprep.subr.bf16.mxu0 %v2973_v17  ;;  %2017 = vmatprep.mubr.bf16.mxu1 %v3052_v40  ;;  %v3056_v16 = vld [vmem:[%s4309_s0 + $0x28] ss:$72 sps:$4 sm:$0xff]  }
  0x4e   :  { %2221 = vmatprep.mubr.bf16.mxu0 %v3058_v43  ;;  %v3059_v17 = vld [vmem:[%s4308_s1 + $0x600] ss:$8 sps:$4 sm:$0xff]   ;;  %v3091_v43 = vld [vmem:[%s4308_s1 + $0x654] ss:$8 sps:$4 sm:$0xff]  }
  0x4f   :  { %1992 = vmatpush1.bf16.msra.mxu1 %v2968_v18  ;;  %v3064_v18 = vld [vmem:[%s4308_s1 + $0x214] ss:$8 sps:$4 sm:$0xff]   ;;  %v3080_v40 = vld [vmem:[%s4308_s1 + $0x240] ss:$8 sps:$4 sm:$0xff]  }
  0x50   :  { %2196 = vmatpush1.bf16.msra.mxu0 %v2971_v19  ;;  %1993 = vmatprep.subr.bf16.mxu1 %v2976_v20  ;;  %v33_v19 = vld [vmem:[%s4309_s0 + $0x98] sm:$0x11] }
  0x51   :  { %2197 = vmatprep.subr.bf16.mxu0 %v2979_v21  ;;  %v3067_v20 = vld [vmem:[%s4308_s1 + $0x614] ss:$8 sps:$4 sm:$0xff]   ;;  %v2441_v21 = vcombine.high %v33_v19, %v33_v19 }
  0x53   :  { %1994 = vmatpush1.bf16.msra.mxu1 %v2974_v22  ;;  %v37_v22 = vld [vmem:[%s4309_s0 + $0xb8] sm:$0x11] }
  0x54   :  { %2198 = vmatpush1.bf16.msra.mxu0 %v2977_v23  ;;  %1995 = vmatprep.subr.bf16.mxu1 %v2982_v24  ;;  %v3062_v23 = vld [vmem:[%s4308_s1 + $0x210] ss:$8 sps:$4 sm:$0xff]   ;;  %v2448_v31 = vcombine.low %v37_v22, %v37_v22 }
  0x55   :  { %2199 = vmatprep.subr.bf16.mxu0 %v2985_v25  ;;  %v3065_v24 = vld [vmem:[%s4308_s1 + $0x610] ss:$8 sps:$4 sm:$0xff]   ;;  %v2449_v25 = vcombine.high %v37_v22, %v37_v22  ;;  %v3161_v22 = vld [vmem:[%s4308_s1 + $0x304] ss:$8 sps:$4 sm:$0xff]  }
  0x57   :  { %1996 = vmatpush1.bf16.msra.mxu1 %v2980_v27  ;;  %v3073_v27 = vld [vmem:[%s4308_s1 + $0x624] ss:$8 sps:$4 sm:$0xff]  }
  0x58   :  { %2200 = vmatpush1.bf16.msra.mxu0 %v2983_v30  ;;  %1997 = vmatprep.subr.bf16.mxu1 %v2988_v32  ;;  %v2440_v30 = vcombine.low %v33_v19, %v33_v19  ;;  %v3076_v32 = vld [vmem:[%s4308_s1 + $0x234] ss:$8 sps:$4 sm:$0xff]  }
  0x59   :  { %2201 = vmatprep.subr.bf16.mxu0 %v2991_v33  ;;  %v3079_v33 = vld [vmem:[%s4308_s1 + $0x634] ss:$8 sps:$4 sm:$0xff]  }
  0x5a   :  { %v3155_v19 = vld [vmem:[%s4308_s1 + $0x6f4] ss:$8 sps:$4 sm:$0xff]  }
  0x5b   :  { %1998 = vmatpush1.bf16.msra.mxu1 %v2986_v36  ;;  %v3074_v36 = vld [vmem:[%s4308_s1 + $0x230] ss:$8 sps:$4 sm:$0xff]  }
  0x5c   :  { %2202 = vmatpush1.bf16.msra.mxu0 %v2989_v37  ;;  %1999 = vmatprep.subr.bf16.mxu1 %v2994_v38  ;;  %v3077_v37 = vld [vmem:[%s4308_s1 + $0x630] ss:$8 sps:$4 sm:$0xff]   ;;  %v3082_v38 = vld [vmem:[%s4308_s1 + $0x244] ss:$8 sps:$4 sm:$0xff]  }
  0x5d   :  { %2203 = vmatprep.subr.bf16.mxu0 %v2997_v39  ;;  %v3085_v39 = vld [vmem:[%s4308_s1 + $0x644] ss:$8 sps:$4 sm:$0xff]  }
  0x5f   :  { %2000 = vmatpush1.bf16.msra.mxu1 %v2992_v41  ;;  %v3083_v41 = vld [vmem:[%s4308_s1 + $0x640] ss:$8 sps:$4 sm:$0xff]  }
  0x60   :  { %2204 = vmatpush1.bf16.msra.mxu0 %v2995_v42  ;;  %2001 = vmatprep.subr.bf16.mxu1 %v3000_v44  ;;  %v3088_v42 = vld [vmem:[%s4308_s1 + $0x254] ss:$8 sps:$4 sm:$0xff]   ;;  %v3086_v44 = vld [vmem:[%s4308_s1 + $0x250] ss:$8 sps:$4 sm:$0xff]  }
  0x61   :  { %2205 = vmatprep.subr.bf16.mxu0 %v3003_v45  ;;  %v3089_v45 = vld [vmem:[%s4308_s1 + $0x650] ss:$8 sps:$4 sm:$0xff]  }
  0x63   :  { %2002 = vmatpush1.bf16.msra.mxu1 %v2998_v46  ;;  %v3094_v46 = vld [vmem:[%s4308_s1 + $0x264] ss:$8 sps:$4 sm:$0xff]  }
  0x64   :  { %2206 = vmatpush1.bf16.msra.mxu0 %v3001_v47  ;;  %2003 = vmatprep.subr.bf16.mxu1 %v3006_v48  ;;  %v3097_v47 = vld [vmem:[%s4308_s1 + $0x664] ss:$8 sps:$4 sm:$0xff]   ;;  %v3092_v48 = vld [vmem:[%s4308_s1 + $0x260] ss:$8 sps:$4 sm:$0xff]  }
  0x65   :  { %2207 = vmatprep.subr.bf16.mxu0 %v3009_v49  ;;  %v3095_v49 = vld [vmem:[%s4308_s1 + $0x660] ss:$8 sps:$4 sm:$0xff]  }
  0x67   :  { %2004 = vmatpush1.bf16.msra.mxu1 %v3004_v50  ;;  %v3100_v50 = vld [vmem:[%s4308_s1 + $0x274] ss:$8 sps:$4 sm:$0xff]  }
  0x68   :  { %2208 = vmatpush1.bf16.msra.mxu0 %v3007_v51  ;;  %2005 = vmatprep.subr.bf16.mxu1 %v3012_v52  ;;  %v3103_v51 = vld [vmem:[%s4308_s1 + $0x674] ss:$8 sps:$4 sm:$0xff]   ;;  %v3098_v52 = vld [vmem:[%s4308_s1 + $0x270] ss:$8 sps:$4 sm:$0xff]  }
  0x69   :  { %2209 = vmatprep.subr.bf16.mxu0 %v3015_v53  ;;  %v3101_v53 = vld [vmem:[%s4308_s1 + $0x670] ss:$8 sps:$4 sm:$0xff]  }
  0x6b   :  { %2006 = vmatpush1.bf16.msra.mxu1 %v3010_v54  ;;  %v3106_v54 = vld [vmem:[%s4308_s1 + $0x284] ss:$8 sps:$4 sm:$0xff]  }
  0x6c   :  { %2210 = vmatpush1.bf16.msra.mxu0 %v3013_v55  ;;  %2007 = vmatprep.subr.bf16.mxu1 %v3018_v56  ;;  %v3109_v55 = vld [vmem:[%s4308_s1 + $0x684] ss:$8 sps:$4 sm:$0xff]   ;;  %v3104_v56 = vld [vmem:[%s4308_s1 + $0x280] ss:$8 sps:$4 sm:$0xff]  }
  0x6d   :  { %2211 = vmatprep.subr.bf16.mxu0 %v3021_v57  ;;  %v3107_v57 = vld [vmem:[%s4308_s1 + $0x680] ss:$8 sps:$4 sm:$0xff]  }
  0x6f   :  { %2008 = vmatpush1.bf16.msra.mxu1 %v3016_v58  ;;  %v3112_v58 = vld [vmem:[%s4308_s1 + $0x294] ss:$8 sps:$4 sm:$0xff]  }
  0x70   :  { %2212 = vmatpush1.bf16.msra.mxu0 %v3019_v59  ;;  %2009 = vmatprep.subr.bf16.mxu1 %v3024_v60  ;;  %v3115_v59 = vld [vmem:[%s4308_s1 + $0x694] ss:$8 sps:$4 sm:$0xff]   ;;  %v3110_v60 = vld [vmem:[%s4308_s1 + $0x290] ss:$8 sps:$4 sm:$0xff]  }
  0x71   :  { %2213 = vmatprep.subr.bf16.mxu0 %v3027_v61  ;;  %v3113_v61 = vld [vmem:[%s4308_s1 + $0x690] ss:$8 sps:$4 sm:$0xff]  }
  0x73   :  { %2010 = vmatpush1.bf16.msra.mxu1 %v3022_v62  ;;  %v3118_v62 = vld [vmem:[%s4308_s1 + $0x2a4] ss:$8 sps:$4 sm:$0xff]  }
  0x74   :  { %2214 = vmatpush1.bf16.msra.mxu0 %v3025_v63  ;;  %2011 = vmatprep.subr.bf16.mxu1 %v3030_v0  ;;  %v3121_v63 = vld [vmem:[%s4308_s1 + $0x6a4] ss:$8 sps:$4 sm:$0xff]   ;;  %v3116_v0 = vld [vmem:[%s4308_s1 + $0x2a0] ss:$8 sps:$4 sm:$0xff]  }
  0x75   :  { %2215 = vmatprep.subr.bf16.mxu0 %v3033_v1  ;;  %v3119_v1 = vld [vmem:[%s4308_s1 + $0x6a0] ss:$8 sps:$4 sm:$0xff]  }
  0x77   :  { %2012 = vmatpush1.bf16.msra.mxu1 %v3028_v2  ;;  %v3124_v2 = vld [vmem:[%s4308_s1 + $0x2b4] ss:$8 sps:$4 sm:$0xff]  }
  0x78   :  { %2216 = vmatpush1.bf16.msra.mxu0 %v3031_v3  ;;  %2013 = vmatprep.subr.bf16.mxu1 %v3037_v4  ;;  %v3127_v3 = vld [vmem:[%s4308_s1 + $0x6b4] ss:$8 sps:$4 sm:$0xff]   ;;  %v3122_v4 = vld [vmem:[%s4308_s1 + $0x2b0] ss:$8 sps:$4 sm:$0xff]  }
  0x79   :  { %2217 = vmatprep.subr.bf16.mxu0 %v3041_v5  ;;  %v3125_v5 = vld [vmem:[%s4308_s1 + $0x6b0] ss:$8 sps:$4 sm:$0xff]  }
  0x7b   :  { %2014 = vmatpush1.bf16.msra.mxu1 %v3035_v6  ;;  %v3130_v6 = vld [vmem:[%s4308_s1 + $0x2c4] ss:$8 sps:$4 sm:$0xff]  }
  0x7c   :  { %2218 = vmatpush1.bf16.msra.mxu0 %v3039_v7  ;;  %2015 = vmatprep.subr.bf16.mxu1 %v3046_v8  ;;  %v3133_v7 = vld [vmem:[%s4308_s1 + $0x6c4] ss:$8 sps:$4 sm:$0xff]   ;;  %v3128_v8 = vld [vmem:[%s4308_s1 + $0x2c0] ss:$8 sps:$4 sm:$0xff]  }
  0x7d   :  { %2219 = vmatprep.subr.bf16.mxu0 %v3049_v9  ;;  %v3131_v9 = vld [vmem:[%s4308_s1 + $0x6c0] ss:$8 sps:$4 sm:$0xff]  }
  0x7f   :  { %2016 = vmatpush1.bf16.msra.mxu1 %v3044_v10  ;;  %v3136_v10 = vld [vmem:[%s4308_s1 + $0x2d4] ss:$8 sps:$4 sm:$0xff]  }
  0x80   :  { %2220 = vmatpush1.bf16.msra.mxu0 %v3047_v11  ;;  %2036 = vmatprep.subr.bf16.mxu1 %v3055_v13  ;;  %v3139_v11 = vld [vmem:[%s4308_s1 + $0x6d4] ss:$8 sps:$4 sm:$0xff]   ;;  %v3137_v13 = vld [vmem:[%s4308_s1 + $0x6d0] ss:$8 sps:$4 sm:$0xff]  }
  0x81   :  { %2240 = vmatprep.subr.bf16.mxu0 %v3061_v14  ;;  %v3143_v14 = vld [vmem:[%s4308_s1 + $0x2e4] ss:$8 sps:$4 sm:$0xff]  }
  0x82   :  { %2018 = vmatmul.mubr.bf16.vlgmr.msra.gmra.mrb[0].mxu1 %v3050_v12  ;;  %v3134_v12 = vld [vmem:[%s4308_s1 + $0x2d0] ss:$8 sps:$4 sm:$0xff]  }
  0x83   :  { %2222 = vmatmul.mubr.bf16.vlgmr.msra.gmra.mrb[0].mxu0 %v3056_v16  ;;  %2037 = vmatpush1.bf16.msra.mxu1 %v3053_v15  ;;  %v3147_v15 = vld [vmem:[%s4308_s1 + $0x6e4] ss:$8 sps:$4 sm:$0xff]   ;;  %v3141_v16 = vld [vmem:[%s4308_s1 + $0x2e0] ss:$8 sps:$4 sm:$0xff]  }
  0x84   :  { %2241 = vmatpush1.bf16.msra.mxu0 %v3059_v17  ;;  %2038 = vmatprep.subr.bf16.mxu1 %v3064_v18  ;;  %v3145_v17 = vld [vmem:[%s4308_s1 + $0x6e0] ss:$8 sps:$4 sm:$0xff]   ;;  %v3152_v18 = vld [vmem:[%s4308_s1 + $0x2f4] ss:$8 sps:$4 sm:$0xff]  }
  0x85   :  { %2242 = vmatprep.subr.bf16.mxu0 %v3067_v20  ;;  %2027 = vmatprep.mubr.bf16.mxu1 %v2441_v21  ;;  %v3150_v20 = vld [vmem:[%s4308_s1 + $0x2f0] ss:$8 sps:$4 sm:$0xff]  }
  0x86   :  { %2231 = vmatprep.mubr.bf16.mxu0 %v2449_v25  ;;  %v3153_v21 = vld [vmem:[%s4308_s1 + $0x6f0] ss:$8 sps:$4 sm:$0xff]   ;;  %v3159_v25 = vld [vmem:[%s4308_s1 + $0x300] ss:$8 sps:$4 sm:$0xff]  }
  0x87   :  { %2039 = vmatpush1.bf16.msra.mxu1 %v3062_v23  ;;  %v3156_v23 = vld [vmem:[%s4309_s0 + $0x10] ss:$72 sps:$4 sm:$0xff]  }
  0x88   :  { %2243 = vmatpush1.bf16.msra.mxu0 %v3065_v24  ;;  %2040 = vmatprep.subr.bf16.mxu1 %v3070_v26  ;;  %v3167_v24 = vld [vmem:[%s4308_s1 + $0x704] ss:$8 sps:$4 sm:$0xff]   ;;  %v3162_v26 = vld [vmem:[%s4309_s0 + $0x30] ss:$72 sps:$4 sm:$0xff]  }
  0x89   :  { %2244 = vmatprep.subr.bf16.mxu0 %v3073_v27  ;;  %v3165_v27 = vld [vmem:[%s4308_s1 + $0x700] ss:$8 sps:$4 sm:$0xff]  }
  0x8a   :  { %2028 = vmatmul.mubr.bf16.gmra.mrb[4].mxu1 %v2440_v30  ;;  %v3170_v30 = vld [vmem:[%s4308_s1 + $0x314] ss:$8 sps:$4 sm:$0xff]  }
  0x8b   :  { %2232 = vmatmul.mubr.bf16.gmra.mrb[4].mxu0 %v2448_v31  ;;  %2041 = vmatpush1.bf16.msra.mxu1 %v3068_v28  ;;  %v34_v28 = vld [vmem:[%s4309_s0 + $0xa0] sm:$0x11]  ;;  %v3173_v31 = vld [vmem:[%s4308_s1 + $0x714] ss:$8 sps:$4 sm:$0xff]  }
  0x8c   :  { %2245 = vmatpush1.bf16.msra.mxu0 %v3071_v29  ;;  %2042 = vmatprep.subr.bf16.mxu1 %v3076_v32  ;;  %v38_v29 = vld [vmem:[%s4309_s0 + $0xc0] sm:$0x11]  ;;  %v2443_v32 = vcombine.high %v34_v28, %v34_v28 }
  0x8d   :  { %2246 = vmatprep.subr.bf16.mxu0 %v3079_v33  ;;  %2068 = vmatprep.mubr.bf16.mxu1 %v3158_v34  ;;  %v2451_v33 = vcombine.high %v38_v29, %v38_v29  ;;  %v3168_v34 = vld [vmem:[%s4308_s1 + $0x310] ss:$8 sps:$4 sm:$0xff]  }
  0x8e   :  { %2272 = vmatprep.mubr.bf16.mxu0 %v3164_v35  ;;  %v3171_v35 = vld [vmem:[%s4308_s1 + $0x710] ss:$8 sps:$4 sm:$0xff]  }
  0x8f   :  { %2043 = vmatpush1.bf16.msra.mxu1 %v3074_v36  ;;  %v3176_v36 = vld [vmem:[%s4308_s1 + $0x324] ss:$8 sps:$4 sm:$0xff]  }
  0x90   :  { %2247 = vmatpush1.bf16.msra.mxu0 %v3077_v37  ;;  %2044 = vmatprep.subr.bf16.mxu1 %v3082_v38  ;;  %v3179_v37 = vld [vmem:[%s4308_s1 + $0x724] ss:$8 sps:$4 sm:$0xff]   ;;  %v3174_v38 = vld [vmem:[%s4308_s1 + $0x320] ss:$8 sps:$4 sm:$0xff]  }
  0x91   :  { %2248 = vmatprep.subr.bf16.mxu0 %v3085_v39  ;;  %v3177_v39 = vld [vmem:[%s4308_s1 + $0x720] ss:$8 sps:$4 sm:$0xff]  }
  0x93   :  { %2045 = vmatpush1.bf16.msra.mxu1 %v3080_v40  ;;  %v2442_v40 = vcombine.low %v34_v28, %v34_v28  ;;  %v3258_v28 = vld [vmem:[%s4308_s1 + $0x3f4] ss:$8 sps:$4 sm:$0xff]  }
  0x94   :  { %2249 = vmatpush1.bf16.msra.mxu0 %v3083_v41  ;;  %2046 = vmatprep.subr.bf16.mxu1 %v3088_v42  ;;  %v2450_v41 = vcombine.low %v38_v29, %v38_v29  ;;  %v3182_v42 = vld [vmem:[%s4308_s1 + $0x334] ss:$8 sps:$4 sm:$0xff]  }
  0x95   :  { %2250 = vmatprep.subr.bf16.mxu0 %v3091_v43  ;;  %v3185_v43 = vld [vmem:[%s4308_s1 + $0x734] ss:$8 sps:$4 sm:$0xff]  }
  0x96   :  { %v3261_v29 = vld [vmem:[%s4308_s1 + $0x7f4] ss:$8 sps:$4 sm:$0xff]  }
  0x97   :  { %2047 = vmatpush1.bf16.msra.mxu1 %v3086_v44  ;;  %v3264_v44 = vld [vmem:[%s4309_s0 + $0x1c] ss:$72 sps:$4 sm:$0xff]  }
  0x98   :  { %2251 = vmatpush1.bf16.msra.mxu0 %v3089_v45  ;;  %2048 = vmatprep.subr.bf16.mxu1 %v3094_v46  ;;  %v3267_v45 = vld [vmem:[%s4309_s0 + $0x3c] ss:$72 sps:$4 sm:$0xff]   ;;  %v3180_v46 = vld [vmem:[%s4308_s1 + $0x330] ss:$8 sps:$4 sm:$0xff]  }
  0x99   :  { %2252 = vmatprep.subr.bf16.mxu0 %v3097_v47  ;;  %v3183_v47 = vld [vmem:[%s4308_s1 + $0x730] ss:$8 sps:$4 sm:$0xff]  }
  0x9b   :  { %2049 = vmatpush1.bf16.msra.mxu1 %v3092_v48  ;;  %v3188_v48 = vld [vmem:[%s4308_s1 + $0x344] ss:$8 sps:$4 sm:$0xff]  }
  0x9c   :  { %2253 = vmatpush1.bf16.msra.mxu0 %v3095_v49  ;;  %2050 = vmatprep.subr.bf16.mxu1 %v3100_v50  ;;  %v3191_v49 = vld [vmem:[%s4308_s1 + $0x744] ss:$8 sps:$4 sm:$0xff]   ;;  %v3186_v50 = vld [vmem:[%s4308_s1 + $0x340] ss:$8 sps:$4 sm:$0xff]  }
  0x9d   :  { %2254 = vmatprep.subr.bf16.mxu0 %v3103_v51  ;;  %v3189_v51 = vld [vmem:[%s4308_s1 + $0x740] ss:$8 sps:$4 sm:$0xff]  }
  0x9f   :  { %2051 = vmatpush1.bf16.msra.mxu1 %v3098_v52  ;;  %v3194_v52 = vld [vmem:[%s4308_s1 + $0x354] ss:$8 sps:$4 sm:$0xff]  }
  0xa0   :  { %2255 = vmatpush1.bf16.msra.mxu0 %v3101_v53  ;;  %2052 = vmatprep.subr.bf16.mxu1 %v3106_v54  ;;  %v3197_v53 = vld [vmem:[%s4308_s1 + $0x754] ss:$8 sps:$4 sm:$0xff]   ;;  %v3192_v54 = vld [vmem:[%s4308_s1 + $0x350] ss:$8 sps:$4 sm:$0xff]  }
  0xa1   :  { %2256 = vmatprep.subr.bf16.mxu0 %v3109_v55  ;;  %v3195_v55 = vld [vmem:[%s4308_s1 + $0x750] ss:$8 sps:$4 sm:$0xff]  }
  0xa3   :  { %2053 = vmatpush1.bf16.msra.mxu1 %v3104_v56  ;;  %v3200_v56 = vld [vmem:[%s4308_s1 + $0x364] ss:$8 sps:$4 sm:$0xff]  }
  0xa4   :  { %2257 = vmatpush1.bf16.msra.mxu0 %v3107_v57  ;;  %2054 = vmatprep.subr.bf16.mxu1 %v3112_v58  ;;  %v3203_v57 = vld [vmem:[%s4308_s1 + $0x764] ss:$8 sps:$4 sm:$0xff]   ;;  %v3198_v58 = vld [vmem:[%s4308_s1 + $0x360] ss:$8 sps:$4 sm:$0xff]  }
  0xa5   :  { %2258 = vmatprep.subr.bf16.mxu0 %v3115_v59  ;;  %v3201_v59 = vld [vmem:[%s4308_s1 + $0x760] ss:$8 sps:$4 sm:$0xff]  }
  0xa7   :  { %2055 = vmatpush1.bf16.msra.mxu1 %v3110_v60  ;;  %v3206_v60 = vld [vmem:[%s4308_s1 + $0x374] ss:$8 sps:$4 sm:$0xff]  }
  0xa8   :  { %2259 = vmatpush1.bf16.msra.mxu0 %v3113_v61  ;;  %2056 = vmatprep.subr.bf16.mxu1 %v3118_v62  ;;  %v3209_v61 = vld [vmem:[%s4308_s1 + $0x774] ss:$8 sps:$4 sm:$0xff]   ;;  %v3204_v62 = vld [vmem:[%s4308_s1 + $0x370] ss:$8 sps:$4 sm:$0xff]  }
  0xa9   :  { %2260 = vmatprep.subr.bf16.mxu0 %v3121_v63  ;;  %v3207_v63 = vld [vmem:[%s4308_s1 + $0x770] ss:$8 sps:$4 sm:$0xff]  }
  0xab   :  { %2057 = vmatpush1.bf16.msra.mxu1 %v3116_v0  ;;  %v3212_v0 = vld [vmem:[%s4308_s1 + $0x384] ss:$8 sps:$4 sm:$0xff]  }
  0xac   :  { %2261 = vmatpush1.bf16.msra.mxu0 %v3119_v1  ;;  %2058 = vmatprep.subr.bf16.mxu1 %v3124_v2  ;;  %v3215_v1 = vld [vmem:[%s4308_s1 + $0x784] ss:$8 sps:$4 sm:$0xff]   ;;  %v3210_v2 = vld [vmem:[%s4308_s1 + $0x380] ss:$8 sps:$4 sm:$0xff]  }
  0xad   :  { %2262 = vmatprep.subr.bf16.mxu0 %v3127_v3  ;;  %v3213_v3 = vld [vmem:[%s4308_s1 + $0x780] ss:$8 sps:$4 sm:$0xff]  }
  0xaf   :  { %2059 = vmatpush1.bf16.msra.mxu1 %v3122_v4  ;;  %v3218_v4 = vld [vmem:[%s4308_s1 + $0x394] ss:$8 sps:$4 sm:$0xff]  }
  0xb0   :  { %2263 = vmatpush1.bf16.msra.mxu0 %v3125_v5  ;;  %2060 = vmatprep.subr.bf16.mxu1 %v3130_v6  ;;  %v3221_v5 = vld [vmem:[%s4308_s1 + $0x794] ss:$8 sps:$4 sm:$0xff]   ;;  %v3216_v6 = vld [vmem:[%s4308_s1 + $0x390] ss:$8 sps:$4 sm:$0xff]  }
  0xb1   :  { %2264 = vmatprep.subr.bf16.mxu0 %v3133_v7  ;;  %v3219_v7 = vld [vmem:[%s4308_s1 + $0x790] ss:$8 sps:$4 sm:$0xff]  }
  0xb3   :  { %2061 = vmatpush1.bf16.msra.mxu1 %v3128_v8  ;;  %v3224_v8 = vld [vmem:[%s4308_s1 + $0x3a4] ss:$8 sps:$4 sm:$0xff]  }
  0xb4   :  { %2265 = vmatpush1.bf16.msra.mxu0 %v3131_v9  ;;  %2062 = vmatprep.subr.bf16.mxu1 %v3136_v10  ;;  %v3227_v9 = vld [vmem:[%s4308_s1 + $0x7a4] ss:$8 sps:$4 sm:$0xff]   ;;  %v3222_v10 = vld [vmem:[%s4308_s1 + $0x3a0] ss:$8 sps:$4 sm:$0xff]  }
  0xb5   :  { %2266 = vmatprep.subr.bf16.mxu0 %v3139_v11  ;;  %v3225_v11 = vld [vmem:[%s4308_s1 + $0x7a0] ss:$8 sps:$4 sm:$0xff]  }
  0xb7   :  { %2063 = vmatpush1.bf16.msra.mxu1 %v3134_v12  ;;  %v3230_v12 = vld [vmem:[%s4308_s1 + $0x3b4] ss:$8 sps:$4 sm:$0xff]  }
  0xb8   :  { %2267 = vmatpush1.bf16.msra.mxu0 %v3137_v13  ;;  %2064 = vmatprep.subr.bf16.mxu1 %v3143_v14  ;;  %v3233_v13 = vld [vmem:[%s4308_s1 + $0x7b4] ss:$8 sps:$4 sm:$0xff]   ;;  %v3228_v14 = vld [vmem:[%s4308_s1 + $0x3b0] ss:$8 sps:$4 sm:$0xff]  }
  0xb9   :  { %2268 = vmatprep.subr.bf16.mxu0 %v3147_v15  ;;  %v3231_v15 = vld [vmem:[%s4308_s1 + $0x7b0] ss:$8 sps:$4 sm:$0xff]  }
  0xbb   :  { %2065 = vmatpush1.bf16.msra.mxu1 %v3141_v16  ;;  %v3236_v16 = vld [vmem:[%s4308_s1 + $0x3c4] ss:$8 sps:$4 sm:$0xff]  }
  0xbc   :  { %2269 = vmatpush1.bf16.msra.mxu0 %v3145_v17  ;;  %2066 = vmatprep.subr.bf16.mxu1 %v3152_v18  ;;  %v3239_v17 = vld [vmem:[%s4308_s1 + $0x7c4] ss:$8 sps:$4 sm:$0xff]   ;;  %v3234_v18 = vld [vmem:[%s4308_s1 + $0x3c0] ss:$8 sps:$4 sm:$0xff]  }
  0xbd   :  { %2270 = vmatprep.subr.bf16.mxu0 %v3155_v19  ;;  %v3237_v19 = vld [vmem:[%s4308_s1 + $0x7c0] ss:$8 sps:$4 sm:$0xff]  }
  0xbf   :  { %2067 = vmatpush1.bf16.msra.mxu1 %v3150_v20  ;;  %v3242_v20 = vld [vmem:[%s4308_s1 + $0x3d4] ss:$8 sps:$4 sm:$0xff]  }
  0xc0   :  { %2271 = vmatpush1.bf16.msra.mxu0 %v3153_v21  ;;  %2087 = vmatprep.subr.bf16.mxu1 %v3161_v22  ;;  %v3245_v21 = vld [vmem:[%s4308_s1 + $0x7d4] ss:$8 sps:$4 sm:$0xff]   ;;  %v3240_v22 = vld [vmem:[%s4308_s1 + $0x3d0] ss:$8 sps:$4 sm:$0xff]  }
  0xc1   :  { %2291 = vmatprep.subr.bf16.mxu0 %v3167_v24  ;;  %v3251_v24 = vld [vmem:[%s4308_s1 + $0x3e4] ss:$8 sps:$4 sm:$0xff]  }
  0xc2   :  { %2069 = vmatmul.mubr.bf16.vlgmr.msra.gmra.mrb[0].mxu1 %v3156_v23  ;;  %v3243_v23 = vld [vmem:[%s4308_s1 + $0x7d0] ss:$8 sps:$4 sm:$0xff]  }
  0xc3   :  { %2273 = vmatmul.mubr.bf16.vlgmr.msra.gmra.mrb[0].mxu0 %v3162_v26  ;;  %2088 = vmatpush1.bf16.msra.mxu1 %v3159_v25  ;;  %v3255_v25 = vld [vmem:[%s4308_s1 + $0x7e4] ss:$8 sps:$4 sm:$0xff]   ;;  %v3249_v26 = vld [vmem:[%s4308_s1 + $0x3e0] ss:$8 sps:$4 sm:$0xff]  }
  0xc4   :  { %2292 = vmatpush1.bf16.msra.mxu0 %v3165_v27  ;;  %2089 = vmatprep.subr.bf16.mxu1 %v3170_v30  ;;  %v3253_v27 = vld [vmem:[%s4308_s1 + $0x7e0] ss:$8 sps:$4 sm:$0xff]   ;;  %v3256_v30 = vld [vmem:[%s4308_s1 + $0x3f0] ss:$8 sps:$4 sm:$0xff]  }
  0xc5   :  { %2293 = vmatprep.subr.bf16.mxu0 %v3173_v31  ;;  %2078 = vmatprep.mubr.bf16.mxu1 %v2443_v32  ;;  %v3259_v31 = vld [vmem:[%s4308_s1 + $0x7f0] ss:$8 sps:$4 sm:$0xff]   ;;  %v3270_v32 = vld [vmem:[%s4308_s1 + $0x804] ss:$8 sps:$4 sm:$0xff]  }
  0xc6   :  { %2282 = vmatprep.mubr.bf16.mxu0 %v2451_v33  ;;  %v3262_v33 = vld [vmem:[%s4309_s0 + $0x18] ss:$72 sps:$4 sm:$0xff]  }
  0xc7   :  { %2090 = vmatpush1.bf16.msra.mxu1 %v3168_v34  ;;  %v3265_v34 = vld [vmem:[%s4309_s0 + $0x38] ss:$72 sps:$4 sm:$0xff]  }
  0xc8   :  { %2294 = vmatpush1.bf16.msra.mxu0 %v3171_v35  ;;  %2091 = vmatprep.subr.bf16.mxu1 %v3176_v36  ;;  %v35_v35 = vld [vmem:[%s4309_s0 + $0xa8] sm:$0x11] }
  0xc9   :  { %2295 = vmatprep.subr.bf16.mxu0 %v3179_v37  ;;  %v39_v36 = vld [vmem:[%s4309_s0 + $0xc8] sm:$0x11] }
  0xca   :  { %2079 = vmatmul.mubr.bf16.gmra.mrb[4].mxu1 %v2442_v40  ;;  %v3268_v37 = vld [vmem:[%s4308_s1 + $0x800] ss:$8 sps:$4 sm:$0xff]   ;;  %v2453_v40 = vcombine.high %v39_v36, %v39_v36 }
  0xcb   :  { %2283 = vmatmul.mubr.bf16.gmra.mrb[4].mxu0 %v2450_v41  ;;  %2092 = vmatpush1.bf16.msra.mxu1 %v3174_v38  ;;  %v3273_v38 = vld [vmem:[%s4308_s1 + $0x814] ss:$8 sps:$4 sm:$0xff]   ;;  %v3271_v41 = vld [vmem:[%s4308_s1 + $0x810] ss:$8 sps:$4 sm:$0xff]  }
  0xcc   :  { %2296 = vmatpush1.bf16.msra.mxu0 %v3177_v39  ;;  %2093 = vmatprep.subr.bf16.mxu1 %v3182_v42  ;;  %v2445_v39 = vcombine.high %v35_v35, %v35_v35  ;;  %v3280_v42 = vld [vmem:[%s4308_s1 + $0x824] ss:$8 sps:$4 sm:$0xff]  }
  0xcd   :  { %2297 = vmatprep.subr.bf16.mxu0 %v3185_v43  ;;  %2119 = vmatprep.mubr.bf16.mxu1 %v3264_v44  ;;  %v2444_v43 = vcombine.low %v35_v35, %v35_v35  ;;  %v2452_v44 = vcombine.low %v39_v36, %v39_v36 }
  0xce   :  { %2323 = vmatprep.mubr.bf16.mxu0 %v3267_v45  ;;  %v4203_v45 = vld [vmem:[%s4309_s0 + $0xd0] sm:$0x11] }
  0xcf   :  { %2094 = vmatpush1.bf16.msra.mxu1 %v3180_v46  ;;  %v3278_v46 = vld [vmem:[%s4308_s1 + $0x820] ss:$8 sps:$4 sm:$0xff]  }
  0xd0   :  { %2298 = vmatpush1.bf16.msra.mxu0 %v3183_v47  ;;  %2095 = vmatprep.subr.bf16.mxu1 %v3188_v48  ;;  %v3283_v47 = vld [vmem:[%s4308_s1 + $0x834] ss:$8 sps:$4 sm:$0xff]   ;;  %v3322_v48 = vld [vmem:[%s4309_s0 + $0x44] ss:$72 sps:$4 sm:$0xff]  }
  0xd1   :  { %2299 = vmatprep.subr.bf16.mxu0 %v3191_v49  ;;  %v2455_v49 = vcombine.high %v4203_v45, %v4203_v45 }
  0xd3   :  { %2096 = vmatpush1.bf16.msra.mxu1 %v3186_v50  ;;  %v3281_v50 = vld [vmem:[%s4308_s1 + $0x830] ss:$8 sps:$4 sm:$0xff]  }
  0xd4   :  { %2300 = vmatpush1.bf16.msra.mxu0 %v3189_v51  ;;  %2097 = vmatprep.subr.bf16.mxu1 %v3194_v52  ;;  %v3286_v51 = vld [vmem:[%s4308_s1 + $0x844] ss:$8 sps:$4 sm:$0xff]   ;;  %v3284_v52 = vld [vmem:[%s4308_s1 + $0x840] ss:$8 sps:$4 sm:$0xff]  }
  0xd5   :  { %2301 = vmatprep.subr.bf16.mxu0 %v3197_v53  ;;  %v3289_v53 = vld [vmem:[%s4308_s1 + $0x854] ss:$8 sps:$4 sm:$0xff]  }
  0xd7   :  { %2098 = vmatpush1.bf16.msra.mxu1 %v3192_v54  ;;  %v3287_v54 = vld [vmem:[%s4308_s1 + $0x850] ss:$8 sps:$4 sm:$0xff]  }
  0xd8   :  { %2302 = vmatpush1.bf16.msra.mxu0 %v3195_v55  ;;  %2099 = vmatprep.subr.bf16.mxu1 %v3200_v56  ;;  %v3292_v55 = vld [vmem:[%s4308_s1 + $0x864] ss:$8 sps:$4 sm:$0xff]   ;;  %v3290_v56 = vld [vmem:[%s4308_s1 + $0x860] ss:$8 sps:$4 sm:$0xff]  }
  0xd9   :  { %2303 = vmatprep.subr.bf16.mxu0 %v3203_v57  ;;  %v3295_v57 = vld [vmem:[%s4308_s1 + $0x874] ss:$8 sps:$4 sm:$0xff]  }
  0xdb   :  { %2100 = vmatpush1.bf16.msra.mxu1 %v3198_v58  ;;  %v3293_v58 = vld [vmem:[%s4308_s1 + $0x870] ss:$8 sps:$4 sm:$0xff]  }
  0xdc   :  { %2304 = vmatpush1.bf16.msra.mxu0 %v3201_v59  ;;  %2101 = vmatprep.subr.bf16.mxu1 %v3206_v60  ;;  %v3298_v59 = vld [vmem:[%s4308_s1 + $0x884] ss:$8 sps:$4 sm:$0xff]   ;;  %v3296_v60 = vld [vmem:[%s4308_s1 + $0x880] ss:$8 sps:$4 sm:$0xff]  }
  0xdd   :  { %2305 = vmatprep.subr.bf16.mxu0 %v3209_v61  ;;  %v3301_v61 = vld [vmem:[%s4308_s1 + $0x894] ss:$8 sps:$4 sm:$0xff]  }
  0xdf   :  { %2102 = vmatpush1.bf16.msra.mxu1 %v3204_v62  ;;  %v3299_v62 = vld [vmem:[%s4308_s1 + $0x890] ss:$8 sps:$4 sm:$0xff]  }
  0xe0   :  { %2306 = vmatpush1.bf16.msra.mxu0 %v3207_v63  ;;  %2103 = vmatprep.subr.bf16.mxu1 %v3212_v0  ;;  %v3304_v63 = vld [vmem:[%s4308_s1 + $0x8a4] ss:$8 sps:$4 sm:$0xff]   ;;  %v3302_v0 = vld [vmem:[%s4308_s1 + $0x8a0] ss:$8 sps:$4 sm:$0xff]  }
  0xe1   :  { %2307 = vmatprep.subr.bf16.mxu0 %v3215_v1  ;;  %v3307_v1 = vld [vmem:[%s4308_s1 + $0x8b4] ss:$8 sps:$4 sm:$0xff]  }
  0xe3   :  { %2104 = vmatpush1.bf16.msra.mxu1 %v3210_v2  ;;  %v3305_v2 = vld [vmem:[%s4308_s1 + $0x8b0] ss:$8 sps:$4 sm:$0xff]  }
  0xe4   :  { %2308 = vmatpush1.bf16.msra.mxu0 %v3213_v3  ;;  %2105 = vmatprep.subr.bf16.mxu1 %v3218_v4  ;;  %v3310_v3 = vld [vmem:[%s4308_s1 + $0x8c4] ss:$8 sps:$4 sm:$0xff]   ;;  %v3308_v4 = vld [vmem:[%s4308_s1 + $0x8c0] ss:$8 sps:$4 sm:$0xff]  }
  0xe5   :  { %2309 = vmatprep.subr.bf16.mxu0 %v3221_v5  ;;  %v3313_v5 = vld [vmem:[%s4308_s1 + $0x8d4] ss:$8 sps:$4 sm:$0xff]  }
  0xe7   :  { %2106 = vmatpush1.bf16.msra.mxu1 %v3216_v6  ;;  %v3311_v6 = vld [vmem:[%s4308_s1 + $0x8d0] ss:$8 sps:$4 sm:$0xff]  }
  0xe8   :  { %2310 = vmatpush1.bf16.msra.mxu0 %v3219_v7  ;;  %2107 = vmatprep.subr.bf16.mxu1 %v3224_v8  ;;  %v3316_v7 = vld [vmem:[%s4308_s1 + $0x8e4] ss:$8 sps:$4 sm:$0xff]   ;;  %v3314_v8 = vld [vmem:[%s4308_s1 + $0x8e0] ss:$8 sps:$4 sm:$0xff]  }
  0xe9   :  { %2311 = vmatprep.subr.bf16.mxu0 %v3227_v9  ;;  %v3319_v9 = vld [vmem:[%s4308_s1 + $0x8f4] ss:$8 sps:$4 sm:$0xff]  }
  0xeb   :  { %2108 = vmatpush1.bf16.msra.mxu1 %v3222_v10  ;;  %v3317_v10 = vld [vmem:[%s4308_s1 + $0x8f0] ss:$8 sps:$4 sm:$0xff]  }
  0xec   :  { %2312 = vmatpush1.bf16.msra.mxu0 %v3225_v11  ;;  %2109 = vmatprep.subr.bf16.mxu1 %v3230_v12  ;;  %v3320_v11 = vld [vmem:[%s4309_s0 + $0x40] ss:$72 sps:$4 sm:$0xff]   ;;  %v2454_v12 = vcombine.low %v4203_v45, %v4203_v45 }
  0xed   :  { %2313 = vmatprep.subr.bf16.mxu0 %v3233_v13  ;;  %v331_v13 = vlaneseq }
  0xef   :  { %2110 = vmatpush1.bf16.msra.mxu1 %v3228_v14  ;;  %v332_v14 = vshrl.u32 %v331_v13, 7 }
  0xf0   :  { %2314 = vmatpush1.bf16.msra.mxu0 %v3231_v15  ;;  %2111 = vmatprep.subr.bf16.mxu1 %v3236_v16 }
  0xf1   :  { %2315 = vmatprep.subr.bf16.mxu0 %v3239_v17 }
  0xf3   :  { %2112 = vmatpush1.bf16.msra.mxu1 %v3234_v18  ;;  %v333_v18 = vsub.s32 0, %v332_v14 }
  0xf4   :  { %2316 = vmatpush1.bf16.msra.mxu0 %v3237_v19  ;;  %2113 = vmatprep.subr.bf16.mxu1 %v3242_v20  ;;  %v329_v20 = vld [vmem:[%s4310_s2] sm:$0x3] }
  0xf5   :  { %2317 = vmatprep.subr.bf16.mxu0 %v3245_v21  ;;  %v337_v21 = vsub.s32 1, %v332_v14 }
  0xf7   :  { %2114 = vmatpush1.bf16.msra.mxu1 %v3240_v22  ;;  %v334_v22 = vrot.slane %v329_v20, %v333_v18 }
  0xf8   :  { %2318 = vmatpush1.bf16.msra.mxu0 %v3243_v23  ;;  %2115 = vmatprep.subr.bf16.mxu1 %v3251_v24  ;;  %v338_v23 = vrot.slane %v329_v20, %v337_v21 }
  0xf9   :  { %2319 = vmatprep.subr.bf16.mxu0 %v3255_v25 }
  0xfb   :  { %2116 = vmatpush1.bf16.msra.mxu1 %v3249_v26 }
  0xfc   :  { %2320 = vmatpush1.bf16.msra.mxu0 %v3253_v27  ;;  %2117 = vmatprep.subr.bf16.mxu1 %v3258_v28 }
  0xfd   :  { %2321 = vmatprep.subr.bf16.mxu0 %v3261_v29 }
  0xff   :  { %2118 = vmatpush1.bf16.msra.mxu1 %v3256_v30 }
 0x100   :  { %2322 = vmatpush1.bf16.msra.mxu0 %v3259_v31  ;;  %2750 = vmatprep.subr.bf16.mxu1 %v3270_v32 }
 0x101   :  { %2342 = vmatprep.subr.bf16.mxu0 %v3270_v32 }
 0x102   :  { %2120 = vmatmul.mubr.bf16.vlgmr.msra.gmra.mrb[0].mxu1 %v3262_v33 }
 0x103   :  { %2324 = vmatmul.mubr.bf16.vlgmr.msra.gmra.mrb[0].mxu0 %v3265_v34  ;;  %2766 = vmatpush1.bf16.msra.mxu1 %v3268_v37 }
 0x104   :  { %2343 = vmatpush1.bf16.msra.mxu0 %v3268_v37  ;;  %2751 = vmatprep.subr.bf16.mxu1 %v3273_v38 }
 0x105   :  { %2344 = vmatprep.subr.bf16.mxu0 %v3273_v38  ;;  %2129 = vmatprep.mubr.bf16.mxu1 %v2445_v39 }
 0x106   :  { %2333 = vmatprep.mubr.bf16.mxu0 %v2453_v40 }
 0x107   :  { %2767 = vmatpush1.bf16.msra.mxu1 %v3271_v41 }
 0x108   :  { %2345 = vmatpush1.bf16.msra.mxu0 %v3271_v41  ;;  %2752 = vmatprep.subr.bf16.mxu1 %v3280_v42 }
 0x109   :  { %2346 = vmatprep.subr.bf16.mxu0 %v3280_v42 }
 0x10a   :  { %2130 = vmatmul.mubr.bf16.gmra.mrb[4].mxu1 %v2444_v43 }
 0x10b   :  { %2334 = vmatmul.mubr.bf16.gmra.mrb[4].mxu0 %v2452_v44  ;;  %2768 = vmatpush1.bf16.msra.mxu1 %v3278_v46 }
 0x10c   :  { %2347 = vmatpush1.bf16.msra.mxu0 %v3278_v46  ;;  %2753 = vmatprep.subr.bf16.mxu1 %v3283_v47 }
 0x10d   :  { %2348 = vmatprep.subr.bf16.mxu0 %v3283_v47  ;;  %2374 = vmatprep.mubr.bf16.mxu0 %v3322_v48 }
 0x10e   :  { %2384 = vmatprep.mubr.bf16.mxu1 %v2455_v49 }
 0x10f   :  { %2769 = vmatpush1.bf16.msra.mxu1 %v3281_v50 }
 0x110   :  { %2349 = vmatpush1.bf16.msra.mxu0 %v3281_v50  ;;  %2754 = vmatprep.subr.bf16.mxu1 %v3286_v51 }
 0x111   :  { %2350 = vmatprep.subr.bf16.mxu0 %v3286_v51 }
 0x113   :  { %2770 = vmatpush1.bf16.msra.mxu1 %v3284_v52 }
 0x114   :  { %2351 = vmatpush1.bf16.msra.mxu0 %v3284_v52  ;;  %2755 = vmatprep.subr.bf16.mxu1 %v3289_v53 }
 0x115   :  { %2352 = vmatprep.subr.bf16.mxu0 %v3289_v53 }
 0x117   :  { %2771 = vmatpush1.bf16.msra.mxu1 %v3287_v54 }
 0x118   :  { %2353 = vmatpush1.bf16.msra.mxu0 %v3287_v54  ;;  %2756 = vmatprep.subr.bf16.mxu1 %v3292_v55 }
 0x119   :  { %2354 = vmatprep.subr.bf16.mxu0 %v3292_v55 }
 0x11b   :  { %2772 = vmatpush1.bf16.msra.mxu1 %v3290_v56 }
 0x11c   :  { %2355 = vmatpush1.bf16.msra.mxu0 %v3290_v56  ;;  %2757 = vmatprep.subr.bf16.mxu1 %v3295_v57 }
 0x11d   :  { %2356 = vmatprep.subr.bf16.mxu0 %v3295_v57 }
 0x11f   :  { %2773 = vmatpush1.bf16.msra.mxu1 %v3293_v58 }
 0x120   :  { %2357 = vmatpush1.bf16.msra.mxu0 %v3293_v58  ;;  %2758 = vmatprep.subr.bf16.mxu1 %v3298_v59 }
 0x121   :  { %2358 = vmatprep.subr.bf16.mxu0 %v3298_v59 }
 0x123   :  { %2774 = vmatpush1.bf16.msra.mxu1 %v3296_v60 }
 0x124   :  { %2359 = vmatpush1.bf16.msra.mxu0 %v3296_v60  ;;  %2759 = vmatprep.subr.bf16.mxu1 %v3301_v61 }
 0x125   :  { %2360 = vmatprep.subr.bf16.mxu0 %v3301_v61 }
 0x127   :  { %2775 = vmatpush1.bf16.msra.mxu1 %v3299_v62 }
 0x128   :  { %2361 = vmatpush1.bf16.msra.mxu0 %v3299_v62  ;;  %2760 = vmatprep.subr.bf16.mxu1 %v3304_v63 }
 0x129   :  { %2362 = vmatprep.subr.bf16.mxu0 %v3304_v63 }
 0x12b   :  { %2776 = vmatpush1.bf16.msra.mxu1 %v3302_v0 }
 0x12c   :  { %2363 = vmatpush1.bf16.msra.mxu0 %v3302_v0  ;;  %2761 = vmatprep.subr.bf16.mxu1 %v3307_v1 }
 0x12d   :  { %2364 = vmatprep.subr.bf16.mxu0 %v3307_v1 }
 0x12f   :  { %2777 = vmatpush1.bf16.msra.mxu1 %v3305_v2 }
 0x130   :  { %2365 = vmatpush1.bf16.msra.mxu0 %v3305_v2  ;;  %2762 = vmatprep.subr.bf16.mxu1 %v3310_v3 }
 0x131   :  { %2366 = vmatprep.subr.bf16.mxu0 %v3310_v3 }
 0x133   :  { %2778 = vmatpush1.bf16.msra.mxu1 %v3308_v4 }
 0x134   :  { %2367 = vmatpush1.bf16.msra.mxu0 %v3308_v4  ;;  %2763 = vmatprep.subr.bf16.mxu1 %v3313_v5 }
 0x135   :  { %2368 = vmatprep.subr.bf16.mxu0 %v3313_v5 }
 0x137   :  { %2779 = vmatpush1.bf16.msra.mxu1 %v3311_v6 }
 0x138   :  { %2369 = vmatpush1.bf16.msra.mxu0 %v3311_v6  ;;  %2764 = vmatprep.subr.bf16.mxu1 %v3316_v7 }
 0x139   :  { %2370 = vmatprep.subr.bf16.mxu0 %v3316_v7 }
 0x13b   :  { %2780 = vmatpush1.bf16.msra.mxu1 %v3314_v8 }
 0x13c   :  { %2371 = vmatpush1.bf16.msra.mxu0 %v3314_v8  ;;  %2765 = vmatprep.subr.bf16.mxu1 %v3319_v9 }
 0x13d   :  { %2372 = vmatprep.subr.bf16.mxu0 %v3319_v9 }
 0x13f   :  { %2781 = vmatpush1.bf16.msra.mxu1 %v3317_v10 }
 0x140   :  { %2373 = vmatpush1.bf16.msra.mxu0 %v3317_v10 }
 0x142   :  { %2385 = vmatmul.mubr.bf16.vlgmr.msra.gmra.mrb[8].mxu1 %v2454_v12 }
 0x143   :  { %2375 = vmatmul.mubr.bf16.vlgmr.msra.gmra.mrb[0].mxu0 %v3320_v11 }
 0x1d5   :  { %v2121_v15 = vpop.f32.mrb[0].mxu1 }
 0x1d6   :  { %v2123_v16 = vpop.f32.mrb[1].mxu1  ;;  %v2782_v36 = vadd.f32 %v2121_v15, %v334_v22 }
 0x1d7   :  { %v2125_v17 = vpop.f32.mrb[2].mxu1  ;;  %v2784_v37 = vadd.f32 %v2123_v16, %v338_v23 }
 0x1d8   :  { %v2127_v19 = vpop.f32.mrb[3].mxu1  ;;  %v2786_v40 = vadd.f32 %v2125_v17, %v334_v22 }
 0x1d9   :  { %v2788_v45 = vadd.f32 %v2127_v19, %v338_v23 }
 0x1dd   :  { %v2131_v24 = vpop.f32.mrb[4].mxu1 }
 0x1de   :  { %v2335_v25 = vpop.f32.mrb[4].mxu0  ;;  %v2790_v26 = vadd.f32 %v2131_v24, %v334_v22  ;;  %v2133_v27 = vpop.f32.mrb[5].mxu1 }
 0x1df   :  { %v2337_v28 = vpop.f32.mrb[5].mxu0  ;;  %v2793_v29 = vadd.f32 %v2133_v27, %v338_v23  ;;  %v2135_v30 = vpop.f32.mrb[6].mxu1 }
 0x1e0   :  { %v2339_v31 = vpop.f32.mrb[6].mxu0  ;;  %v2791_v32 = vadd.f32 %v2790_v26, %v2335_v25  ;;  %v2136_v33 = vpop.f32.mrb[7].mxu1 }
 0x1e1   :  { %v2340_v34 = vpop.f32.mrb[7].mxu0  ;;  %v2794_v35 = vadd.f32 %v2793_v29, %v2337_v28 }
 0x215   :  { %v2386_v39 = vpop.f32.mrb[8].mxu1 }
 0x216   :  { %v2376_v38 = vpop.f32.mrb[0].mxu0  ;;  %v2792_v42 = vadd.f32 %v2791_v32, %v2386_v39  ;;  %v2388_v44 = vpop.f32.mrb[9].mxu1 }
 0x217   :  { %v2783_v41 = vadd.f32 %v2782_v36, %v2376_v38  ;;  %v2378_v43 = vpop.f32.mrb[1].mxu0  ;;  %v2795_v47 = vadd.f32 %v2794_v35, %v2388_v44  ;;  %v2390_v49 = vpop.f32.mrb[10].mxu1 }
 0x218   :  { %v2785_v46 = vadd.f32 %v2784_v37, %v2378_v43  ;;  %v2380_v48 = vpop.f32.mrb[2].mxu0  ;;  %v2391_v52 = vpop.f32.mrb[11].mxu1 }
 0x219   :  { %v2787_v50 = vadd.f32 %v2786_v40, %v2380_v48  ;;  %v2382_v51 = vpop.f32.mrb[3].mxu0  ;;  %v2749_v54 = vpack.c.bf16 %v2795_v47, %v2792_v42 }
 0x21a   :  { %v2747_v53 = vpack.c.bf16 %v2785_v46, %v2783_v41  ;;  %v2789_v55 = vadd.f32 %v2788_v45, %v2382_v51 }
 0x21b   :  { %2415 = vst [vmem:[%s4311_s3 + $0x10] sm:$0x11] %v2749_v54 }
 0x21c   :  { %2413 = vst [vmem:[%s4311_s3] sm:$0xff] %v2747_v53  ;;  %v2748_v56 = vpack.c.bf16 %v2789_v55, %v2787_v50 }
 0x21e   :  { %2414 = vst [vmem:[%s4311_s3 + $0x8] sm:$0xff] %v2748_v56 }

</bundles_post_ra>
